<compile_context>
chip_gen: v7x
topology: tpu7x:2x2x1
jax: 0.10.0
libtpu: 0.0.40
codegen_flags: <defaults>
</compile_context>

<pallas_src>
import jax
import jax.numpy as jnp
from jax.experimental import pallas as pl
from jax.experimental.pallas import tpu as pltpu


# ---------------------------------------------------------------------------
# Pallas kernel: one grid step = one tile of Bt batch elements.
# ---------------------------------------------------------------------------
def _attention_kernel(v_ref, q_ref, wv_ref, wq_ref, const_ref, bl_ref, out_ref):
    """
    v_ref    : (Bt*k, v_dim)     compute dtype (bf16)
    q_ref    : (Bt,   q_dim)     compute dtype (bf16)
    wv_ref   : (v_dim, num_hid)  compute dtype (bf16), VMEM-resident
    wq_ref   : (q_dim, num_hid)  compute dtype (bf16), VMEM-resident
    const_ref: (3, num_hid) f32  rows = [bv, bq, wl], VMEM-resident
    bl_ref   : (1, 1) f32        scalar bias of the 1-wide Linear (SMEM)
    out_ref  : (k, Bt) f32       softmax weights, batch on the 128-lane axis
    """
    k, bt = out_ref.shape
    num_hid = wv_ref.shape[1]

    bv = const_ref[0:1, :]                                    # (1, H)
    bq = const_ref[1:2, :]                                    # (1, H)
    wl = const_ref[2:3, :]                                    # (1, H)

    # NonLinearLayer(v): weight-normed Linear + ReLU  (MXU, f32 accumulation).
    vp = jnp.dot(v_ref[...], wv_ref[...], preferred_element_type=jnp.float32)
    vp = jnp.maximum(vp + bv, 0.0)                            # (Bt*k, H)

    # NonLinearLayer(q): one row per batch element.
    qp = jnp.dot(q_ref[...], wq_ref[...], preferred_element_type=jnp.float32)
    qp = jnp.maximum(qp + bq, 0.0)                            # (Bt, H)

    # Fold the 1-wide final Linear's weight into the q gate (VPU) so the
    # num_hid reduction below is an elementwise multiply + lane reduce instead
    # of an N=1 MXU matmul.
    qw = qp * wl                                              # (Bt, H)

    # joint_repr = v_proj * q_proj (q broadcast over the k candidates).
    # TODO(synk): nn.Dropout(0.1) is identity in eval mode; not applied here.
    joint = vp.reshape(bt, k, num_hid) * qw[:, None, :]       # (Bt, k, H)
    logits = jnp.sum(joint, axis=-1)                          # (Bt, k)

    # Put batch on lanes: dense (k, Bt) epilogue + unmasked output stores.
    logits = jnp.transpose(logits) + bl_ref[0, 0]             # (k, Bt)

    # Numerically stable softmax over the k candidates (sublane axis).
    m = jnp.max(logits, axis=0, keepdims=True)
    e = jnp.exp(logits - m)
    out_ref[...] = e / jnp.sum(e, axis=0, keepdims=True)


# ---------------------------------------------------------------------------
# Wrapper
# ---------------------------------------------------------------------------
def _choose_block_batch(requested, batch, k, v_dim, q_dim, budget_bytes=8 << 20):
    """Largest 128-multiple tile <= requested whose double-buffered per-step
    inputs/outputs stay within a conservative VMEM byte budget."""
    bt = max(128, (requested // 128) * 128)
    bt = min(bt, pl.cdiv(batch, 128) * 128)           # don't over-pad tiny batches
    per_row = (k * v_dim + q_dim) * 2 + k * 4         # bf16 inputs + f32 output
    while bt > 128 and 2 * bt * per_row > budget_bytes:
        bt -= 128
    return bt


def expr_parsing_attention(v, q, params, *, block_batch=256,
                           compute_dtype=jnp.bfloat16):
    """v: [batch, k, v_dim], q: [batch, q_dim] -> softmax weights [batch, k, 1]."""
    batch, k, v_dim = v.shape
    q_dim = q.shape[-1]
    num_hid = params["wv"].shape[1]

    bt = _choose_block_batch(block_batch, batch, k, v_dim, q_dim)
    num_blocks = pl.cdiv(batch, bt)
    batch_p = num_blocks * bt
    if batch_p != batch:
        v = jnp.pad(v, ((0, batch_p - batch), (0, 0), (0, 0)))
        q = jnp.pad(q, ((0, batch_p - batch), (0, 0)))

    v2 = v.reshape(batch_p * k, v_dim).astype(compute_dtype)   # (B*k, v_dim), free reshape
    q2 = q.astype(compute_dtype)                                # (B, q_dim)
    wv = params["wv"].astype(compute_dtype)
    wq = params["wq"].astype(compute_dtype)
    consts = jnp.concatenate(
        [params["bv"].reshape(1, num_hid),
         params["bq"].reshape(1, num_hid),
         params["wl"].reshape(1, num_hid)], axis=0).astype(jnp.float32)
    bl = params["bl"].reshape(1, 1).astype(jnp.float32)

    out_t = pl.pallas_call(
        _attention_kernel,
        out_shape=jax.ShapeDtypeStruct((k, batch_p), jnp.float32),
        grid_spec=pltpu.PrefetchScalarGridSpec(
            num_scalar_prefetch=0,
            grid=(num_blocks,),
            in_specs=[
                pl.BlockSpec((bt * k, v_dim), lambda b: (b, 0)),     # v (flattened)
                pl.BlockSpec((bt, q_dim), lambda b: (b, 0)),         # q
                # Constant index maps -> weights/constants stay VMEM-resident
                # across grid steps (no per-step re-DMA).
                pl.BlockSpec((v_dim, num_hid), lambda b: (0, 0)),    # Wv
                pl.BlockSpec((q_dim, num_hid), lambda b: (0, 0)),    # Wq
                pl.BlockSpec((3, num_hid), lambda b: (0, 0)),        # [bv; bq; wl]
                pl.BlockSpec(memory_space=pltpu.MemorySpace.SMEM),   # bl scalar
            ],
            out_specs=pl.BlockSpec((k, bt), lambda b: (0, b)),       # lane-dense
        ),
        compiler_params=pltpu.CompilerParams(
            dimension_semantics=("parallel",)),
    )(v2, q2, wv, wq, consts, bl)

    # (k, batch_p) -> (batch, k, 1): wrapper-side layout plumbing only.
    return jnp.transpose(out_t)[:batch].reshape(batch, k, 1)


# ---------------------------------------------------------------------------
# Parameter setup (glue): deterministic init + weight_norm(dim=None) resolution
# ---------------------------------------------------------------------------
def _weight_norm_dim_none(v_weight, g):
    # PyTorch weight_norm with dim=None: w = g * v / ||v||_F  (g is a scalar)
    return g * v_weight / jnp.sqrt(jnp.sum(v_weight ** 2))


def _linear_init(key, fan_in, fan_out):
    # mimic nn.Linear default init: U(-1/sqrt(fan_in), 1/sqrt(fan_in))
    kw, kb = jax.random.split(key)
    bound = 1.0 / (fan_in ** 0.5)
    w = jax.random.uniform(kw, (fan_in, fan_out), jnp.float32, -bound, bound)
    b = jax.random.uniform(kb, (1, fan_out), jnp.float32, -bound, bound)
    return w, b


def init_params(key, v_dim, q_dim, num_hid):
    # The PyTorch module declares the final Linear over q_dim but applies it to
    # a num_hid-wide joint representation -> it only runs when num_hid == q_dim.
    assert num_hid == q_dim, "ExprParsingAttention requires num_hid == q_dim"
    k1, k2, k3 = jax.random.split(key, 3)
    wv_v, bv = _linear_init(k1, v_dim, num_hid)
    wq_v, bq = _linear_init(k2, q_dim, num_hid)
    wl_v, bl = _linear_init(k3, num_hid, 1)
    # weight_norm: g initialised to ||v||_F (as in PyTorch)
    wv = _weight_norm_dim_none(wv_v, jnp.sqrt(jnp.sum(wv_v ** 2)))
    wq = _weight_norm_dim_none(wq_v, jnp.sqrt(jnp.sum(wq_v ** 2)))
    wl = _weight_norm_dim_none(wl_v, jnp.sqrt(jnp.sum(wl_v ** 2)))
    return {"wv": wv, "bv": bv, "wq": wq, "bq": bq, "wl": wl, "bl": bl}


# ---------------------------------------------------------------------------
# Pure-JAX reference for correctness check (f32 math)
# ---------------------------------------------------------------------------
def reference(v, q, params):
    hi = jax.lax.Precision.HIGHEST
    vp = jnp.maximum(
        jnp.einsum("bkd,dh->bkh", v, params["wv"], precision=hi) + params["bv"], 0.0)
    qp = jnp.maximum(
        jnp.einsum("bd,dh->bh", q, params["wq"], precision=hi) + params["bq"], 0.0)
    joint = vp * qp[:, None, :]
    logits = jnp.einsum("bkh,ho->bko", joint, params["wl"], precision=hi) + params["bl"]
    return jax.nn.softmax(logits, axis=1)


if __name__ == "__main__":
    batch, k, v_dim = 500, 8, 16          # 500 -> padded to 2 tiles of 256
    q_dim = num_hid = 32                  # module's Linear(q_dim, 1) => num_hid == q_dim

    key = jax.random.PRNGKey(0)
    kv, kq, kp = jax.random.split(key, 3)
    v = jax.random.normal(kv, (batch, k, v_dim), jnp.float32)
    q = jax.random.normal(kq, (batch, q_dim), jnp.float32)
    params = init_params(kp, v_dim, q_dim, num_hid)

    out = expr_parsing_attention(v, q, params)
    out = jax.block_until_ready(out)

    # Reference on the same bf16-rounded activations/weights the kernel
    # consumes (both paths accumulate in f32), so results match tightly.
    rd = lambda x: x.astype(jnp.bfloat16).astype(jnp.float32)
    ref_params = dict(params, wv=rd(params["wv"]), wq=rd(params["wq"]))
    ref = reference(rd(v), rd(q), ref_params)

    assert out.shape == (batch, k, 1)
    assert jnp.allclose(out, ref, atol=1e-4, rtol=1e-3), "mismatch vs reference"
    assert jnp.allclose(jnp.sum(out, axis=1), 1.0, atol=1e-5), "softmax not normalized"

    print("KERNEL_OK")
</pallas_src>

<mosaic_0001>
module attributes {stable_mosaic.version = 11 : i64} {
  func.func @_attention_kernel(%arg0: i32, %arg1: memref<2048x16xbf16, #tpu.memory_space<vmem>>, %arg2: memref<256x32xbf16, #tpu.memory_space<vmem>>, %arg3: memref<16x32xbf16, #tpu.memory_space<vmem>>, %arg4: memref<32x32xbf16, #tpu.memory_space<vmem>>, %arg5: memref<3x32xf32, #tpu.memory_space<vmem>>, %arg6: memref<1x1xf32, #tpu.memory_space<smem>>, %arg7: memref<8x256xf32, #tpu.memory_space<vmem>>) attributes {dimension_semantics = [#tpu.dimension_semantics<parallel>], iteration_bounds = array<i64: 2>, scalar_prefetch = 0 : i64, scratch_operands = 0 : i64, tpu.core_type = #tpu.core_type<tc>, window_params = [{transform_indices = @transform_0, window_bounds = array<i64: 2048, 16>}, {transform_indices = @transform_1, window_bounds = array<i64: 256, 32>}, {pipeline_mode = #tpu.pipeline_mode<synchronous>, transform_indices = @transform_2, window_bounds = array<i64: 16, 32>}, {pipeline_mode = #tpu.pipeline_mode<synchronous>, transform_indices = @transform_3, window_bounds = array<i64: 32, 32>}, {pipeline_mode = #tpu.pipeline_mode<synchronous>, transform_indices = @transform_4, window_bounds = array<i64: 3, 32>}, {transform_indices = @transform_5, window_bounds = array<i64: 1, 1>}, {transform_indices = @transform_6, window_bounds = array<i64: 8, 256>}]} {
    %c0 = arith.constant 0 : index
    %c0_0 = arith.constant 0 : index
    %0 = vector.load %arg5[%c0, %c0_0] : memref<3x32xf32, #tpu.memory_space<vmem>>, vector<1x32xf32>
    %c1 = arith.constant 1 : index
    %c0_1 = arith.constant 0 : index
    %1 = vector.load %arg5[%c1, %c0_1] : memref<3x32xf32, #tpu.memory_space<vmem>>, vector<1x32xf32>
    %c2 = arith.constant 2 : index
    %c0_2 = arith.constant 0 : index
    %2 = vector.load %arg5[%c2, %c0_2] : memref<3x32xf32, #tpu.memory_space<vmem>>, vector<1x32xf32>
    %c0_3 = arith.constant 0 : index
    %c0_4 = arith.constant 0 : index
    %3 = vector.load %arg1[%c0_3, %c0_4] : memref<2048x16xbf16, #tpu.memory_space<vmem>>, vector<2048x16xbf16>
    %c0_5 = arith.constant 0 : index
    %c0_6 = arith.constant 0 : index
    %4 = vector.load %arg3[%c0_5, %c0_6] : memref<16x32xbf16, #tpu.memory_space<vmem>>, vector<16x32xbf16>
    %cst = arith.constant dense<0.000000e+00> : vector<2048x32xf32>
    %5 = tpu.matmul %3, %4, %cst {dimension_numbers = #tpu.dot_dimension_numbers<[1], [0], [0], [1], [0, 0, 1, 1], [], []>} : vector<2048x16xbf16>, vector<16x32xbf16>, vector<2048x32xf32> -> vector<2048x32xf32>
    %6 = vector.broadcast %0 : vector<1x32xf32> to vector<2048x32xf32>
    %7 = arith.addf %5, %6 : vector<2048x32xf32>
    %cst_7 = arith.constant 0.000000e+00 : f32
    %8 = vector.broadcast %cst_7 : f32 to vector<2048x32xf32>
    %9 = arith.maximumf %7, %8 : vector<2048x32xf32>
    %c0_8 = arith.constant 0 : index
    %c0_9 = arith.constant 0 : index
    %10 = vector.load %arg2[%c0_8, %c0_9] : memref<256x32xbf16, #tpu.memory_space<vmem>>, vector<256x32xbf16>
    %c0_10 = arith.constant 0 : index
    %c0_11 = arith.constant 0 : index
    %11 = vector.load %arg4[%c0_10, %c0_11] : memref<32x32xbf16, #tpu.memory_space<vmem>>, vector<32x32xbf16>
    %cst_12 = arith.constant dense<0.000000e+00> : vector<256x32xf32>
    %12 = tpu.matmul %10, %11, %cst_12 {dimension_numbers = #tpu.dot_dimension_numbers<[1], [0], [0], [1], [0, 0, 1, 1], [], []>} : vector<256x32xbf16>, vector<32x32xbf16>, vector<256x32xf32> -> vector<256x32xf32>
    %13 = vector.broadcast %1 : vector<1x32xf32> to vector<256x32xf32>
    %14 = arith.addf %12, %13 : vector<256x32xf32>
    %cst_13 = arith.constant 0.000000e+00 : f32
    %15 = vector.broadcast %cst_13 : f32 to vector<256x32xf32>
    %16 = arith.maximumf %14, %15 : vector<256x32xf32>
    %17 = vector.broadcast %2 : vector<1x32xf32> to vector<256x32xf32>
    %18 = arith.mulf %16, %17 : vector<256x32xf32>
    %19 = vector.shape_cast %9 : vector<2048x32xf32> to vector<256x8x32xf32>
    %20 = vector.shape_cast %18 : vector<256x32xf32> to vector<256x1x32xf32>
    %21 = vector.broadcast %20 : vector<256x1x32xf32> to vector<256x8x32xf32>
    %22 = arith.mulf %19, %21 : vector<256x8x32xf32>
    %cst_14 = arith.constant dense<0.000000e+00> : vector<256x8xf32>
    %23 = vector.multi_reduction <add>, %22, %cst_14 [2] : vector<256x8x32xf32> to vector<256x8xf32>
    %24 = tpu.transpose %23, [1, 0] : vector<256x8xf32> -> vector<8x256xf32>
    %c0_15 = arith.constant 0 : index
    %c0_16 = arith.constant 0 : index
    %25 = memref.load %arg6[%c0_15, %c0_16] : memref<1x1xf32, #tpu.memory_space<smem>>
    %26 = vector.broadcast %25 : f32 to vector<8x256xf32>
    %27 = arith.addf %24, %26 : vector<8x256xf32>
    %cst_17 = arith.constant dense<0xFF800000> : vector<256xf32>
    %28 = vector.multi_reduction <maximumf>, %27, %cst_17 [0] : vector<8x256xf32> to vector<256xf32>
    %29 = vector.shape_cast %28 : vector<256xf32> to vector<1x256xf32>
    %30 = vector.broadcast %29 : vector<1x256xf32> to vector<8x256xf32>
    %31 = arith.subf %27, %30 : vector<8x256xf32>
    %32 = math.exp %31 : vector<8x256xf32>
    %cst_18 = arith.constant dense<0.000000e+00> : vector<256xf32>
    %33 = vector.multi_reduction <add>, %32, %cst_18 [0] : vector<8x256xf32> to vector<256xf32>
    %34 = vector.shape_cast %33 : vector<256xf32> to vector<1x256xf32>
    %35 = vector.broadcast %34 : vector<1x256xf32> to vector<8x256xf32>
    %36 = arith.divf %32, %35 : vector<8x256xf32>
    %c0_19 = arith.constant 0 : index
    %c0_20 = arith.constant 0 : index
    %37 = vector.load %arg7[%c0_19, %c0_20] : memref<8x256xf32, #tpu.memory_space<vmem>>, vector<8x256xf32>
    tpu.vector_store %arg7[%c0_19, %c0_20], %36 {strides = array<i32>} : memref<8x256xf32, #tpu.memory_space<vmem>>, vector<8x256xf32>,
    return
  }
  func.func @transform_0(%arg0: i32) -> (i32, i32) {
    %c0_i32 = arith.constant 0 : i32
    %c0_i32_0 = arith.constant 0 : i32
    return %arg0, %c0_i32 : i32, i32
  }
  func.func @transform_1(%arg0: i32) -> (i32, i32) {
    %c0_i32 = arith.constant 0 : i32
    %c0_i32_0 = arith.constant 0 : i32
    return %arg0, %c0_i32 : i32, i32
  }
  func.func @transform_2(%arg0: i32) -> (i32, i32) {
    %c0_i32 = arith.constant 0 : i32
    %c0_i32_0 = arith.constant 0 : i32
    %c0_i32_1 = arith.constant 0 : i32
    return %c0_i32, %c0_i32_0 : i32, i32
  }
  func.func @transform_3(%arg0: i32) -> (i32, i32) {
    %c0_i32 = arith.constant 0 : i32
    %c0_i32_0 = arith.constant 0 : i32
    %c0_i32_1 = arith.constant 0 : i32
    return %c0_i32, %c0_i32_0 : i32, i32
  }
  func.func @transform_4(%arg0: i32) -> (i32, i32) {
    %c0_i32 = arith.constant 0 : i32
    %c0_i32_0 = arith.constant 0 : i32
    %c0_i32_1 = arith.constant 0 : i32
    return %c0_i32, %c0_i32_0 : i32, i32
  }
  func.func @transform_5(%arg0: i32) -> (i32, i32) {
    %c0_i32 = arith.constant 0 : i32
    %c0_i32_0 = arith.constant 0 : i32
    %c0_i32_1 = arith.constant 0 : i32
    return %c0_i32, %c0_i32_0 : i32, i32
  }
  func.func @transform_6(%arg0: i32) -> (i32, i32) {
    %c0_i32 = arith.constant 0 : i32
    %c0_i32_0 = arith.constant 0 : i32
    return %c0_i32, %arg0 : i32, i32
  }
}

</mosaic_0001>

<bundles_post_ra>
// kernel: tpu_custom_call.1
= control target key start
LH: loop header
LB: loop body
LE: loop exit
PB: predicated region body
PF: predicated region fallthrough
CT: control target
= control target key end

     0   :  { %s15844_s0 = inlined_call_operand.vmem [shape: bf16[4096,16], index: 0, kind: input, shape index: {}]   ;;  %s15845_s1 = inlined_call_operand.vmem [shape: bf16[512,32], index: 1, kind: input, shape index: {}]   ;;  %s15846_s2 = inlined_call_operand.vmem [shape: bf16[16,32], index: 2, kind: input, shape index: {}]   ;;  %s15847_s3 = inlined_call_operand.vmem [shape: bf16[32,32], index: 3, kind: input, shape index: {}]   ;;  %s15848_s4 = inlined_call_operand.vmem [shape: f32[3,32], index: 4, kind: input, shape index: {}]   ;;  %s15849_s5 = inlined_call_operand.<no memory space> [shape: f32[1,1], index: 5, kind: input, shape index: {}]   ;;  %s15850_s6 = inlined_call_operand.hbm [shape: f32[8,512], index: 6, kind: output, shape index: {}]  }
   0x1   :  { %11 = sst [smem:[#allocation2]] %s15849_s5 }
   0x2   :  { %12 = vsyncpa [#allocation4], 0 }
   0x3   :  { %14 = vsyncpa [#allocation4 + $0x1], 0  ;;  %s9993_s23 = smov 0   ;;  %s9995_s24 = smov 0  }
   0x4   :  { %s9997_s25 = smov 0   ;;  %s9999_s26 = smov 0  }
   0x5 LB: > { %s10014_s5 = sadd.s32 4294967295, %s9951_s26   ;;  %s8935_s27 = sadd.s32 4294967294, %s9951_s26   ;;  %s9951_s26 = sphi %s9999_s26, %s17337_s26   ;;  %s9947_s25 = sphi %s9997_s25, %s17336_s25   ;;  %s9943_s24 = sphi %s9995_s24, %s17335_s24   ;;  %s9939_s23 = sphi %s9993_s23, %s17334_s23  }
   0x6   : > { %s10018_s28 = sadd.s32 1, %s9951_s26   ;;  %s163_s29 = sadd.s32 1, %s9947_s25 }
   0x7   : > { %s160_s30 = ssub.s32 %s9951_s26, %s10018_s28  ;;  %p173_p0 = scmp.ne.s32.totalorder %s9947_s25, %s9943_s24 }
   0x8   : > { %p161_p1 = scmp.eq.s32.totalorder %s160_s30, 0  ;;  %p174_p2 = scmp.eq.s32.totalorder %s10014_s5, 1 }
   0x9   : > { %p179_p3 = scmp.ne.s32.totalorder %s9943_s24, %s9939_s23  ;;  %p180_p4 = scmp.eq.s32.totalorder %s8935_s27, 1 }
   0xa   : > { %s10029_s7 = scalar_select %p161_p1, %s9947_s25, %s163_s29  }
   0xb   : > { %p10031_p5 = por %p174_p2, %p173_p0  ;;  %p10035_p6 = por %p180_p4, %p179_p3 }
   0xc   : > { %p8938_p7 = scmp.ge.s32.totalorder %s9951_s26, 1  ;;  %p228_p8 = scmp.lt.s32.totalorder %s9951_s26, 3 }
   0xe   : > { %p229_p9 = pnand %p8938_p7, %p228_p8 }
  0x10   : > { %232 = sbr.rel (%p229_p9) target bundleno = 1364 (0x554), region = 44 }
  0x17   : > { %v9727_v0 = vld [vmem:[%s15846_s2] sm:$0xff]   ;;  %s10045_s12 = sshll.u32 %s10014_s5, 8  ;;  %vm1188_vm0 = vcmask 130048   ;;  %v9758_v2 = vld [vmem:[%s15847_s3 + $0x8] sm:$0xff]   ;;  %s8942_s22 = sshll.u32 %s10014_s5, 5  ;;  %vm3018_vm1 = vcmask 261120  }
  0x18   : > { %p264_p10 = scmp.lt.s32.totalorder %s10045_s12, 511  ;;  %9685 = vmatprep.subr.bf16.mxu1 %v9727_v0  ;;  %v9729_v1 = vld [vmem:[%s15847_s3] sm:$0xff]   ;;  %9391 = vmatprep.subr.bf16.mxu0 %v9727_v0  ;;  %p270_p11 = scmp.lt.s32.totalorder %s8942_s22, 63  ;;  %vm8482_vm2 = vcmask 1041409   ;;  %vm8484_vm3 = vcmask 1042434   ;;  %vm8486_vm4 = vcmask 1043459  }
  0x19   : > { %9686 = vmatpush3.bf16.msra.mxu1 %v9727_v0  ;;  %9392 = vmatpush3.bf16.msra.mxu0 %v9727_v0  ;;  %vm8488_vm5 = vcmask 1044484   ;;  %vm8490_vm6 = vcmask 1045509   ;;  %vm8492_vm7 = vcmask 1046534   ;;  %vm8494_vm8 = vcmask 1047559   ;;  %s9954_s30 = smov [#allocation3]  }
  0x1a   : > { %s265_s15 = scalar_select %p264_p10, %s10045_s12, 511  ;;  %9649 = vmatprep.subr.bf16.mxu1 %v9729_v1 }
  0x1b   : > { %s17339_s22 = smov (!%p270_p11, %s8942_s22), 63 }
  0x1c   : > { %s8941_s16 = sshll.u32 %s265_s15, 2  ;;  %s8943_s27 = sshll.u32 %s17339_s22, 2 }
  0x1d   : > { %s10055_s19 = scalar_lea.vmem %s15844_s0, %s8941_s16  ;;  %s10139_s5 = scalar_lea.vmem %s15845_s1, %s8943_s27 }
  0x1e   : > { %v9728_v3 = vld [vmem:[%s10055_s19 + $0x240] sm:$0xff]   ;;  %v9730_v4 = vld [vmem:[%s10055_s19 + $0x248] sm:$0xff]   ;;  %v9731_v5 = vld [vmem:[%s10055_s19 + $0x250] sm:$0xff]   ;;  %s8809_s15 = sld [smem:[#allocation2]]  ;;  %s260_s16 = sand.u32 1, %s9943_s24  }
  0x1f   : > { %9537 = vmatprep.mubr.msk.bf16.mxu1 %vm1188_vm0, %v9728_v3  ;;  %v9732_v6 = vld [vmem:[%s10055_s19 + $0x258] sm:$0xff]   ;;  %v9733_v7 = vld [vmem:[%s10055_s19 + $0x260] sm:$0xff]   ;;  %v9734_v8 = vld [vmem:[%s10055_s19 + $0x268] sm:$0xff]   ;;  %s8939_s17 = sshll.u32 %s260_s16, 4  ;;  %s15800_s22 = scalar_lea.hbm %s15850_s6, %s10045_s12 }
  0x20   : > { %9538 = vmatmul.mubr.msk.bf16.vlgmr.msra.gmra.mrb[0].mxu1 %vm1188_vm0, %v9730_v4  ;;  %v9735_v9 = vld [vmem:[%s10055_s19 + $0x270] sm:$0xff]   ;;  %v9736_v10 = vld [vmem:[%s10055_s19 + $0x278] sm:$0xff]   ;;  %v9737_v11 = vld [vmem:[%s10055_s19 + $0x280] sm:$0xff]   ;;  %s262_s18 = scalar_lea.vmem [#allocation3], %s8939_s17  ;;  %s8850_s27 = scalar_lea.sflag [#allocation4], %s260_s16 }
  0x21   : > { %9650 = vmatpush3.bf16.msra.mxu1 %v9729_v1  ;;  %9541 = vmatprep.mubr.msk.bf16.mxu1 %vm1188_vm0, %v9731_v5  ;;  %v9738_v12 = vld [vmem:[%s10055_s19 + $0x288] sm:$0xff]   ;;  %v9739_v13 = vld [vmem:[%s10055_s19 + $0x290] sm:$0xff]   ;;  %v9740_v14 = vld [vmem:[%s10055_s19 + $0x298] sm:$0xff]  }
  0x22   : > { %9651 = vmatprep.subr.bf16.mxu1 %v9758_v2  ;;  %v9741_v15 = vld [vmem:[%s10055_s19 + $0x2a0] sm:$0xff]   ;;  %v9742_v16 = vld [vmem:[%s10055_s19 + $0x2a8] sm:$0xff]   ;;  %v9743_v18 = vld [vmem:[%s10055_s19 + $0x2b0] sm:$0xff]  }
  0x23   : > { %v9775_v17 = vld [vmem:[%s10055_s19] sm:$0xff]   ;;  %v9777_v19 = vld [vmem:[%s10055_s19 + $0x8] sm:$0xff]   ;;  %v9779_v20 = vld [vmem:[%s10055_s19 + $0x10] sm:$0xff]  }
  0x24   : > { %9393 = vmatprep.mubr.msk.bf16.mxu0 %vm1188_vm0, %v9775_v17  ;;  %v9744_v21 = vld [vmem:[%s10055_s19 + $0x2b8] sm:$0xff]   ;;  %v9745_v22 = vld [vmem:[%s10055_s19 + $0x2c0] sm:$0xff]   ;;  %v9746_v25 = vld [vmem:[%s10055_s19 + $0x2c8] sm:$0xff]  }
  0x25   : > { %9652 = vmatpush3.bf16.msra.mxu1 %v9758_v2  ;;  %9394 = vmatmul.mubr.msk.bf16.vlgmr.msra.gmra.mrb[0].mxu0 %vm1188_vm0, %v9777_v19  ;;  %v9781_v23 = vld [vmem:[%s10055_s19 + $0x18] sm:$0xff]   ;;  %v9783_v24 = vld [vmem:[%s10055_s19 + $0x20] sm:$0xff]   ;;  %v9747_v26 = vld [vmem:[%s10055_s19 + $0x2d0] sm:$0xff]  }
  0x26   : > { %9397 = vmatprep.mubr.msk.bf16.mxu0 %vm1188_vm0, %v9779_v20  ;;  %v9785_v27 = vld [vmem:[%s10055_s19 + $0x28] sm:$0xff]   ;;  %v9787_v28 = vld [vmem:[%s10055_s19 + $0x30] sm:$0xff]   ;;  %v9748_v29 = vld [vmem:[%s10055_s19 + $0x2d8] sm:$0xff]  }
  0x27   : > { %v9749_v30 = vld [vmem:[%s10055_s19 + $0x2e0] sm:$0xff]   ;;  %v9789_v31 = vld [vmem:[%s10055_s19 + $0x38] sm:$0xff]   ;;  %v9750_v33 = vld [vmem:[%s10055_s19 + $0x2e8] sm:$0xff]  }
  0x28   : > { %9542 = vmatmul.mubr.msk.bf16.gmra.mrb[4].mxu1 %vm1188_vm0, %v9732_v6  ;;  %v9791_v32 = vld [vmem:[%s10055_s19 + $0x40] sm:$0xff]   ;;  %v9751_v34 = vld [vmem:[%s10055_s19 + $0x2f0] sm:$0xff]   ;;  %v9793_v35 = vld [vmem:[%s10055_s19 + $0x48] sm:$0xff]  }
  0x29   : > { %9545 = vmatprep.mubr.msk.bf16.mxu1 %vm1188_vm0, %v9733_v7  ;;  %v9752_v36 = vld [vmem:[%s10055_s19 + $0x2f8] sm:$0xff]   ;;  %v9753_v37 = vld [vmem:[%s10055_s19 + $0x300] sm:$0xff]   ;;  %v9795_v38 = vld [vmem:[%s10055_s19 + $0x50] sm:$0xff]  }
  0x2a   : > { %v9797_v39 = vld [vmem:[%s10055_s19 + $0x58] sm:$0xff]   ;;  %v9754_v40 = vld [vmem:[%s10055_s19 + $0x308] sm:$0xff]   ;;  %v9755_v41 = vld [vmem:[%s10055_s19 + $0x310] sm:$0xff]  }
  0x2b   : > { %v9799_v42 = vld [vmem:[%s10055_s19 + $0x60] sm:$0xff]   ;;  %v9801_v43 = vld [vmem:[%s10055_s19 + $0x68] sm:$0xff]   ;;  %v9756_v44 = vld [vmem:[%s10055_s19 + $0x318] sm:$0xff]  }
  0x2c   : > { %v9757_v45 = vld [vmem:[%s10055_s19 + $0x320] sm:$0xff]   ;;  %v9803_v46 = vld [vmem:[%s10055_s19 + $0x70] sm:$0xff]   ;;  %v9805_v47 = vld [vmem:[%s10055_s19 + $0x78] sm:$0xff]  }
  0x2d   : > { %9398 = vmatmul.mubr.msk.bf16.gmra.mrb[4].mxu0 %vm1188_vm0, %v9781_v23  ;;  %v9759_v48 = vld [vmem:[%s10055_s19 + $0x328] sm:$0xff]   ;;  %v9760_v49 = vld [vmem:[%s10055_s19 + $0x330] sm:$0xff]   ;;  %v9807_v50 = vld [vmem:[%s10055_s19 + $0x80] sm:$0xff]  }
  0x2e   : > { %9401 = vmatprep.mubr.msk.bf16.mxu0 %vm1188_vm0, %v9783_v24  ;;  %v9809_v51 = vld [vmem:[%s10055_s19 + $0x88] sm:$0xff]   ;;  %v9761_v52 = vld [vmem:[%s10055_s19 + $0x338] sm:$0xff]   ;;  %v9762_v53 = vld [vmem:[%s10055_s19 + $0x340] sm:$0xff]  }
  0x2f   : > { %v9811_v54 = vld [vmem:[%s10055_s19 + $0x90] sm:$0xff]   ;;  %v9813_v55 = vld [vmem:[%s10055_s19 + $0x98] sm:$0xff]   ;;  %v9763_v56 = vld [vmem:[%s10055_s19 + $0x348] sm:$0xff]  }
  0x30   : > { %9546 = vmatmul.mubr.msk.bf16.gmra.mrb[8].mxu1 %vm1188_vm0, %v9734_v8  ;;  %v9764_v57 = vld [vmem:[%s10055_s19 + $0x350] sm:$0xff]   ;;  %v9815_v58 = vld [vmem:[%s10055_s19 + $0xa0] sm:$0xff]   ;;  %v9817_v59 = vld [vmem:[%s10055_s19 + $0xa8] sm:$0xff]  }
  0x31   : > { %9549 = vmatprep.mubr.msk.bf16.mxu1 %vm1188_vm0, %v9735_v9  ;;  %v9765_v60 = vld [vmem:[%s10055_s19 + $0x358] sm:$0xff]   ;;  %v9766_v61 = vld [vmem:[%s10055_s19 + $0x360] sm:$0xff]   ;;  %v9819_v62 = vld [vmem:[%s10055_s19 + $0xb0] sm:$0xff]  }
  0x32   : > { %v9821_v63 = vld [vmem:[%s10055_s19 + $0xb8] sm:$0xff]   ;;  %v9767_v0 = vld [vmem:[%s10055_s19 + $0x368] sm:$0xff]   ;;  %v9768_v1 = vld [vmem:[%s10055_s19 + $0x370] sm:$0xff]  }
  0x33   : > { %v9823_v2 = vld [vmem:[%s10055_s19 + $0xc0] sm:$0xff]   ;;  %v9825_v3 = vld [vmem:[%s10055_s19 + $0xc8] sm:$0xff]   ;;  %v9769_v4 = vld [vmem:[%s10055_s19 + $0x378] sm:$0xff]  }
  0x34   : > { %v9770_v5 = vld [vmem:[%s10055_s19 + $0x380] sm:$0xff]   ;;  %v9827_v6 = vld [vmem:[%s10055_s19 + $0xd0] sm:$0xff]   ;;  %v9829_v7 = vld [vmem:[%s10055_s19 + $0xd8] sm:$0xff]  }
  0x35   : > { %9402 = vmatmul.mubr.msk.bf16.gmra.mrb[8].mxu0 %vm1188_vm0, %v9785_v27  ;;  %v9771_v8 = vld [vmem:[%s10055_s19 + $0x388] sm:$0xff]   ;;  %v9772_v9 = vld [vmem:[%s10055_s19 + $0x390] sm:$0xff]   ;;  %v9780_v20 = vld [vmem:[%s10055_s19 + $0x3b8] sm:$0xff]  }
  0x36   : > { %9405 = vmatprep.mubr.msk.bf16.mxu0 %vm1188_vm0, %v9787_v28  ;;  %v9778_v17 = vld [vmem:[%s10055_s19 + $0x3b0] sm:$0xff]   ;;  %v9835_v19 = vld [vmem:[%s10055_s19 + $0x108] sm:$0xff]   ;;  %v9837_v23 = vld [vmem:[%s10055_s19 + $0x118] sm:$0xff]  }
  0x37   : > { %v9784_v24 = vld [vmem:[%s10055_s19 + $0x3c8] sm:$0xff]   ;;  %v9788_v28 = vld [vmem:[%s10055_s19 + $0x3d8] sm:$0xff]  }
  0x38   : > { %9550 = vmatmul.mubr.msk.bf16.gmra.mrb[12].mxu1 %vm1188_vm0, %v9736_v10  ;;  %v9830_v10 = vld [vmem:[%s10055_s19 + $0xe0] sm:$0xff]   ;;  %v9839_v27 = vld [vmem:[%s10055_s19 + $0x128] sm:$0xff]  }
  0x39   : > { %9553 = vmatprep.mubr.msk.bf16.mxu1 %vm1188_vm0, %v9737_v11  ;;  %v9831_v11 = vld [vmem:[%s10055_s19 + $0xe8] sm:$0xff]  }
  0x3d   : > { %9406 = vmatmul.mubr.msk.bf16.gmra.mrb[12].mxu0 %vm1188_vm0, %v9789_v31  ;;  %v9841_v31 = vld [vmem:[%s10055_s19 + $0x138] sm:$0xff]  }
  0x3e   : > { %9409 = vmatprep.mubr.msk.bf16.mxu0 %vm1188_vm0, %v9791_v32  ;;  %v9792_v32 = vld [vmem:[%s10055_s19 + $0x3e8] sm:$0xff]  }
  0x40   : > { %9554 = vmatmul.mubr.msk.bf16.gmra.mrb[16].mxu1 %vm1188_vm0, %v9738_v12  ;;  %v9773_v12 = vld [vmem:[%s10055_s19 + $0x398] sm:$0xff]  }
  0x41   : > { %9557 = vmatprep.mubr.msk.bf16.mxu1 %vm1188_vm0, %v9739_v13  ;;  %v9774_v13 = vld [vmem:[%s10055_s19 + $0x3a0] sm:$0xff]  }
  0x45   : > { %9410 = vmatmul.mubr.msk.bf16.gmra.mrb[16].mxu0 %vm1188_vm0, %v9793_v35  ;;  %v9843_v35 = vld [vmem:[%s10055_s19 + $0x148] sm:$0xff]  }
  0x46   : > { %9413 = vmatprep.mubr.msk.bf16.mxu0 %vm1188_vm0, %v9795_v38  ;;  %v9796_v38 = vld [vmem:[%s10055_s19 + $0x3f8] sm:$0xff]  }
  0x48   : > { %9558 = vmatmul.mubr.msk.bf16.gmra.mrb[20].mxu1 %vm1188_vm0, %v9740_v14  ;;  %v9832_v14 = vld [vmem:[%s10055_s19 + $0xf0] sm:$0xff]  }
  0x49   : > { %9561 = vmatprep.mubr.msk.bf16.mxu1 %vm1188_vm0, %v9741_v15  ;;  %v9833_v15 = vld [vmem:[%s10055_s19 + $0xf8] sm:$0xff]  }
  0x4d   : > { %9414 = vmatmul.mubr.msk.bf16.gmra.mrb[20].mxu0 %vm1188_vm0, %v9797_v39 }
  0x4e   : > { %9417 = vmatprep.mubr.msk.bf16.mxu0 %vm1188_vm0, %v9799_v42  ;;  %v9844_v42 = vld [vmem:[%s10055_s19 + $0x150] sm:$0xff]  }
  0x50   : > { %9562 = vmatmul.mubr.msk.bf16.gmra.mrb[24].mxu1 %vm1188_vm0, %v9742_v16  ;;  %v9776_v16 = vld [vmem:[%s10055_s19 + $0x3a8] sm:$0xff]  }
  0x51   : > { %9565 = vmatprep.mubr.msk.bf16.mxu1 %vm1188_vm0, %v9743_v18  ;;  %v9834_v18 = vld [vmem:[%s10055_s19 + $0x100] sm:$0xff]  }
  0x55   : > { %9418 = vmatmul.mubr.msk.bf16.gmra.mrb[24].mxu0 %vm1188_vm0, %v9801_v43  ;;  %v9845_v43 = vld [vmem:[%s10055_s19 + $0x158] sm:$0xff]  }
  0x56   : > { %9421 = vmatprep.mubr.msk.bf16.mxu0 %vm1188_vm0, %v9803_v46  ;;  %v9800_v46 = vld [vmem:[%s10139_s5 + $0x8] sm:$0xff]  }
  0x58   : > { %9566 = vmatmul.mubr.msk.bf16.gmra.mrb[28].mxu1 %vm1188_vm0, %v9744_v21  ;;  %v9782_v21 = vld [vmem:[%s10055_s19 + $0x3c0] sm:$0xff]  }
  0x59   : > { %9569 = vmatprep.mubr.msk.bf16.mxu1 %vm1188_vm0, %v9745_v22  ;;  %v9836_v22 = vld [vmem:[%s10055_s19 + $0x110] sm:$0xff]  }
  0x5d   : > { %9422 = vmatmul.mubr.msk.bf16.gmra.mrb[28].mxu0 %vm1188_vm0, %v9805_v47 }
  0x5e   : > { %9425 = vmatprep.mubr.msk.bf16.mxu0 %vm1188_vm0, %v9807_v50  ;;  %v9846_v50 = vld [vmem:[%s10055_s19 + $0x160] sm:$0xff]  }
  0x60   : > { %9570 = vmatmul.mubr.msk.bf16.gmra.mrb[32].mxu1 %vm1188_vm0, %v9746_v25  ;;  %v9786_v25 = vld [vmem:[%s10055_s19 + $0x3d0] sm:$0xff]  }
  0x61   : > { %9573 = vmatprep.mubr.msk.bf16.mxu1 %vm1188_vm0, %v9747_v26  ;;  %v9838_v26 = vld [vmem:[%s10055_s19 + $0x120] sm:$0xff]  }
  0x65   : > { %9426 = vmatmul.mubr.msk.bf16.gmra.mrb[32].mxu0 %vm1188_vm0, %v9809_v51  ;;  %v9847_v51 = vld [vmem:[%s10055_s19 + $0x168] sm:$0xff]  }
  0x66   : > { %9429 = vmatprep.mubr.msk.bf16.mxu0 %vm1188_vm0, %v9811_v54  ;;  %v9804_v54 = vld [vmem:[%s10139_s5 + $0x18] sm:$0xff]  }
  0x68   : > { %9574 = vmatmul.mubr.msk.bf16.gmra.mrb[36].mxu1 %vm1188_vm0, %v9748_v29  ;;  %v9790_v29 = vld [vmem:[%s10055_s19 + $0x3e0] sm:$0xff]  }
  0x69   : > { %9577 = vmatprep.mubr.msk.bf16.mxu1 %vm1188_vm0, %v9749_v30  ;;  %v9840_v30 = vld [vmem:[%s10055_s19 + $0x130] sm:$0xff]  }
  0x6d   : > { %9430 = vmatmul.mubr.msk.bf16.gmra.mrb[36].mxu0 %vm1188_vm0, %v9813_v55 }
  0x6e   : > { %9433 = vmatprep.mubr.msk.bf16.mxu0 %vm1188_vm0, %v9815_v58  ;;  %v9848_v58 = vld [vmem:[%s10055_s19 + $0x170] sm:$0xff]  }
  0x70   : > { %9578 = vmatmul.mubr.msk.bf16.gmra.mrb[40].mxu1 %vm1188_vm0, %v9750_v33  ;;  %v9794_v33 = vld [vmem:[%s10055_s19 + $0x3f0] sm:$0xff]  }
  0x71   : > { %9581 = vmatprep.mubr.msk.bf16.mxu1 %vm1188_vm0, %v9751_v34  ;;  %v9842_v34 = vld [vmem:[%s10055_s19 + $0x140] sm:$0xff]  }
  0x75   : > { %9434 = vmatmul.mubr.msk.bf16.gmra.mrb[40].mxu0 %vm1188_vm0, %v9817_v59  ;;  %v9849_v59 = vld [vmem:[%s10055_s19 + $0x178] sm:$0xff]  }
  0x76   : > { %9437 = vmatprep.mubr.msk.bf16.mxu0 %vm1188_vm0, %v9819_v62  ;;  %v9808_v62 = vld [vmem:[%s10139_s5 + $0x28] sm:$0xff]  }
  0x78   : > { %9582 = vmatmul.mubr.msk.bf16.gmra.mrb[44].mxu1 %vm1188_vm0, %v9752_v36 }
  0x79   : > { %9585 = vmatprep.mubr.msk.bf16.mxu1 %vm1188_vm0, %v9753_v37 }
  0x7d   : > { %9438 = vmatmul.mubr.msk.bf16.gmra.mrb[44].mxu0 %vm1188_vm0, %v9821_v63 }
  0x7e   : > { %9441 = vmatprep.mubr.msk.bf16.mxu0 %vm1188_vm0, %v9823_v2  ;;  %v9850_v2 = vld [vmem:[%s10055_s19 + $0x180] sm:$0xff]  }
  0x80   : > { %9586 = vmatmul.mubr.msk.bf16.gmra.mrb[48].mxu1 %vm1188_vm0, %v9754_v40  ;;  %v9798_v40 = vld [vmem:[%s10139_s5] sm:$0xff]  }
  0x81   : > { %9589 = vmatprep.mubr.msk.bf16.mxu1 %vm1188_vm0, %v9755_v41 }
  0x85   : > { %9442 = vmatmul.mubr.msk.bf16.gmra.mrb[48].mxu0 %vm1188_vm0, %v9825_v3  ;;  %v9851_v3 = vld [vmem:[%s10055_s19 + $0x188] sm:$0xff]  }
  0x86   : > { %9445 = vmatprep.mubr.msk.bf16.mxu0 %vm1188_vm0, %v9827_v6  ;;  %v9812_v6 = vld [vmem:[%s10139_s5 + $0x38] sm:$0xff]  }
  0x88   : > { %9590 = vmatmul.mubr.msk.bf16.gmra.mrb[52].mxu1 %vm1188_vm0, %v9756_v44 }
  0x89   : > { %9593 = vmatprep.mubr.msk.bf16.mxu1 %vm1188_vm0, %v9757_v45 }
  0x8d   : > { %9446 = vmatmul.mubr.msk.bf16.gmra.mrb[52].mxu0 %vm1188_vm0, %v9829_v7 }
  0x8e   : > { %9449 = vmatprep.mubr.msk.bf16.mxu0 %vm1188_vm0, %v9830_v10  ;;  %v9852_v10 = vld [vmem:[%s10055_s19 + $0x190] sm:$0xff]  }
  0x90   : > { %9594 = vmatmul.mubr.msk.bf16.gmra.mrb[56].mxu1 %vm1188_vm0, %v9759_v48  ;;  %v9802_v48 = vld [vmem:[%s10139_s5 + $0x10] sm:$0xff]  }
  0x91   : > { %9597 = vmatprep.mubr.msk.bf16.mxu1 %vm1188_vm0, %v9760_v49 }
  0x95   : > { %9450 = vmatmul.mubr.msk.bf16.gmra.mrb[56].mxu0 %vm1188_vm0, %v9831_v11  ;;  %v9853_v11 = vld [vmem:[%s10055_s19 + $0x198] sm:$0xff]  }
  0x96   : > { %9453 = vmatprep.mubr.msk.bf16.mxu0 %vm1188_vm0, %v9832_v14  ;;  %v9816_v14 = vld [vmem:[%s10139_s5 + $0x48] sm:$0xff]  }
  0x98   : > { %9598 = vmatmul.mubr.msk.bf16.gmra.mrb[60].mxu1 %vm1188_vm0, %v9761_v52 }
  0x99   : > { %9601 = vmatprep.mubr.msk.bf16.mxu1 %vm1188_vm0, %v9762_v53 }
  0x9d   : > { %9454 = vmatmul.mubr.msk.bf16.gmra.mrb[60].mxu0 %vm1188_vm0, %v9833_v15 }
  0x9e   : > { %9457 = vmatprep.mubr.msk.bf16.mxu0 %vm1188_vm0, %v9834_v18  ;;  %v9854_v18 = vld [vmem:[%s10055_s19 + $0x1a0] sm:$0xff]  }
  0xa0   : > { %9602 = vmatmul.mubr.msk.bf16.gmra.mrb[64].mxu1 %vm1188_vm0, %v9763_v56  ;;  %v9806_v56 = vld [vmem:[%s10139_s5 + $0x20] sm:$0xff]  }
  0xa1   : > { %9605 = vmatprep.mubr.msk.bf16.mxu1 %vm1188_vm0, %v9764_v57 }
  0xa5   : > { %9458 = vmatmul.mubr.msk.bf16.gmra.mrb[64].mxu0 %vm1188_vm0, %v9835_v19  ;;  %v9855_v19 = vld [vmem:[%s10055_s19 + $0x1a8] sm:$0xff]  }
  0xa6   : > { %9461 = vmatprep.mubr.msk.bf16.mxu0 %vm1188_vm0, %v9836_v22  ;;  %v9820_v22 = vld [vmem:[%s10139_s5 + $0x58] sm:$0xff]  }
  0xa8   : > { %9606 = vmatmul.mubr.msk.bf16.gmra.mrb[68].mxu1 %vm1188_vm0, %v9765_v60 }
  0xa9   : > { %9609 = vmatprep.mubr.msk.bf16.mxu1 %vm1188_vm0, %v9766_v61 }
  0xad   : > { %9462 = vmatmul.mubr.msk.bf16.gmra.mrb[68].mxu0 %vm1188_vm0, %v9837_v23 }
  0xae   : > { %9465 = vmatprep.mubr.msk.bf16.mxu0 %vm1188_vm0, %v9838_v26  ;;  %v9856_v26 = vld [vmem:[%s10055_s19 + $0x1b0] sm:$0xff]  }
  0xb0   : > { %9610 = vmatmul.mubr.msk.bf16.gmra.mrb[72].mxu1 %vm1188_vm0, %v9767_v0  ;;  %v9810_v0 = vld [vmem:[%s10139_s5 + $0x30] sm:$0xff]  }
  0xb1   : > { %9613 = vmatprep.mubr.msk.bf16.mxu1 %vm1188_vm0, %v9768_v1 }
  0xb5   : > { %9466 = vmatmul.mubr.msk.bf16.gmra.mrb[72].mxu0 %vm1188_vm0, %v9839_v27  ;;  %v9857_v27 = vld [vmem:[%s10055_s19 + $0x1b8] sm:$0xff]  }
  0xb6   : > { %9469 = vmatprep.mubr.msk.bf16.mxu0 %vm1188_vm0, %v9840_v30  ;;  %v9824_v30 = vld [vmem:[%s10139_s5 + $0x68] sm:$0xff]  }
  0xb8   : > { %9614 = vmatmul.mubr.msk.bf16.gmra.mrb[76].mxu1 %vm1188_vm0, %v9769_v4 }
  0xb9   : > { %9617 = vmatprep.mubr.msk.bf16.mxu1 %vm1188_vm0, %v9770_v5 }
  0xbd   : > { %9470 = vmatmul.mubr.msk.bf16.gmra.mrb[76].mxu0 %vm1188_vm0, %v9841_v31 }
  0xbe   : > { %9473 = vmatprep.mubr.msk.bf16.mxu0 %vm1188_vm0, %v9842_v34  ;;  %v9858_v34 = vld [vmem:[%s10055_s19 + $0x1c0] sm:$0xff]  }
  0xc0   : > { %9618 = vmatmul.mubr.msk.bf16.gmra.mrb[80].mxu1 %vm1188_vm0, %v9771_v8  ;;  %v9814_v8 = vld [vmem:[%s10139_s5 + $0x40] sm:$0xff]  }
  0xc1   : > { %9621 = vmatprep.mubr.msk.bf16.mxu1 %vm1188_vm0, %v9772_v9 }
  0xc5   : > { %9474 = vmatmul.mubr.msk.bf16.gmra.mrb[80].mxu0 %vm1188_vm0, %v9843_v35  ;;  %v9859_v35 = vld [vmem:[%s10055_s19 + $0x1c8] sm:$0xff]  }
  0xc6   : > { %9477 = vmatprep.mubr.msk.bf16.mxu0 %vm1188_vm0, %v9844_v42  ;;  %v9828_v42 = vld [vmem:[%s10139_s5 + $0x78] sm:$0xff]  }
  0xc8   : > { %9622 = vmatmul.mubr.msk.bf16.gmra.mrb[84].mxu1 %vm1188_vm0, %v9773_v12 }
  0xc9   : > { %9625 = vmatprep.mubr.msk.bf16.mxu1 %vm1188_vm0, %v9774_v13 }
  0xcd   : > { %9478 = vmatmul.mubr.msk.bf16.gmra.mrb[84].mxu0 %vm1188_vm0, %v9845_v43 }
  0xce   : > { %9481 = vmatprep.mubr.msk.bf16.mxu0 %vm1188_vm0, %v9846_v50 }
  0xd0   : > { %9626 = vmatmul.mubr.msk.bf16.gmra.mrb[88].mxu1 %vm1188_vm0, %v9776_v16  ;;  %v9818_v16 = vld [vmem:[%s10139_s5 + $0x50] sm:$0xff]  }
  0xd1   : > { %9629 = vmatprep.mubr.msk.bf16.mxu1 %vm1188_vm0, %v9778_v17 }
  0xd5   : > { %9482 = vmatmul.mubr.msk.bf16.gmra.mrb[88].mxu0 %vm1188_vm0, %v9847_v51  ;;  %v9861_v51 = vld [vmem:[%s10055_s19 + $0x1d8] sm:$0xff]  }
  0xd6   : > { %9485 = vmatprep.mubr.msk.bf16.mxu0 %vm1188_vm0, %v9848_v58 }
  0xd8   : > { %9630 = vmatmul.mubr.msk.bf16.gmra.mrb[92].mxu1 %vm1188_vm0, %v9780_v20 }
  0xd9   : > { %9633 = vmatprep.mubr.msk.bf16.mxu1 %vm1188_vm0, %v9782_v21 }
  0xdd   : > { %9486 = vmatmul.mubr.msk.bf16.gmra.mrb[92].mxu0 %vm1188_vm0, %v9849_v59 }
  0xde   : > { %9489 = vmatprep.mubr.msk.bf16.mxu0 %vm1188_vm0, %v9850_v2 }
  0xe0   : > { %9634 = vmatmul.mubr.msk.bf16.gmra.mrb[96].mxu1 %vm1188_vm0, %v9784_v24  ;;  %v9822_v24 = vld [vmem:[%s10139_s5 + $0x60] sm:$0xff]  }
  0xe1   : > { %9637 = vmatprep.mubr.msk.bf16.mxu1 %vm1188_vm0, %v9786_v25 }
  0xe5   : > { %9490 = vmatmul.mubr.msk.bf16.gmra.mrb[96].mxu0 %vm1188_vm0, %v9851_v3  ;;  %v9862_v3 = vld [vmem:[%s10055_s19 + $0x1e0] sm:$0xff]  }
  0xe6   : > { %9493 = vmatprep.mubr.msk.bf16.mxu0 %vm1188_vm0, %v9852_v10 }
  0xe8   : > { %9638 = vmatmul.mubr.msk.bf16.gmra.mrb[100].mxu1 %vm1188_vm0, %v9788_v28 }
  0xe9   : > { %9641 = vmatprep.mubr.msk.bf16.mxu1 %vm1188_vm0, %v9790_v29 }
  0xed   : > { %9494 = vmatmul.mubr.msk.bf16.gmra.mrb[100].mxu0 %vm1188_vm0, %v9853_v11 }
  0xee   : > { %9497 = vmatprep.mubr.msk.bf16.mxu0 %vm1188_vm0, %v9854_v18 }
  0xf0   : > { %9642 = vmatmul.mubr.msk.bf16.gmra.mrb[104].mxu1 %vm1188_vm0, %v9792_v32  ;;  %v9826_v32 = vld [vmem:[%s10139_s5 + $0x70] sm:$0xff]   ;;  %s9893_s5 = sshll.u32 %s9954_s30, 4  ;;  %s9894_s5 = int_to_ptr.vmem [resolvable:$false] %s9893_s5 }
  0xf1   : > { %9645 = vmatprep.mubr.msk.bf16.mxu1 %vm1188_vm0, %v9794_v33  ;;  %s9895_s10 = scalar_lea.vmem %s9894_s5, 512 }
  0xf3   : > { %v10260_v36 = vpop.f32.mrb[0].mxu1 }
  0xf4   : > { %v10262_v37 = vpop.f32.mrb[1].mxu1 }
  0xf5   : > { %v10265_v39 = vpop.f32.mrb[2].mxu1  ;;  %9498 = vmatmul.mubr.msk.bf16.gmra.mrb[104].mxu0 %vm1188_vm0, %v9855_v19 }
  0xf6   : > { %v10268_v41 = vpop.f32.mrb[3].mxu1  ;;  %9501 = vmatprep.mubr.msk.bf16.mxu0 %vm1188_vm0, %v9856_v26 }
  0xf8   : > { %9646 = vmatmul.mubr.msk.bf16.gmra.mrb[108].mxu1 %vm1188_vm0, %v9796_v38  ;;  %v10398_v50 = vpop.f32.mrb[0].mxu0 }
  0xf9   : > { %9653 = vmatprep.mubr.msk.bf16.mxu1 %vm3018_vm1, %v9798_v40 }
  0xfb   : > { %v10276_v44 = vpop.f32.mrb[4].mxu1 }
  0xfc   : > { %v10278_v45 = vpop.f32.mrb[5].mxu1 }
  0xfd   : > { %v10281_v47 = vpop.f32.mrb[6].mxu1  ;;  %9502 = vmatmul.mubr.msk.bf16.gmra.mrb[108].mxu0 %vm1188_vm0, %v9857_v27  ;;  %v9865_v27 = vld [vmem:[%s10055_s19 + $0x1f8] sm:$0xff]  }
  0xfe   : > { %v10284_v49 = vpop.f32.mrb[7].mxu1  ;;  %9505 = vmatprep.mubr.msk.bf16.mxu0 %vm1188_vm0, %v9858_v34 }
 0x100   : > { %9654 = vmatmul.mubr.msk.bf16.vlgmr.msra.gmra.mrb[112].mxu1 %vm3018_vm1, %v9800_v46 }
 0x101   : > { %9657 = vmatprep.mubr.msk.bf16.mxu1 %vm3018_vm1, %v9802_v48  ;;  %v9860_v48 = vld [vmem:[%s10055_s19 + $0x1d0] sm:$0xff]  }
 0x103   : > { %v10292_v52 = vpop.f32.mrb[8].mxu1 }
 0x104   : > { %v10294_v53 = vpop.f32.mrb[9].mxu1 }
 0x105   : > { %v10297_v55 = vpop.f32.mrb[10].mxu1  ;;  %9506 = vmatmul.mubr.msk.bf16.gmra.mrb[112].mxu0 %vm1188_vm0, %v9859_v35 }
 0x106   : > { %v10300_v57 = vpop.f32.mrb[11].mxu1  ;;  %9509 = vmatprep.mubr.msk.bf16.mxu0 %vm1188_vm0, %v9860_v48 }
 0x108   : > { %9658 = vmatmul.mubr.msk.bf16.gmra.mrb[116].mxu1 %vm3018_vm1, %v9804_v54  ;;  %v10402_v54 = vpop.f32.mrb[1].mxu0 }
 0x109   : > { %9661 = vmatprep.mubr.msk.bf16.mxu1 %vm3018_vm1, %v9806_v56  ;;  %v10405_v56 = vpop.f32.mrb[2].mxu0 }
 0x10a   : > { %v10408_v58 = vpop.f32.mrb[3].mxu0 }
 0x10b   : > { %v10308_v60 = vpop.f32.mrb[12].mxu1 }
 0x10c   : > { %v10310_v61 = vpop.f32.mrb[13].mxu1 }
 0x10d   : > { %v10313_v63 = vpop.f32.mrb[14].mxu1  ;;  %9510 = vmatmul.mubr.msk.bf16.gmra.mrb[116].mxu0 %vm1188_vm0, %v9861_v51 }
 0x10e   : > { %v10316_v1 = vpop.f32.mrb[15].mxu1  ;;  %9513 = vmatprep.mubr.msk.bf16.mxu0 %vm1188_vm0, %v9862_v3 }
 0x110   : > { %9662 = vmatmul.mubr.msk.bf16.gmra.mrb[120].mxu1 %vm3018_vm1, %v9808_v62 }
 0x111   : > { %9665 = vmatprep.mubr.msk.bf16.mxu1 %vm3018_vm1, %v9810_v0 }
 0x113   : > { %v10324_v4 = vpop.f32.mrb[16].mxu1 }
 0x114   : > { %v10326_v5 = vpop.f32.mrb[17].mxu1 }
 0x115   : > { %v10329_v7 = vpop.f32.mrb[18].mxu1 }
 0x116   : > { %v10332_v9 = vpop.f32.mrb[19].mxu1 }
 0x118   : > { %9666 = vmatmul.mubr.msk.bf16.gmra.mrb[124].mxu1 %vm3018_vm1, %v9812_v6  ;;  %v10419_v6 = vpop.f32.mrb[4].mxu0 }
 0x119   : > { %9669 = vmatprep.mubr.msk.bf16.mxu1 %vm3018_vm1, %v9814_v8  ;;  %v9863_v8 = vld [vmem:[%s10055_s19 + $0x1e8] sm:$0xff]   ;;  %v10422_v10 = vpop.f32.mrb[5].mxu0 }
 0x11a   : > { %v10425_v11 = vpop.f32.mrb[6].mxu0  ;;  %9514 = vmatmul.mubr.msk.bf16.gmra.mrb[120].mxu0 %vm1188_vm0, %v9863_v8 }
 0x11b   : > { %v10340_v12 = vpop.f32.mrb[20].mxu1 }
 0x11c   : > { %v10342_v13 = vpop.f32.mrb[21].mxu1 }
 0x11d   : > { %v10345_v15 = vpop.f32.mrb[22].mxu1 }
 0x11e   : > { %v10348_v17 = vpop.f32.mrb[23].mxu1 }
 0x120   : > { %9670 = vmatmul.mubr.msk.bf16.gmra.mrb[128].mxu1 %vm3018_vm1, %v9816_v14  ;;  %v10428_v14 = vpop.f32.mrb[7].mxu0 }
 0x121   : > { %9673 = vmatprep.mubr.msk.bf16.mxu1 %vm3018_vm1, %v9818_v16  ;;  %v10439_v26 = vpop.f32.mrb[8].mxu0 }
 0x122   : > { %16072 = vst [vmem:[#allocation6_spill] sm:$0xff] %v10439_v26 }
 0x123   : > { %v10356_v20 = vpop.f32.mrb[24].mxu1 }
 0x124   : > { %v10358_v21 = vpop.f32.mrb[25].mxu1 }
 0x125   : > { %v10361_v23 = vpop.f32.mrb[26].mxu1 }
 0x126   : > { %v10364_v25 = vpop.f32.mrb[27].mxu1 }
 0x128   : > { %9674 = vmatmul.mubr.msk.bf16.gmra.mrb[132].mxu1 %vm3018_vm1, %v9820_v22 }
 0x129   : > { %9677 = vmatprep.mubr.msk.bf16.mxu1 %vm3018_vm1, %v9822_v24  ;;  %v9864_v24 = vld [vmem:[%s10055_s19 + $0x1f0] sm:$0xff]  }
 0x12a   : > { %9517 = vmatprep.mubr.msk.bf16.mxu0 %vm1188_vm0, %v9864_v24 }
 0x12b   : > { %v10372_v28 = vpop.f32.mrb[28].mxu1  ;;  %9518 = vmatmul.mubr.msk.bf16.gmra.mrb[124].mxu0 %vm1188_vm0, %v9865_v27 }
 0x12c   : > { %v10374_v29 = vpop.f32.mrb[29].mxu1 }
 0x12d   : > { %v10377_v31 = vpop.f32.mrb[30].mxu1 }
 0x12e   : > { %v10380_v33 = vpop.f32.mrb[31].mxu1 }
 0x130   : > { %9678 = vmatmul.mubr.msk.bf16.gmra.mrb[136].mxu1 %vm3018_vm1, %v9824_v30  ;;  %v10442_v30 = vpop.f32.mrb[9].mxu0 }
 0x131   : > { %9681 = vmatprep.mubr.msk.bf16.mxu1 %vm3018_vm1, %v9826_v32  ;;  %16073 = vst [vmem:[#allocation7_spill] sm:$0xff] %v10442_v30  ;;  %v10445_v32 = vpop.f32.mrb[10].mxu0 }
 0x132   : > { %16074 = vst [vmem:[#allocation8_spill] sm:$0xff] %v10445_v32  ;;  %v10448_v34 = vpop.f32.mrb[11].mxu0 }
 0x133   : > { %v10388_v38 = vpop.f32.mrb[32].mxu1  ;;  %16075 = vst [vmem:[#allocation9_spill] sm:$0xff] %v10448_v34  ;;  %v10458_v3 = vpop.f32.mrb[12].mxu0 }
 0x134   : > { %v10390_v40 = vpop.f32.mrb[33].mxu1  ;;  %16080 = vst [vmem:[#allocation14_spill] sm:$0xff] %v10458_v3  ;;  %v10460_v8 = vpop.f32.mrb[13].mxu0 }
 0x135   : > { %v10393_v43 = vpop.f32.mrb[34].mxu1  ;;  %16081 = vst [vmem:[#allocation15_spill] sm:$0xff] %v10460_v8  ;;  %v10462_v30 = vpop.f32.mrb[14].mxu0 }
 0x136   : > { %v10395_v46 = vpop.f32.mrb[35].mxu1  ;;  %16082 = vst [vmem:[#allocation16_spill] sm:$0xff] %v10462_v30  ;;  %v10464_v24 = vpop.f32.mrb[15].mxu0 }
 0x137   : > { %16083 = vst [vmem:[#allocation17_spill] sm:$0xff] %v10464_v24  ;;  %v10466_v32 = vpop.f32.mrb[16].mxu0 }
 0x138   : > { %9682 = vmatmul.mubr.msk.bf16.gmra.mrb[140].mxu1 %vm3018_vm1, %v9828_v42  ;;  %16084 = vst [vmem:[#allocation18_spill] sm:$0xff] %v10466_v32  ;;  %v10470_v34 = vpop.f32.mrb[17].mxu0 }
 0x139   : > { %16086 = vst [vmem:[#allocation20_spill] sm:$0xff] %v10470_v34 }
 0x13b   : > { %v10410_v59 = vpop.f32.mrb[36].mxu1 }
 0x13c   : > { %v10412_v62 = vpop.f32.mrb[37].mxu1 }
 0x13d   : > { %v10414_v0 = vpop.f32.mrb[38].mxu1 }
 0x13e   : > { %v10416_v2 = vpop.f32.mrb[39].mxu1 }
 0x143   : > { %v10430_v16 = vpop.f32.mrb[40].mxu1 }
 0x144   : > { %v10432_v18 = vpop.f32.mrb[41].mxu1 }
 0x145   : > { %v10434_v19 = vpop.f32.mrb[42].mxu1 }
 0x146   : > { %v10436_v22 = vpop.f32.mrb[43].mxu1 }
 0x14b   : > { %v10450_v35 = vpop.f32.mrb[44].mxu1 }
 0x14c   : > { %16076 = vst [vmem:[#allocation10_spill] sm:$0xff] %v10450_v35  ;;  %v10452_v42 = vpop.f32.mrb[45].mxu1 }
 0x14d   : > { %16077 = vst [vmem:[#allocation11_spill] sm:$0xff] %v10452_v42  ;;  %v10454_v48 = vpop.f32.mrb[46].mxu1  ;;  %v10474_v42 = vpop.f32.mrb[18].mxu0 }
 0x14e   : > { %16078 = vst [vmem:[#allocation12_spill] sm:$0xff] %v10454_v48  ;;  %v10456_v51 = vpop.f32.mrb[47].mxu1  ;;  %16088 = vst [vmem:[#allocation22_spill] sm:$0xff] %v10474_v42 }
 0x14f   : > { %16079 = vst [vmem:[#allocation13_spill] sm:$0xff] %v10456_v51  ;;  %v10478_v51 = vpop.f32.mrb[19].mxu0 }
 0x150   : > { %16090 = vst [vmem:[#allocation24_spill] sm:$0xff] %v10478_v51  ;;  %v10482_v8 = vpop.f32.mrb[20].mxu0 }
 0x151   : > { %16092 = vst [vmem:[#allocation26_spill] sm:$0xff] %v10482_v8  ;;  %v10484_v30 = vpop.f32.mrb[21].mxu0 }
 0x152   : > { %16093 = vst [vmem:[#allocation27_spill] sm:$0xff] %v10484_v30  ;;  %v10486_v24 = vpop.f32.mrb[22].mxu0 }
 0x153   : > { %v10468_v27 = vpop.f32.mrb[48].mxu1  ;;  %16094 = vst [vmem:[#allocation28_spill] sm:$0xff] %v10486_v24  ;;  %v10488_v32 = vpop.f32.mrb[23].mxu0 }
 0x154   : > { %16085 = vst [vmem:[#allocation19_spill] sm:$0xff] %v10468_v27  ;;  %v10472_v35 = vpop.f32.mrb[49].mxu1  ;;  %16095 = vst [vmem:[#allocation29_spill] sm:$0xff] %v10488_v32  ;;  %v10490_v27 = vpop.f32.mrb[24].mxu0 }
 0x155   : > { %16087 = vst [vmem:[#allocation21_spill] sm:$0xff] %v10472_v35  ;;  %v10476_v48 = vpop.f32.mrb[50].mxu1  ;;  %16096 = vst [vmem:[#allocation30_spill] sm:$0xff] %v10490_v27  ;;  %v10494_v35 = vpop.f32.mrb[25].mxu0 }
 0x156   : > { %16089 = vst [vmem:[#allocation23_spill] sm:$0xff] %v10476_v48  ;;  %v10480_v3 = vpop.f32.mrb[51].mxu1  ;;  %16098 = vst [vmem:[#allocation32_spill] sm:$0xff] %v10494_v35  ;;  %v10498_v48 = vpop.f32.mrb[26].mxu0 }
 0x157   : > { %16091 = vst [vmem:[#allocation25_spill] sm:$0xff] %v10480_v3  ;;  %16100 = vst [vmem:[#allocation34_spill] sm:$0xff] %v10498_v48  ;;  %v10502_v3 = vpop.f32.mrb[27].mxu0 }
 0x158   : > { %16102 = vst [vmem:[#allocation36_spill] sm:$0xff] %v10502_v3  ;;  %v10506_v30 = vpop.f32.mrb[28].mxu0 }
 0x159   : > { %16104 = vst [vmem:[#allocation38_spill] sm:$0xff] %v10506_v30  ;;  %v10508_v24 = vpop.f32.mrb[29].mxu0 }
 0x15a   : > { %16105 = vst [vmem:[#allocation39_spill] sm:$0xff] %v10508_v24  ;;  %v10510_v32 = vpop.f32.mrb[30].mxu0 }
 0x15b   : > { %v10492_v34 = vpop.f32.mrb[52].mxu1  ;;  %16106 = vst [vmem:[#allocation40_spill] sm:$0xff] %v10510_v32  ;;  %v10512_v27 = vpop.f32.mrb[31].mxu0 }
 0x15c   : > { %16097 = vst [vmem:[#allocation31_spill] sm:$0xff] %v10492_v34  ;;  %v10496_v42 = vpop.f32.mrb[53].mxu1  ;;  %16107 = vst [vmem:[#allocation41_spill] sm:$0xff] %v10512_v27  ;;  %v3332_v34 = vlaneseq }
 0x15d   : > { %16099 = vst [vmem:[#allocation33_spill] sm:$0xff] %v10496_v42  ;;  %v10500_v51 = vpop.f32.mrb[54].mxu1 }
 0x15e   : > { %16101 = vst [vmem:[#allocation35_spill] sm:$0xff] %v10500_v51  ;;  %v10504_v8 = vpop.f32.mrb[55].mxu1  ;;  %v10522_v3 = vshrl.u32 %v3332_v34, 7 }
 0x15f   : > { %16103 = vst [vmem:[#allocation37_spill] sm:$0xff] %v10504_v8  ;;  %v7457_v8 = vand.u32 127, %v3332_v34  ;;  %v9866_v34 = vld [vmem:[%s10055_s19 + $0x200] sm:$0xff]  }
 0x160   : > { %9521 = vmatprep.mubr.msk.bf16.mxu0 %vm1188_vm0, %v9866_v34 }
 0x161   : > { %v10525_v24 = vsub.s32 %v7457_v8, %v10522_v3 }
 0x163   : > { %v10514_v35 = vpop.f32.mrb[56].mxu1  ;;  %16112 = vst [vmem:[#allocation46_spill] sm:$0xff] %v10525_v24 }
 0x164   : > { %16108 = vst [vmem:[#allocation42_spill] sm:$0xff] %v10514_v35  ;;  %v10516_v42 = vpop.f32.mrb[57].mxu1 }
 0x165   : > { %16109 = vst [vmem:[#allocation43_spill] sm:$0xff] %v10516_v42  ;;  %v10518_v48 = vpop.f32.mrb[58].mxu1 }
 0x166   : > { %16110 = vst [vmem:[#allocation44_spill] sm:$0xff] %v10518_v48  ;;  %v10520_v51 = vpop.f32.mrb[59].mxu1 }
 0x167   : > { %16111 = vst [vmem:[#allocation45_spill] sm:$0xff] %v10520_v51 }
 0x16b   : > { %v10527_v32 = vpop.f32.mrb[60].mxu1 }
 0x16c   : > { %16113 = vst [vmem:[#allocation47_spill] sm:$0xff] %v10527_v32  ;;  %v10529_v27 = vpop.f32.mrb[61].mxu1 }
 0x16d   : > { %16114 = vst [vmem:[#allocation48_spill] sm:$0xff] %v10529_v27  ;;  %v10531_v30 = vpop.f32.mrb[62].mxu1 }
 0x16e   : > { %16115 = vst [vmem:[#allocation49_spill] sm:$0xff] %v10531_v30  ;;  %v10533_v35 = vpop.f32.mrb[63].mxu1 }
 0x16f   : > { %16116 = vst [vmem:[#allocation50_spill] sm:$0xff] %v10533_v35 }
 0x173   : > { %v10535_v42 = vpop.f32.mrb[64].mxu1 }
 0x174   : > { %16117 = vst [vmem:[#allocation51_spill] sm:$0xff] %v10535_v42  ;;  %v10537_v48 = vpop.f32.mrb[65].mxu1  ;;  %v9867_v42 = vld [vmem:[%s10055_s19 + $0x208] sm:$0xff]  }
 0x175   : > { %16118 = vst [vmem:[#allocation52_spill] sm:$0xff] %v10537_v48  ;;  %v10539_v51 = vpop.f32.mrb[66].mxu1  ;;  %9522 = vmatmul.mubr.msk.bf16.gmra.mrb[128].mxu0 %vm1188_vm0, %v9867_v42 }
 0x176   : > { %16119 = vst [vmem:[#allocation53_spill] sm:$0xff] %v10539_v51  ;;  %v10541_v26 = vpop.f32.mrb[67].mxu1 }
 0x177   : > { %16120 = vst [vmem:[#allocation54_spill] sm:$0xff] %v10541_v26 }
 0x17b   : > { %v10544_v8 = vpop.f32.mrb[68].mxu1 }
 0x17c   : > { %16121 = vst [vmem:[#allocation55_spill] sm:$0xff] %v10544_v8  ;;  %v10547_v24 = vpop.f32.mrb[69].mxu1  ;;  %v10563_v8 = vpop.f32.mrb[32].mxu0 }
 0x17d   : > { %16122 = vst [vmem:[#allocation56_spill] sm:$0xff] %v10547_v24  ;;  %v10549_v30 = vpop.f32.mrb[70].mxu1  ;;  %16129 = vst [vmem:[#allocation63_spill] sm:$0xff] %v10563_v8  ;;  %v10567_v24 = vpop.f32.mrb[33].mxu0 }
 0x17e   : > { %16123 = vst [vmem:[#allocation57_spill] sm:$0xff] %v10549_v30  ;;  %v10551_v35 = vpop.f32.mrb[71].mxu1  ;;  %16131 = vst [vmem:[#allocation65_spill] sm:$0xff] %v10567_v24  ;;  %v9868_v30 = vld [vmem:[%s10055_s19 + $0x210] sm:$0xff]   ;;  %v10573_v42 = vpop.f32.mrb[34].mxu0 }
 0x17f   : > { %16124 = vst [vmem:[#allocation58_spill] sm:$0xff] %v10551_v35  ;;  %v9869_v35 = vld [vmem:[%s10055_s19 + $0x218] sm:$0xff]   ;;  %16132 = vst [vmem:[#allocation66_spill] sm:$0xff] %v10573_v42  ;;  %9525 = vmatprep.mubr.msk.bf16.mxu0 %vm1188_vm0, %v9868_v30  ;;  %v10581_v8 = vpop.f32.mrb[35].mxu0  ;;  %v9871_v42 = vld [vmem:[%s10055_s19 + $0x228] sm:$0xff]  }
 0x180   : > { %9526 = vmatmul.mubr.msk.bf16.gmra.mrb[132].mxu0 %vm1188_vm0, %v9869_v35  ;;  %16135 = vst [vmem:[#allocation69_spill] sm:$0xff] %v10581_v8  ;;  %v10596_v30 = vpop.f32.mrb[36].mxu0 }
 0x181   : > { %16140 = vst [vmem:[#allocation74_spill] sm:$0xff] %v10596_v30 }
 0x183   : > { %v10555_v48 = vpop.f32.mrb[72].mxu1 }
 0x184   : > { %16125 = vst [vmem:[#allocation59_spill] sm:$0xff] %v10555_v48  ;;  %v10557_v51 = vpop.f32.mrb[73].mxu1 }
 0x185   : > { %16126 = vst [vmem:[#allocation60_spill] sm:$0xff] %v10557_v51  ;;  %v10559_v26 = vpop.f32.mrb[74].mxu1 }
 0x186   : > { %16127 = vst [vmem:[#allocation61_spill] sm:$0xff] %v10559_v26  ;;  %v10561_v27 = vpop.f32.mrb[75].mxu1 }
 0x187   : > { %16128 = vst [vmem:[#allocation62_spill] sm:$0xff] %v10561_v27 }
 0x18b   : > { %v10565_v34 = vpop.f32.mrb[76].mxu1 }
 0x18c   : > { %16130 = vst [vmem:[#allocation64_spill] sm:$0xff] %v10565_v34  ;;  %v10571_v32 = vpop.f32.mrb[77].mxu1 }
 0x18d   : > { %v10575_v48 = vpop.f32.mrb[78].mxu1 }
 0x18e   : > { %16133 = vst [vmem:[#allocation67_spill] sm:$0xff] %v10575_v48  ;;  %v10578_v26 = vpop.f32.mrb[79].mxu1  ;;  %v10594_v48 = vld [vmem:[%s15848_s4] ss:$0 sm:$0xff] }
 0x18f   : > { %16134 = vst [vmem:[#allocation68_spill] sm:$0xff] %v10578_v26  ;;  %v9870_v26 = vld [vmem:[%s10055_s19 + $0x220] sm:$0xff]   ;;  %v10602_v35 = vadd.f32 %v10260_v36, %v10594_v48  ;;  %v10619_v30 = vadd.f32 %v10265_v39, %v10594_v48  ;;  %v10623_v36 = vadd.f32 %v10594_v48, %v10268_v41  ;;  %v10643_v41 = vadd.f32 %v10281_v47, %v10594_v48 }
 0x190   : > { %9529 = vmatprep.mubr.msk.bf16.mxu0 %vm1188_vm0, %v9870_v26  ;;  %v10636_v26 = vadd.f32 %v10594_v48, %v10278_v45  ;;  %v10656_v45 = vadd.f32 %v10594_v48, %v10294_v53  ;;  %v10662_v47 = vadd.f32 %v10297_v55, %v10594_v48  ;;  %v10672_v53 = vadd.f32 %v10308_v60, %v10594_v48 }
 0x191   : > { %16141 = vst [vmem:[#allocation75_spill] sm:$0xff] %v10602_v35  ;;  %16146 = vst [vmem:[#allocation80_spill] sm:$0xff] %v10619_v30  ;;  %9530 = vmatmul.mubr.msk.bf16.gmra.mrb[136].mxu0 %vm1188_vm0, %v9871_v42  ;;  %v10681_v55 = vadd.f32 %v10313_v63, %v10594_v48  ;;  %v10689_v42 = vadd.f32 %v10324_v4, %v10594_v48  ;;  %v10698_v63 = vadd.f32 %v10594_v48, %v10326_v5 }
 0x192   : > { %16147 = vst [vmem:[#allocation81_spill] sm:$0xff] %v10623_v36  ;;  %16150 = vst [vmem:[#allocation84_spill] sm:$0xff] %v10636_v26  ;;  %v10706_v4 = vadd.f32 %v10329_v7, %v10594_v48  ;;  %v10724_v7 = vadd.f32 %v10594_v48, %v10342_v13  ;;  %v10733_v5 = vadd.f32 %v10345_v15, %v10594_v48  ;;  %v16219_v26 = vld [vmem:[#allocation17_spill] sm:$0xff]  ;;  %v16230_v36 = vld [vmem:[#allocation23_spill] sm:$0xff] }
 0x193   : > { %v10583_v34 = vpop.f32.mrb[80].mxu1  ;;  %16151 = vst [vmem:[#allocation85_spill] sm:$0xff] %v10643_v41  ;;  %16154 = vst [vmem:[#allocation88_spill] sm:$0xff] %v10656_v45  ;;  %v10742_v13 = vadd.f32 %v10356_v20, %v10594_v48  ;;  %v10760_v20 = vadd.f32 %v10594_v48, %v10364_v25  ;;  %v10772_v15 = vadd.f32 %v10594_v48, %v10374_v29 }
 0x194   : > { %16136 = vst [vmem:[#allocation70_spill] sm:$0xff] %v10583_v34  ;;  %v10585_v24 = vpop.f32.mrb[81].mxu1  ;;  %16155 = vst [vmem:[#allocation89_spill] sm:$0xff] %v10662_v47  ;;  %v10746_v47 = vadd.f32 %v10594_v48, %v10358_v21  ;;  %v10784_v21 = vadd.f32 %v10594_v48, %v10380_v33 }
 0x195   : > { %16137 = vst [vmem:[#allocation71_spill] sm:$0xff] %v10585_v24  ;;  %v10587_v27 = vpop.f32.mrb[82].mxu1  ;;  %v10606_v24 = vpop.f32.mrb[37].mxu0  ;;  %16157 = vst [vmem:[#allocation91_spill] sm:$0xff] %v10672_v53  ;;  %v10768_v53 = vadd.f32 %v10372_v28, %v10594_v48  ;;  %v10788_v28 = vadd.f32 %v10388_v38, %v10594_v48 }
 0x196   : > { %16138 = vst [vmem:[#allocation72_spill] sm:$0xff] %v10587_v27  ;;  %v10589_v51 = vpop.f32.mrb[83].mxu1  ;;  %v10615_v34 = vpop.f32.mrb[38].mxu0  ;;  %16159 = vst [vmem:[#allocation93_spill] sm:$0xff] %v10681_v55  ;;  %v10854_v55 = vadd.f32 %v10414_v0, %v10594_v48 }
 0x197   : > { %16139 = vst [vmem:[#allocation73_spill] sm:$0xff] %v10589_v51  ;;  %v10610_v51 = vadd.f32 %v10594_v48, %v10262_v37  ;;  %16145 = vst [vmem:[#allocation79_spill] sm:$0xff] %v10615_v34  ;;  %v10628_v37 = vpop.f32.mrb[39].mxu0  ;;  %v10676_v34 = vadd.f32 %v10594_v48, %v10310_v61 }
 0x198   : > { %16148 = vst [vmem:[#allocation82_spill] sm:$0xff] %v10628_v37  ;;  %v10648_v37 = vadd.f32 %v10594_v48, %v10284_v49  ;;  %v10666_v49 = vadd.f32 %v10594_v48, %v10300_v57  ;;  %v10685_v57 = vadd.f32 %v10594_v48, %v10316_v1  ;;  %16161 = vst [vmem:[#allocation95_spill] sm:$0xff] %v10689_v42  ;;  %v10714_v35 = vpop.f32.mrb[40].mxu0  ;;  %v9873_v42 = vld [vmem:[%s10055_s19 + $0x238] sm:$0xff]  }
 0x199   : > { %16143 = vst [vmem:[#allocation77_spill] sm:$0xff] %v10610_v51  ;;  %16158 = vst [vmem:[#allocation92_spill] sm:$0xff] %v10676_v34  ;;  %v10780_v1 = vadd.f32 %v10377_v31, %v10594_v48  ;;  %v10798_v31 = vadd.f32 %v10594_v48, %v10390_v40  ;;  %v10833_v40 = vadd.f32 %v10405_v56, %v10594_v48 }
 0x19a   : > { %16152 = vst [vmem:[#allocation86_spill] sm:$0xff] %v10648_v37  ;;  %16156 = vst [vmem:[#allocation90_spill] sm:$0xff] %v10666_v49  ;;  %v9872_v49 = vld [vmem:[%s10055_s19 + $0x230] sm:$0xff]   ;;  %s8864_s19 = sshll.u32 %s262_s18, 4  ;;  %s15802_s19 = int_to_ptr.vmem [resolvable:$true] %s8864_s19 }
 0x19b   : > { %v10604_v8 = vpop.f32.mrb[84].mxu1  ;;  %16160 = vst [vmem:[#allocation94_spill] sm:$0xff] %v10685_v57  ;;  %16162 = vst [vmem:[#allocation96_spill] sm:$0xff] %v10698_v63  ;;  %9533 = vmatprep.mubr.msk.bf16.mxu0 %vm1188_vm0, %v9872_v49  ;;  %v16226_v37 = vld [vmem:[#allocation20_spill] sm:$0xff]  ;;  %s9889_s29 = scalar_lea.vmem %s15802_s19, 256  ;;  %p9896_p1 = scmp.lt.s32.totalorder %s15802_s19, %s9894_s5 }
 0x19c   : > { %16142 = vst [vmem:[#allocation76_spill] sm:$0xff] %v10604_v8  ;;  %v10612_v27 = vpop.f32.mrb[85].mxu1  ;;  %16163 = vst [vmem:[#allocation97_spill] sm:$0xff] %v10706_v4  ;;  %9534 = vmatmul.mubr.msk.bf16.gmra.mrb[140].mxu0 %vm1188_vm0, %v9873_v42  ;;  %v10810_v42 = vadd.f32 %v10594_v48, %v10395_v46  ;;  %v10846_v46 = vadd.f32 %v10594_v48, %v10408_v58  ;;  %v10883_v58 = vadd.f32 %v10425_v11, %v10594_v48  ;;  %v16197_v11 = vld [vmem:[#allocation7_spill] sm:$0xff]  ;;  %p9890_p12 = scmp.ne.s32.totalorder %s15802_s19, %s9889_s29  ;;  %p9897_p2 = scmp.lt.s32.totalorder %s9895_s10, %s9889_s29 }
 0x19d   : > { %16144 = vst [vmem:[#allocation78_spill] sm:$0xff] %v10612_v27  ;;  %v10625_v8 = vpop.f32.mrb[86].mxu1  ;;  %v10632_v27 = vadd.f32 %v10276_v44, %v10594_v48  ;;  %v10652_v44 = vadd.f32 %v10292_v52, %v10594_v48  ;;  %v10710_v52 = vadd.f32 %v10594_v48, %v10332_v9  ;;  %16166 = vst [vmem:[#allocation100_spill] sm:$0xff] %v10724_v7 }
 0x19e   : > { %v10638_v39 = vpop.f32.mrb[87].mxu1  ;;  %16167 = vst [vmem:[#allocation101_spill] sm:$0xff] %v10733_v5  ;;  %16169 = vst [vmem:[#allocation103_spill] sm:$0xff] %v10742_v13  ;;  %v10822_v5 = vadd.f32 %v10398_v50, %v10594_v48  ;;  %v10838_v50 = vadd.f32 %v10410_v59, %v10594_v48  ;;  %v10858_v59 = vadd.f32 %v10594_v48, %v10416_v2  ;;  %p9891_p13 = pnand %p9890_p12, %p10031_p5  ;;  %p9898_p3 = por %p9897_p2, %p9896_p1 }
 0x19f   : > { %16149 = vst [vmem:[#allocation83_spill] sm:$0xff] %v10632_v27  ;;  %16153 = vst [vmem:[#allocation87_spill] sm:$0xff] %v10652_v44  ;;  %v10720_v27 = vadd.f32 %v10340_v12, %v10594_v48  ;;  %v10738_v12 = vadd.f32 %v10594_v48, %v10348_v17  ;;  %v10748_v44 = vpop.f32.mrb[41].mxu0  ;;  %v10756_v17 = vadd.f32 %v10361_v23, %v10594_v48 }
 0x1a0   : > { %16164 = vst [vmem:[#allocation98_spill] sm:$0xff] %v10710_v52  ;;  %16170 = vst [vmem:[#allocation104_spill] sm:$0xff] %v10746_v47  ;;  %v10762_v63 = vpop.f32.mrb[42].mxu0  ;;  %v10876_v2 = vadd.f32 %v10430_v16, %v10594_v48  ;;  %v10893_v16 = vadd.f32 %v10594_v48, %v10432_v18  ;;  %v16211_v47 = vld [vmem:[#allocation14_spill] sm:$0xff]  ;;  %v9953_v52 = vmov 1966171168   ;;  %p9892_p0 = pneg %p9891_p13 }
 0x1a1   : > { %16165 = vst [vmem:[#allocation99_spill] sm:$0xff] %v10720_v27  ;;  %16168 = vst [vmem:[#allocation102_spill] sm:$0xff] %v10738_v12  ;;  %v10775_v23 = vpop.f32.mrb[43].mxu0  ;;  %v10806_v27 = vadd.f32 %v10393_v43, %v10594_v48  ;;  %v10826_v43 = vadd.f32 %v10594_v48, %v10402_v54  ;;  %v10842_v54 = vadd.f32 %v10594_v48, %v10412_v62  ;;  %v3330_v7 = vunpack.c.l.s4 %v9953_v52 }
 0x1a2   : > { %16171 = vst [vmem:[#allocation105_spill] sm:$0xff] %v10756_v17  ;;  %16172 = vst [vmem:[#allocation106_spill] sm:$0xff] %v10760_v20  ;;  %v10814_v49 = vpop.f32.mrb[44].mxu0  ;;  %v10870_v17 = vadd.f32 %v10594_v48, %v10422_v10  ;;  %v10906_v10 = vadd.f32 %v10594_v48, %v10436_v22  ;;  %v16195_v20 = vld [vmem:[#allocation6_spill] sm:$0xff]  ;;  %v11016_v52 = vadd.f32 %v16230_v36, %v10594_v48  ;;  %p9899_p4 = pnand %p9898_p3, %p9892_p0 }
 0x1a3   : > { %v10691_v60 = vpop.f32.mrb[88].mxu1  ;;  %16173 = vst [vmem:[#allocation107_spill] sm:$0xff] %v10768_v53  ;;  %16174 = vst [vmem:[#allocation108_spill] sm:$0xff] %v10772_v15  ;;  %v10848_v38 = vpop.f32.mrb[45].mxu0  ;;  %v10866_v53 = vadd.f32 %v10419_v6, %v10594_v48  ;;  %v10887_v6 = vadd.f32 %v10594_v48, %v10428_v14  ;;  %v10902_v14 = vadd.f32 %v10434_v19, %v10594_v48 }
 0x1a4   : > { %v10700_v41 = vpop.f32.mrb[89].mxu1  ;;  %16175 = vst [vmem:[#allocation109_spill] sm:$0xff] %v10780_v1  ;;  %16176 = vst [vmem:[#allocation110_spill] sm:$0xff] %v10784_v21  ;;  %v10860_v62 = vpop.f32.mrb[46].mxu0  ;;  %v10920_v19 = vadd.f32 %v10594_v48, %v16197_v11 }
 0x1a5   : > { %v10712_v61 = vpop.f32.mrb[90].mxu1  ;;  %16177 = vst [vmem:[#allocation111_spill] sm:$0xff] %v10788_v28  ;;  %16178 = vst [vmem:[#allocation112_spill] sm:$0xff] %v10798_v31  ;;  %v10872_v0 = vpop.f32.mrb[47].mxu0  ;;  %v16209_v28 = vld [vmem:[#allocation13_spill] sm:$0xff] }
 0x1a6   : > { %v10726_v9 = vpop.f32.mrb[91].mxu1  ;;  %16179 = vst [vmem:[#allocation113_spill] sm:$0xff] %v10806_v27  ;;  %16180 = vst [vmem:[#allocation114_spill] sm:$0xff] %v10810_v42  ;;  %v10922_v12 = vpop.f32.mrb[48].mxu0  ;;  %v16213_v42 = vld [vmem:[#allocation15_spill] sm:$0xff] }
 0x1a7   : > { %16181 = vst [vmem:[#allocation115_spill] sm:$0xff] %v10833_v40  ;;  %16182 = vst [vmem:[#allocation116_spill] sm:$0xff] %v10838_v50  ;;  %v16199_v50 = vld [vmem:[#allocation8_spill] sm:$0xff]  ;;  %v10931_v1 = vpop.f32.mrb[49].mxu0  ;;  %v10973_v31 = vadd.f32 %v10594_v48, %v16213_v42  ;;  %v16221_v42 = vld [vmem:[#allocation18_spill] sm:$0xff] }
 0x1a8   : > { %16183 = vst [vmem:[#allocation117_spill] sm:$0xff] %v10842_v54  ;;  %16184 = vst [vmem:[#allocation118_spill] sm:$0xff] %v10846_v46  ;;  %v10929_v4 = vadd.f32 %v16199_v50, %v10594_v48  ;;  %v16203_v54 = vld [vmem:[#allocation9_spill] sm:$0xff]  ;;  %v10942_v22 = vpop.f32.mrb[50].mxu0  ;;  %v16205_v50 = vld [vmem:[#allocation11_spill] sm:$0xff]  ;;  %v10991_v30 = vadd.f32 %v16221_v42, %v10594_v48 }
 0x1a9   : > { %16185 = vst [vmem:[#allocation119_spill] sm:$0xff] %v10854_v55  ;;  %16186 = vst [vmem:[#allocation120_spill] sm:$0xff] %v10858_v59  ;;  %v10916_v55 = vadd.f32 %v16195_v20, %v10594_v48  ;;  %v16201_v59 = vld [vmem:[#allocation10_spill] sm:$0xff]  ;;  %v10940_v27 = vadd.f32 %v10594_v48, %v16203_v54  ;;  %v16207_v20 = vld [vmem:[#allocation12_spill] sm:$0xff]  ;;  %v10958_v54 = vadd.f32 %v10594_v48, %v16209_v28 }
 0x1aa   : > { %16187 = vst [vmem:[#allocation121_spill] sm:$0xff] %v10866_v53  ;;  %16188 = vst [vmem:[#allocation122_spill] sm:$0xff] %v10870_v17  ;;  %v10936_v11 = vadd.f32 %v16201_v59, %v10594_v48  ;;  %v10954_v59 = vpop.f32.mrb[51].mxu0  ;;  %v16215_v28 = vld [vmem:[#allocation16_spill] sm:$0xff]  ;;  %v16247_v42 = vld [vmem:[#allocation26_spill] sm:$0xff] }
 0x1ab   : > { %v10790_v29 = vpop.f32.mrb[92].mxu1  ;;  %16189 = vst [vmem:[#allocation123_spill] sm:$0xff] %v10876_v2  ;;  %16190 = vst [vmem:[#allocation124_spill] sm:$0xff] %v10883_v58  ;;  %v10948_v2 = vadd.f32 %v10594_v48, %v16205_v50  ;;  %v10966_v50 = vpop.f32.mrb[52].mxu0  ;;  %v10977_v57 = vadd.f32 %v16215_v28, %v10594_v48  ;;  %v16250_v46 = vld [vmem:[#allocation37_spill] sm:$0xff] }
 0x1ac   : > { %v10800_v33 = vpop.f32.mrb[93].mxu1  ;;  %16191 = vst [vmem:[#allocation125_spill] sm:$0xff] %v10887_v6  ;;  %16192 = vst [vmem:[#allocation126_spill] sm:$0xff] %v10893_v16  ;;  %v10952_v16 = vadd.f32 %v16207_v20, %v10594_v48  ;;  %v10979_v34 = vpop.f32.mrb[53].mxu0  ;;  %v10987_v20 = vadd.f32 %v10594_v48, %v16219_v26  ;;  %v11005_v26 = vadd.f32 %v10594_v48, %v16226_v37  ;;  %v16234_v37 = vld [vmem:[#allocation25_spill] sm:$0xff] }
 0x1ad   : > { %v10812_v25 = vpop.f32.mrb[94].mxu1  ;;  %16193 = vst [vmem:[#allocation127_spill] sm:$0xff] %v10902_v14  ;;  %16194 = vst [vmem:[#allocation128_spill] sm:$0xff] %v10906_v10  ;;  %v10964_v14 = vadd.f32 %v16211_v47, %v10594_v48  ;;  %v10993_v28 = vpop.f32.mrb[54].mxu0  ;;  %v16223_v47 = vld [vmem:[#allocation19_spill] sm:$0xff]  ;;  %v11025_v53 = vadd.f32 %v10594_v48, %v16234_v37  ;;  %v11070_v6 = vadd.f32 %v10594_v48, %v16250_v46  ;;  %v16256_v46 = vld [vmem:[#allocation28_spill] sm:$0xff] }
 0x1ae   : > { %v10818_v13 = vpop.f32.mrb[95].mxu1  ;;  %16196 = vst [vmem:[#allocation6_spill] sm:$0xff] %v10916_v55  ;;  %16198 = vst [vmem:[#allocation7_spill] sm:$0xff] %v10920_v19  ;;  %v16228_v55 = vld [vmem:[#allocation21_spill] sm:$0xff]  ;;  %v16237_v19 = vld [vmem:[#allocation22_spill] sm:$0xff] }
 0x1af   : > { %16200 = vst [vmem:[#allocation8_spill] sm:$0xff] %v10929_v4  ;;  %16202 = vst [vmem:[#allocation10_spill] sm:$0xff] %v10936_v11  ;;  %v10999_v11 = vadd.f32 %v16223_v47, %v10594_v48  ;;  %v11007_v4 = vpop.f32.mrb[55].mxu0  ;;  %v11012_v58 = vadd.f32 %v10594_v48, %v16228_v55  ;;  %v3331_v55 = vunpack.c.0.s8 %v3330_v7  ;;  %v16240_v7 = vld [vmem:[#allocation31_spill] sm:$0xff] }
 0x1b0   : > { %16204 = vst [vmem:[#allocation9_spill] sm:$0xff] %v10940_v27  ;;  %16206 = vst [vmem:[#allocation11_spill] sm:$0xff] %v10948_v2  ;;  %v11021_v2 = vpop.f32.mrb[56].mxu0 }
 0x1b1   : > { %16208 = vst [vmem:[#allocation12_spill] sm:$0xff] %v10952_v16  ;;  %16210 = vst [vmem:[#allocation13_spill] sm:$0xff] %v10958_v54  ;;  %v11029_v27 = vpop.f32.mrb[57].mxu0  ;;  %v11035_v16 = vadd.f32 %v16237_v19, %v10594_v48  ;;  %v11046_v54 = vadd.f32 %v16240_v7, %v10594_v48  ;;  %v11063_v7 = vadd.f32 %v16247_v42, %v10594_v48 }
 0x1b2   : > { %16212 = vst [vmem:[#allocation14_spill] sm:$0xff] %v10964_v14  ;;  %16214 = vst [vmem:[#allocation15_spill] sm:$0xff] %v10973_v31  ;;  %v16238_v14 = vld [vmem:[#allocation24_spill] sm:$0xff]  ;;  %v11041_v37 = vpop.f32.mrb[58].mxu0  ;;  %v16245_v31 = vld [vmem:[#allocation35_spill] sm:$0xff] }
 0x1b3   : > { %v10878_v56 = vpop.f32.mrb[96].mxu1  ;;  %16216 = vst [vmem:[#allocation16_spill] sm:$0xff] %v10977_v57  ;;  %16217 = vst [vmem:[#allocation129_spill] sm:$0xff] %v10979_v34  ;;  %v11039_v17 = vadd.f32 %v10594_v48, %v16238_v14  ;;  %v16242_v57 = vld [vmem:[#allocation33_spill] sm:$0xff]  ;;  %v11053_v19 = vpop.f32.mrb[59].mxu0  ;;  %v11059_v40 = vadd.f32 %v16245_v31, %v10594_v48  ;;  %v11075_v14 = vsub.s32 %v3331_v55, %v10522_v3 }
 0x1b4   : > { %v10895_v15 = vpop.f32.mrb[97].mxu1  ;;  %16220 = vst [vmem:[#allocation17_spill] sm:$0xff] %v10987_v20  ;;  %16222 = vst [vmem:[#allocation18_spill] sm:$0xff] %v10993_v28  ;;  %v11050_v36 = vadd.f32 %v10594_v48, %v16242_v57  ;;  %v16253_v20 = vld [vmem:[#allocation27_spill] sm:$0xff]  ;;  %v16264_v57 = vld [vmem:[#allocation32_spill] sm:$0xff] }
 0x1b5   : > { %v10908_v21 = vpop.f32.mrb[98].mxu1  ;;  %16224 = vst [vmem:[#allocation19_spill] sm:$0xff] %v10999_v11  ;;  %16227 = vst [vmem:[#allocation20_spill] sm:$0xff] %v11007_v4  ;;  %v11065_v11 = vpop.f32.mrb[60].mxu0  ;;  %v11079_v31 = vadd.f32 %v10594_v48, %v16253_v20  ;;  %v16290_v28 = vld [vmem:[#allocation48_spill] sm:$0xff]  ;;  %v16295_v4 = vld [vmem:[#allocation50_spill] sm:$0xff] }
 0x1b6   : > { %v10910_v18 = vpop.f32.mrb[99].mxu1  ;;  %16229 = vst [vmem:[#allocation21_spill] sm:$0xff] %v11012_v58  ;;  %16231 = vst [vmem:[#allocation23_spill] sm:$0xff] %v11016_v52  ;;  %v11081_v52 = vpop.f32.mrb[61].mxu0  ;;  %v16262_v58 = vld [vmem:[#allocation30_spill] sm:$0xff]  ;;  %v11169_v20 = vadd.f32 %v10594_v48, %v16290_v28 }
 0x1b7   : > { %16233 = vst [vmem:[#allocation133_spill] sm:$0xff] %v11021_v2  ;;  %16235 = vst [vmem:[#allocation25_spill] sm:$0xff] %v11025_v53  ;;  %v11089_v53 = vadd.f32 %v16256_v46, %v10594_v48  ;;  %v11107_v46 = vadd.f32 %v10594_v48, %v16264_v57  ;;  %v16280_v57 = vld [vmem:[#allocation42_spill] sm:$0xff] }
 0x1b8   : > { %16236 = vst [vmem:[#allocation134_spill] sm:$0xff] %v11029_v27  ;;  %16239 = vst [vmem:[#allocation22_spill] sm:$0xff] %v11041_v37 }
 0x1b9   : > { %16241 = vst [vmem:[#allocation24_spill] sm:$0xff] %v11046_v54  ;;  %16243 = vst [vmem:[#allocation31_spill] sm:$0xff] %v11050_v36  ;;  %v16270_v36 = vld [vmem:[#allocation36_spill] sm:$0xff] }
 0x1ba   : > { %16244 = vst [vmem:[#allocation33_spill] sm:$0xff] %v11053_v19  ;;  %16246 = vst [vmem:[#allocation35_spill] sm:$0xff] %v11059_v40 }
 0x1bb   : > { %v10968_v10 = vpop.f32.mrb[100].mxu1  ;;  %16248 = vst [vmem:[#allocation26_spill] sm:$0xff] %v11063_v7  ;;  %16249 = vst [vmem:[#allocation135_spill] sm:$0xff] %v11065_v11  ;;  %v11095_v11 = vpop.f32.mrb[62].mxu0  ;;  %v16276_v7 = vld [vmem:[#allocation40_spill] sm:$0xff] }
 0x1bc   : > { %v10982_v45 = vpop.f32.mrb[101].mxu1  ;;  %16251 = vst [vmem:[#allocation37_spill] sm:$0xff] %v11070_v6  ;;  %16254 = vst [vmem:[#allocation27_spill] sm:$0xff] %v11081_v52  ;;  %v11109_v27 = vpop.f32.mrb[63].mxu0  ;;  %v16268_v52 = vld [vmem:[#allocation34_spill] sm:$0xff]  ;;  %v16282_v6 = vld [vmem:[#allocation43_spill] sm:$0xff] }
 0x1bd   : > { %16218 = vst [vmem:[#allocation130_spill] sm:$0xff] %v10982_v45  ;;  %v11001_v51 = vpop.f32.mrb[102].mxu1  ;;  %16257 = vst [vmem:[#allocation28_spill] sm:$0xff] %v11089_v53  ;;  %v11117_v54 = vadd.f32 %v16268_v52, %v10594_v48  ;;  %v16284_v53 = vld [vmem:[#allocation44_spill] sm:$0xff] }
 0x1be   : > { %16225 = vst [vmem:[#allocation131_spill] sm:$0xff] %v11001_v51  ;;  %v11018_v47 = vpop.f32.mrb[103].mxu1  ;;  %16260 = vst [vmem:[#allocation138_spill] sm:$0xff] %v11095_v11  ;;  %v16328_v51 = vld [vmem:[#allocation65_spill] sm:$0xff] }
 0x1bf   : > { %16232 = vst [vmem:[#allocation132_spill] sm:$0xff] %v11018_v47  ;;  %16265 = vst [vmem:[#allocation32_spill] sm:$0xff] %v11107_v46  ;;  %v16288_v47 = vld [vmem:[#allocation47_spill] sm:$0xff] }
 0x1c0   : > { %16266 = vst [vmem:[#allocation140_spill] sm:$0xff] %v11109_v27  ;;  %16269 = vst [vmem:[#allocation34_spill] sm:$0xff] %v11117_v54  ;;  %v16272_v27 = vld [vmem:[#allocation38_spill] sm:$0xff]  ;;  %v16301_v54 = vld [vmem:[#allocation52_spill] sm:$0xff] }
 0x1c1   : > { %v11127_v11 = vadd.f32 %v16272_v27, %v10594_v48  ;;  %v11145_v27 = vadd.f32 %v16280_v57, %v10594_v48  ;;  %16291 = vst [vmem:[#allocation48_spill] sm:$0xff] %v11169_v20  ;;  %v11181_v57 = vadd.f32 %v10594_v48, %v16295_v4  ;;  %v11202_v28 = vadd.f32 %v10594_v48, %v16301_v54  ;;  %v16308_v4 = vld [vmem:[#allocation55_spill] sm:$0xff]  ;;  %v16318_v54 = vld [vmem:[#allocation60_spill] sm:$0xff] }
 0x1c3   : > { %v11072_v19 = vpop.f32.mrb[104].mxu1  ;;  %16273 = vst [vmem:[#allocation38_spill] sm:$0xff] %v11127_v11  ;;  %16281 = vst [vmem:[#allocation42_spill] sm:$0xff] %v11145_v27 }
 0x1c4   : > { %16252 = vst [vmem:[#allocation136_spill] sm:$0xff] %v11072_v19  ;;  %v11083_v42 = vpop.f32.mrb[105].mxu1  ;;  %v16258_v19 = vld [vmem:[#allocation29_spill] sm:$0xff]  ;;  %16296 = vst [vmem:[#allocation50_spill] sm:$0xff] %v11181_v57  ;;  %v16322_v57 = vld [vmem:[#allocation62_spill] sm:$0xff] }
 0x1c5   : > { %16255 = vst [vmem:[#allocation137_spill] sm:$0xff] %v11083_v42  ;;  %v11093_v55 = vadd.f32 %v10594_v48, %v16258_v19  ;;  %v11099_v37 = vpop.f32.mrb[106].mxu1  ;;  %v11103_v42 = vadd.f32 %v16262_v58, %v10594_v48  ;;  %v11121_v58 = vadd.f32 %v10594_v48, %v16270_v36  ;;  %v16274_v19 = vld [vmem:[#allocation39_spill] sm:$0xff]  ;;  %v11137_v36 = vadd.f32 %v16276_v7, %v10594_v48 }
 0x1c6   : > { %16261 = vst [vmem:[#allocation139_spill] sm:$0xff] %v11099_v37  ;;  %v11112_v2 = vpop.f32.mrb[107].mxu1  ;;  %v11131_v40 = vadd.f32 %v10594_v48, %v16274_v19  ;;  %v11149_v19 = vadd.f32 %v10594_v48, %v16282_v6  ;;  %v11155_v7 = vadd.f32 %v16284_v53, %v10594_v48  ;;  %v11165_v6 = vadd.f32 %v16288_v47, %v10594_v48 }
 0x1c7   : > { %16259 = vst [vmem:[#allocation29_spill] sm:$0xff] %v11093_v55  ;;  %16263 = vst [vmem:[#allocation30_spill] sm:$0xff] %v11103_v42  ;;  %v16286_v55 = vld [vmem:[#allocation45_spill] sm:$0xff]  ;;  %v16298_v42 = vld [vmem:[#allocation51_spill] sm:$0xff] }
 0x1c8   : > { %16267 = vst [vmem:[#allocation141_spill] sm:$0xff] %v11112_v2  ;;  %16271 = vst [vmem:[#allocation36_spill] sm:$0xff] %v11121_v58  ;;  %v16278_v2 = vld [vmem:[#allocation41_spill] sm:$0xff]  ;;  %v11191_v11 = vadd.f32 %v16298_v42, %v10594_v48 }
 0x1c9   : > { %16275 = vst [vmem:[#allocation39_spill] sm:$0xff] %v11131_v40  ;;  %16277 = vst [vmem:[#allocation40_spill] sm:$0xff] %v11137_v36  ;;  %v11141_v37 = vadd.f32 %v10594_v48, %v16278_v2  ;;  %v11159_v2 = vadd.f32 %v10594_v48, %v16286_v55  ;;  %v16293_v55 = vld [vmem:[#allocation49_spill] sm:$0xff]  ;;  %v11196_v40 = vsub.s32 0, %v10522_v3  ;;  %v16306_v3 = vld [vmem:[#allocation54_spill] sm:$0xff] }
 0x1ca   : > { %16283 = vst [vmem:[#allocation43_spill] sm:$0xff] %v11149_v19  ;;  %16285 = vst [vmem:[#allocation44_spill] sm:$0xff] %v11155_v7  ;;  %v11177_v46 = vadd.f32 %v16293_v55, %v10594_v48  ;;  %v16303_v58 = vld [vmem:[#allocation53_spill] sm:$0xff]  ;;  %v11214_v36 = vadd.f32 %v10594_v48, %v16306_v3  ;;  %v16314_v3 = vld [vmem:[#allocation58_spill] sm:$0xff]  ;;  %v11241_v7 = vadd.f32 %v10594_v48, %v16318_v54 }
 0x1cb   : > { %16279 = vst [vmem:[#allocation41_spill] sm:$0xff] %v11141_v37  ;;  %16287 = vst [vmem:[#allocation45_spill] sm:$0xff] %v11159_v2  ;;  %v11171_v52 = vpop.f32.mrb[108].mxu1  ;;  %v11206_v53 = vadd.f32 %v16303_v58, %v10594_v48  ;;  %v16310_v58 = vld [vmem:[#allocation56_spill] sm:$0xff]  ;;  %v16312_v42 = vld [vmem:[#allocation57_spill] sm:$0xff]  ;;  %v11233_v20 = vadd.f32 %v10594_v48, %v16314_v3  ;;  %v11273_v54 = vadd.f32 %v10594_v48, %v16328_v51 }
 0x1cc   : > { %16289 = vst [vmem:[#allocation47_spill] sm:$0xff] %v11165_v6  ;;  %16292 = vst [vmem:[#allocation142_spill] sm:$0xff] %v11171_v52  ;;  %v11183_v47 = vpop.f32.mrb[109].mxu1  ;;  %v11224_v2 = vadd.f32 %v10594_v48, %v16310_v58  ;;  %v11228_v6 = vadd.f32 %v16312_v42, %v10594_v48  ;;  %v11246_v58 = vld [vmem:[%s15848_s4 + $0x1] ss:$0 sm:$0xff]  ;;  %v16320_v3 = vld [vmem:[#allocation61_spill] sm:$0xff] }
 0x1cd   : > { %16294 = vst [vmem:[#allocation49_spill] sm:$0xff] %v11177_v46  ;;  %16297 = vst [vmem:[#allocation143_spill] sm:$0xff] %v11183_v47  ;;  %v11193_v55 = vpop.f32.mrb[110].mxu1  ;;  %v11218_v47 = vadd.f32 %v16308_v4, %v10594_v48  ;;  %v16316_v4 = vld [vmem:[#allocation59_spill] sm:$0xff]  ;;  %v11252_v46 = vadd.f32 %v16320_v3, %v10594_v48  ;;  %v16336_v51 = vld [vmem:[#allocation68_spill] sm:$0xff] }
 0x1ce   : > { %16299 = vst [vmem:[#allocation51_spill] sm:$0xff] %v11191_v11  ;;  %16300 = vst [vmem:[#allocation144_spill] sm:$0xff] %v11193_v55  ;;  %v11208_v27 = vpop.f32.mrb[111].mxu1  ;;  %v11237_v37 = vadd.f32 %v16316_v4, %v10594_v48  ;;  %v11256_v4 = vadd.f32 %v10594_v48, %v16322_v57  ;;  %v16326_v42 = vld [vmem:[#allocation63_spill] sm:$0xff]  ;;  %v11290_v11 = vadd.f32 %v10594_v48, %v10571_v32 }
 0x1cf   : > { %16302 = vst [vmem:[#allocation52_spill] sm:$0xff] %v11202_v28  ;;  %16304 = vst [vmem:[#allocation53_spill] sm:$0xff] %v11206_v53  ;;  %v11266_v19 = vadd.f32 %v16326_v42, %v10594_v48  ;;  %v11281_v42 = vld [vmem:[%s15848_s4 + $0x2] ss:$0 sm:$0xff]  ;;  %v11306_v32 = vadd.f32 %v10594_v48, %v16336_v51 }
 0x1d0   : > { %16305 = vst [vmem:[#allocation145_spill] sm:$0xff] %v11208_v27  ;;  %16307 = vst [vmem:[#allocation54_spill] sm:$0xff] %v11214_v36  ;;  %v16324_v27 = vld [vmem:[#allocation64_spill] sm:$0xff]  ;;  %v16347_v36 = vld [vmem:[#allocation73_spill] sm:$0xff] }
 0x1d1   : > { %16309 = vst [vmem:[#allocation55_spill] sm:$0xff] %v11218_v47  ;;  %16311 = vst [vmem:[#allocation56_spill] sm:$0xff] %v11224_v2  ;;  %v11262_v55 = vadd.f32 %v16324_v27, %v10594_v48 }
 0x1d2   : > { %16313 = vst [vmem:[#allocation57_spill] sm:$0xff] %v11228_v6  ;;  %16315 = vst [vmem:[#allocation58_spill] sm:$0xff] %v11233_v20 }
 0x1d3   : > { %16317 = vst [vmem:[#allocation59_spill] sm:$0xff] %v11237_v37  ;;  %16319 = vst [vmem:[#allocation60_spill] sm:$0xff] %v11241_v7  ;;  %v9655_v52 = vpop.f32.mrb[112].mxu1  ;;  %v16345_v7 = vld [vmem:[#allocation72_spill] sm:$0xff] }
 0x1d4   : > { %16321 = vst [vmem:[#allocation61_spill] sm:$0xff] %v11252_v46  ;;  %16323 = vst [vmem:[#allocation62_spill] sm:$0xff] %v11256_v4  ;;  %v3110_v57 = vadd.f32 %v9655_v52, %v11246_v58  ;;  %v3101_v28 = vpop.f32.mrb[113].mxu1  ;;  %v16334_v52 = vld [vmem:[#allocation67_spill] sm:$0xff]  ;;  %v16343_v4 = vld [vmem:[#allocation69_spill] sm:$0xff]  ;;  %v11330_v47 = vadd.f32 %v16345_v7, %v10594_v48 }
 0x1d5   : > { %16325 = vst [vmem:[#allocation64_spill] sm:$0xff] %v11262_v55  ;;  %16327 = vst [vmem:[#allocation63_spill] sm:$0xff] %v11266_v19  ;;  %v3102_v53 = vadd.f32 %v11246_v58, %v3101_v28  ;;  %v11284_v3 = vpop.f32.mrb[114].mxu1  ;;  %v16332_v28 = vld [vmem:[#allocation66_spill] sm:$0xff]  ;;  %v11302_v46 = vadd.f32 %v16334_v52, %v10594_v48  ;;  %v16340_v55 = vld [vmem:[#allocation71_spill] sm:$0xff]  ;;  %v11325_v51 = vadd.f32 %v10594_v48, %v16343_v4 }
 0x1d6   : > { %16329 = vst [vmem:[#allocation65_spill] sm:$0xff] %v11273_v54  ;;  %16330 = vst [vmem:[#allocation146_spill] sm:$0xff] %v11290_v11  ;;  %v3230_v27 = vmax.f32 %v3110_v57, 0.0  ;;  %v11292_v6 = vpop.f32.mrb[115].mxu1  ;;  %v11298_v2 = vadd.f32 %v16332_v28, %v10594_v48  ;;  %v11318_v28 = vadd.f32 %v10594_v48, %v16340_v55  ;;  %v16352_v11 = vld [vmem:[#allocation74_spill] sm:$0xff] }
 0x1d7   : > { %16331 = vst [vmem:[#allocation147_spill] sm:$0xff] %v11292_v6  ;;  %v3228_v20 = vmax.f32 %v3102_v53, 0.0  ;;  %16335 = vst [vmem:[#allocation67_spill] sm:$0xff] %v11302_v46  ;;  %v16338_v53 = vld [vmem:[#allocation70_spill] sm:$0xff]  ;;  %v11351_v54 = vadd.f32 %v16352_v11, %v10594_v48  ;;  %v16359_v46 = vld [vmem:[#allocation79_spill] sm:$0xff]  ;;  %v16368_v6 = vmax.f32 %v11039_v17, 0.0 }
 0x1d8   : > { %16333 = vst [vmem:[#allocation66_spill] sm:$0xff] %v11298_v2  ;;  %16337 = vst [vmem:[#allocation68_spill] sm:$0xff] %v11306_v32  ;;  %v11309_v57 = vmul.f32 %v11281_v42, %v3230_v27  ;;  %v11314_v37 = vadd.f32 %v16338_v53, %v10594_v48  ;;  %v11334_v53 = vadd.f32 %v10594_v48, %v16347_v36  ;;  %v16356_v2 = vld [vmem:[#allocation78_spill] sm:$0xff] }
 0x1d9   : > { %16341 = vst [vmem:[#allocation71_spill] sm:$0xff] %v11318_v28  ;;  %v11321_v52 = vmul.f32 %v11281_v42, %v3228_v20  ;;  %16344 = vst [vmem:[#allocation69_spill] sm:$0xff] %v11325_v51  ;;  %v16349_v20 = vld [vmem:[#allocation76_spill] sm:$0xff]  ;;  %v11367_v11 = vadd.f32 %v10594_v48, %v16356_v2  ;;  %v11390_v32 = vadd.f32 %v16359_v46, %v10594_v48 }
 0x1da   : > { %16339 = vst [vmem:[#allocation70_spill] sm:$0xff] %v11314_v37  ;;  %16346 = vst [vmem:[#allocation72_spill] sm:$0xff] %v11330_v47  ;;  %v3433_v55 = vrot.slane %v11309_v57, %v11075_v14  ;;  %v11340_v19 = vadd.f32 %v16349_v20, %v10594_v48  ;;  %v11359_v20 = vadd.f32 %v10594_v48, %v10606_v24 }
 0x1db   : > { %16342 = vst [vmem:[#allocation148_spill] sm:$0xff] %v11321_v52  ;;  %16348 = vst [vmem:[#allocation73_spill] sm:$0xff] %v11334_v53  ;;  %v11344_v4 = vrot.slane %v11321_v52, %v11075_v14  ;;  %v11346_v27 = vpop.f32.mrb[116].mxu1  ;;  %v11361_v52 = vpop.f32.mrb[64].mxu0 }
 0x1dc   : > { %16350 = vst [vmem:[#allocation76_spill] sm:$0xff] %v11340_v19  ;;  %16351 = vst [vmem:[#allocation149_spill] sm:$0xff] %v11346_v27  ;;  %v3441_v45 = vcombine.high %v3433_v55, %v3433_v55  ;;  %v11355_v34 = vpop.f32.mrb[117].mxu1  ;;  %v11375_v24 = vrot.slane %v3433_v55, %v11075_v14  ;;  %v11382_v7 = vpop.f32.mrb[65].mxu0  ;;  %v16367_v19 = vmax.f32 %v11005_v26, 0.0  ;;  %v11438_v26 = vadd.f32 %v10594_v48, %v10726_v9 }
 0x1dd   : > { %16353 = vst [vmem:[#allocation74_spill] sm:$0xff] %v11351_v54  ;;  %16354 = vst [vmem:[#allocation150_spill] sm:$0xff] %v11359_v20  ;;  %v11369_v36 = vpop.f32.mrb[118].mxu1  ;;  %v3351_v37 = vrot.slane %v11344_v4, %v11075_v14  ;;  %v11392_v55 = vpop.f32.mrb[66].mxu0  ;;  %v16364_v54 = vld [vmem:[#allocation82_spill] sm:$0xff] }
 0x1de   : > { %16355 = vst [vmem:[#allocation151_spill] sm:$0xff] %v11361_v52  ;;  %16357 = vst [vmem:[#allocation78_spill] sm:$0xff] %v11367_v11  ;;  %v11378_v52 = vrot.slane %v3441_v45, %v11075_v14  ;;  %v11380_v27 = vpop.f32.mrb[119].mxu1  ;;  %v11396_v45 = vadd.f32 %v10625_v8, %v10594_v48  ;;  %v4963_v47 = vrot.slane %v11375_v24, %v11196_v40  ;;  %v11403_v53 = vpop.f32.mrb[67].mxu0 }
 0x1df   : > { %16358 = vst [vmem:[#allocation152_spill] sm:$0xff] %v11382_v7  ;;  %16360 = vst [vmem:[#allocation79_spill] sm:$0xff] %v11390_v32  ;;  %v4899_v46 = vrot.slane %v3351_v37, %v11196_v40  ;;  %v3373_v28 = vcombine.high %v3351_v37, %v3351_v37  ;;  %v11413_v8 = vadd.f32 %v10594_v48, %v10638_v39  ;;  %v16371_v39 = vmax.f32 %v10826_v43, 0.0  ;;  %v11448_v43 = vpop.f32.mrb[68].mxu0 }
 0x1e0   : > { %16361 = vst [vmem:[#allocation153_spill] sm:$0xff] %v11392_v55  ;;  %16362 = vst [vmem:[#allocation154_spill] sm:$0xff] %v11396_v45  ;;  %v4967_v2 = vrot.slane %v11378_v52, %v11196_v40  ;;  %v11409_v55 = vadd.f32 %v10594_v48, %v16364_v54  ;;  %v11417_v7 = vadd.f32 %v10691_v60, %v10594_v48 }
 0x1e1   : > { %16363 = vst [vmem:[#allocation155_spill] sm:$0xff] %v11403_v53  ;;  %16365 = vst [vmem:[#allocation82_spill] sm:$0xff] %v11413_v8  ;;  %v6192_v53 = vmul.f32 %v4963_v47, %v16367_v19  ;;  %v11425_v37 = vadd.f32 %v10594_v48, %v10700_v41  ;;  %v11429_v54 = vadd.f32 %v10712_v61, %v10594_v48 }
 0x1e2   : > { %16366 = vst [vmem:[#allocation156_spill] sm:$0xff] %v11417_v7  ;;  %v6193_v11 = vmul.f32 %v4967_v2, %v16368_v6  ;;  %v6176_v20 = vmul.f32 %v4899_v46, %v16371_v39  ;;  %v4907_v60 = vrot.slane %v3373_v28, %v11196_v40  ;;  %16372 = vst [vmem:[#allocation159_spill] sm:$0xff] %v11438_v26  ;;  %v16375_v6 = vmax.f32 %v10822_v5, 0.0 }
 0x1e3   : > { %16369 = vst [vmem:[#allocation157_spill] sm:$0xff] %v11425_v37  ;;  %16370 = vst [vmem:[#allocation158_spill] sm:$0xff] %v11429_v54  ;;  %v11434_v51 = vpop.f32.mrb[120].mxu1  ;;  %v6480_v17 = vsel %vm3018_vm1, %v6192_v53, 0.0  ;;  %v11446_v61 = vadd.f32 %v10714_v35, %v10594_v48  ;;  %v11457_v53 = vadd.f32 %v10594_v48, %v10748_v44  ;;  %v11470_v39 = vadd.f32 %v10594_v48, %v10775_v23 }
 0x1e4   : > { %v6483_v41 = vsel %vm3018_vm1, %v6193_v11, 0.0  ;;  %v11442_v19 = vpop.f32.mrb[121].mxu1  ;;  %16374 = vst [vmem:[#allocation161_spill] sm:$0xff] %v11448_v43  ;;  %6481 = vadd.xlane.f32.xlu0 %v6480_v17  ;;  %v6178_v47 = vmul.f32 %v4907_v60, %v16375_v6  ;;  %v11461_v11 = vadd.f32 %v10762_v63, %v10594_v48  ;;  %v11472_v60 = vpop.f32.mrb[69].mxu0  ;;  %v11478_v63 = vadd.f32 %v10790_v29, %v10594_v48 }
 0x1e5   : > { %16373 = vst [vmem:[#allocation160_spill] sm:$0xff] %v11446_v61  ;;  %6484 = vadd.xlane.f32.xlu1 %v6483_v41  ;;  %v11452_v28 = vpop.f32.mrb[122].mxu1  ;;  %16376 = vst [vmem:[#allocation162_spill] sm:$0xff] %v11457_v53  ;;  %v3426_v41 = vcombine.high %v11309_v57, %v11309_v57  ;;  %v11482_v6 = vpop.f32.mrb[70].mxu0  ;;  %v6432_v23 = vsel %vm3018_vm1, %v6176_v20, 0.0  ;;  %v3113_v29 = vadd.f32 %v11284_v3, %v11246_v58  ;;  %v16492_v53 = vld [vmem:[#allocation9_spill] sm:$0xff] }
 0x1e6   : > { %16377 = vst [vmem:[#allocation163_spill] sm:$0xff] %v11461_v11  ;;  %v11465_v46 = vpop.f32.mrb[123].mxu1  ;;  %16378 = vst [vmem:[#allocation164_spill] sm:$0xff] %v11470_v39  ;;  %v6438_v2 = vsel %vm3018_vm1, %v6178_v47, 0.0  ;;  %v11488_v44 = vpop.f32.mrb[71].mxu0  ;;  %v11497_v20 = vadd.f32 %v10594_v48, %v10800_v33  ;;  %v3471_v47 = vcombine.high %v11375_v24, %v11375_v24  ;;  %v3473_v35 = vcombine.high %v11378_v52, %v11378_v52 }
 0x1e7   : > { %16379 = vst [vmem:[#allocation165_spill] sm:$0xff] %v11472_v60  ;;  %16380 = vst [vmem:[#allocation166_spill] sm:$0xff] %v11478_v63  ;;  %v11514_v33 = vadd.f32 %v10814_v49, %v10594_v48  ;;  %v11518_v24 = vadd.f32 %v10812_v25, %v10594_v48  ;;  %v11532_v49 = vadd.f32 %v10878_v56, %v10594_v48  ;;  %v3231_v17 = vmax.f32 %v3113_v29, 0.0  ;;  %v16458_v60 = vld [vmem:[#allocation148_spill] sm:$0xff] }
 0x1e8   : > { %16381 = vst [vmem:[#allocation167_spill] sm:$0xff] %v11482_v6  ;;  %16382 = vst [vmem:[#allocation168_spill] sm:$0xff] %v11488_v44  ;;  %6433 = vadd.xlane.f32.xlu0 %v6432_v23  ;;  %v3440_v23 = vrot.slane %v3426_v41, %v11075_v14  ;;  %v4971_v52 = vrot.slane %v3471_v47, %v11196_v40  ;;  %v4975_v3 = vrot.slane %v3473_v35, %v11196_v40  ;;  %v11528_v41 = vpop.f32.mrb[72].mxu0 }
 0x1e9   : > { %6439 = vadd.xlane.f32.xlu1 %v6438_v2  ;;  %16383 = vst [vmem:[#allocation169_spill] sm:$0xff] %v11497_v20  ;;  %v11507_v2 = vadd.f32 %v10594_v48, %v10818_v13  ;;  %16385 = vst [vmem:[#allocation171_spill] sm:$0xff] %v11514_v33  ;;  %v11526_v13 = vadd.f32 %v10594_v48, %v10848_v38  ;;  %v11538_v25 = vadd.f32 %v10860_v62, %v10594_v48  ;;  %v11558_v45 = vpop.f32.mrb[73].mxu0 }
 0x1ea   : > { %16386 = vst [vmem:[#allocation172_spill] sm:$0xff] %v11518_v24  ;;  %16388 = vst [vmem:[#allocation174_spill] sm:$0xff] %v11528_v41  ;;  %v11542_v35 = vadd.f32 %v10594_v48, %v10872_v0  ;;  %v11546_v38 = vadd.f32 %v10594_v48, %v10895_v15  ;;  %v11550_v47 = vadd.f32 %v10908_v21, %v10594_v48  ;;  %v16394_v56 = vmax.f32 %v10991_v30, 0.0  ;;  %v11566_v8 = vpop.f32.mrb[74].mxu0  ;;  %v16445_v41 = vld [vmem:[#allocation32_spill] sm:$0xff] }
 0x1eb   : > { %16384 = vst [vmem:[#allocation170_spill] sm:$0xff] %v11507_v2  ;;  %v11510_v5 = vpop.f32.mrb[124].mxu1  ;;  %16387 = vst [vmem:[#allocation173_spill] sm:$0xff] %v11526_v13  ;;  %v16395_v24 = vmax.f32 %v11035_v16, 0.0  ;;  %v11563_v15 = vrot.slane %v3440_v23, %v11075_v14  ;;  %v11570_v30 = vadd.f32 %v10594_v48, %v10910_v18  ;;  %v11587_v18 = vadd.f32 %v10594_v48, %v10931_v1 }
 0x1ec   : > { %v11522_v9 = vpop.f32.mrb[125].mxu1  ;;  %16389 = vst [vmem:[#allocation175_spill] sm:$0xff] %v11532_v49  ;;  %16390 = vst [vmem:[#allocation176_spill] sm:$0xff] %v11538_v25  ;;  %v6194_v29 = vmul.f32 %v4971_v52, %v16394_v56  ;;  %v11578_v52 = vpop.f32.mrb[75].mxu0  ;;  %v11581_v56 = vmul.f32 %v11281_v42, %v3231_v17  ;;  %v11601_v1 = vadd.f32 %v10942_v22, %v10594_v48  ;;  %v16408_v22 = vld [vmem:[#allocation130_spill] sm:$0xff]  ;;  %v16410_v49 = vld [vmem:[#allocation131_spill] sm:$0xff] }
 0x1ed   : > { %v11534_v57 = vpop.f32.mrb[126].mxu1  ;;  %16391 = vst [vmem:[#allocation177_spill] sm:$0xff] %v11542_v35  ;;  %16392 = vst [vmem:[#allocation178_spill] sm:$0xff] %v11546_v38  ;;  %v6195_v63 = vmul.f32 %v4975_v3, %v16395_v24  ;;  %v11576_v24 = vadd.f32 %v10922_v12, %v10594_v48  ;;  %v11593_v17 = vpop.f32.mrb[76].mxu0  ;;  %v11616_v0 = vadd.f32 %v10968_v10, %v10594_v48  ;;  %v16406_v10 = vld [vmem:[#allocation129_spill] sm:$0xff]  ;;  %v16416_v35 = vld [vmem:[#allocation132_spill] sm:$0xff] }
 0x1ee   : > { %16393 = vst [vmem:[#allocation179_spill] sm:$0xff] %v11550_v47  ;;  %v11556_v62 = vpop.f32.mrb[127].mxu1  ;;  %16396 = vst [vmem:[#allocation180_spill] sm:$0xff] %v11558_v45  ;;  %v6486_v16 = vsel %vm3018_vm1, %v6194_v29, 0.0  ;;  %v11605_v29 = vadd.f32 %v10594_v48, %v10954_v59  ;;  %v11611_v12 = vpop.f32.mrb[77].mxu0  ;;  %v3442_v3 = vcombine.high %v3440_v23, %v3440_v23  ;;  %v11625_v59 = vrot.slane %v11581_v56, %v11075_v14  ;;  %v16420_v25 = vld [vmem:[#allocation133_spill] sm:$0xff] }
 0x1ef   : > { %16397 = vst [vmem:[#allocation181_spill] sm:$0xff] %v11566_v8  ;;  %16398 = vst [vmem:[#allocation182_spill] sm:$0xff] %v11570_v30  ;;  %6487 = vadd.xlane.f32.xlu0 %v6486_v16  ;;  %v6489_v54 = vsel %vm3018_vm1, %v6195_v63, 0.0  ;;  %v4979_v63 = vrot.slane %v11563_v15, %v11196_v40  ;;  %v11621_v20 = vpop.f32.mrb[78].mxu0  ;;  %v11634_v23 = vadd.f32 %v10594_v48, %v16406_v10 }
 0x1f0   : > { %16399 = vst [vmem:[#allocation183_spill] sm:$0xff] %v11578_v52  ;;  %6490 = vadd.xlane.f32.xlu1 %v6489_v54  ;;  %16400 = vst [vmem:[#allocation184_spill] sm:$0xff] %v11593_v17  ;;  %v11609_v54 = vadd.f32 %v10966_v50, %v10594_v48  ;;  %v16405_v50 = vmax.f32 %v11079_v31, 0.0  ;;  %v11636_v47 = vpop.f32.mrb[79].mxu0  ;;  %v11640_v37 = vadd.f32 %v10594_v48, %v16408_v22 }
 0x1f1   : > { %16402 = vst [vmem:[#allocation186_spill] sm:$0xff] %v11611_v12  ;;  %16403 = vst [vmem:[#allocation187_spill] sm:$0xff] %v11616_v0  ;;  %v11644_v30 = vadd.f32 %v16410_v49, %v10594_v48  ;;  %v11647_v31 = vrot.slane %v3442_v3, %v11075_v14  ;;  %v11655_v10 = vpop.f32.mrb[80].mxu0  ;;  %v11678_v49 = vrot.slane %v11625_v59, %v11075_v14 }
 0x1f2   : > { %16401 = vst [vmem:[#allocation185_spill] sm:$0xff] %v11609_v54  ;;  %16404 = vst [vmem:[#allocation188_spill] sm:$0xff] %v11621_v20  ;;  %v6196_v7 = vmul.f32 %v4979_v63, %v16405_v50  ;;  %v16412_v50 = vld [vmem:[#allocation18_spill] sm:$0xff]  ;;  %v11661_v33 = vpop.f32.mrb[81].mxu0  ;;  %v16418_v20 = vld [vmem:[#allocation20_spill] sm:$0xff] }
 0x1f3   : > { %v11597_v16 = vpop.f32.mrb[128].mxu1  ;;  %16407 = vst [vmem:[#allocation129_spill] sm:$0xff] %v11636_v47  ;;  %16409 = vst [vmem:[#allocation130_spill] sm:$0xff] %v11640_v37  ;;  %v11653_v21 = vadd.f32 %v16412_v50, %v10594_v48  ;;  %v11666_v47 = vadd.f32 %v10594_v48, %v16416_v35  ;;  %v4983_v50 = vrot.slane %v11647_v31, %v11196_v40  ;;  %v11674_v22 = vpop.f32.mrb[82].mxu0 }
 0x1f4   : > { %v11618_v2 = vpop.f32.mrb[129].mxu1  ;;  %16411 = vst [vmem:[#allocation131_spill] sm:$0xff] %v11644_v30  ;;  %16414 = vst [vmem:[#allocation189_spill] sm:$0xff] %v11655_v10  ;;  %v6492_v38 = vsel %vm3018_vm1, %v6196_v7, 0.0  ;;  %v11672_v7 = vadd.f32 %v10594_v48, %v16418_v20  ;;  %v11683_v35 = vadd.f32 %v16420_v25, %v10594_v48  ;;  %v16424_v10 = vld [vmem:[#allocation22_spill] sm:$0xff]  ;;  %v16427_v25 = vld [vmem:[#allocation29_spill] sm:$0xff] }
 0x1f5   : > { %v11629_v26 = vpop.f32.mrb[130].mxu1  ;;  %16413 = vst [vmem:[#allocation18_spill] sm:$0xff] %v11653_v21  ;;  %16415 = vst [vmem:[#allocation190_spill] sm:$0xff] %v11661_v33  ;;  %6493 = vadd.xlane.f32.xlu0 %v6492_v38  ;;  %v16422_v38 = vld [vmem:[#allocation134_spill] sm:$0xff]  ;;  %v11689_v33 = vpop.f32.mrb[83].mxu0  ;;  %v11696_v12 = vadd.f32 %v16424_v10, %v10594_v48  ;;  %v16428_v11 = vmax.f32 %v16427_v25, 0.0 }
 0x1f6   : > { %v11649_v63 = vpop.f32.mrb[131].mxu1  ;;  %16417 = vst [vmem:[#allocation132_spill] sm:$0xff] %v11666_v47  ;;  %16419 = vst [vmem:[#allocation20_spill] sm:$0xff] %v11674_v22  ;;  %v11687_v0 = vadd.f32 %v10594_v48, %v16422_v38  ;;  %v11698_v3 = vpop.f32.mrb[84].mxu0  ;;  %v4995_v38 = vrot.slane %v11678_v49, %v11196_v40  ;;  %v16430_v22 = vld [vmem:[#allocation135_spill] sm:$0xff]  ;;  %v16433_v25 = vld [vmem:[#allocation136_spill] sm:$0xff] }
 0x1f7   : > { %16421 = vst [vmem:[#allocation133_spill] sm:$0xff] %v11683_v35  ;;  %16423 = vst [vmem:[#allocation134_spill] sm:$0xff] %v11689_v33  ;;  %v6197_v17 = vmul.f32 %v4983_v50, %v16428_v11  ;;  %v16429_v33 = vld [vmem:[#allocation33_spill] sm:$0xff]  ;;  %v11712_v13 = vadd.f32 %v16430_v22, %v10594_v48  ;;  %v11714_v10 = vpop.f32.mrb[85].mxu0  ;;  %v11719_v11 = vadd.f32 %v16433_v25, %v10594_v48  ;;  %v16435_v50 = vld [vmem:[#allocation147_spill] sm:$0xff] }
 0x1f8   : > { %16425 = vst [vmem:[#allocation22_spill] sm:$0xff] %v11696_v12  ;;  %16426 = vst [vmem:[#allocation191_spill] sm:$0xff] %v11698_v3  ;;  %v11708_v20 = vadd.f32 %v10594_v48, %v16429_v33  ;;  %v3105_v37 = vadd.f32 %v11246_v58, %v16435_v50  ;;  %v11726_v61 = vpop.f32.mrb[86].mxu0  ;;  %v16437_v47 = vld [vmem:[#allocation27_spill] sm:$0xff]  ;;  %v16440_v50 = vld [vmem:[#allocation137_spill] sm:$0xff]  ;;  %v3490_v33 = vcombine.high %v11625_v59, %v11625_v59 }
 0x1f9   : > { %16431 = vst [vmem:[#allocation29_spill] sm:$0xff] %v11712_v13  ;;  %16432 = vst [vmem:[#allocation33_spill] sm:$0xff] %v11714_v10  ;;  %v6495_v22 = vsel %vm3018_vm1, %v6197_v17, 0.0  ;;  %v11735_v25 = vadd.f32 %v10594_v48, %v16437_v47  ;;  %v11737_v32 = vpop.f32.mrb[87].mxu0  ;;  %v11741_v45 = vadd.f32 %v10594_v48, %v16440_v50  ;;  %v16442_v30 = vld [vmem:[#allocation138_spill] sm:$0xff]  ;;  %v16446_v50 = vmax.f32 %v16445_v41, 0.0 }
 0x1fa   : > { %16434 = vst [vmem:[#allocation135_spill] sm:$0xff] %v11719_v11  ;;  %16436 = vst [vmem:[#allocation136_spill] sm:$0xff] %v11726_v61  ;;  %6496 = vadd.xlane.f32.xlu1 %v6495_v22  ;;  %v11750_v61 = vadd.f32 %v16442_v30, %v10594_v48  ;;  %v11752_v47 = vpop.f32.mrb[88].mxu0  ;;  %v11766_v48 = vld [vmem:[%s15848_s4] ss:$0 sm:$0xff]  ;;  %v16449_v30 = vld [vmem:[#allocation139_spill] sm:$0xff]  ;;  %v3118_v13 = vadd.f32 %v11246_v58, %v11355_v34 }
 0x1fb   : > { %v11704_v52 = vpop.f32.mrb[132].mxu1  ;;  %16438 = vst [vmem:[#allocation147_spill] sm:$0xff] %v11735_v25  ;;  %16439 = vst [vmem:[#allocation27_spill] sm:$0xff] %v11737_v32  ;;  %v3343_v32 = vcombine.high %v11344_v4, %v11344_v4  ;;  %v6200_v44 = vmul.f32 %v4995_v38, %v16446_v50  ;;  %v11760_v22 = vpop.f32.mrb[89].mxu0  ;;  %v3229_v4 = vmax.f32 %v3105_v37, 0.0  ;;  %v16451_v41 = vld [vmem:[#allocation140_spill] sm:$0xff]  ;;  %v3129_v37 = vadd.f32 %v11369_v36, %v11246_v58 }
 0x1fc   : > { %v11723_v3 = vpop.f32.mrb[133].mxu1  ;;  %16441 = vst [vmem:[#allocation137_spill] sm:$0xff] %v11741_v45  ;;  %16443 = vst [vmem:[#allocation138_spill] sm:$0xff] %v11750_v61  ;;  %v11774_v38 = vadd.f32 %v11766_v48, %v16451_v41  ;;  %v11776_v50 = vpop.f32.mrb[90].mxu0  ;;  %v16454_v59 = vld [vmem:[#allocation141_spill] sm:$0xff]  ;;  %v3328_v41 = vcombine.high %v16458_v60, %v16458_v60  ;;  %v16472_v34 = vld [vmem:[#allocation36_spill] sm:$0xff] }
 0x1fd   : > { %v11729_v8 = vpop.f32.mrb[134].mxu1  ;;  %16444 = vst [vmem:[#allocation192_spill] sm:$0xff] %v11752_v47  ;;  %16447 = vst [vmem:[#allocation32_spill] sm:$0xff] %v11760_v22  ;;  %v11770_v47 = vadd.f32 %v11766_v48, %v16449_v30  ;;  %v11780_v6 = vadd.f32 %v11766_v48, %v16454_v59  ;;  %v16456_v10 = vld [vmem:[#allocation149_spill] sm:$0xff]  ;;  %v6504_v22 = vsel %vm3018_vm1, %v6200_v44, 0.0  ;;  %v11786_v30 = vpop.f32.mrb[91].mxu0  ;;  %v3365_v60 = vrot.slane %v3343_v32, %v11075_v14 }
 0x1fe   : > { %v11745_v17 = vpop.f32.mrb[135].mxu1  ;;  %16448 = vst [vmem:[#allocation193_spill] sm:$0xff] %v11766_v48  ;;  %16452 = vst [vmem:[#allocation140_spill] sm:$0xff] %v11774_v38  ;;  %v3126_v11 = vadd.f32 %v16456_v10, %v11246_v58  ;;  %6505 = vadd.xlane.f32.xlu0 %v6504_v22  ;;  %v11795_v43 = vpop.f32.mrb[92].mxu0  ;;  %v16460_v10 = vld [vmem:[#allocation142_spill] sm:$0xff]  ;;  %v3265_v45 = vmul.f32 %v11281_v42, %v3229_v4  ;;  %v16466_v32 = vld [vmem:[#allocation143_spill] sm:$0xff] }
 0x1ff   : > { %16450 = vst [vmem:[#allocation139_spill] sm:$0xff] %v11770_v47  ;;  %16453 = vst [vmem:[#allocation194_spill] sm:$0xff] %v11776_v50  ;;  %v11792_v50 = vrot.slane %v3490_v33, %v11075_v14  ;;  %v11799_v44 = vadd.f32 %v11766_v48, %v16460_v10  ;;  %v11808_v33 = vpop.f32.mrb[93].mxu0  ;;  %v16473_v38 = vmax.f32 %v16472_v34, 0.0  ;;  %v4903_v36 = vrot.slane %v3365_v60, %v11196_v40  ;;  %v16475_v34 = vld [vmem:[#allocation118_spill] sm:$0xff]  ;;  %v16477_v35 = vld [vmem:[#allocation145_spill] sm:$0xff] }
 0x200   : > { %16455 = vst [vmem:[#allocation141_spill] sm:$0xff] %v11780_v6  ;;  %16457 = vst [vmem:[#allocation149_spill] sm:$0xff] %v11786_v30  ;;  %v11817_v30 = vpop.f32.mrb[94].mxu0  ;;  %v3234_v4 = vmax.f32 %v3126_v11, 0.0  ;;  %v3375_v6 = vcombine.high %v3365_v60, %v3365_v60  ;;  %v3232_v11 = vmax.f32 %v3118_v13, 0.0  ;;  %v3235_v12 = vmax.f32 %v3129_v37, 0.0 }
 0x201   : > { %16459 = vst [vmem:[#allocation148_spill] sm:$0xff] %v11795_v43  ;;  %16461 = vst [vmem:[#allocation142_spill] sm:$0xff] %v11799_v44  ;;  %v4999_v10 = vrot.slane %v11792_v50, %v11196_v40  ;;  %v11830_v61 = vpop.f32.mrb[95].mxu0 }
 0x202   : > { %16463 = vst [vmem:[#allocation196_spill] sm:$0xff] %v11808_v33  ;;  %16465 = vst [vmem:[#allocation198_spill] sm:$0xff] %v11817_v30  ;;  %v16468_v33 = vld [vmem:[#allocation144_spill] sm:$0xff]  ;;  %v4911_v13 = vrot.slane %v3375_v6, %v11196_v40 }
 0x203   : > { %v11806_v22 = vpop.f32.mrb[136].mxu1  ;;  %v11826_v59 = vadd.f32 %v11766_v48, %v16468_v33  ;;  %16471 = vst [vmem:[#allocation200_spill] sm:$0xff] %v11830_v61  ;;  %v6201_v30 = vmul.f32 %v4999_v10, %v16473_v38  ;;  %v3475_v33 = vcombine.high %v11581_v56, %v11581_v56  ;;  %v3121_v61 = vadd.f32 %v11246_v58, %v11380_v27 }
 0x204   : > { %16462 = vst [vmem:[#allocation195_spill] sm:$0xff] %v11806_v22  ;;  %v11814_v43 = vpop.f32.mrb[137].mxu1  ;;  %v11822_v22 = vadd.f32 %v11766_v48, %v16466_v32  ;;  %v16476_v38 = vmax.f32 %v16475_v34, 0.0  ;;  %v3270_v32 = vmul.f32 %v11281_v42, %v3234_v4  ;;  %v3384_v27 = vrot.slane %v3265_v45, %v11075_v14  ;;  %v16479_v4 = vld [vmem:[#allocation115_spill] sm:$0xff] }
 0x205   : > { %16464 = vst [vmem:[#allocation197_spill] sm:$0xff] %v11814_v43  ;;  %16469 = vst [vmem:[#allocation144_spill] sm:$0xff] %v11826_v59  ;;  %v11828_v47 = vpop.f32.mrb[138].mxu1  ;;  %v3342_v43 = vrot.slane %v3328_v41, %v11075_v14  ;;  %v6507_v41 = vsel %vm3018_vm1, %v6201_v30, 0.0  ;;  %v3271_v34 = vmul.f32 %v11281_v42, %v3235_v12  ;;  %v3142_v56 = vadd.f32 %v11434_v51, %v11246_v58 }
 0x206   : > { %16467 = vst [vmem:[#allocation143_spill] sm:$0xff] %v11822_v22  ;;  %16470 = vst [vmem:[#allocation199_spill] sm:$0xff] %v11828_v47  ;;  %v11836_v25 = vpop.f32.mrb[139].mxu1  ;;  %v3377_v47 = vcombine.high %v3265_v45, %v3265_v45  ;;  %v6177_v10 = vmul.f32 %v4903_v36, %v16476_v38  ;;  %6508 = vadd.xlane.f32.xlu1 %v6507_v41  ;;  %v11860_v36 = vrot.slane %v3475_v33, %v11075_v14 }
 0x207   : > { %16474 = vst [vmem:[#allocation36_spill] sm:$0xff] %v11836_v25  ;;  %v11849_v25 = vadd.f32 %v11766_v48, %v16477_v35  ;;  %v11857_v37 = vrot.slane %v3342_v43, %v11075_v14  ;;  %v3268_v35 = vmul.f32 %v11281_v42, %v3232_v11  ;;  %v16480_v41 = vmax.f32 %v16479_v4, 0.0 }
 0x208   : > { %v6435_v30 = vsel %vm3018_vm1, %v6177_v10, 0.0  ;;  %v11869_v45 = vrot.slane %v3377_v47, %v11075_v14  ;;  %v3233_v10 = vmax.f32 %v3121_v61, 0.0  ;;  %v3622_v11 = vcombine.high %v3270_v32, %v3270_v32 }
 0x209   : > { %16478 = vst [vmem:[#allocation118_spill] sm:$0xff] %v11849_v25  ;;  %6436 = vadd.xlane.f32.xlu0 %v6435_v30  ;;  %v6179_v6 = vmul.f32 %v4911_v13, %v16480_v41  ;;  %v4915_v33 = vrot.slane %v11857_v37, %v11196_v40  ;;  %v11878_v12 = vrot.slane %v3270_v32, %v11075_v14  ;;  %v16484_v41 = vld [vmem:[#allocation122_spill] sm:$0xff] }
 0x20a   : > { %v3134_v13 = vadd.f32 %v11246_v58, %v11442_v19  ;;  %v3392_v61 = vcombine.high %v3384_v27, %v3384_v27  ;;  %v3524_v4 = vcombine.high %v3268_v35, %v3268_v35  ;;  %v3145_v51 = vadd.f32 %v11452_v28, %v11246_v58 }
 0x20b   : > { %v11866_v38 = vpop.f32.mrb[140].mxu1  ;;  %v6441_v30 = vsel %vm3018_vm1, %v6179_v6, 0.0  ;;  %v16485_v59 = vmax.f32 %v16484_v41, 0.0  ;;  %v11892_v32 = vrot.slane %v3268_v35, %v11075_v14  ;;  %v11895_v19 = vrot.slane %v3271_v34, %v11075_v14 }
 0x20c   : > { %16481 = vst [vmem:[#allocation145_spill] sm:$0xff] %v11866_v38  ;;  %v11875_v60 = vpop.f32.mrb[141].mxu1  ;;  %6442 = vadd.xlane.f32.xlu1 %v6441_v30  ;;  %v3344_v6 = vcombine.high %v3342_v43, %v3342_v43  ;;  %v3238_v38 = vmax.f32 %v3142_v56, 0.0  ;;  %v11900_v28 = vrot.slane %v3384_v27, %v11075_v14  ;;  %v3239_v43 = vmax.f32 %v3145_v51, 0.0 }
 0x20d   : > { %16482 = vst [vmem:[#allocation115_spill] sm:$0xff] %v11875_v60  ;;  %v11883_v47 = vpop.f32.mrb[142].mxu1  ;;  %v6180_v44 = vmul.f32 %v4915_v33, %v16485_v59  ;;  %v3671_v60 = vcombine.high %v3271_v34, %v3271_v34  ;;  %v11903_v59 = vrot.slane %v3622_v11, %v11075_v14  ;;  %v3236_v33 = vmax.f32 %v3134_v13, 0.0 }
 0x20e   : > { %16483 = vst [vmem:[#allocation201_spill] sm:$0xff] %v11883_v47  ;;  %v11889_v22 = vpop.f32.mrb[143].mxu1  ;;  %v3269_v47 = vmul.f32 %v11281_v42, %v3233_v10  ;;  %v3137_v34 = vadd.f32 %v11246_v58, %v11465_v46  ;;  %v11910_v10 = vrot.slane %v3344_v6, %v11075_v14  ;;  %v11915_v56 = vrot.slane %v3392_v61, %v11075_v14  ;;  %v16488_v6 = vld [vmem:[#allocation7_spill] sm:$0xff] }
 0x20f   : > { %16486 = vst [vmem:[#allocation122_spill] sm:$0xff] %v11889_v22  ;;  %v6444_v21 = vsel %vm3018_vm1, %v6180_v44, 0.0  ;;  %v4931_v44 = vrot.slane %v11900_v28, %v11196_v40  ;;  %v11918_v27 = vrot.slane %v3524_v4, %v11075_v14  ;;  %v11923_v13 = vrot.slane %v3671_v60, %v11075_v14 }
 0x210   : > { %6445 = vadd.xlane.f32.xlu0 %v6444_v21  ;;  %v3158_v46 = vadd.f32 %v11510_v5, %v11246_v58  ;;  %v3573_v21 = vcombine.high %v3269_v47, %v3269_v47  ;;  %v11928_v30 = vrot.slane %v3269_v47, %v11075_v14  ;;  %v3274_v51 = vmul.f32 %v11281_v42, %v3238_v38 }
 0x211   : > { %16487 = vst [vmem:[#allocation202_spill] sm:$0xff] %v11923_v13  ;;  %v4919_v61 = vrot.slane %v11910_v10, %v11196_v40  ;;  %v3237_v41 = vmax.f32 %v3137_v34, 0.0  ;;  %v16489_v11 = vmax.f32 %v16488_v6, 0.0  ;;  %v4935_v35 = vrot.slane %v11915_v56, %v11196_v40  ;;  %v16490_v13 = vld [vmem:[#allocation125_spill] sm:$0xff] }
 0x212   : > { %v3818_v5 = vcombine.high %v3274_v51, %v3274_v51  ;;  %v3272_v22 = vmul.f32 %v11281_v42, %v3236_v33  ;;  %v3275_v47 = vmul.f32 %v11281_v42, %v3239_v43  ;;  %v16491_v38 = vmax.f32 %v16490_v13, 0.0 }
 0x213   : > { %v6184_v60 = vmul.f32 %v4931_v44, %v16489_v11  ;;  %v3242_v48 = vmax.f32 %v3158_v46, 0.0  ;;  %v16493_v4 = vmax.f32 %v16492_v53, 0.0  ;;  %v3472_v44 = vcombine.high %v11563_v15, %v11563_v15 }
 0x214   : > { %v6181_v54 = vmul.f32 %v4919_v61, %v16491_v38  ;;  %v11949_v11 = vrot.slane %v3573_v21, %v11075_v14  ;;  %v11954_v43 = vrot.slane %v3274_v51, %v11075_v14  ;;  %v3273_v46 = vmul.f32 %v11281_v42, %v3237_v41 }
 0x215   : > { %v6456_v39 = vsel %vm3018_vm1, %v6184_v60, 0.0  ;;  %v6185_v34 = vmul.f32 %v4935_v35, %v16493_v4  ;;  %v3150_v53 = vadd.f32 %v11246_v58, %v11522_v9  ;;  %v3161_v15 = vadd.f32 %v11534_v57, %v11246_v58  ;;  %v16494_v57 = vld [vmem:[#allocation26_spill] sm:$0xff] }
 0x216   : > { %v6447_v13 = vsel %vm3018_vm1, %v6181_v54, 0.0  ;;  %6457 = vadd.xlane.f32.xlu0 %v6456_v39  ;;  %v4987_v35 = vrot.slane %v3472_v44, %v11196_v40  ;;  %v3720_v21 = vcombine.high %v3272_v22, %v3272_v22  ;;  %v11964_v61 = vrot.slane %v3272_v22, %v11075_v14 }
 0x217   : > { %6448 = vadd.xlane.f32.xlu1 %v6447_v13  ;;  %v3867_v51 = vcombine.high %v3275_v47, %v3275_v47  ;;  %v3474_v54 = vcombine.high %v11647_v31, %v11647_v31  ;;  %v11969_v39 = vrot.slane %v3818_v5, %v11075_v14  ;;  %v3278_v4 = vmul.f32 %v11281_v42, %v3242_v48  ;;  %v11982_v5 = vpop.f32.mrb[96].mxu0 }
 0x218   : > { %v3174_v9 = vadd.f32 %v11597_v16, %v11246_v58  ;;  %v16495_v41 = vmax.f32 %v16494_v57, 0.0  ;;  %v3153_v22 = vadd.f32 %v11246_v58, %v11556_v62  ;;  %v6459_v38 = vsel %vm3018_vm1, %v6185_v34, 0.0  ;;  %v16497_v62 = vld [vmem:[#allocation28_spill] sm:$0xff] }
 0x219   : > { %v4991_v31 = vrot.slane %v3474_v54, %v11196_v40  ;;  %v11985_v48 = vrot.slane %v3275_v47, %v11075_v14  ;;  %v3240_v44 = vmax.f32 %v3150_v53, 0.0  ;;  %v3243_v16 = vmax.f32 %v3161_v15, 0.0  ;;  %v11993_v54 = vpop.f32.mrb[97].mxu0 }
 0x21a   : > { %v6198_v6 = vmul.f32 %v4987_v35, %v16495_v41  ;;  %v3769_v35 = vcombine.high %v3273_v46, %v3273_v46  ;;  %v11989_v57 = vrot.slane %v3273_v46, %v11075_v14  ;;  %v4014_v41 = vcombine.high %v3278_v4, %v3278_v4  ;;  %16499 = vst [vmem:[#allocation125_spill] sm:$0xff] %v11993_v54 }
 0x21b   : > { %6460 = vadd.xlane.f32.xlu1 %v6459_v38  ;;  %v16498_v34 = vmax.f32 %v16497_v62, 0.0  ;;  %v11996_v33 = vrot.slane %v3278_v4, %v11075_v14  ;;  %v3246_v47 = vmax.f32 %v3174_v9, 0.0  ;;  %v3520_v53 = vcombine.high %v11678_v49, %v11678_v49 }
 0x21c   : > { %v6498_v13 = vsel %vm3018_vm1, %v6198_v6, 0.0  ;;  %16496 = vst [vmem:[#allocation7_spill] sm:$0xff] %v11989_v57  ;;  %v3522_v15 = vcombine.high %v11792_v50, %v11792_v50  ;;  %v12002_v6 = vpop.f32.mrb[98].mxu0  ;;  %v12005_v46 = vrot.slane %v3720_v21, %v11075_v14  ;;  %v3166_v4 = vadd.f32 %v11246_v58, %v11618_v2 }
 0x21d   : > { %6499 = vadd.xlane.f32.xlu0 %v6498_v13  ;;  %v6199_v60 = vmul.f32 %v4991_v31, %v16498_v34  ;;  %16500 = vst [vmem:[#allocation9_spill] sm:$0xff] %v11996_v33  ;;  %16501 = vst [vmem:[#allocation26_spill] sm:$0xff] %v12002_v6  ;;  %v3241_v31 = vmax.f32 %v3153_v22, 0.0  ;;  %v12011_v13 = vpop.f32.mrb[99].mxu0  ;;  %v12014_v9 = vrot.slane %v3867_v51, %v11075_v14 }
 0x21e   : > { %16502 = vst [vmem:[#allocation28_spill] sm:$0xff] %v12005_v46  ;;  %16503 = vst [vmem:[#allocation203_spill] sm:$0xff] %v12011_v13  ;;  %v3276_v49 = vmul.f32 %v11281_v42, %v3240_v44  ;;  %v3279_v50 = vmul.f32 %v11281_v42, %v3243_v16  ;;  %v12022_v34 = vrot.slane %v3769_v35, %v11075_v14  ;;  %v3244_v38 = vmax.f32 %v3166_v4, 0.0 }
 0x21f   : > { %16504 = vst [vmem:[#allocation204_spill] sm:$0xff] %v12014_v9  ;;  %v6501_v62 = vsel %vm3018_vm1, %v6199_v60, 0.0  ;;  %v12027_v22 = vrot.slane %v4014_v41, %v11075_v14  ;;  %v3282_v44 = vmul.f32 %v11281_v42, %v3246_v47  ;;  %v5003_v60 = vrot.slane %v3520_v53, %v11196_v40  ;;  %v12039_v41 = vpop.f32.mrb[100].mxu0  ;;  %v16510_v53 = vld [vmem:[#allocation34_spill] sm:$0xff] }
 0x220   : > { %16505 = vst [vmem:[#allocation205_spill] sm:$0xff] %v12022_v34  ;;  %6502 = vadd.xlane.f32.xlu1 %v6501_v62  ;;  %v5007_v16 = vrot.slane %v3522_v15, %v11196_v40  ;;  %v3916_v21 = vcombine.high %v3276_v49, %v3276_v49  ;;  %v3277_v35 = vmul.f32 %v11281_v42, %v3241_v31  ;;  %16507 = vst [vmem:[#allocation207_spill] sm:$0xff] %v12039_v41  ;;  %v16508_v34 = vld [vmem:[#allocation30_spill] sm:$0xff]  ;;  %v12055_v13 = vpop.f32.mrb[101].mxu0 }
 0x221   : > { %16506 = vst [vmem:[#allocation206_spill] sm:$0xff] %v12027_v22  ;;  %v12037_v2 = vrot.slane %v11860_v36, %v11075_v14  ;;  %v12042_v62 = vrot.slane %v3276_v49, %v11075_v14  ;;  %v4063_v51 = vcombine.high %v3279_v50, %v3279_v50  ;;  %v16509_v47 = vmax.f32 %v16508_v34, 0.0  ;;  %16513 = vst [vmem:[#allocation34_spill] sm:$0xff] %v12055_v13 }
 0x222   : > { %v16511_v57 = vmax.f32 %v16510_v53, 0.0  ;;  %v12049_v46 = vrot.slane %v3279_v50, %v11075_v14  ;;  %v3965_v31 = vcombine.high %v3277_v35, %v3277_v35  ;;  %v3491_v41 = vcombine.high %v11860_v36, %v11860_v36  ;;  %v16514_v53 = vld [vmem:[#allocation39_spill] sm:$0xff] }
 0x223   : > { %v6202_v9 = vmul.f32 %v5003_v60, %v16509_v47  ;;  %v5011_v4 = vrot.slane %v12037_v2, %v11196_v40  ;;  %v4210_v49 = vcombine.high %v3282_v44, %v3282_v44  ;;  %v3177_v34 = vadd.f32 %v11629_v26, %v11246_v58 }
 0x224   : > { %v6203_v15 = vmul.f32 %v5007_v16, %v16511_v57  ;;  %16512 = vst [vmem:[#allocation30_spill] sm:$0xff] %v12049_v46  ;;  %v12061_v16 = vpop.f32.mrb[102].mxu0  ;;  %v3280_v47 = vmul.f32 %v11281_v42, %v3244_v38  ;;  %v16515_v36 = vmax.f32 %v16514_v53, 0.0  ;;  %v12068_v13 = vrot.slane %v3491_v41, %v11075_v14 }
 0x225   : > { %v6510_v60 = vsel %vm3018_vm1, %v6202_v9, 0.0  ;;  %v12070_v54 = vpop.f32.mrb[103].mxu0  ;;  %v12076_v9 = vrot.slane %v11996_v33, %v11075_v14  ;;  %v12087_v41 = vrot.slane %v3277_v35, %v11075_v14  ;;  %v12096_v53 = vrot.slane %v12042_v62, %v11075_v14 }
 0x226   : > { %v6513_v57 = vsel %vm3018_vm1, %v6203_v15, 0.0  ;;  %6511 = vadd.xlane.f32.xlu0 %v6510_v60  ;;  %v6204_v6 = vmul.f32 %v5011_v4, %v16515_v36  ;;  %v12079_v15 = vrot.slane %v3916_v21, %v11075_v14  ;;  %v12084_v4 = vrot.slane %v4063_v51, %v11075_v14  ;;  %v12111_v38 = vpop.f32.mrb[104].mxu0 }
 0x227   : > { %6514 = vadd.xlane.f32.xlu1 %v6513_v57  ;;  %16516 = vst [vmem:[#allocation39_spill] sm:$0xff] %v12076_v9  ;;  %16518 = vst [vmem:[#allocation209_spill] sm:$0xff] %v12087_v41  ;;  %v12090_v60 = vrot.slane %v3965_v31, %v11075_v14  ;;  %v5015_v57 = vrot.slane %v12068_v13, %v11196_v40  ;;  %v12099_v21 = vrot.slane %v3282_v44, %v11075_v14 }
 0x228   : > { %16517 = vst [vmem:[#allocation208_spill] sm:$0xff] %v12084_v4  ;;  %v3247_v36 = vmax.f32 %v3177_v34, 0.0  ;;  %v6516_v51 = vsel %vm3018_vm1, %v6204_v6, 0.0  ;;  %v12106_v31 = vrot.slane %v12049_v46, %v11075_v14  ;;  %v12109_v50 = vrot.slane %v4210_v49, %v11075_v14  ;;  %v16524_v6 = vld [vmem:[#allocation41_spill] sm:$0xff] }
 0x229   : > { %16519 = vst [vmem:[#allocation210_spill] sm:$0xff] %v12090_v60  ;;  %16520 = vst [vmem:[#allocation211_spill] sm:$0xff] %v12099_v21  ;;  %v4112_v26 = vcombine.high %v3280_v47, %v3280_v47  ;;  %v12116_v34 = vrot.slane %v3280_v47, %v11075_v14  ;;  %v16525_v25 = vmax.f32 %v16524_v6, 0.0  ;;  %v3374_v46 = vcombine.high %v11857_v37, %v11857_v37  ;;  %v12132_v47 = vpop.f32.mrb[105].mxu0 }
 0x22a   : > { %16521 = vst [vmem:[#allocation212_spill] sm:$0xff] %v12106_v31  ;;  %16522 = vst [vmem:[#allocation213_spill] sm:$0xff] %v12109_v50  ;;  %6517 = vadd.xlane.f32.xlu0 %v6516_v51  ;;  %v12130_v44 = vrot.slane %v12087_v41, %v11075_v14  ;;  %v12138_v37 = vrot.slane %v12099_v21, %v11075_v14  ;;  %v12144_v49 = vpop.f32.mrb[106].mxu0  ;;  %v12157_v21 = vadd.f32 %v11704_v52, %v11246_v58  ;;  %v16543_v41 = vld [vmem:[#allocation15_spill] sm:$0xff] }
 0x22b   : > { %16523 = vst [vmem:[#allocation214_spill] sm:$0xff] %v12116_v34  ;;  %v6205_v35 = vmul.f32 %v5015_v57, %v16525_v25  ;;  %16526 = vst [vmem:[#allocation41_spill] sm:$0xff] %v12132_v47  ;;  %v12141_v57 = vmul.f32 %v11281_v42, %v3247_v36  ;;  %v12149_v51 = vrot.slane %v4112_v26, %v11075_v14  ;;  %v12159_v42 = vpop.f32.mrb[107].mxu0 }
 0x22c   : > { %16527 = vst [vmem:[#allocation215_spill] sm:$0xff] %v12138_v37  ;;  %16528 = vst [vmem:[#allocation216_spill] sm:$0xff] %v12144_v49  ;;  %v12153_v25 = vadd.f32 %v11246_v58, %v11649_v63  ;;  %v3376_v26 = vcombine.high %v11910_v10, %v11910_v10  ;;  %v3422_v31 = vcombine.high %v11900_v28, %v11900_v28  ;;  %v12176_v36 = vpop.f32.mrb[108].mxu0 }
 0x22d   : > { %v6519_v6 = vsel %vm3018_vm1, %v6205_v35, 0.0  ;;  %16529 = vst [vmem:[#allocation217_spill] sm:$0xff] %v12149_v51  ;;  %16530 = vst [vmem:[#allocation218_spill] sm:$0xff] %v12159_v42  ;;  %v4923_v35 = vrot.slane %v3374_v46, %v11196_v40  ;;  %v3424_v63 = vcombine.high %v11915_v56, %v11915_v56  ;;  %v3407_v58 = vrot.slane %v11869_v45, %v11075_v14  ;;  %v16532_v46 = vld [vmem:[#allocation121_spill] sm:$0xff]  ;;  %v12184_v4 = vpop.f32.mrb[109].mxu0 }
 0x22e   : > { %6520 = vadd.xlane.f32.xlu1 %v6519_v6  ;;  %v3393_v52 = vcombine.high %v11869_v45, %v11869_v45  ;;  %v3521_v6 = vcombine.high %v12037_v2, %v12037_v2  ;;  %16531 = vst [vmem:[#allocation219_spill] sm:$0xff] %v12176_v36  ;;  %v16533_v50 = vmax.f32 %v16532_v46, 0.0  ;;  %v4927_v37 = vrot.slane %v3376_v26, %v11196_v40  ;;  %v12190_v9 = vpop.f32.mrb[110].mxu0  ;;  %v16538_v46 = vld [vmem:[#allocation6_spill] sm:$0xff] }
 0x22f   : > { %v4939_v28 = vrot.slane %v3422_v31, %v11196_v40  ;;  %v3523_v56 = vcombine.high %v12068_v13, %v12068_v13  ;;  %16534 = vst [vmem:[#allocation121_spill] sm:$0xff] %v12184_v4  ;;  %v4943_v22 = vrot.slane %v3424_v63, %v11196_v40  ;;  %v4947_v45 = vrot.slane %v3407_v58, %v11196_v40  ;;  %v12198_v36 = vpop.f32.mrb[111].mxu0  ;;  %v16541_v63 = vld [vmem:[#allocation8_spill] sm:$0xff] }
 0x230   : > { %v6182_v10 = vmul.f32 %v4923_v35, %v16533_v50  ;;  %v3421_v2 = vrot.slane %v3393_v52, %v11075_v14  ;;  %v5019_v33 = vrot.slane %v3521_v6, %v11196_v40  ;;  %16535 = vst [vmem:[#allocation220_spill] sm:$0xff] %v12190_v9  ;;  %v16536_v35 = vld [vmem:[#allocation124_spill] sm:$0xff]  ;;  %v16539_v60 = vmax.f32 %v16538_v46, 0.0 }
 0x231   : > { %v16537_v26 = vmax.f32 %v16536_v35, 0.0  ;;  %v5023_v4 = vrot.slane %v3523_v56, %v11196_v40  ;;  %16540 = vst [vmem:[#allocation124_spill] sm:$0xff] %v12198_v36  ;;  %v16542_v42 = vmax.f32 %v16541_v63, 0.0  ;;  %v16544_v6 = vmax.f32 %v16543_v41, 0.0  ;;  %v16549_v56 = vld [vmem:[#allocation40_spill] sm:$0xff] }
 0x232   : > { %v6450_v50 = vsel %vm3018_vm1, %v6182_v10, 0.0  ;;  %v6186_v13 = vmul.f32 %v4939_v28, %v16539_v60  ;;  %v4951_v9 = vrot.slane %v3421_v2, %v11196_v40  ;;  %v16545_v10 = vld [vmem:[#allocation38_spill] sm:$0xff]  ;;  %v12211_v60 = vrot.slane %v12116_v34, %v11075_v14 }
 0x233   : > { %v6183_v31 = vmul.f32 %v4927_v37, %v16537_v26  ;;  %6451 = vadd.xlane.f32.xlu0 %v6450_v50  ;;  %v6187_v52 = vmul.f32 %v4943_v22, %v16542_v42  ;;  %v6188_v49 = vmul.f32 %v4947_v45, %v16544_v6  ;;  %v16546_v47 = vmax.f32 %v16545_v10, 0.0  ;;  %v12207_v37 = vpop.f32.mrb[112].mxu0  ;;  %v16553_v45 = vld [vmem:[#allocation17_spill] sm:$0xff] }
 0x234   : > { %16547 = vst [vmem:[#allocation6_spill] sm:$0xff] %v12207_v37  ;;  %16548 = vst [vmem:[#allocation8_spill] sm:$0xff] %v12211_v60  ;;  %v16550_v50 = vmax.f32 %v16549_v56, 0.0  ;;  %v3423_v22 = vcombine.high %v3407_v58, %v3407_v58  ;;  %v12218_v41 = vpop.f32.mrb[113].mxu0  ;;  %v4259_v42 = vcombine.high %v12141_v57, %v12141_v57  ;;  %v16554_v46 = vmax.f32 %v16553_v45, 0.0 }
 0x235   : > { %v6206_v35 = vmul.f32 %v5019_v33, %v16546_v47  ;;  %v6453_v28 = vsel %vm3018_vm1, %v6183_v31, 0.0  ;;  %16551 = vst [vmem:[#allocation15_spill] sm:$0xff] %v12218_v41  ;;  %v12224_v33 = vrot.slane %v12141_v57, %v11075_v14  ;;  %v3245_v47 = vmax.f32 %v12153_v25, 0.0  ;;  %v12229_v63 = vpop.f32.mrb[114].mxu0 }
 0x236   : > { %v12216_v26 = vmul.f32 %v5023_v4, %v16550_v50  ;;  %6454 = vadd.xlane.f32.xlu1 %v6453_v28  ;;  %v6189_v31 = vmul.f32 %v4951_v9, %v16554_v46  ;;  %16555 = vst [vmem:[#allocation40_spill] sm:$0xff] %v12229_v63  ;;  %v6462_v4 = vsel %vm3018_vm1, %v6186_v13, 0.0  ;;  %v4955_v58 = vrot.slane %v3423_v22, %v11196_v40  ;;  %v12235_v56 = vpop.f32.mrb[115].mxu0  ;;  %v16560_v22 = vld [vmem:[#allocation14_spill] sm:$0xff] }
 0x237   : > { %16552 = vst [vmem:[#allocation38_spill] sm:$0xff] %v12224_v33  ;;  %v3425_v6 = vcombine.high %v3421_v2, %v3421_v2  ;;  %v3645_v10 = vrot.slane %v11878_v12, %v11075_v14  ;;  %16556 = vst [vmem:[#allocation17_spill] sm:$0xff] %v12235_v56  ;;  %6463 = vadd.xlane.f32.xlu0 %v6462_v4  ;;  %v6465_v57 = vsel %vm3018_vm1, %v6187_v52, 0.0  ;;  %v12250_v50 = vpop.f32.mrb[116].mxu0  ;;  %v16561_v45 = vmax.f32 %v16560_v22, 0.0  ;;  %v16564_v22 = vld [vmem:[#allocation16_spill] sm:$0xff] }
 0x238   : > { %v16557_v25 = vcombine.high %v11878_v12, %v11878_v12  ;;  %v3547_v28 = vrot.slane %v11892_v32, %v11075_v14  ;;  %v16558_v2 = vcombine.high %v11892_v32, %v11892_v32  ;;  %16559 = vst [vmem:[#allocation221_spill] sm:$0xff] %v12250_v50  ;;  %v16568_v50 = vmax.f32 %v11605_v29, 0.0 }
 0x239   : > { %v6190_v46 = vmul.f32 %v4955_v58, %v16561_v45  ;;  %v4959_v52 = vrot.slane %v3425_v6, %v11196_v40  ;;  %v5091_v4 = vrot.slane %v3645_v10, %v11196_v40  ;;  %v3667_v12 = vcombine.high %v3645_v10, %v3645_v10 }
 0x23a   : > { %v3659_v9 = vrot.slane %v16557_v25, %v11075_v14  ;;  %v12248_v13 = vrot.slane %v16558_v2, %v11075_v14  ;;  %v12256_v25 = vpop.f32.mrb[117].mxu0  ;;  %6466 = vadd.xlane.f32.xlu1 %v6465_v57  ;;  %v5027_v60 = vrot.slane %v3547_v28, %v11196_v40  ;;  %v6468_v58 = vsel %vm3018_vm1, %v6188_v49, 0.0  ;;  %v16571_v49 = vld [vmem:[#allocation69_spill] sm:$0xff] }
 0x23b   : > { %16562 = vst [vmem:[#allocation14_spill] sm:$0xff] %v12256_v25  ;;  %v12262_v56 = vpop.f32.mrb[118].mxu0  ;;  %v16565_v6 = vmax.f32 %v16564_v22, 0.0  ;;  %v16566_v10 = vmax.f32 %v11587_v18, 0.0  ;;  %v5099_v57 = vrot.slane %v3667_v12, %v11196_v40  ;;  %6469 = vadd.xlane.f32.xlu0 %v6468_v58  ;;  %v16572_v36 = vmax.f32 %v16571_v49, 0.0 }
 0x23c   : > { %v5095_v34 = vrot.slane %v3659_v9, %v11196_v40  ;;  %v5031_v32 = vrot.slane %v12248_v13, %v11196_v40  ;;  %v3669_v2 = vcombine.high %v3659_v9, %v3659_v9  ;;  %16563 = vst [vmem:[#allocation222_spill] sm:$0xff] %v12262_v56  ;;  %v12270_v25 = vpop.f32.mrb[119].mxu0  ;;  %v16569_v9 = vld [vmem:[#allocation65_spill] sm:$0xff]  ;;  %v6471_v12 = vsel %vm3018_vm1, %v6189_v31, 0.0 }
 0x23d   : > { %v6191_v45 = vmul.f32 %v4959_v52, %v16565_v6  ;;  %v6224_v41 = vmul.f32 %v5091_v4, %v16566_v10  ;;  %16567 = vst [vmem:[#allocation16_spill] sm:$0xff] %v12270_v25  ;;  %v16570_v37 = vmax.f32 %v16569_v9, 0.0  ;;  %v12285_v52 = vpop.f32.mrb[120].mxu0  ;;  %v16574_v29 = vmax.f32 %v11576_v24, 0.0 }
 0x23e   : > { %v12274_v63 = vmul.f32 %v5095_v34, %v16568_v50  ;;  %v12282_v22 = vmul.f32 %v5031_v32, %v16572_v36  ;;  %v5103_v18 = vrot.slane %v3669_v2, %v11196_v40  ;;  %16573 = vst [vmem:[#allocation65_spill] sm:$0xff] %v12285_v52  ;;  %v12301_v36 = vrot.slane %v4259_v42, %v11075_v14 }
 0x23f   : > { %v12278_v56 = vmul.f32 %v5027_v60, %v16570_v37  ;;  %v12292_v34 = vmul.f32 %v5099_v57, %v16574_v29  ;;  %v12296_v37 = vrot.slane %v11903_v59, %v11075_v14  ;;  %v12298_v60 = vpop.f32.mrb[121].mxu0  ;;  %v3250_v32 = vmax.f32 %v12157_v21, 0.0  ;;  %6472 = vadd.xlane.f32.xlu1 %v6471_v12 }
 0x240   : > { %16575 = vst [vmem:[#allocation69_spill] sm:$0xff] %v12298_v60  ;;  %16576 = vst [vmem:[#allocation223_spill] sm:$0xff] %v12301_v36  ;;  %v16577_v31 = vmax.f32 %v11601_v1, 0.0  ;;  %v12310_v2 = vpop.f32.mrb[122].mxu0  ;;  %v6522_v58 = vsel %vm3018_vm1, %v6206_v35, 0.0  ;;  %v3638_v42 = vcombine.high %v11903_v59, %v11903_v59  ;;  %v12319_v10 = vrot.slane %v11895_v19, %v11075_v14 }
 0x241   : > { %16578 = vst [vmem:[#allocation224_spill] sm:$0xff] %v12310_v2  ;;  %v5107_v6 = vrot.slane %v12296_v37, %v11196_v40  ;;  %v12321_v21 = vpop.f32.mrb[123].mxu0  ;;  %v12325_v1 = vrot.slane %v12224_v33, %v11075_v14  ;;  %v12330_v35 = vld [vmem:[%s15848_s4 + $0x2] ss:$0 sm:$0xff]  ;;  %6523 = vadd.xlane.f32.xlu0 %v6522_v58  ;;  %v16581_v59 = vcombine.high %v11895_v19, %v11895_v19  ;;  %v6525_v12 = vsel %vm3018_vm1, %v12216_v26, 0.0 }
 0x242   : > { %v12308_v24 = vmul.f32 %v5103_v18, %v16577_v31  ;;  %16579 = vst [vmem:[#allocation225_spill] sm:$0xff] %v12321_v21  ;;  %v3281_v57 = vmul.f32 %v12330_v35, %v3245_v47  ;;  %v3569_v49 = vcombine.high %v3547_v28, %v3547_v28  ;;  %v12339_v18 = vpop.f32.mrb[124].mxu0  ;;  %v16583_v29 = vmax.f32 %v11634_v23, 0.0  ;;  %v9884_v28 = vld [vmem:[%s15848_s4 + $0x1] ss:$0 sm:$0xff] }
 0x243   : > { %16580 = vst [vmem:[#allocation226_spill] sm:$0xff] %v12325_v1  ;;  %v12337_v9 = vrot.slane %v16581_v59, %v11075_v14  ;;  %16582 = vst [vmem:[#allocation227_spill] sm:$0xff] %v12339_v18  ;;  %v12348_v50 = vrot.slane %v3638_v42, %v11075_v14  ;;  %v5123_v47 = vrot.slane %v12319_v10, %v11196_v40  ;;  %6526 = vadd.xlane.f32.xlu1 %v6525_v12  ;;  %v16588_v1 = vld [vmem:[#allocation63_spill] sm:$0xff]  ;;  %v16657_v21 = vld [vmem:[#allocation134_spill] sm:$0xff] }
 0x244   : > { %v12345_v31 = vmul.f32 %v5107_v6, %v16583_v29  ;;  %v3286_v19 = vmul.f32 %v12330_v35, %v3250_v32  ;;  %v3182_v58 = vadd.f32 %v9884_v28, %v11723_v3  ;;  %v5035_v26 = vrot.slane %v3569_v49, %v11196_v40  ;;  %v12360_v6 = vpop.f32.mrb[125].mxu0 }
 0x245   : > { %v5127_v23 = vrot.slane %v12337_v9, %v11196_v40  ;;  %16584 = vst [vmem:[#allocation228_spill] sm:$0xff] %v12360_v6  ;;  %v3193_v42 = vadd.f32 %v9884_v28, %v11729_v8  ;;  %v6474_v59 = vsel %vm3018_vm1, %v6190_v46, 0.0  ;;  %v5111_v32 = vrot.slane %v12348_v50, %v11196_v40  ;;  %v12370_v3 = vpop.f32.mrb[126].mxu0 }
 0x246   : > { %v16585_v29 = vmax.f32 %v11687_v0, 0.0  ;;  %16586 = vst [vmem:[#allocation229_spill] sm:$0xff] %v12370_v3  ;;  %v4161_v12 = vcombine.high %v3281_v57, %v3281_v57  ;;  %6475 = vadd.xlane.f32.xlu0 %v6474_v59  ;;  %v16587_v33 = vmax.f32 %v11708_v20, 0.0  ;;  %v16589_v51 = vmax.f32 %v16588_v1, 0.0  ;;  %v12382_v6 = vpop.f32.mrb[127].mxu0 }
 0x247   : > { %v3571_v46 = vcombine.high %v12248_v13, %v12248_v13  ;;  %16590 = vst [vmem:[#allocation63_spill] sm:$0xff] %v12382_v6  ;;  %v6477_v0 = vsel %vm3018_vm1, %v6191_v45, 0.0  ;;  %v12392_v20 = vrot.slane %v11918_v27, %v11075_v14  ;;  %v4406_v45 = vcombine.high %v3286_v19, %v3286_v19 }
 0x248   : > { %v12368_v4 = vmul.f32 %v5123_v47, %v16585_v29  ;;  %v12374_v49 = vmul.f32 %v5127_v23, %v16587_v33  ;;  %v12378_v8 = vmul.f32 %v5035_v26, %v16589_v51  ;;  %v6576_v47 = vsel %vm3018_vm1, %v6224_v41, 0.0  ;;  %6478 = vadd.xlane.f32.xlu1 %v6477_v0  ;;  %v16603_v51 = vld [vmem:[#allocation162_spill] sm:$0xff] }
 0x249   : > { %v16591_v29 = vmax.f32 %v11672_v7, 0.0  ;;  %v12397_v33 = vrot.slane %v3281_v57, %v11075_v14  ;;  %v5039_v13 = vrot.slane %v3571_v46, %v11196_v40  ;;  %v3540_v41 = vcombine.high %v11918_v27, %v11918_v27  ;;  %v16597_v46 = vld [vmem:[#allocation150_spill] sm:$0xff] }
 0x24a   : > { %v12403_v7 = vrot.slane %v3286_v19, %v11075_v14  ;;  %v3248_v1 = vmax.f32 %v3182_v58, 0.0  ;;  %v5043_v23 = vrot.slane %v12392_v20, %v11196_v40  ;;  %v3251_v26 = vmax.f32 %v3193_v42, 0.0  ;;  %6577 = vadd.xlane.f32.xlu0 %v6576_v47 }
 0x24b   : > { %v12388_v59 = vmul.f32 %v5111_v32, %v16591_v29  ;;  %16592 = vst [vmem:[#allocation230_spill] sm:$0xff] %v12397_v33  ;;  %v16594_v32 = vld [vmem:[#allocation66_spill] sm:$0xff]  ;;  %v12412_v0 = vrot.slane %v3540_v41, %v11075_v14  ;;  %v12416_v27 = vrot.slane %v11928_v30, %v11075_v14  ;;  %v12419_v19 = vrot.slane %v4161_v12, %v11075_v14 }
 0x24c   : > { %16593 = vst [vmem:[#allocation231_spill] sm:$0xff] %v12403_v7  ;;  %v16595_v29 = vmax.f32 %v16594_v32, 0.0  ;;  %v6579_v58 = vsel %vm3018_vm1, %v12274_v63, 0.0  ;;  %v16598_v42 = vmax.f32 %v16597_v46, 0.0  ;;  %v12437_v12 = vrot.slane %v12397_v33, %v11075_v14 }
 0x24d   : > { %16596 = vst [vmem:[#allocation66_spill] sm:$0xff] %v12419_v19  ;;  %6580 = vadd.xlane.f32.xlu1 %v6579_v58  ;;  %v5047_v63 = vrot.slane %v12412_v0, %v11196_v40  ;;  %v6528_v46 = vsel %vm3018_vm1, %v12278_v56, 0.0  ;;  %v16602_v58 = vmax.f32 %v11409_v55, 0.0  ;;  %v16604_v32 = vmax.f32 %v16603_v51, 0.0  ;;  %v16641_v19 = vld [vmem:[#allocation181_spill] sm:$0xff] }
 0x24e   : > { %v12409_v57 = vmul.f32 %v5039_v13, %v16595_v29  ;;  %v12425_v47 = vmul.f32 %v5043_v23, %v16598_v42  ;;  %v16599_v13 = vcombine.high %v11928_v30, %v11928_v30  ;;  %16600 = vst [vmem:[#allocation150_spill] sm:$0xff] %v12437_v12  ;;  %v5059_v23 = vrot.slane %v12416_v27, %v11196_v40 }
 0x24f   : > { %v12444_v29 = vmul.f32 %v12330_v35, %v3248_v1  ;;  %v3185_v30 = vadd.f32 %v9884_v28, %v11745_v17  ;;  %6529 = vadd.xlane.f32.xlu0 %v6528_v46  ;;  %v3668_v1 = vcombine.high %v12296_v37, %v12296_v37  ;;  %v3670_v17 = vcombine.high %v12348_v50, %v12348_v50  ;;  %v16606_v46 = vld [vmem:[#allocation164_spill] sm:$0xff] }
 0x250   : > { %v12431_v41 = vrot.slane %v16599_v13, %v11075_v14  ;;  %v12453_v13 = vmul.f32 %v5047_v63, %v16602_v58  ;;  %v12457_v36 = vmul.f32 %v5059_v23, %v16604_v32  ;;  %v12464_v56 = vrot.slane %v4406_v45, %v11075_v14  ;;  %v16609_v58 = vld [vmem:[#allocation151_spill] sm:$0xff] }
 0x251   : > { %16601 = vst [vmem:[#allocation232_spill] sm:$0xff] %v12444_v29  ;;  %v6531_v28 = vsel %vm3018_vm1, %v12282_v22, 0.0  ;;  %v16607_v55 = vmax.f32 %v16606_v46, 0.0  ;;  %v3716_v51 = vcombine.high %v12319_v10, %v12319_v10  ;;  %v12477_v37 = vmul.f32 %v12330_v35, %v3251_v26  ;;  %v16610_v46 = vld [vmem:[#allocation193_spill] sm:$0xff] }
 0x252   : > { %v5063_v42 = vrot.slane %v12431_v41, %v11196_v40  ;;  %16605 = vst [vmem:[#allocation162_spill] sm:$0xff] %v12464_v56  ;;  %6532 = vadd.xlane.f32.xlu1 %v6531_v28  ;;  %v5115_v50 = vrot.slane %v3668_v1, %v11196_v40  ;;  %v5119_v45 = vrot.slane %v3670_v17, %v11196_v40  ;;  %v3249_v23 = vmax.f32 %v3185_v30, 0.0  ;;  %v16611_v26 = vld [vmem:[#allocation185_spill] sm:$0xff]  ;;  %v16613_v1 = vld [vmem:[#allocation18_spill] sm:$0xff] }
 0x253   : > { %16608 = vst [vmem:[#allocation164_spill] sm:$0xff] %v12477_v37  ;;  %v5131_v10 = vrot.slane %v3716_v51, %v11196_v40  ;;  %v16612_v28 = vmax.f32 %v16611_v26, 0.0  ;;  %v16614_v17 = vmax.f32 %v16613_v1, 0.0  ;;  %v3718_v30 = vcombine.high %v12337_v9, %v12337_v9  ;;  %v16619_v9 = vld [vmem:[#allocation152_spill] sm:$0xff]  ;;  %v16620_v1 = vld [vmem:[#allocation153_spill] sm:$0xff] }
 0x254   : > { %v12470_v63 = vmul.f32 %v5063_v42, %v16607_v55  ;;  %v6582_v42 = vsel %vm3018_vm1, %v12292_v34, 0.0  ;;  %v12488_v55 = vadd.f32 %v16610_v46, %v16609_v58  ;;  %v12502_v34 = vrot.slane %v12444_v29, %v11075_v14  ;;  %v16653_v29 = vld [vmem:[#allocation173_spill] sm:$0xff] }
 0x255   : > { %6583 = vadd.xlane.f32.xlu0 %v6582_v42  ;;  %v12492_v32 = vmul.f32 %v5115_v50, %v16612_v28  ;;  %v12496_v33 = vmul.f32 %v5119_v45, %v16614_v17  ;;  %v6585_v51 = vsel %vm3018_vm1, %v12308_v24, 0.0  ;;  %v16616_v42 = vld [vmem:[#allocation133_spill] sm:$0xff]  ;;  %v16618_v50 = vld [vmem:[#allocation202_spill] sm:$0xff]  ;;  %v12518_v28 = vadd.f32 %v16610_v46, %v16619_v9 }
 0x256   : > { %16615 = vst [vmem:[#allocation151_spill] sm:$0xff] %v12502_v34  ;;  %v16617_v58 = vmax.f32 %v16616_v42, 0.0  ;;  %v12512_v26 = vrot.slane %v16618_v50, %v11075_v14  ;;  %6586 = vadd.xlane.f32.xlu1 %v6585_v51  ;;  %v12522_v17 = vadd.f32 %v16610_v46, %v16620_v1  ;;  %v5135_v24 = vrot.slane %v3718_v30, %v11196_v40  ;;  %v16623_v1 = vld [vmem:[#allocation155_spill] sm:$0xff]  ;;  %v16624_v30 = vld [vmem:[#allocation22_spill] sm:$0xff] }
 0x257   : > { %v12530_v42 = vmul.f32 %v12330_v35, %v3249_v23  ;;  %v6588_v51 = vsel %vm3018_vm1, %v12345_v31, 0.0  ;;  %v12539_v45 = vadd.f32 %v16610_v46, %v16623_v1  ;;  %v16625_v12 = vmax.f32 %v16624_v30, 0.0  ;;  %v16626_v23 = vld [vmem:[#allocation161_spill] sm:$0xff] }
 0x258   : > { %v12508_v22 = vmul.f32 %v5131_v10, %v16617_v58  ;;  %v12527_v10 = vrot.slane %v12477_v37, %v11075_v14  ;;  %v5139_v58 = vrot.slane %v12512_v26, %v11196_v40  ;;  %v3687_v35 = vcombine.high %v16618_v50, %v16618_v50  ;;  %v16629_v50 = vld [vmem:[#allocation165_spill] sm:$0xff] }
 0x259   : > { %16622 = vst [vmem:[#allocation185_spill] sm:$0xff] %v12530_v42  ;;  %6589 = vadd.xlane.f32.xlu0 %v6588_v51  ;;  %v12543_v34 = vmul.f32 %v5135_v24, %v16625_v12  ;;  %v6591_v31 = vsel %vm3018_vm1, %v12388_v59, 0.0  ;;  %v16627_v51 = vld [vmem:[#allocation147_spill] sm:$0xff]  ;;  %v3570_v1 = vcombine.high %v12392_v20, %v12392_v20  ;;  %v12563_v30 = vadd.f32 %v16610_v46, %v16629_v50  ;;  %v16631_v50 = vld [vmem:[#allocation168_spill] sm:$0xff] }
 0x25a   : > { %16621 = vst [vmem:[#allocation193_spill] sm:$0xff] %v12527_v10  ;;  %v12551_v10 = vadd.f32 %v16610_v46, %v16626_v23  ;;  %v16628_v9 = vmax.f32 %v16627_v51, 0.0  ;;  %6592 = vadd.xlane.f32.xlu1 %v6591_v31  ;;  %v12566_v59 = vrot.slane %v3687_v35, %v11075_v14  ;;  %v6600_v23 = vsel %vm3018_vm1, %v12368_v4, 0.0  ;;  %v16630_v31 = vld [vmem:[#allocation167_spill] sm:$0xff]  ;;  %v16634_v42 = vld [vmem:[#allocation140_spill] sm:$0xff] }
 0x25b   : > { %v6534_v20 = vsel %vm3018_vm1, %v12378_v8, 0.0  ;;  %v12577_v51 = vadd.f32 %v16610_v46, %v16630_v31  ;;  %v12581_v35 = vadd.f32 %v16610_v46, %v16631_v50  ;;  %v3618_v31 = vcombine.high %v12416_v27, %v12416_v27  ;;  %v16638_v27 = vld [vmem:[#allocation180_spill] sm:$0xff] }
 0x25c   : > { %v12555_v56 = vmul.f32 %v5139_v58, %v16628_v9  ;;  %v6603_v58 = vsel %vm3018_vm1, %v12374_v49, 0.0  ;;  %v5051_v9 = vrot.slane %v3570_v1, %v11196_v40  ;;  %v5143_v4 = vrot.slane %v12566_v59, %v11196_v40  ;;  %v16632_v1 = vld [vmem:[#allocation74_spill] sm:$0xff] }
 0x25d   : > { %6601 = vadd.xlane.f32.xlu0 %v6600_v23  ;;  %v3572_v49 = vcombine.high %v12412_v0, %v12412_v0  ;;  %v16633_v23 = vmax.f32 %v16632_v1, 0.0  ;;  %v6537_v50 = vsel %vm3018_vm1, %v12409_v57, 0.0  ;;  %v16635_v37 = vmax.f32 %v16634_v42, 0.0 }
 0x25e   : > { %6604 = vadd.xlane.f32.xlu1 %v6603_v58  ;;  %v6540_v1 = vsel %vm3018_vm1, %v12425_v47, 0.0  ;;  %v12611_v58 = vadd.f32 %v16610_v46, %v16638_v27  ;;  %v5067_v57 = vrot.slane %v3618_v31, %v11196_v40  ;;  %v3620_v47 = vcombine.high %v12431_v41, %v12431_v41  ;;  %v16643_v31 = vld [vmem:[#allocation160_spill] sm:$0xff] }
 0x25f   : > { %v12591_v12 = vmul.f32 %v5051_v9, %v16633_v23  ;;  %v12600_v0 = vmul.f32 %v5143_v4, %v16635_v37  ;;  %v5055_v24 = vrot.slane %v3572_v49, %v11196_v40  ;;  %v16636_v9 = vld [vmem:[#allocation174_spill] sm:$0xff]  ;;  %v16639_v4 = vld [vmem:[#allocation79_spill] sm:$0xff]  ;;  %v6552_v27 = vsel %vm3018_vm1, %v12457_v36, 0.0 }
 0x260   : > { %v12607_v23 = vadd.f32 %v16610_v46, %v16636_v9  ;;  %v16640_v49 = vmax.f32 %v16639_v4, 0.0  ;;  %v6543_v9 = vsel %vm3018_vm1, %v12453_v13, 0.0  ;;  %v16644_v42 = vmax.f32 %v16643_v31, 0.0  ;;  %v16645_v4 = vld [vmem:[#allocation183_spill] sm:$0xff] }
 0x261   : > { %6535 = vadd.xlane.f32.xlu0 %v6534_v20  ;;  %v12628_v20 = vadd.f32 %v16610_v46, %v16641_v19  ;;  %v12638_v41 = vadd.f32 %v16610_v46, %v16645_v4  ;;  %v5071_v13 = vrot.slane %v3620_v47, %v11196_v40  ;;  %v3603_v36 = vrot.slane %v11949_v11, %v11075_v14  ;;  %v16648_v31 = vld [vmem:[#allocation163_spill] sm:$0xff] }
 0x262   : > { %16637 = vst [vmem:[#allocation18_spill] sm:$0xff] %v12607_v23  ;;  %v12618_v8 = vmul.f32 %v5055_v24, %v16640_v49  ;;  %v12632_v37 = vmul.f32 %v5067_v57, %v16644_v42  ;;  %6538 = vadd.xlane.f32.xlu1 %v6537_v50  ;;  %v6555_v24 = vsel %vm3018_vm1, %v12470_v63, 0.0  ;;  %v6594_v19 = vsel %vm3018_vm1, %v12492_v32, 0.0  ;;  %v16646_v63 = vld [vmem:[#allocation184_spill] sm:$0xff]  ;;  %v16650_v42 = vld [vmem:[#allocation186_spill] sm:$0xff] }
 0x263   : > { %16642 = vst [vmem:[#allocation133_spill] sm:$0xff] %v12628_v20  ;;  %v6597_v57 = vsel %vm3018_vm1, %v12496_v33, 0.0  ;;  %v12651_v49 = vadd.f32 %v16610_v46, %v16646_v63  ;;  %v16649_v47 = vmax.f32 %v16648_v31, 0.0  ;;  %v5075_v7 = vrot.slane %v3603_v36, %v11196_v40  ;;  %v16652_v31 = vld [vmem:[#allocation189_spill] sm:$0xff]  ;;  %v16655_v50 = vld [vmem:[#allocation190_spill] sm:$0xff] }
 0x264   : > { %v3589_v32 = vcombine.high %v11949_v11, %v11949_v11  ;;  %v6606_v33 = vsel %vm3018_vm1, %v12508_v22, 0.0  ;;  %v3717_v63 = vcombine.high %v12512_v26, %v12512_v26  ;;  %v16654_v11 = vmax.f32 %v16653_v29, 0.0 }
 0x265   : > { %6541 = vadd.xlane.f32.xlu0 %v6540_v1  ;;  %16647 = vst [vmem:[#allocation202_spill] sm:$0xff] %v12651_v49  ;;  %v12655_v4 = vmul.f32 %v5071_v13, %v16649_v47  ;;  %v12665_v1 = vadd.f32 %v16610_v46, %v16650_v42  ;;  %v1936_v47 = vadd.f32 %v16610_v46, %v16652_v31  ;;  %v16656_v42 = vld [vmem:[#allocation20_spill] sm:$0xff]  ;;  %v16662_v49 = vld [vmem:[#allocation177_spill] sm:$0xff] }
 0x266   : > { %6544 = vadd.xlane.f32.xlu1 %v6543_v9  ;;  %v12674_v6 = vmul.f32 %v5075_v7, %v16654_v11  ;;  %v3617_v22 = vrot.slane %v3589_v32, %v11075_v14  ;;  %v1928_v3 = vadd.f32 %v16610_v46, %v16655_v50  ;;  %v1939_v18 = vadd.f32 %v16610_v46, %v16656_v42  ;;  %v16658_v13 = vld [vmem:[#allocation188_spill] sm:$0xff] }
 0x267   : > { %16651 = vst [vmem:[#allocation152_spill] sm:$0xff] %v12665_v1  ;;  %v1931_v26 = vadd.f32 %v16610_v46, %v16657_v21  ;;  %v5147_v9 = vrot.slane %v3717_v63, %v11196_v40  ;;  %v12687_v7 = vadd.f32 %v16610_v46, %v16658_v13  ;;  %v3719_v50 = vcombine.high %v12566_v59, %v12566_v59  ;;  %v16659_v21 = vld [vmem:[#allocation129_spill] sm:$0xff] }
 0x268   : > { %v5079_v29 = vrot.slane %v3617_v22, %v11196_v40  ;;  %v6609_v32 = vsel %vm3018_vm1, %v12543_v34, 0.0  ;;  %v12697_v63 = vadd.f32 %v16610_v46, %v16659_v21  ;;  %v2712_v13 = vmax.f32 %v1936_v47, 0.0  ;;  %v16664_v21 = vld [vmem:[#allocation33_spill] sm:$0xff] }
 0x269   : > { %6553 = vadd.xlane.f32.xlu0 %v6552_v27  ;;  %v16660_v27 = vld [vmem:[#allocation29_spill] sm:$0xff]  ;;  %v16663_v2 = vmax.f32 %v16662_v49, 0.0  ;;  %v5151_v59 = vrot.slane %v3719_v50, %v11196_v40  ;;  %v3619_v52 = vcombine.high %v3603_v36, %v3603_v36  ;;  %v2710_v34 = vmax.f32 %v1928_v3, 0.0 }
 0x26a   : > { %v16661_v42 = vmax.f32 %v16660_v27, 0.0  ;;  %6556 = vadd.xlane.f32.xlu1 %v6555_v24  ;;  %v2713_v25 = vmax.f32 %v1939_v18, 0.0  ;;  %v2711_v11 = vmax.f32 %v1931_v26, 0.0  ;;  %v3621_v1 = vcombine.high %v3617_v22, %v3617_v22  ;;  %v16665_v27 = vld [vmem:[#allocation138_spill] sm:$0xff] }
 0x26b   : > { %v12705_v60 = vmul.f32 %v5079_v29, %v16663_v2  ;;  %v1944_v20 = vadd.f32 %v16610_v46, %v16664_v21  ;;  %v5083_v24 = vrot.slane %v3619_v52, %v11196_v40  ;;  %v3841_v2 = vrot.slane %v11954_v43, %v11075_v14  ;;  %v12733_v52 = vld [vmem:[%s15848_s4] ss:$0 sm:$0xff] }
 0x26c   : > { %v12701_v31 = vmul.f32 %v5147_v9, %v16661_v42  ;;  %v16666_v9 = vmax.f32 %v16665_v27, 0.0  ;;  %v5087_v49 = vrot.slane %v3621_v1, %v11196_v40  ;;  %v16667_v18 = vcombine.high %v11954_v43, %v11954_v43  ;;  %v16669_v1 = vld [vmem:[#allocation27_spill] sm:$0xff] }
 0x26d   : > { %6595 = vadd.xlane.f32.xlu0 %v6594_v19  ;;  %v3743_v36 = vrot.slane %v11964_v61, %v11075_v14  ;;  %v16668_v46 = vcombine.high %v11964_v61, %v11964_v61  ;;  %v1947_v47 = vadd.f32 %v12733_v52, %v16669_v1  ;;  %v16670_v43 = vld [vmem:[#allocation171_spill] sm:$0xff]  ;;  %v5219_v29 = vrot.slane %v3841_v2, %v11196_v40 }
 0x26e   : > { %v12712_v42 = vmul.f32 %v5151_v59, %v16666_v9  ;;  %v3855_v3 = vrot.slane %v16667_v18, %v11075_v14  ;;  %6598 = vadd.xlane.f32.xlu1 %v6597_v57  ;;  %v16671_v22 = vmax.f32 %v16670_v43, 0.0  ;;  %v3863_v50 = vcombine.high %v3841_v2, %v3841_v2  ;;  %v16672_v59 = vld [vmem:[#allocation176_spill] sm:$0xff] }
 0x26f   : > { %v12728_v19 = vrot.slane %v16668_v46, %v11075_v14  ;;  %v16673_v61 = vmax.f32 %v16672_v59, 0.0  ;;  %v5155_v27 = vrot.slane %v3743_v36, %v11196_v40  ;;  %v2714_v18 = vmax.f32 %v1944_v20, 0.0  ;;  %v16674_v43 = vld [vmem:[#allocation32_spill] sm:$0xff]  ;;  %v16677_v20 = vld [vmem:[#allocation149_spill] sm:$0xff] }
 0x270   : > { %v12739_v26 = vmul.f32 %v5083_v24, %v16671_v22  ;;  %v5223_v57 = vrot.slane %v3855_v3, %v11196_v40  ;;  %v12750_v46 = vmul.f32 %v5219_v29, %v2710_v34  ;;  %v5227_v24 = vrot.slane %v3863_v50, %v11196_v40  ;;  %v16678_v50 = vld [vmem:[#allocation191_spill] sm:$0xff]  ;;  %v12837_v29 = vpop.f32.mrb[128].mxu0 }
 0x271   : > { %v12744_v21 = vmul.f32 %v5087_v49, %v16673_v61  ;;  %v5159_v9 = vrot.slane %v12728_v19, %v11196_v40  ;;  %6607 = vadd.xlane.f32.xlu0 %v6606_v33  ;;  %v3865_v1 = vcombine.high %v3855_v3, %v3855_v3  ;;  %v1960_v2 = vadd.f32 %v12733_v52, %v16674_v43 }
 0x272   : > { %v12755_v22 = vmul.f32 %v5223_v57, %v2711_v11  ;;  %v16675_v49 = vmax.f32 %v12518_v28, 0.0  ;;  %v16676_v61 = vmax.f32 %v12539_v45, 0.0  ;;  %6610 = vadd.xlane.f32.xlu1 %v6609_v32  ;;  %v1963_v33 = vadd.f32 %v12733_v52, %v16677_v20 }
 0x273   : > { %v12767_v34 = vmul.f32 %v5227_v24, %v2712_v13  ;;  %v5231_v3 = vrot.slane %v3865_v1, %v11196_v40  ;;  %v12772_v11 = vrot.slane %v11969_v39, %v11075_v14  ;;  %v6612_v28 = vsel %vm3018_vm1, %v12555_v56, 0.0 }
 0x274   : > { %v12759_v59 = vmul.f32 %v5155_v27, %v16675_v49  ;;  %v12763_v23 = vmul.f32 %v5159_v9, %v16676_v61  ;;  %v6546_v45 = vsel %vm3018_vm1, %v12591_v12, 0.0  ;;  %v3834_v32 = vcombine.high %v11969_v39, %v11969_v39 }
 0x275   : > { %6613 = vadd.xlane.f32.xlu0 %v6612_v28  ;;  %v6615_v13 = vsel %vm3018_vm1, %v12600_v0, 0.0  ;;  %v12785_v57 = vadd.f32 %v12733_v52, %v16678_v50  ;;  %v12787_v27 = vmul.f32 %v5231_v3, %v2713_v25  ;;  %v5235_v56 = vrot.slane %v12772_v11, %v11196_v40 }
 0x276   : > { %v2715_v9 = vmax.f32 %v1947_v47, 0.0  ;;  %v2718_v24 = vmax.f32 %v1960_v2, 0.0  ;;  %v12792_v12 = vrot.slane %v3834_v32, %v11075_v14  ;;  %v12796_v39 = vrot.slane %v11985_v48, %v11075_v14  ;;  %6616 = vadd.xlane.f32.xlu1 %v6615_v13  ;;  %v16680_v2 = vld [vmem:[#allocation136_spill] sm:$0xff] }
 0x277   : > { %v2719_v0 = vmax.f32 %v1963_v33, 0.0  ;;  %v12798_v1 = vmul.f32 %v5235_v56, %v2714_v18  ;;  %v16679_v25 = vcombine.high %v11985_v48, %v11985_v48  ;;  %v2000_v47 = vadd.f32 %v12733_v52, %v11982_v5  ;;  %v16681_v32 = vld [vmem:[#allocation192_spill] sm:$0xff] }
 0x278   : > { %v12810_v49 = vadd.f32 %v12733_v52, %v16680_v2  ;;  %v5239_v61 = vrot.slane %v12792_v12, %v11196_v40  ;;  %v5251_v18 = vrot.slane %v12796_v39, %v11196_v40  ;;  %v3961_v20 = vcombine.high %v12096_v53, %v12096_v53 }
 0x279   : > { %v12804_v43 = vrot.slane %v16679_v25, %v11075_v14  ;;  %6547 = vadd.xlane.f32.xlu0 %v6546_v45  ;;  %v2728_v5 = vmax.f32 %v2000_v47, 0.0  ;;  %v3765_v3 = vcombine.high %v3743_v36, %v3743_v36  ;;  %v6549_v28 = vsel %vm3018_vm1, %v12618_v8, 0.0  ;;  %v16682_v47 = vld [vmem:[#allocation125_spill] sm:$0xff] }
 0x27a   : > { %v12825_v13 = vadd.f32 %v12733_v52, %v16681_v32  ;;  %v12827_v50 = vmul.f32 %v5239_v61, %v2715_v9  ;;  %v12829_v56 = vmul.f32 %v5251_v18, %v2718_v24  ;;  %6550 = vadd.xlane.f32.xlu1 %v6549_v28  ;;  %v5291_v25 = vrot.slane %v3961_v20, %v11196_v40  ;;  %v16683_v61 = vld [vmem:[#allocation194_spill] sm:$0xff]  ;;  %v12848_v18 = vpop.f32.mrb[129].mxu0 }
 0x27b   : > { %v5255_v33 = vrot.slane %v12804_v43, %v11196_v40  ;;  %v5163_v2 = vrot.slane %v3765_v3, %v11196_v40  ;;  %v1992_v36 = vadd.f32 %v12733_v52, %v16682_v47  ;;  %v6558_v8 = vsel %vm3018_vm1, %v12632_v37, 0.0  ;;  %v12858_v32 = vpop.f32.mrb[130].mxu0  ;;  %v16686_v47 = vld [vmem:[#allocation26_spill] sm:$0xff] }
 0x27c   : > { %v12844_v24 = vadd.f32 %v12733_v52, %v16683_v61  ;;  %v6561_v20 = vsel %vm3018_vm1, %v12655_v4, 0.0  ;;  %v16685_v3 = vmax.f32 %v12488_v55, 0.0  ;;  %v2003_v61 = vadd.f32 %v12733_v52, %v16686_v47  ;;  %v12870_v55 = vpop.f32.mrb[131].mxu0  ;;  %v16690_v47 = vld [vmem:[#allocation28_spill] sm:$0xff] }
 0x27d   : > { %v12831_v45 = vmul.f32 %v5255_v33, %v2719_v0  ;;  %v5283_v0 = vrot.slane %v12096_v53, %v11196_v40  ;;  %6559 = vadd.xlane.f32.xlu0 %v6558_v8  ;;  %v12852_v33 = vmul.f32 %v5291_v25, %v2728_v5  ;;  %v2726_v28 = vmax.f32 %v1992_v36, 0.0  ;;  %v16688_v5 = vld [vmem:[#allocation203_spill] sm:$0xff] }
 0x27e   : > { %v12856_v37 = vmul.f32 %v5163_v2, %v16685_v3  ;;  %v16687_v53 = vcombine.high %v12042_v62, %v12042_v62  ;;  %v3767_v4 = vcombine.high %v12728_v19, %v12728_v19  ;;  %v1995_v25 = vadd.f32 %v12733_v52, %v16688_v5  ;;  %6562 = vadd.xlane.f32.xlu1 %v6561_v20 }
 0x27f   : > { %16684 = vst [vmem:[#allocation153_spill] sm:$0xff] %v12852_v33  ;;  %v6564_v2 = vsel %vm3018_vm1, %v12674_v6, 0.0  ;;  %v12875_v3 = vmul.f32 %v5283_v0, %v2726_v28  ;;  %v12879_v62 = vrot.slane %v16690_v47, %v11075_v14  ;;  %v2729_v19 = vmax.f32 %v2003_v61, 0.0  ;;  %v12894_v33 = vpop.xlane.xlu0 %6481 }
 0x280   : > { %v3953_v8 = vrot.slane %v16687_v53, %v11075_v14  ;;  %v12881_v53 = vpop.f32.mrb[132].mxu0  ;;  %v5167_v5 = vrot.slane %v3767_v4, %v11196_v40  ;;  %v2727_v48 = vmax.f32 %v1995_v25, 0.0  ;;  %v3736_v28 = vcombine.high %v16690_v47, %v16690_v47  ;;  %16693 = vst [vmem:[#allocation147_spill] sm:$0xff] %v12894_v33  ;;  %v16697_v47 = vld [vmem:[#allocation148_spill] sm:$0xff] }
 0x281   : > { %16689 = vst [vmem:[#allocation155_spill] sm:$0xff] %v12875_v3  ;;  %16691 = vst [vmem:[#allocation22_spill] sm:$0xff] %v12881_v53  ;;  %6565 = vadd.xlane.f32.xlu0 %v6564_v2  ;;  %v5171_v0 = vrot.slane %v12879_v62, %v11196_v40  ;;  %v12890_v36 = vpop.f32.mrb[133].mxu0  ;;  %v6567_v61 = vsel %vm3018_vm1, %v12705_v60, 0.0  ;;  %v16694_v25 = vmax.f32 %v12522_v17, 0.0  ;;  %v16699_v60 = vmax.f32 %v12563_v30, 0.0 }
 0x282   : > { %v3963_v9 = vcombine.high %v3953_v8, %v3953_v8  ;;  %v5287_v6 = vrot.slane %v3953_v8, %v11196_v40  ;;  %16692 = vst [vmem:[#allocation161_spill] sm:$0xff] %v12890_v36  ;;  %v16695_v8 = vld [vmem:[#allocation207_spill] sm:$0xff]  ;;  %v12903_v3 = vpop.f32.mrb[134].mxu0  ;;  %6568 = vadd.xlane.f32.xlu1 %v6567_v61  ;;  %v12907_v36 = vadd.f32 %v12733_v52, %v16697_v47 }
 0x283   : > { %v12899_v2 = vmul.f32 %v5167_v5, %v16694_v25  ;;  %v2016_v20 = vadd.f32 %v12733_v52, %v16695_v8  ;;  %16696 = vst [vmem:[#allocation165_spill] sm:$0xff] %v12903_v3  ;;  %v12913_v33 = vmul.f32 %v5171_v0, %v16699_v60  ;;  %v12916_v17 = vrot.slane %v3736_v28, %v11075_v14  ;;  %v16701_v25 = vld [vmem:[#allocation196_spill] sm:$0xff]  ;;  %v12934_v28 = vpop.xlane.xlu1 %6484 }
 0x284   : > { %v5295_v4 = vrot.slane %v3963_v9, %v11196_v40  ;;  %v12909_v53 = vmul.f32 %v5287_v6, %v2727_v48  ;;  %v12918_v9 = vpop.f32.mrb[135].mxu0  ;;  %v6618_v5 = vsel %vm3018_vm1, %v12701_v31, 0.0  ;;  %v12924_v61 = vadd.f32 %v12733_v52, %v16701_v25  ;;  %16704 = vst [vmem:[#allocation174_spill] sm:$0xff] %v12934_v28 }
 0x285   : > { %16700 = vst [vmem:[#allocation168_spill] sm:$0xff] %v12918_v9  ;;  %v6621_v48 = vsel %vm3018_vm1, %v12712_v42, 0.0  ;;  %v12930_v30 = vpop.f32.mrb[136].mxu0  ;;  %6619 = vadd.xlane.f32.xlu0 %v6618_v5  ;;  %v6570_v0 = vsel %vm3018_vm1, %v12739_v26, 0.0  ;;  %v5175_v31 = vrot.slane %v12916_v17, %v11196_v40  ;;  %v2732_v8 = vmax.f32 %v2016_v20, 0.0  ;;  %v16706_v42 = vld [vmem:[#allocation7_spill] sm:$0xff] }
 0x286   : > { %16698 = vst [vmem:[#allocation167_spill] sm:$0xff] %v12909_v53  ;;  %v12928_v6 = vmul.f32 %v5295_v4, %v2729_v19  ;;  %16703 = vst [vmem:[#allocation140_spill] sm:$0xff] %v12930_v30  ;;  %v3946_v47 = vrot.slane %v12079_v15, %v11075_v14  ;;  %v12940_v60 = vpop.f32.mrb[137].mxu0  ;;  %v12944_v19 = vrot.slane %v16706_v42, %v11075_v14  ;;  %v16707_v4 = vld [vmem:[#allocation34_spill] sm:$0xff]  ;;  %6622 = vadd.xlane.f32.xlu1 %v6621_v48 }
 0x287   : > { %16705 = vst [vmem:[#allocation180_spill] sm:$0xff] %v12940_v60  ;;  %v2008_v5 = vadd.f32 %v12733_v52, %v16707_v4  ;;  %v2019_v26 = vadd.f32 %v12733_v52, %v12061_v16  ;;  %v16708_v25 = vcombine.high %v12079_v15, %v12079_v15  ;;  %v12954_v28 = vpop.f32.mrb[138].mxu0  ;;  %v16711_v4 = vcombine.high %v16706_v42, %v16706_v42  ;;  %v12969_v15 = vpop.xlane.xlu0 %6433 }
 0x288   : > { %16702 = vst [vmem:[#allocation74_spill] sm:$0xff] %v12928_v6  ;;  %16709 = vst [vmem:[#allocation79_spill] sm:$0xff] %v12954_v28  ;;  %v16710_v6 = vmax.f32 %v12581_v35, 0.0  ;;  %v3962_v30 = vcombine.high %v3946_v47, %v3946_v47  ;;  %v5299_v53 = vrot.slane %v3946_v47, %v11196_v40  ;;  %v12967_v9 = vpop.f32.mrb[139].mxu0  ;;  %v5187_v48 = vrot.slane %v12944_v19, %v11196_v40  ;;  %v12999_v3 = vpop.xlane.xlu1 %6439 }
 0x289   : > { %v3960_v20 = vrot.slane %v16708_v25, %v11075_v14  ;;  %v12965_v16 = vrot.slane %v16711_v4, %v11075_v14  ;;  %16712 = vst [vmem:[#allocation181_spill] sm:$0xff] %v12967_v9  ;;  %16713 = vst [vmem:[#allocation160_spill] sm:$0xff] %v12969_v15  ;;  %v2730_v25 = vmax.f32 %v2008_v5, 0.0  ;;  %v2733_v35 = vmax.f32 %v2019_v26, 0.0  ;;  %6571 = vadd.xlane.f32.xlu0 %v6570_v0 }
 0x28a   : > { %v12958_v60 = vmul.f32 %v5175_v31, %v16710_v6  ;;  %v12973_v31 = vpop.f32.mrb[140].mxu0  ;;  %v6573_v47 = vsel %vm3018_vm1, %v12744_v21, 0.0  ;;  %v6672_v42 = vsel %vm3018_vm1, %v12750_v46, 0.0  ;;  %v5307_v4 = vrot.slane %v3962_v30, %v11196_v40  ;;  %v16717_v46 = vld [vmem:[#allocation200_spill] sm:$0xff]  ;;  %16718 = vst [vmem:[#allocation163_spill] sm:$0xff] %v12999_v3 }
 0x28b   : > { %v3964_v6 = vcombine.high %v3960_v20, %v3960_v20  ;;  %16714 = vst [vmem:[#allocation183_spill] sm:$0xff] %v12973_v31  ;;  %v5191_v15 = vrot.slane %v12965_v16, %v11196_v40  ;;  %v12982_v9 = vpop.f32.mrb[141].mxu0  ;;  %v16716_v5 = vmax.f32 %v12611_v58, 0.0  ;;  %v12988_v28 = vmul.f32 %v5299_v53, %v2730_v25  ;;  %6574 = vadd.xlane.f32.xlu1 %v6573_v47 }
 0x28c   : > { %16715 = vst [vmem:[#allocation184_spill] sm:$0xff] %v12982_v9  ;;  %v2011_v21 = vadd.f32 %v12733_v52, %v12070_v54  ;;  %v12993_v31 = vpop.f32.mrb[142].mxu0  ;;  %v12997_v30 = vadd.f32 %v12733_v52, %v16717_v46  ;;  %v13001_v9 = vmul.f32 %v5307_v4, %v2732_v8  ;;  %v16719_v58 = vmax.f32 %v12638_v41, 0.0  ;;  %v13023_v4 = vpop.xlane.xlu0 %6487 }
 0x28d   : > { %v12986_v26 = vmul.f32 %v5187_v48, %v16716_v5  ;;  %v5311_v0 = vrot.slane %v3964_v6, %v11196_v40  ;;  %v5303_v48 = vrot.slane %v3960_v20, %v11196_v40  ;;  %v13008_v25 = vpop.f32.mrb[143].mxu0  ;;  %v3864_v47 = vcombine.high %v12772_v11, %v12772_v11  ;;  %6673 = vadd.xlane.f32.xlu0 %v6672_v42  ;;  %v16722_v42 = vld [vmem:[#allocation41_spill] sm:$0xff] }
 0x28e   : > { %v13005_v53 = vmul.f32 %v5191_v15, %v16719_v58  ;;  %v2731_v5 = vmax.f32 %v2011_v21, 0.0  ;;  %v6675_v8 = vsel %vm3018_vm1, %v12755_v22, 0.0  ;;  %v3866_v41 = vcombine.high %v12792_v12, %v12792_v12  ;;  %16721 = vst [vmem:[#allocation189_spill] sm:$0xff] %v13023_v4 }
 0x28f   : > { %v13011_v6 = vmul.f32 %v5311_v0, %v2733_v35  ;;  %v2032_v20 = vadd.f32 %v12733_v52, %v12111_v38  ;;  %v4010_v15 = vcombine.high %v12130_v44, %v12130_v44  ;;  %v5243_v0 = vrot.slane %v3864_v47, %v11196_v40  ;;  %6676 = vadd.xlane.f32.xlu1 %v6675_v8  ;;  %v13043_v8 = vpop.xlane.xlu1 %6490 }
 0x290   : > { %v13025_v35 = vmul.f32 %v5303_v48, %v2731_v5  ;;  %v3912_v11 = vcombine.high %v12796_v39, %v12796_v39  ;;  %v2024_v22 = vadd.f32 %v12733_v52, %v16722_v42  ;;  %v6624_v12 = vsel %vm3018_vm1, %v12759_v59, 0.0  ;;  %16724 = vst [vmem:[#allocation173_spill] sm:$0xff] %v13043_v8 }
 0x291   : > { %16720 = vst [vmem:[#allocation186_spill] sm:$0xff] %v13011_v6  ;;  %v5247_v38 = vrot.slane %v3866_v41, %v11196_v40  ;;  %v2736_v21 = vmax.f32 %v2032_v20, 0.0  ;;  %v5323_v46 = vrot.slane %v4010_v15, %v11196_v40  ;;  %v16723_v58 = vmax.f32 %v12785_v57, 0.0  ;;  %6625 = vadd.xlane.f32.xlu0 %v6624_v12  ;;  %v16727_v20 = vld [vmem:[#allocation216_spill] sm:$0xff]  ;;  %v16728_v15 = vld [vmem:[#allocation209_spill] sm:$0xff] }
 0x292   : > { %v5259_v5 = vrot.slane %v3912_v11, %v11196_v40  ;;  %v2734_v47 = vmax.f32 %v2024_v22, 0.0  ;;  %v5315_v39 = vrot.slane %v12130_v44, %v11196_v40  ;;  %v16725_v59 = vmax.f32 %v12810_v49, 0.0 }
 0x293   : > { %v13038_v48 = vmul.f32 %v5243_v0, %v16723_v58  ;;  %v13049_v41 = vmul.f32 %v5323_v46, %v2736_v21  ;;  %v2035_v57 = vadd.f32 %v12733_v52, %v16727_v20  ;;  %v16729_v0 = vcombine.high %v16728_v15, %v16728_v15  ;;  %v13072_v20 = vpop.xlane.xlu0 %6493 }
 0x294   : > { %v13047_v42 = vmul.f32 %v5247_v38, %v16725_v59  ;;  %v6627_v44 = vsel %vm3018_vm1, %v12763_v23, 0.0  ;;  %v16730_v22 = vmax.f32 %v12825_v13, 0.0  ;;  %v13063_v49 = vmul.f32 %v5315_v39, %v2734_v47  ;;  %16731 = vst [vmem:[#allocation20_spill] sm:$0xff] %v13072_v20  ;;  %v16733_v39 = vld [vmem:[#allocation204_spill] sm:$0xff] }
 0x295   : > { %16726 = vst [vmem:[#allocation190_spill] sm:$0xff] %v13049_v41  ;;  %v4002_v11 = vrot.slane %v16729_v0, %v11075_v14  ;;  %v3914_v38 = vcombine.high %v12804_v43, %v12804_v43  ;;  %v2723_v21 = vmax.f32 %v12997_v30, 0.0  ;;  %6628 = vadd.xlane.f32.xlu1 %v6627_v44  ;;  %v6678_v46 = vsel %vm3018_vm1, %v12767_v34, 0.0 }
 0x296   : > { %v13061_v12 = vmul.f32 %v5259_v5, %v16730_v22  ;;  %v2737_v58 = vmax.f32 %v2035_v57, 0.0  ;;  %v6681_v23 = vsel %vm3018_vm1, %v12787_v27, 0.0  ;;  %v16732_v5 = vld [vmem:[#allocation218_spill] sm:$0xff]  ;;  %6679 = vadd.xlane.f32.xlu0 %v6678_v46  ;;  %v13081_v34 = vrot.slane %v16733_v39, %v11075_v14  ;;  %v16734_v57 = vld [vmem:[#allocation219_spill] sm:$0xff] }
 0x297   : > { %v4012_v59 = vcombine.high %v4002_v11, %v4002_v11  ;;  %v5263_v13 = vrot.slane %v3914_v38, %v11196_v40  ;;  %v2027_v47 = vadd.f32 %v12733_v52, %v16732_v5  ;;  %v5319_v43 = vrot.slane %v4002_v11, %v11196_v40  ;;  %v16735_v27 = vld [vmem:[#allocation210_spill] sm:$0xff]  ;;  %v16737_v5 = vld [vmem:[#allocation121_spill] sm:$0xff] }
 0x298   : > { %v2048_v15 = vadd.f32 %v12733_v52, %v16734_v57  ;;  %v3995_v0 = vrot.slane %v16735_v27, %v11075_v14  ;;  %v16736_v44 = vmax.f32 %v12844_v24, 0.0  ;;  %v2040_v11 = vadd.f32 %v12733_v52, %v16737_v5 }
 0x299   : > { %v5327_v30 = vrot.slane %v4012_v59, %v11196_v40  ;;  %v2735_v38 = vmax.f32 %v2027_v47, 0.0  ;;  %v3883_v46 = vcombine.high %v16733_v39, %v16733_v39  ;;  %6682 = vadd.xlane.f32.xlu1 %v6681_v23  ;;  %v13095_v59 = vpop.xlane.xlu1 %6496  ;;  %v5267_v57 = vrot.slane %v13081_v34, %v11196_v40 }
 0x29a   : > { %v13089_v22 = vmul.f32 %v5263_v13, %v16736_v44  ;;  %16738 = vst [vmem:[#allocation134_spill] sm:$0xff] %v13095_v59  ;;  %v2740_v20 = vmax.f32 %v2048_v15, 0.0  ;;  %v4011_v8 = vcombine.high %v3995_v0, %v3995_v0  ;;  %v6684_v24 = vsel %vm3018_vm1, %v12798_v1, 0.0  ;;  %v16741_v15 = vld [vmem:[#allocation220_spill] sm:$0xff] }
 0x29b   : > { %v13097_v54 = vmul.f32 %v5327_v30, %v2737_v58  ;;  %v13103_v13 = vmul.f32 %v5319_v43, %v2735_v38  ;;  %v2738_v47 = vmax.f32 %v2040_v11, 0.0  ;;  %v5331_v44 = vrot.slane %v3995_v0, %v11196_v40  ;;  %6685 = vadd.xlane.f32.xlu0 %v6684_v24  ;;  %v13118_v43 = vpop.xlane.xlu0 %6505  ;;  %v16744_v11 = vld [vmem:[#allocation124_spill] sm:$0xff] }
 0x29c   : > { %v16740_v23 = vmax.f32 %v12924_v61, 0.0  ;;  %v5339_v58 = vrot.slane %v4011_v8, %v11196_v40  ;;  %v13112_v30 = vrot.slane %v3883_v46, %v11075_v14  ;;  %v2051_v5 = vadd.f32 %v12733_v52, %v16741_v15 }
 0x29d   : > { %16739 = vst [vmem:[#allocation188_spill] sm:$0xff] %v13097_v54  ;;  %v6687_v1 = vsel %vm3018_vm1, %v12827_v50, 0.0  ;;  %v13120_v38 = vmul.f32 %v5331_v44, %v2738_v47  ;;  %v16743_v61 = vcombine.high %v16735_v27, %v16735_v27  ;;  %v2043_v8 = vadd.f32 %v12733_v52, %v16744_v11 }
 0x29e   : > { %v13108_v39 = vmul.f32 %v5267_v57, %v16740_v23  ;;  %v16745_v57 = vld [vmem:[#allocation198_spill] sm:$0xff]  ;;  %6688 = vadd.xlane.f32.xlu1 %v6687_v1  ;;  %v13133_v50 = vmul.f32 %v5339_v58, %v2740_v20  ;;  %v5271_v47 = vrot.slane %v13112_v30, %v11196_v40  ;;  %v6696_v44 = vsel %vm3018_vm1, %v12829_v56, 0.0 }
 0x29f   : > { %16742 = vst [vmem:[#allocation129_spill] sm:$0xff] %v13120_v38  ;;  %v4009_v0 = vrot.slane %v16743_v61, %v11075_v14  ;;  %v13131_v24 = vadd.f32 %v12733_v52, %v16745_v57  ;;  %v2741_v27 = vmax.f32 %v2051_v5, 0.0  ;;  %v2739_v15 = vmax.f32 %v2043_v8, 0.0  ;;  %6697 = vadd.xlane.f32.xlu0 %v6696_v44  ;;  %v13139_v61 = vpop.xlane.xlu1 %6508  ;;  %v16747_v58 = vld [vmem:[#allocation6_spill] sm:$0xff]  ;;  %v16748_v8 = vld [vmem:[#allocation39_spill] sm:$0xff] }
 0x2a0   : > { %16746 = vst [vmem:[#allocation29_spill] sm:$0xff] %v13133_v50  ;;  %v13141_v11 = vmul.f32 %v5271_v47, %v2723_v21  ;;  %v3766_v20 = vcombine.high %v12879_v62, %v12879_v62  ;;  %v2064_v1 = vadd.f32 %v12733_v52, %v16747_v58  ;;  %v6699_v56 = vsel %vm3018_vm1, %v12831_v45, 0.0  ;;  %v13161_v58 = vpop.xlane.xlu0 %6436 }
 0x2a1   : > { %v4013_v23 = vcombine.high %v4009_v0, %v4009_v0  ;;  %v5335_v57 = vrot.slane %v4009_v0, %v11196_v40  ;;  %v4059_v44 = vcombine.high %v16748_v8, %v16748_v8  ;;  %v6630_v0 = vsel %vm3018_vm1, %v12856_v37, 0.0  ;;  %16750 = vst [vmem:[#allocation33_spill] sm:$0xff] %v13161_v58  ;;  %v16765_v58 = vld [vmem:[#allocation222_spill] sm:$0xff] }
 0x2a2   : > { %6700 = vadd.xlane.f32.xlu1 %v6699_v56  ;;  %v6633_v62 = vsel %vm3018_vm1, %v12899_v2, 0.0  ;;  %v5179_v45 = vrot.slane %v3766_v20, %v11196_v40  ;;  %v6636_v56 = vsel %vm3018_vm1, %v12913_v33, 0.0  ;;  %v6639_v37 = vsel %vm3018_vm1, %v12958_v60, 0.0  ;;  %v16754_v33 = vld [vmem:[#allocation9_spill] sm:$0xff] }
 0x2a3   : > { %v5343_v5 = vrot.slane %v4013_v23, %v11196_v40  ;;  %v13159_v47 = vmul.f32 %v5335_v57, %v2739_v15  ;;  %v2744_v23 = vmax.f32 %v2064_v1, 0.0  ;;  %v5355_v59 = vrot.slane %v4059_v44, %v11196_v40  ;;  %6631 = vadd.xlane.f32.xlu0 %v6630_v0  ;;  %v16752_v15 = vld [vmem:[#allocation40_spill] sm:$0xff]  ;;  %v13193_v0 = vpop.xlane.xlu1 %6442 }
 0x2a4   : > { %v3768_v2 = vcombine.high %v12916_v17, %v12916_v17  ;;  %v2067_v57 = vadd.f32 %v12733_v52, %v16752_v15  ;;  %v16753_v20 = vmax.f32 %v12551_v10, 0.0  ;;  %v16755_v44 = vcombine.high %v16754_v33, %v16754_v33  ;;  %16756 = vst [vmem:[#allocation27_spill] sm:$0xff] %v13193_v0  ;;  %v13215_v21 = vpop.xlane.xlu0 %6445 }
 0x2a5   : > { %16749 = vst [vmem:[#allocation177_spill] sm:$0xff] %v13159_v47  ;;  %v13163_v46 = vmul.f32 %v5343_v5, %v2741_v27  ;;  %v6648_v27 = vsel %vm3018_vm1, %v12986_v26, 0.0  ;;  %v13181_v5 = vmul.f32 %v5355_v59, %v2744_v23  ;;  %v6651_v17 = vsel %vm3018_vm1, %v13005_v53, 0.0  ;;  %16761 = vst [vmem:[#allocation171_spill] sm:$0xff] %v13215_v21 }
 0x2a6   : > { %v13179_v1 = vmul.f32 %v5179_v45, %v16753_v20  ;;  %v13187_v60 = vrot.slane %v16755_v44, %v11075_v14  ;;  %6634 = vadd.xlane.f32.xlu1 %v6633_v62  ;;  %v6690_v26 = vsel %vm3018_vm1, %v13038_v48, 0.0  ;;  %v5183_v10 = vrot.slane %v3768_v2, %v11196_v40  ;;  %v16757_v45 = vld [vmem:[#allocation46_spill] sm:$0xff]  ;;  %v16758_v20 = vld [vmem:[#allocation221_spill] sm:$0xff] }
 0x2a7   : > { %16751 = vst [vmem:[#allocation138_spill] sm:$0xff] %v13163_v46  ;;  %v3814_v59 = vcombine.high %v12944_v19, %v12944_v19  ;;  %v7557_v23 = vrot.slane %v13118_v43, %v16757_v45  ;;  %v2745_v15 = vmax.f32 %v2067_v57, 0.0  ;;  %v2080_v53 = vadd.f32 %v12733_v52, %v16758_v20  ;;  %6637 = vadd.xlane.f32.xlu0 %v6636_v56  ;;  %v16760_v44 = vld [vmem:[#allocation206_spill] sm:$0xff] }
 0x2a8   : > { %v4061_v62 = vcombine.high %v13187_v60, %v13187_v60  ;;  %v6693_v48 = vsel %vm3018_vm1, %v13047_v42, 0.0  ;;  %v16759_v33 = vmax.f32 %v12577_v51, 0.0  ;;  %v4044_v43 = vrot.slane %v16760_v44, %v11075_v14  ;;  %v16762_v56 = vld [vmem:[#allocation14_spill] sm:$0xff] }
 0x2a9   : > { %v5195_v19 = vrot.slane %v3814_v59, %v11196_v40  ;;  %v7561_v57 = vrot.slane %v13139_v61, %v16757_v45  ;;  %v2072_v4 = vadd.f32 %v12733_v52, %v16762_v56  ;;  %v3816_v51 = vcombine.high %v12965_v16, %v12965_v16  ;;  %v16763_v42 = vld [vmem:[#allocation18_spill] sm:$0xff] }
 0x2aa   : > { %v13208_v2 = vmul.f32 %v5183_v10, %v16759_v33  ;;  %v5359_v20 = vrot.slane %v4061_v62, %v11196_v40  ;;  %6640 = vadd.xlane.f32.xlu1 %v6639_v37  ;;  %v16764_v10 = vmax.f32 %v16763_v42, 0.0  ;;  %v2748_v33 = vmax.f32 %v2080_v53, 0.0 }
 0x2ab   : > { %v4060_v0 = vcombine.high %v4044_v43, %v4044_v43  ;;  %v5363_v3 = vrot.slane %v4044_v43, %v11196_v40  ;;  %v2746_v21 = vmax.f32 %v2072_v4, 0.0  ;;  %v5199_v62 = vrot.slane %v3816_v51, %v11196_v40  ;;  %6649 = vadd.xlane.f32.xlu0 %v6648_v27  ;;  %v16768_v27 = vld [vmem:[#allocation133_spill] sm:$0xff] }
 0x2ac   : > { %v13224_v59 = vmul.f32 %v5195_v19, %v16764_v10  ;;  %v13227_v61 = vmul.f32 %v5359_v20, %v2745_v15  ;;  %v2083_v56 = vadd.f32 %v12733_v52, %v16765_v58  ;;  %v6702_v16 = vsel %vm3018_vm1, %v13061_v12, 0.0  ;;  %v13236_v19 = vpop.xlane.xlu1 %6448 }
 0x2ad   : > { %v6705_v37 = vsel %vm3018_vm1, %v13089_v22, 0.0  ;;  %16766 = vst [vmem:[#allocation176_spill] sm:$0xff] %v13236_v19  ;;  %v5371_v53 = vrot.slane %v4060_v0, %v11196_v40  ;;  %v16767_v4 = vcombine.high %v16760_v44, %v16760_v44  ;;  %v6708_v43 = vsel %vm3018_vm1, %v13108_v39, 0.0  ;;  %v16770_v0 = vld [vmem:[#allocation16_spill] sm:$0xff]  ;;  %v13259_v39 = vpop.xlane.xlu0 %6457 }
 0x2ae   : > { %v13245_v58 = vmul.f32 %v5363_v3, %v2746_v21  ;;  %v16769_v20 = vmax.f32 %v16768_v27, 0.0  ;;  %v2749_v51 = vmax.f32 %v2083_v56, 0.0  ;;  %6652 = vadd.xlane.f32.xlu1 %v6651_v17  ;;  %v2075_v10 = vadd.f32 %v12733_v52, %v16770_v0  ;;  %v16771_v3 = vld [vmem:[#allocation205_spill] sm:$0xff]  ;;  %v16775_v0 = vld [vmem:[#allocation15_spill] sm:$0xff] }
 0x2af   : > { %v4058_v15 = vrot.slane %v16767_v4, %v11075_v14  ;;  %v13251_v22 = vmul.f32 %v5371_v53, %v2748_v33  ;;  %v13257_v4 = vsel %vm8482_vm2, %v7561_v57, %v7557_v23  ;;  %v13263_v21 = vrot.slane %v16771_v3, %v11075_v14  ;;  %v16773_v33 = vld [vmem:[#allocation212_spill] sm:$0xff]  ;;  %6691 = vadd.xlane.f32.xlu0 %v6690_v26  ;;  %v16774_v23 = vld [vmem:[#allocation69_spill] sm:$0xff] }
 0x2b0   : > { %v13249_v12 = vmul.f32 %v5199_v62, %v16769_v20  ;;  %v16772_v62 = vld [vmem:[#allocation65_spill] sm:$0xff]  ;;  %v4108_v56 = vcombine.high %v16773_v33, %v16773_v33  ;;  %v13269_v53 = vpop.xlane.xlu1 %6460  ;;  %v2747_v27 = vmax.f32 %v2075_v10, 0.0  ;;  %v2088_v57 = vadd.f32 %v12733_v52, %v16774_v23 }
 0x2b1   : > { %v4062_v42 = vcombine.high %v4058_v15, %v4058_v15  ;;  %v5367_v44 = vrot.slane %v4058_v15, %v11196_v40  ;;  %v2096_v17 = vadd.f32 %v12733_v52, %v16772_v62  ;;  %v5379_v20 = vrot.slane %v16773_v33, %v11196_v40  ;;  %v16776_v33 = vld [vmem:[#allocation17_spill] sm:$0xff] }
 0x2b2   : > { %v13278_v19 = vadd.f32 %v12733_v52, %v16775_v0  ;;  %v5203_v62 = vrot.slane %v13263_v21, %v11196_v40  ;;  %v5387_v26 = vrot.slane %v4108_v56, %v11196_v40  ;;  %6694 = vadd.xlane.f32.xlu1 %v6693_v48  ;;  %v2750_v50 = vmax.f32 %v2088_v57, 0.0  ;;  %v16777_v0 = vld [vmem:[#allocation152_spill] sm:$0xff]  ;;  %v16780_v56 = vld [vmem:[#allocation30_spill] sm:$0xff]  ;;  %v16782_v57 = vld [vmem:[#allocation225_spill] sm:$0xff] }
 0x2b3   : > { %v5375_v15 = vrot.slane %v4062_v42, %v11196_v40  ;;  %v2752_v46 = vmax.f32 %v2096_v17, 0.0  ;;  %v6711_v42 = vsel %vm3018_vm1, %v13141_v11, 0.0  ;;  %v13287_v23 = vmul.f32 %v5367_v44, %v2747_v27  ;;  %6703 = vadd.xlane.f32.xlu0 %v6702_v16 }
 0x2b4   : > { %v13291_v47 = vadd.f32 %v12733_v52, %v16776_v33  ;;  %v16778_v38 = vmax.f32 %v16777_v0, 0.0  ;;  %v3785_v48 = vcombine.high %v16771_v3, %v16771_v3  ;;  %v13301_v11 = vmul.f32 %v5379_v20, %v2750_v50  ;;  %v13314_v3 = vpop.xlane.xlu1 %6502  ;;  %v16785_v20 = vld [vmem:[#allocation227_spill] sm:$0xff] }
 0x2b5   : > { %v13285_v10 = vmul.f32 %v5375_v15, %v2749_v51  ;;  %v13297_v17 = vmul.f32 %v5387_v26, %v2752_v46  ;;  %v16779_v51 = vld [vmem:[#allocation224_spill] sm:$0xff]  ;;  %v16781_v15 = vcombine.high %v16780_v56, %v16780_v56  ;;  %v13311_v46 = vpop.xlane.xlu0 %6499  ;;  %16784 = vst [vmem:[#allocation149_spill] sm:$0xff] %v13314_v3  ;;  %v3913_v16 = vcombine.high %v13081_v34, %v13081_v34 }
 0x2b6   : > { %v13295_v54 = vmul.f32 %v5203_v62, %v16778_v38  ;;  %v2099_v44 = vadd.f32 %v12733_v52, %v16779_v51  ;;  %v2091_v38 = vadd.f32 %v12733_v52, %v16782_v57  ;;  %16783 = vst [vmem:[#allocation32_spill] sm:$0xff] %v13311_v46  ;;  %v2742_v62 = vmax.f32 %v13278_v19, 0.0  ;;  %6706 = vadd.xlane.f32.xlu1 %v6705_v37  ;;  %v16787_v3 = vld [vmem:[#allocation228_spill] sm:$0xff] }
 0x2b7   : > { %v4100_v27 = vrot.slane %v16781_v15, %v11075_v14  ;;  %v3813_v50 = vrot.slane %v3785_v48, %v11075_v14  ;;  %v2112_v26 = vadd.f32 %v12733_v52, %v16785_v20  ;;  %v6642_v33 = vsel %vm3018_vm1, %v13179_v1, 0.0  ;;  %6709 = vadd.xlane.f32.xlu0 %v6708_v43  ;;  %v16786_v20 = vld [vmem:[#allocation208_spill] sm:$0xff] }
 0x2b8   : > { %v2753_v0 = vmax.f32 %v2099_v44, 0.0  ;;  %v2751_v56 = vmax.f32 %v2091_v38, 0.0  ;;  %v2743_v19 = vmax.f32 %v13291_v47, 0.0  ;;  %v5275_v57 = vrot.slane %v3913_v16, %v11196_v40 }
 0x2b9   : > { %v4110_v51 = vcombine.high %v4100_v27, %v4100_v27  ;;  %v5207_v15 = vrot.slane %v3813_v50, %v11196_v40  ;;  %v5383_v48 = vrot.slane %v4100_v27, %v11196_v40  ;;  %v4093_v37 = vrot.slane %v16786_v20, %v11075_v14 }
 0x2ba   : > { %v2104_v1 = vadd.f32 %v12733_v52, %v16787_v3  ;;  %v3915_v44 = vcombine.high %v13112_v30, %v13112_v30  ;;  %v16788_v47 = vmax.f32 %v12697_v63, 0.0  ;;  %v16789_v27 = vmax.f32 %v12907_v36, 0.0  ;;  %6712 = vadd.xlane.f32.xlu1 %v6711_v42 }
 0x2bb   : > { %v5391_v34 = vrot.slane %v4110_v51, %v11196_v40  ;;  %v13336_v46 = vmul.f32 %v5383_v48, %v2751_v56  ;;  %v2756_v16 = vmax.f32 %v2112_v26, 0.0  ;;  %v4109_v41 = vcombine.high %v4093_v37, %v4093_v37  ;;  %v6512_v56 = vpop.xlane.xlu0 %6511  ;;  %v16790_v48 = vld [vmem:[#allocation229_spill] sm:$0xff]  ;;  %6643 = vadd.xlane.f32.xlu0 %v6642_v33 }
 0x2bc   : > { %v6253_v38 = vmul.f32 %v5207_v15, %v16788_v47  ;;  %v13340_v43 = vmul.f32 %v5275_v57, %v16789_v27  ;;  %v2754_v6 = vmax.f32 %v2104_v1, 0.0  ;;  %v5395_v3 = vrot.slane %v4093_v37, %v11196_v40  ;;  %v6515_v15 = vpop.xlane.xlu1 %6514 }
 0x2bd   : > { %v13342_v51 = vmul.f32 %v5391_v34, %v2753_v0  ;;  %v6645_v30 = vsel %vm3018_vm1, %v13208_v2, 0.0  ;;  %v6654_v63 = vsel %vm3018_vm1, %v13224_v59, 0.0  ;;  %v5279_v36 = vrot.slane %v3915_v44, %v11196_v40  ;;  %v16793_v44 = vld [vmem:[#allocation63_spill] sm:$0xff] }
 0x2be   : > { %v2115_v26 = vadd.f32 %v12733_v52, %v16790_v48  ;;  %v7565_v42 = vrot.slane %v6512_v56, %v16757_v45  ;;  %v7569_v0 = vrot.slane %v6515_v15, %v16757_v45  ;;  %v5403_v57 = vrot.slane %v4109_v41, %v11196_v40  ;;  %6646 = vadd.xlane.f32.xlu1 %v6645_v30 }
 0x2bf   : > { %v13355_v34 = vmul.f32 %v5395_v3, %v2754_v6  ;;  %v16791_v2 = vmax.f32 %v13131_v24, 0.0  ;;  %v16792_v59 = vcombine.high %v16786_v20, %v16786_v20  ;;  %v2107_v47 = vadd.f32 %v12733_v52, %v16793_v44  ;;  %v6518_v20 = vpop.xlane.xlu0 %6517  ;;  %6655 = vadd.xlane.f32.xlu0 %v6654_v63 }
 0x2c0   : > { %v3815_v33 = vcombine.high %v13263_v21, %v13263_v21  ;;  %v8511_v41 = vsel %vm8484_vm3, %v7565_v42, %v13257_v4  ;;  %v13369_v6 = vmul.f32 %v5403_v57, %v2756_v16  ;;  %v3817_v27 = vcombine.high %v3813_v50, %v3813_v50 }
 0x2c1   : > { %v6271_v37 = vmul.f32 %v5279_v36, %v16791_v2  ;;  %v4107_v1 = vrot.slane %v16792_v59, %v11075_v14  ;;  %v5347_v24 = vrot.slane %v16748_v8, %v11196_v40  ;;  %v8512_v3 = vsel %vm8486_vm4, %v7569_v0, %v8511_v41  ;;  %v16795_v0 = vld [vmem:[#allocation202_spill] sm:$0xff]  ;;  %v16800_v41 = vld [vmem:[#allocation231_spill] sm:$0xff] }
 0x2c2   : > { %v2757_v56 = vmax.f32 %v2115_v26, 0.0  ;;  %v2755_v36 = vmax.f32 %v2107_v47, 0.0  ;;  %v7573_v48 = vrot.slane %v6518_v20, %v16757_v45  ;;  %v5211_v30 = vrot.slane %v3815_v33, %v11196_v40  ;;  %v16804_v20 = vld [vmem:[#allocation185_spill] sm:$0xff] }
 0x2c3   : > { %v4111_v15 = vcombine.high %v4107_v1, %v4107_v1  ;;  %v5399_v21 = vrot.slane %v4107_v1, %v11196_v40  ;;  %v5215_v4 = vrot.slane %v3817_v27, %v11196_v40  ;;  %v6657_v50 = vsel %vm3018_vm1, %v13249_v12, 0.0  ;;  %v16798_v12 = vld [vmem:[#allocation232_spill] sm:$0xff] }
 0x2c4   : > { %v6288_v16 = vmul.f32 %v5347_v24, %v2742_v62  ;;  %v5351_v26 = vrot.slane %v13187_v60, %v11196_v40  ;;  %6658 = vadd.xlane.f32.xlu1 %v6657_v50  ;;  %v13384_v63 = vsel %vm8488_vm5, %v7573_v48, %v8512_v3  ;;  %v16796_v57 = vmax.f32 %v16795_v0, 0.0  ;;  %v16806_v48 = vld [vmem:[#allocation195_spill] sm:$0xff]  ;;  %v13469_v0 = vpop.xlane.xlu0 %6451 }
 0x2c5   : > { %v5407_v8 = vrot.slane %v4111_v15, %v11196_v40  ;;  %16794 = vst [vmem:[#allocation191_spill] sm:$0xff] %v13384_v63  ;;  %v13386_v42 = vmul.f32 %v5399_v21, %v2755_v36  ;;  %v16797_v59 = vmax.f32 %v12687_v7, 0.0  ;;  %v16799_v44 = vcombine.high %v16798_v12, %v16798_v12  ;;  %v16801_v7 = vld [vmem:[#allocation164_spill] sm:$0xff]  ;;  %v13425_v36 = vld [vmem:[%s15848_s4 + $0x1] ss:$0 sm:$0xff]  ;;  %16812 = vst [vmem:[#allocation125_spill] sm:$0xff] %v13469_v0 }
 0x2c6   : > { %v6254_v2 = vmul.f32 %v5211_v30, %v16796_v57  ;;  %v6660_v60 = vsel %vm3018_vm1, %v13295_v54, 0.0  ;;  %v13402_v33 = vmul.f32 %v5351_v26, %v2743_v19  ;;  %v13406_v27 = vrot.slane %v16800_v41, %v11075_v14  ;;  %v16805_v19 = vld [vmem:[#allocation66_spill] sm:$0xff]  ;;  %v16807_v30 = vld [vmem:[#allocation197_spill] sm:$0xff]  ;;  %v16810_v57 = vld [vmem:[#allocation151_spill] sm:$0xff] }
 0x2c7   : > { %v6255_v1 = vmul.f32 %v5215_v4, %v16797_v59  ;;  %v13396_v62 = vrot.slane %v16799_v44, %v11075_v14  ;;  %v13400_v47 = vmul.f32 %v5407_v8, %v2757_v56  ;;  %v16802_v24 = vcombine.high %v16801_v7, %v16801_v7  ;;  %6661 = vadd.xlane.f32.xlu0 %v6660_v60  ;;  %v13436_v8 = vpop.xlane.xlu1 %6520  ;;  %v16809_v26 = vld [vmem:[#allocation162_spill] sm:$0xff]  ;;  %v16813_v59 = vld [vmem:[#allocation8_spill] sm:$0xff] }
 0x2c8   : > { %v4357_v15 = vcombine.high %v16804_v20, %v16804_v20  ;;  %v13418_v54 = vrot.slane %v16804_v20, %v11075_v14  ;;  %v13429_v21 = vadd.f32 %v13425_v36, %v16806_v48  ;;  %v13433_v4 = vadd.f32 %v13425_v36, %v16807_v30  ;;  %16808 = vst [vmem:[#allocation192_spill] sm:$0xff] %v13436_v8 }
 0x2c9   : > { %v13412_v3 = vrot.slane %v16802_v24, %v11075_v14  ;;  %v6663_v50 = vsel %vm3018_vm1, %v6253_v38, 0.0  ;;  %v13444_v12 = vrot.slane %v16810_v57, %v11075_v14  ;;  %v7497_v44 = vrot.slane %v13269_v53, %v16757_v45  ;;  %v16811_v38 = vld [vmem:[#allocation193_spill] sm:$0xff] }
 0x2ca   : > { %6664 = vadd.xlane.f32.xlu1 %v6663_v50  ;;  %v13454_v24 = vrot.slane %v16811_v38, %v11075_v14  ;;  %v6714_v20 = vsel %vm3018_vm1, %v13340_v43, 0.0  ;;  %v13461_v30 = vrot.slane %v4357_v15, %v11075_v14  ;;  %v7493_v50 = vrot.slane %v13259_v39, %v16757_v45 }
 0x2cb   : > { %16803 = vst [vmem:[#allocation136_spill] sm:$0xff] %v13412_v3  ;;  %6715 = vadd.xlane.f32.xlu0 %v6714_v20  ;;  %v6717_v43 = vsel %vm3018_vm1, %v6271_v37, 0.0  ;;  %v2128_v48 = vadd.f32 %v12733_v52, %v12837_v29  ;;  %v4157_v53 = vcombine.high %v16813_v59, %v16813_v59  ;;  %v2120_v39 = vadd.f32 %v12733_v52, %v12848_v18  ;;  %v13481_v7 = vpop.xlane.xlu1 %6454  ;;  %v16820_v3 = vld [vmem:[#allocation161_spill] sm:$0xff] }
 0x2cc   : > { %v8496_v15 = vsel %vm8482_vm2, %v7497_v44, %v7493_v50  ;;  %v5411_v20 = vrot.slane %v16813_v59, %v11196_v40  ;;  %16814 = vst [vmem:[#allocation194_spill] sm:$0xff] %v13481_v7  ;;  %v6666_v56 = vsel %vm3018_vm1, %v6254_v2, 0.0  ;;  %v2131_v29 = vadd.f32 %v12733_v52, %v12858_v32  ;;  %v16815_v44 = vld [vmem:[#allocation214_spill] sm:$0xff]  ;;  %v6464_v7 = vpop.xlane.xlu0 %6463 }
 0x2cd   : > { %v2760_v37 = vmax.f32 %v2128_v48, 0.0  ;;  %v16816_v50 = vcombine.high %v16815_v44, %v16815_v44  ;;  %v6768_v60 = vsel %vm3018_vm1, %v6288_v16, 0.0  ;;  %v5419_v18 = vrot.slane %v4157_v53, %v11196_v40 }
 0x2ce   : > { %6718 = vadd.xlane.f32.xlu1 %v6717_v43  ;;  %v2758_v63 = vmax.f32 %v2120_v39, 0.0  ;;  %v2123_v59 = vadd.f32 %v12733_v52, %v12870_v55  ;;  %v6669_v2 = vsel %vm3018_vm1, %v6255_v1, 0.0  ;;  %v2761_v48 = vmax.f32 %v2131_v29, 0.0  ;;  %v16819_v1 = vld [vmem:[#allocation217_spill] sm:$0xff] }
 0x2cf   : > { %v4149_v43 = vrot.slane %v16816_v50, %v11075_v14  ;;  %6667 = vadd.xlane.f32.xlu0 %v6666_v56  ;;  %v7501_v8 = vrot.slane %v6464_v7, %v16757_v45  ;;  %v13497_v44 = vmul.f32 %v5419_v18, %v2760_v37  ;;  %v6467_v53 = vpop.xlane.xlu1 %6466  ;;  %v16818_v50 = vld [vmem:[#allocation22_spill] sm:$0xff]  ;;  %v4142_v29 = vrot.slane %v16819_v1, %v11075_v14 }
 0x2d0   : > { %v13499_v56 = vmul.f32 %v5411_v20, %v2758_v63  ;;  %v2759_v16 = vmax.f32 %v2123_v59, 0.0  ;;  %v2144_v55 = vadd.f32 %v12733_v52, %v16818_v50  ;;  %v7505_v37 = vrot.slane %v6467_v53, %v16757_v45 }
 0x2d1   : > { %v4159_v0 = vcombine.high %v4149_v43, %v4149_v43  ;;  %v5415_v32 = vrot.slane %v4149_v43, %v11196_v40  ;;  %16817 = vst [vmem:[#allocation26_spill] sm:$0xff] %v13497_v44  ;;  %v2136_v43 = vadd.f32 %v12733_v52, %v16820_v3  ;;  %v8497_v7 = vsel %vm8484_vm3, %v7501_v8, %v8496_v15  ;;  %v16821_v15 = vld [vmem:[#allocation165_spill] sm:$0xff] }
 0x2d2   : > { %6670 = vadd.xlane.f32.xlu1 %v6669_v2  ;;  %v6771_v63 = vsel %vm3018_vm1, %v13402_v33, 0.0  ;;  %v2764_v59 = vmax.f32 %v2144_v55, 0.0  ;;  %v4158_v2 = vcombine.high %v4142_v29, %v4142_v29  ;;  %v8498_v44 = vsel %vm8486_vm4, %v7505_v37, %v8497_v7  ;;  %v16823_v33 = vld [vmem:[#allocation155_spill] sm:$0xff]  ;;  %v16825_v55 = vld [vmem:[#allocation168_spill] sm:$0xff] }
 0x2d3   : > { %v5423_v39 = vrot.slane %v4159_v0, %v11196_v40  ;;  %6769 = vadd.xlane.f32.xlu0 %v6768_v60  ;;  %v13512_v20 = vmul.f32 %v5415_v32, %v2759_v16  ;;  %v6470_v0 = vpop.xlane.xlu0 %6469  ;;  %v2762_v50 = vmax.f32 %v2136_v43, 0.0  ;;  %v5427_v8 = vrot.slane %v4142_v29, %v11196_v40  ;;  %v13521_v53 = vpop.xlane.xlu1 %6472  ;;  %v16827_v7 = vld [vmem:[#allocation167_spill] sm:$0xff] }
 0x2d4   : > { %v7509_v3 = vrot.slane %v6470_v0, %v16757_v45  ;;  %v2147_v60 = vadd.f32 %v12733_v52, %v16821_v15  ;;  %16822 = vst [vmem:[#allocation203_spill] sm:$0xff] %v13521_v53  ;;  %v6720_v32 = vsel %vm3018_vm1, %v16823_v33, 0.0  ;;  %v16824_v16 = vcombine.high %v16819_v1, %v16819_v1  ;;  %v16831_v53 = vld [vmem:[#allocation199_spill] sm:$0xff] }
 0x2d5   : > { %v13514_v18 = vmul.f32 %v5423_v39, %v2761_v48  ;;  %v5435_v48 = vrot.slane %v4158_v2, %v11196_v40  ;;  %v2139_v43 = vadd.f32 %v12733_v52, %v16825_v55  ;;  %v6723_v37 = vsel %vm3018_vm1, %v16827_v7, 0.0 }
 0x2d6   : > { %6772 = vadd.xlane.f32.xlu1 %v6771_v63  ;;  %v4156_v39 = vrot.slane %v16824_v16, %v11075_v14  ;;  %v13533_v29 = vsel %vm8488_vm5, %v7509_v3, %v8498_v44  ;;  %v13537_v63 = vmul.f32 %v5427_v8, %v2762_v50  ;;  %v2765_v0 = vmax.f32 %v2147_v60, 0.0  ;;  %v16832_v44 = vld [vmem:[#allocation140_spill] sm:$0xff] }
 0x2d7   : > { %16826 = vst [vmem:[#allocation28_spill] sm:$0xff] %v13533_v29  ;;  %6721 = vadd.xlane.f32.xlu0 %v6720_v32  ;;  %v13539_v15 = vpop.xlane.xlu0 %6523  ;;  %v13541_v2 = vmul.f32 %v5435_v48, %v2764_v59  ;;  %v2763_v1 = vmax.f32 %v2139_v43, 0.0  ;;  %v13546_v55 = vadd.f32 %v13425_v36, %v16831_v53  ;;  %v2160_v3 = vadd.f32 %v12733_v52, %v16832_v44  ;;  %v16833_v32 = vld [vmem:[#allocation150_spill] sm:$0xff]  ;;  %v16834_v8 = vld [vmem:[#allocation180_spill] sm:$0xff]  ;;  %v13554_v59 = vpop.xlane.xlu1 %6526 }
 0x2d8   : > { %16828 = vst [vmem:[#allocation207_spill] sm:$0xff] %v13537_v63  ;;  %16829 = vst [vmem:[#allocation148_spill] sm:$0xff] %v13539_v15  ;;  %v4160_v33 = vcombine.high %v4156_v39, %v4156_v39  ;;  %v5431_v16 = vrot.slane %v4156_v39, %v11196_v40  ;;  %v4206_v50 = vcombine.high %v16833_v32, %v16833_v32  ;;  %v6774_v48 = vsel %vm3018_vm1, %v13181_v5, 0.0  ;;  %v9887_v5 = vld [vmem:[%s15848_s4] ss:$0 sm:$0xff] }
 0x2d9   : > { %16830 = vst [vmem:[#allocation196_spill] sm:$0xff] %v13541_v2  ;;  %v2152_v60 = vadd.f32 %v12733_v52, %v16834_v8  ;;  %16835 = vst [vmem:[#allocation7_spill] sm:$0xff] %v13554_v59  ;;  %v5443_v53 = vrot.slane %v16833_v32, %v11196_v40  ;;  %v6777_v7 = vsel %vm3018_vm1, %v13227_v61, 0.0  ;;  %v16842_v61 = vld [vmem:[#allocation181_spill] sm:$0xff]  ;;  %v16843_v59 = vld [vmem:[#allocation36_spill] sm:$0xff] }
 0x2da   : > { %6724 = vadd.xlane.f32.xlu1 %v6723_v37  ;;  %v5439_v39 = vrot.slane %v4160_v33, %v11196_v40  ;;  %v13559_v43 = vmul.f32 %v5431_v16, %v2763_v1  ;;  %v2768_v37 = vmax.f32 %v2160_v3, 0.0  ;;  %v5451_v44 = vrot.slane %v4206_v50, %v11196_v40  ;;  %v16839_v33 = vld [vmem:[#allocation79_spill] sm:$0xff]  ;;  %v16840_v16 = vld [vmem:[#allocation230_spill] sm:$0xff] }
 0x2db   : > { %6775 = vadd.xlane.f32.xlu0 %v6774_v48  ;;  %v2766_v52 = vmax.f32 %v2152_v60, 0.0  ;;  %v13566_v8 = vpop.xlane.xlu0 %6475  ;;  %v2163_v1 = vadd.f32 %v9887_v5, %v16839_v33  ;;  %v16841_v32 = vcombine.high %v16840_v16, %v16840_v16  ;;  %v2155_v3 = vadd.f32 %v9887_v5, %v16842_v61  ;;  %v13589_v33 = vpop.xlane.xlu1 %6478 }
 0x2dc   : > { %16836 = vst [vmem:[#allocation34_spill] sm:$0xff] %v13559_v43  ;;  %16837 = vst [vmem:[#allocation200_spill] sm:$0xff] %v13566_v8  ;;  %v13568_v29 = vmul.f32 %v5439_v39, %v2765_v0  ;;  %v13581_v50 = vadd.f32 %v13425_v36, %v16843_v59  ;;  %v6780_v0 = vsel %vm3018_vm1, %v13245_v58, 0.0  ;;  %v13585_v60 = vmul.f32 %v5451_v44, %v2768_v37  ;;  %v13595_v59 = vld [vmem:[%s15848_s4 + $0x2] ss:$0 sm:$0xff] }
 0x2dd   : > { %v4198_v48 = vrot.slane %v16841_v32, %v11075_v14  ;;  %v13587_v39 = vmul.f32 %v5443_v53, %v2766_v52  ;;  %16846 = vst [vmem:[#allocation218_spill] sm:$0xff] %v13589_v33  ;;  %v2769_v8 = vmax.f32 %v2163_v1, 0.0  ;;  %v2767_v16 = vmax.f32 %v2155_v3, 0.0  ;;  %v16848_v53 = vld [vmem:[#allocation183_spill] sm:$0xff]  ;;  %v16849_v52 = vld [vmem:[#allocation184_spill] sm:$0xff] }
 0x2de   : > { %16838 = vst [vmem:[#allocation41_spill] sm:$0xff] %v13568_v29  ;;  %6778 = vadd.xlane.f32.xlu1 %v6777_v7  ;;  %16844 = vst [vmem:[#allocation216_spill] sm:$0xff] %v13585_v60  ;;  %v16847_v7 = vmax.f32 %v13429_v21, 0.0  ;;  %v2176_v37 = vadd.f32 %v9887_v5, %v16848_v53  ;;  %v4191_v44 = vrot.slane %v16805_v19, %v11075_v14 }
 0x2df   : > { %16845 = vst [vmem:[#allocation209_spill] sm:$0xff] %v13587_v39  ;;  %v4208_v15 = vcombine.high %v4198_v48, %v4198_v48  ;;  %v5447_v32 = vrot.slane %v4198_v48, %v11196_v40  ;;  %6781 = vadd.xlane.f32.xlu0 %v6780_v0  ;;  %v2168_v1 = vadd.f32 %v9887_v5, %v16849_v52  ;;  %v6578_v61 = vpop.xlane.xlu0 %6577  ;;  %v6783_v48 = vsel %vm3018_vm1, %v13287_v23, 0.0  ;;  %v6581_v60 = vpop.xlane.xlu1 %6580 }
 0x2e0   : > { %v13600_v58 = vmul.f32 %v13595_v59, %v16847_v7  ;;  %v2179_v21 = vadd.f32 %v9887_v5, %v12993_v31  ;;  %v6792_v0 = vsel %vm3018_vm1, %v13301_v11, 0.0  ;;  %v2772_v7 = vmax.f32 %v2176_v37, 0.0 }
 0x2e1   : > { %v5455_v3 = vrot.slane %v4208_v15, %v11196_v40  ;;  %v13609_v33 = vmul.f32 %v5447_v32, %v2767_v16  ;;  %v4207_v53 = vcombine.high %v4191_v44, %v4191_v44  ;;  %v2770_v39 = vmax.f32 %v2168_v1, 0.0 }
 0x2e2   : > { %6784 = vadd.xlane.f32.xlu1 %v6783_v48  ;;  %v6795_v52 = vsel %vm3018_vm1, %v13336_v46, 0.0  ;;  %v5459_v23 = vrot.slane %v4191_v44, %v11196_v40  ;;  %v16852_v15 = vcombine.high %v16805_v19, %v16805_v19  ;;  %v7653_v16 = vrot.slane %v6578_v61, %v16757_v45  ;;  %v16854_v19 = vld [vmem:[#allocation153_spill] sm:$0xff] }
 0x2e3   : > { %16850 = vst [vmem:[#allocation204_spill] sm:$0xff] %v13609_v33  ;;  %v13616_v29 = vmul.f32 %v5455_v3, %v2769_v8  ;;  %v7657_v11 = vrot.slane %v6581_v60, %v16757_v45  ;;  %6793 = vadd.xlane.f32.xlu0 %v6792_v0  ;;  %v5467_v32 = vrot.slane %v4207_v53, %v11196_v40  ;;  %v6530_v1 = vpop.xlane.xlu0 %6529  ;;  %v2773_v8 = vmax.f32 %v2179_v21, 0.0  ;;  %v6533_v0 = vpop.xlane.xlu1 %6532  ;;  %v16856_v53 = vld [vmem:[#allocation74_spill] sm:$0xff]  ;;  %v16878_v33 = vld [vmem:[#allocation88_spill] sm:$0xff] }
 0x2e4   : > { %v4205_v31 = vrot.slane %v16852_v15, %v11075_v14  ;;  %v2171_v37 = vadd.f32 %v9887_v5, %v13008_v25  ;;  %v13627_v46 = vmul.f32 %v5459_v23, %v2770_v39  ;;  %v6726_v61 = vsel %vm3018_vm1, %v16854_v19, 0.0  ;;  %v16857_v39 = vld [vmem:[#allocation215_spill] sm:$0xff]  ;;  %v16862_v19 = vld [vmem:[#allocation77_spill] sm:$0xff] }
 0x2e5   : > { %16851 = vst [vmem:[#allocation219_spill] sm:$0xff] %v13616_v29  ;;  %v8531_v3 = vsel %vm8482_vm2, %v7657_v11, %v7653_v16  ;;  %v13633_v15 = vmul.f32 %v5467_v32, %v2772_v7  ;;  %v6729_v25 = vsel %vm3018_vm1, %v16856_v53, 0.0  ;;  %v5475_v21 = vrot.slane %v16857_v39, %v11196_v40  ;;  %v16858_v23 = vld [vmem:[#allocation211_spill] sm:$0xff] }
 0x2e6   : > { %16853 = vst [vmem:[#allocation210_spill] sm:$0xff] %v13627_v46  ;;  %v4209_v48 = vcombine.high %v4205_v31, %v4205_v31  ;;  %v5463_v44 = vrot.slane %v4205_v31, %v11196_v40  ;;  %6796 = vadd.xlane.f32.xlu1 %v6795_v52  ;;  %v2771_v60 = vmax.f32 %v2171_v37, 0.0  ;;  %v16859_v31 = vcombine.high %v16858_v23, %v16858_v23 }
 0x2e7   : > { %16855 = vst [vmem:[#allocation121_spill] sm:$0xff] %v13633_v15  ;;  %v7589_v16 = vrot.slane %v6530_v1, %v16757_v45  ;;  %v7593_v7 = vrot.slane %v6533_v0, %v16757_v45  ;;  %6727 = vadd.xlane.f32.xlu0 %v6726_v61  ;;  %v4255_v32 = vcombine.high %v16857_v39, %v16857_v39  ;;  %v6584_v37 = vpop.xlane.xlu0 %6583  ;;  %v16863_v53 = vmax.f32 %v16862_v19, 0.0  ;;  %v16865_v39 = vld [vmem:[#allocation81_spill] sm:$0xff] }
 0x2e8   : > { %v5471_v5 = vrot.slane %v4209_v48, %v11196_v40  ;;  %v4247_v52 = vrot.slane %v16859_v31, %v11075_v14  ;;  %v13646_v11 = vmul.f32 %v5463_v44, %v2771_v60  ;;  %v7661_v61 = vrot.slane %v6584_v37, %v16757_v45  ;;  %v16864_v60 = vld [vmem:[#allocation213_spill] sm:$0xff]  ;;  %v16868_v37 = vld [vmem:[#allocation75_spill] sm:$0xff] }
 0x2e9   : > { %v13654_v46 = vmul.f32 %v5475_v21, %v16863_v53  ;;  %v13658_v1 = vsel %vm8482_vm2, %v7593_v7, %v7589_v16  ;;  %v5483_v44 = vrot.slane %v4255_v32, %v11196_v40  ;;  %v4240_v0 = vrot.slane %v16864_v60, %v11075_v14 }
 0x2ea   : > { %16860 = vst [vmem:[#allocation220_spill] sm:$0xff] %v13646_v11  ;;  %v13650_v48 = vmul.f32 %v5471_v5, %v2773_v8  ;;  %v5479_v23 = vrot.slane %v4247_v52, %v11196_v40  ;;  %v4257_v31 = vcombine.high %v4247_v52, %v4247_v52  ;;  %6730 = vadd.xlane.f32.xlu1 %v6729_v25  ;;  %v6587_v8 = vpop.xlane.xlu1 %6586  ;;  %v6732_v5 = vsel %vm3018_vm1, %v12988_v28, 0.0 }
 0x2eb   : > { %v16866_v21 = vmax.f32 %v16865_v39, 0.0  ;;  %v16867_v16 = vcombine.high %v16864_v60, %v16864_v60  ;;  %v8532_v7 = vsel %vm8484_vm3, %v7661_v61, %v8531_v3  ;;  %v7665_v32 = vrot.slane %v6587_v8, %v16757_v45  ;;  %6733 = vadd.xlane.f32.xlu0 %v6732_v5  ;;  %v16870_v39 = vld [vmem:[#allocation80_spill] sm:$0xff]  ;;  %v16872_v3 = vld [vmem:[#allocation226_spill] sm:$0xff] }
 0x2ec   : > { %16861 = vst [vmem:[#allocation124_spill] sm:$0xff] %v13650_v48  ;;  %v5487_v52 = vrot.slane %v4257_v31, %v11196_v40  ;;  %v16869_v53 = vmax.f32 %v16868_v37, 0.0  ;;  %v5491_v28 = vrot.slane %v4240_v0, %v11196_v40  ;;  %v6735_v31 = vsel %vm3018_vm1, %v13025_v35, 0.0 }
 0x2ed   : > { %v13668_v19 = vmul.f32 %v5479_v23, %v16866_v21  ;;  %v4254_v25 = vrot.slane %v16867_v16, %v11075_v14  ;;  %v6590_v23 = vpop.xlane.xlu0 %6589  ;;  %v16871_v21 = vmax.f32 %v16870_v39, 0.0  ;;  %v5507_v61 = vrot.slane %v16872_v3, %v11196_v40  ;;  %v16873_v16 = vld [vmem:[#allocation84_spill] sm:$0xff]  ;;  %v16876_v39 = vld [vmem:[#allocation86_spill] sm:$0xff] }
 0x2ee   : > { %v13679_v11 = vmul.f32 %v5483_v44, %v16869_v53  ;;  %v13693_v8 = vrot.slane %v13418_v54, %v11075_v14  ;;  %v8533_v44 = vsel %vm8486_vm4, %v7665_v32, %v8532_v7  ;;  %v7669_v5 = vrot.slane %v6590_v23, %v16757_v45  ;;  %6736 = vadd.xlane.f32.xlu1 %v6735_v31  ;;  %v16880_v7 = vld [vmem:[#allocation38_spill] sm:$0xff] }
 0x2ef   : > { %v13686_v48 = vmul.f32 %v5487_v52, %v16871_v21  ;;  %v5495_v60 = vrot.slane %v4254_v25, %v11196_v40  ;;  %v16874_v35 = vmax.f32 %v16873_v16, 0.0  ;;  %v13701_v52 = vpop.xlane.xlu1 %6592  ;;  %v6744_v53 = vsel %vm3018_vm1, %v13063_v49, 0.0 }
 0x2f0   : > { %16875 = vst [vmem:[#allocation198_spill] sm:$0xff] %v13701_v52  ;;  %v16877_v21 = vmax.f32 %v16876_v39, 0.0  ;;  %v16879_v29 = vmax.f32 %v16878_v33, 0.0  ;;  %v16881_v32 = vcombine.high %v16880_v7, %v16880_v7  ;;  %v16882_v31 = vmax.f32 %v13433_v4, 0.0  ;;  %6745 = vadd.xlane.f32.xlu0 %v6744_v53 }
 0x2f1   : > { %v13699_v37 = vmul.f32 %v5491_v28, %v16874_v35  ;;  %v13726_v16 = vsel %vm8488_vm5, %v7669_v5, %v8533_v44  ;;  %v3253_v33 = vmax.f32 %v13581_v50, 0.0  ;;  %v6747_v35 = vsel %vm3018_vm1, %v13103_v13, 0.0 }
 0x2f2   : > { %v13707_v15 = vmul.f32 %v5495_v60, %v16877_v21  ;;  %v13711_v2 = vmul.f32 %v5507_v61, %v16879_v29  ;;  %v4296_v23 = vrot.slane %v16881_v32, %v11075_v14  ;;  %v13722_v49 = vmul.f32 %v13595_v59, %v16882_v31  ;;  %16883 = vst [vmem:[#allocation6_spill] sm:$0xff] %v13726_v16  ;;  %v6602_v61 = vpop.xlane.xlu0 %6601  ;;  %v16884_v21 = vld [vmem:[#allocation90_spill] sm:$0xff] }
 0x2f3   : > { %v3255_v60 = vmax.f32 %v13546_v55, 0.0  ;;  %v4602_v29 = vcombine.high %v13600_v58, %v13600_v58  ;;  %v7685_v39 = vrot.slane %v6602_v61, %v16757_v45  ;;  %6748 = vadd.xlane.f32.xlu1 %v6747_v35  ;;  %v6786_v55 = vsel %vm3018_vm1, %v13251_v22, 0.0  ;;  %v6605_v53 = vpop.xlane.xlu1 %6604  ;;  %v16886_v22 = vld [vmem:[#allocation223_spill] sm:$0xff] }
 0x2f4   : > { %v5511_v4 = vrot.slane %v4296_v23, %v11196_v40  ;;  %v6789_v44 = vsel %vm3018_vm1, %v13285_v10, 0.0  ;;  %v4256_v5 = vcombine.high %v4240_v0, %v4240_v0  ;;  %v16885_v7 = vmax.f32 %v16884_v21, 0.0  ;;  %6787 = vadd.xlane.f32.xlu0 %v6786_v55  ;;  %v16888_v21 = vld [vmem:[#allocation83_spill] sm:$0xff] }
 0x2f5   : > { %v4258_v32 = vcombine.high %v4254_v25, %v4254_v25  ;;  %v4304_v13 = vcombine.high %v16872_v3, %v16872_v3  ;;  %v4306_v31 = vcombine.high %v4296_v23, %v4296_v23  ;;  %v7689_v61 = vrot.slane %v6605_v53, %v16757_v45 }
 0x2f6   : > { %v13741_v50 = vmul.f32 %v5511_v4, %v16885_v7  ;;  %v5499_v35 = vrot.slane %v4256_v5, %v11196_v40  ;;  %v4289_v28 = vrot.slane %v16886_v22, %v11075_v14  ;;  %v16887_v10 = vcombine.high %v16886_v22, %v16886_v22  ;;  %v6536_v4 = vpop.xlane.xlu0 %6535 }
 0x2f7   : > { %v6798_v25 = vsel %vm3018_vm1, %v13297_v17, 0.0  ;;  %v5503_v3 = vrot.slane %v4258_v32, %v11196_v40  ;;  %v5515_v23 = vrot.slane %v4304_v13, %v11196_v40  ;;  %v5519_v55 = vrot.slane %v4306_v31, %v11196_v40  ;;  %6790 = vadd.xlane.f32.xlu1 %v6789_v44  ;;  %v6539_v16 = vpop.xlane.xlu1 %6538  ;;  %v16890_v17 = vld [vmem:[#allocation85_spill] sm:$0xff]  ;;  %v16892_v13 = vld [vmem:[#allocation87_spill] sm:$0xff] }
 0x2f8   : > { %v4303_v0 = vrot.slane %v16887_v10, %v11075_v14  ;;  %v13759_v5 = vsel %vm8482_vm2, %v7689_v61, %v7685_v39  ;;  %v7597_v53 = vrot.slane %v6536_v4, %v16757_v45  ;;  %v16889_v7 = vmax.f32 %v16888_v21, 0.0  ;;  %v16894_v39 = vld [vmem:[#allocation89_spill] sm:$0xff]  ;;  %6799 = vadd.xlane.f32.xlu0 %v6798_v25 }
 0x2f9   : > { %v5523_v10 = vrot.slane %v4289_v28, %v11196_v40  ;;  %v16891_v52 = vmax.f32 %v16890_v17, 0.0  ;;  %v16893_v43 = vmax.f32 %v16892_v13, 0.0  ;;  %v16895_v61 = vmax.f32 %v16894_v39, 0.0  ;;  %v16898_v17 = vld [vmem:[#allocation94_spill] sm:$0xff] }
 0x2fa   : > { %v13764_v22 = vmul.f32 %v5499_v35, %v16889_v7  ;;  %v5527_v44 = vrot.slane %v4303_v0, %v11196_v40  ;;  %v13782_v35 = vrot.slane %v13600_v58, %v11075_v14  ;;  %v8518_v4 = vsel %vm8484_vm3, %v7597_v53, %v13658_v1  ;;  %v6542_v7 = vpop.xlane.xlu0 %6541 }
 0x2fb   : > { %v13769_v32 = vmul.f32 %v5503_v3, %v16891_v52  ;;  %v13773_v31 = vmul.f32 %v5515_v23, %v16893_v43  ;;  %v13777_v63 = vmul.f32 %v5519_v55, %v16895_v61  ;;  %v7601_v52 = vrot.slane %v6539_v16, %v16757_v45  ;;  %v16896_v3 = vld [vmem:[#allocation92_spill] sm:$0xff]  ;;  %v13814_v39 = vpop.xlane.xlu1 %6544 }
 0x2fc   : > { %v16897_v21 = vmax.f32 %v16896_v3, 0.0  ;;  %v4504_v23 = vcombine.high %v13722_v49, %v13722_v49  ;;  %v13795_v55 = vrot.slane %v13722_v49, %v11075_v14  ;;  %v6801_v58 = vsel %vm3018_vm1, %v13342_v51, 0.0  ;;  %16900 = vst [vmem:[#allocation39_spill] sm:$0xff] %v13814_v39 }
 0x2fd   : > { %v16899_v1 = vmax.f32 %v16898_v17, 0.0  ;;  %v13804_v16 = vmul.f32 %v13595_v59, %v3255_v60  ;;  %v13807_v25 = vmul.f32 %v13595_v59, %v3253_v33  ;;  %v7605_v13 = vrot.slane %v6542_v7, %v16757_v45  ;;  %6802 = vadd.xlane.f32.xlu1 %v6801_v58 }
 0x2fe   : > { %v13789_v43 = vmul.f32 %v5523_v10, %v16897_v21  ;;  %v8519_v10 = vsel %vm8486_vm4, %v7601_v52, %v8518_v4  ;;  %v13812_v49 = vrot.slane %v4602_v29, %v11075_v14  ;;  %v6804_v51 = vsel %vm3018_vm1, %v13355_v34, 0.0  ;;  %v6554_v52 = vpop.xlane.xlu0 %6553 }
 0x2ff   : > { %v13801_v53 = vmul.f32 %v5527_v44, %v16899_v1  ;;  %v4305_v61 = vcombine.high %v4289_v28, %v4289_v28  ;;  %v4307_v44 = vcombine.high %v4303_v0, %v4303_v0  ;;  %v13822_v33 = vrot.slane %v13782_v35, %v11075_v14  ;;  %6805 = vadd.xlane.f32.xlu0 %v6804_v51  ;;  %v6557_v1 = vpop.xlane.xlu1 %6556 }
 0x300   : > { %v13825_v4 = vsel %vm8488_vm5, %v7605_v13, %v8519_v10  ;;  %v6807_v29 = vsel %vm3018_vm1, %v13386_v42, 0.0  ;;  %v5603_v28 = vrot.slane %v13406_v27, %v11196_v40  ;;  %v16902_v0 = vcombine.high %v16800_v41, %v16800_v41  ;;  %v16903_v10 = vld [vmem:[#allocation91_spill] sm:$0xff] }
 0x301   : > { %16901 = vst [vmem:[#allocation40_spill] sm:$0xff] %v13825_v4  ;;  %v5531_v3 = vrot.slane %v4305_v61, %v11196_v40  ;;  %v5535_v34 = vrot.slane %v4307_v44, %v11196_v40  ;;  %v13838_v7 = vrot.slane %v4504_v23, %v11075_v14  ;;  %v7621_v58 = vrot.slane %v6554_v52, %v16757_v45  ;;  %v16906_v61 = vld [vmem:[#allocation93_spill] sm:$0xff]  ;;  %v16909_v23 = vld [vmem:[#allocation112_spill] sm:$0xff] }
 0x302   : > { %v4443_v21 = vrot.slane %v16902_v0, %v11075_v14  ;;  %6808 = vadd.xlane.f32.xlu1 %v6807_v29  ;;  %v6738_v42 = vsel %vm3018_vm1, %v13001_v9, 0.0  ;;  %v5539_v17 = vrot.slane %v13444_v12, %v11196_v40  ;;  %v16904_v13 = vmax.f32 %v16903_v10, 0.0  ;;  %v16912_v52 = vld [vmem:[#allocation96_spill] sm:$0xff] }
 0x303   : > { %v16907_v41 = vmax.f32 %v16906_v61, 0.0  ;;  %v16910_v0 = vmax.f32 %v16909_v23, 0.0  ;;  %v7625_v9 = vrot.slane %v6557_v1, %v16757_v45  ;;  %6739 = vadd.xlane.f32.xlu0 %v6738_v42  ;;  %v16913_v4 = vmax.f32 %v16912_v52, 0.0  ;;  %v13875_v42 = vpop.xlane.xlu0 %6595  ;;  %v16917_v1 = vld [vmem:[#allocation186_spill] sm:$0xff]  ;;  %v13893_v52 = vpop.xlane.xlu1 %6598 }
 0x304   : > { %v13847_v51 = vmul.f32 %v5531_v3, %v16904_v13  ;;  %v5607_v29 = vrot.slane %v4443_v21, %v11196_v40  ;;  %v16915_v3 = vcombine.high %v16810_v57, %v16810_v57  ;;  %v13873_v13 = vrot.slane %v13795_v55, %v11075_v14  ;;  %16916 = vst [vmem:[#allocation14_spill] sm:$0xff] %v13875_v42  ;;  %v16928_v42 = vld [vmem:[#allocation111_spill] sm:$0xff] }
 0x305   : > { %v13851_v44 = vmul.f32 %v5535_v34, %v16907_v41  ;;  %v13855_v60 = vmul.f32 %v5603_v28, %v16910_v0  ;;  %v13861_v39 = vmul.f32 %v5539_v17, %v16913_v4  ;;  %v4451_v34 = vcombine.high %v13406_v27, %v13406_v27  ;;  %v16918_v17 = vld [vmem:[#allocation114_spill] sm:$0xff]  ;;  %16921 = vst [vmem:[#allocation222_spill] sm:$0xff] %v13893_v52 }
 0x306   : > { %16905 = vst [vmem:[#allocation9_spill] sm:$0xff] %v13847_v51  ;;  %v4345_v10 = vrot.slane %v16915_v3, %v11075_v14  ;;  %v6741_v4 = vsel %vm3018_vm1, %v16917_v1, 0.0  ;;  %v16919_v61 = vmax.f32 %v16918_v17, 0.0  ;;  %v4651_v57 = vcombine.high %v13804_v16, %v13804_v16  ;;  %v16922_v3 = vld [vmem:[#allocation190_spill] sm:$0xff] }
 0x307   : > { %16908 = vst [vmem:[#allocation46_spill] sm:$0xff] %v13851_v44  ;;  %16911 = vst [vmem:[#allocation221_spill] sm:$0xff] %v13855_v60  ;;  %v13887_v27 = vrot.slane %v13804_v16, %v11075_v14  ;;  %v13890_v23 = vsel %vm8482_vm2, %v7625_v9, %v7621_v58  ;;  %6742 = vadd.xlane.f32.xlu1 %v6741_v4  ;;  %v6750_v1 = vsel %vm3018_vm1, %v16922_v3, 0.0  ;;  %v16923_v16 = vld [vmem:[#allocation188_spill] sm:$0xff]  ;;  %v16924_v9 = vld [vmem:[#allocation98_spill] sm:$0xff] }
 0x308   : > { %16914 = vst [vmem:[#allocation206_spill] sm:$0xff] %v13861_v39  ;;  %v13881_v41 = vmul.f32 %v5607_v29, %v16919_v61  ;;  %v5543_v0 = vrot.slane %v4345_v10, %v11196_v40  ;;  %v5611_v29 = vrot.slane %v4451_v34, %v11196_v40  ;;  %v4453_v17 = vcombine.high %v4443_v21, %v4443_v21  ;;  %v6608_v34 = vpop.xlane.xlu0 %6607  ;;  %v16938_v44 = vld [vmem:[#allocation117_spill] sm:$0xff] }
 0x309   : > { %v13900_v61 = vrot.slane %v16809_v26, %v11075_v14  ;;  %6751 = vadd.xlane.f32.xlu0 %v6750_v1  ;;  %v6753_v58 = vsel %vm3018_vm1, %v16923_v16, 0.0  ;;  %v16925_v4 = vmax.f32 %v16924_v9, 0.0  ;;  %v16927_v52 = vcombine.high %v16809_v26, %v16809_v26 }
 0x30a   : > { %16920 = vst [vmem:[#allocation18_spill] sm:$0xff] %v13881_v41  ;;  %v5635_v21 = vrot.slane %v13454_v24, %v11196_v40  ;;  %v16929_v39 = vmax.f32 %v16928_v42, 0.0  ;;  %v5615_v16 = vrot.slane %v4453_v17, %v11196_v40  ;;  %v16931_v9 = vcombine.high %v16811_v38, %v16811_v38  ;;  %v16932_v42 = vld [vmem:[#allocation126_spill] sm:$0xff]  ;;  %v16936_v38 = vld [vmem:[#allocation113_spill] sm:$0xff] }
 0x30b   : > { %v13906_v28 = vmul.f32 %v5543_v0, %v16925_v4  ;;  %v13912_v3 = vrot.slane %v16927_v52, %v11075_v14  ;;  %v5619_v0 = vrot.slane %v13900_v61, %v11196_v40  ;;  %v7693_v4 = vrot.slane %v6608_v34, %v16757_v45  ;;  %6754 = vadd.xlane.f32.xlu1 %v6753_v58 }
 0x30c   : > { %v13918_v1 = vmul.f32 %v5611_v29, %v16929_v39  ;;  %v13927_v26 = vrot.slane %v16931_v9, %v11075_v14  ;;  %v16933_v29 = vmax.f32 %v16932_v42, 0.0  ;;  %v16937_v9 = vmax.f32 %v16936_v38, 0.0 }
 0x30d   : > { %16926 = vst [vmem:[#allocation133_spill] sm:$0xff] %v13906_v28  ;;  %v5623_v39 = vrot.slane %v13912_v3, %v11196_v40  ;;  %v16935_v28 = vld [vmem:[#allocation129_spill] sm:$0xff]  ;;  %v16939_v52 = vmax.f32 %v16938_v44, 0.0  ;;  %v4553_v44 = vcombine.high %v13807_v25, %v13807_v25 }
 0x30e   : > { %16930 = vst [vmem:[#allocation16_spill] sm:$0xff] %v13918_v1  ;;  %v13936_v17 = vmul.f32 %v5635_v21, %v16933_v29  ;;  %v6611_v1 = vpop.xlane.xlu1 %6610  ;;  %v6756_v41 = vsel %vm3018_vm1, %v16935_v28, 0.0  ;;  %v13942_v60 = vmul.f32 %v5615_v16, %v16937_v9  ;;  %v5639_v58 = vrot.slane %v13927_v26, %v11196_v40  ;;  %v16940_v28 = vld [vmem:[#allocation120_spill] sm:$0xff] }
 0x30f   : > { %v13946_v51 = vmul.f32 %v5619_v0, %v16939_v52  ;;  %v8539_v21 = vsel %vm8484_vm3, %v7693_v4, %v13759_v5  ;;  %v7697_v42 = vrot.slane %v6611_v1, %v16757_v45  ;;  %6757 = vadd.xlane.f32.xlu0 %v6756_v41  ;;  %v16941_v29 = vmax.f32 %v16940_v28, 0.0  ;;  %v6614_v0 = vpop.xlane.xlu0 %6613  ;;  %v16942_v52 = vld [vmem:[#allocation177_spill] sm:$0xff]  ;;  %v16943_v9 = vld [vmem:[#allocation128_spill] sm:$0xff] }
 0x310   : > { %16934 = vst [vmem:[#allocation205_spill] sm:$0xff] %v13936_v17  ;;  %v6759_v38 = vsel %vm3018_vm1, %v16942_v52, 0.0  ;;  %v16944_v17 = vmax.f32 %v16943_v9, 0.0  ;;  %v4353_v5 = vcombine.high %v13444_v12, %v13444_v12  ;;  %v13970_v41 = vrot.slane %v4651_v57, %v11075_v14  ;;  %v16949_v52 = vld [vmem:[#allocation95_spill] sm:$0xff] }
 0x311   : > { %v13957_v16 = vmul.f32 %v5623_v39, %v16941_v29  ;;  %v8540_v1 = vsel %vm8486_vm4, %v7697_v42, %v8539_v21  ;;  %v7701_v4 = vrot.slane %v6614_v0, %v16757_v45  ;;  %6760 = vadd.xlane.f32.xlu1 %v6759_v38  ;;  %v4355_v39 = vcombine.high %v4345_v10, %v4345_v10 }
 0x312   : > { %v13965_v34 = vmul.f32 %v5639_v58, %v16944_v17  ;;  %v13974_v28 = vpop.xlane.xlu1 %6616  ;;  %v6810_v29 = vsel %vm3018_vm1, %v13369_v6, 0.0  ;;  %v5547_v17 = vrot.slane %v4353_v5, %v11196_v40  ;;  %v13981_v58 = vrot.slane %v13396_v62, %v11075_v14 }
 0x313   : > { %16945 = vst [vmem:[#allocation65_spill] sm:$0xff] %v13974_v28  ;;  %v16946_v12 = vcombine.high %v13396_v62, %v13396_v62  ;;  %v13990_v21 = vsel %vm8488_vm5, %v7701_v4, %v8540_v1  ;;  %6811 = vadd.xlane.f32.xlu0 %v6810_v29  ;;  %v6813_v10 = vsel %vm3018_vm1, %v13400_v47, 0.0  ;;  %v5551_v6 = vrot.slane %v4355_v39, %v11196_v40  ;;  %v13997_v0 = vpop.xlane.xlu0 %6547  ;;  %v16953_v39 = vld [vmem:[#allocation97_spill] sm:$0xff]  ;;  %v16960_v28 = vld [vmem:[#allocation100_spill] sm:$0xff] }
 0x314   : > { %16947 = vst [vmem:[#allocation212_spill] sm:$0xff] %v13990_v21  ;;  %v5571_v42 = vrot.slane %v13693_v8, %v11196_v40  ;;  %16948 = vst [vmem:[#allocation69_spill] sm:$0xff] %v13997_v0  ;;  %v16950_v38 = vmax.f32 %v16949_v52, 0.0  ;;  %v5555_v62 = vrot.slane %v13981_v58, %v11196_v40  ;;  %v16952_v47 = vcombine.high %v13418_v54, %v13418_v54  ;;  %v16959_v54 = vld [vmem:[#allocation29_spill] sm:$0xff] }
 0x315   : > { %v13987_v57 = vrot.slane %v16946_v12, %v11075_v14  ;;  %6814 = vadd.xlane.f32.xlu1 %v6813_v10  ;;  %v16954_v29 = vmax.f32 %v16953_v39, 0.0  ;;  %v16955_v12 = vld [vmem:[#allocation104_spill] sm:$0xff]  ;;  %v4452_v21 = vcombine.high %v13900_v61, %v13900_v61  ;;  %v16962_v10 = vld [vmem:[#allocation102_spill] sm:$0xff]  ;;  %v14045_v61 = vrot.slane %v13807_v25, %v11075_v14 }
 0x316   : > { %v14001_v9 = vmul.f32 %v5547_v17, %v16950_v38  ;;  %v14011_v1 = vrot.slane %v16952_v47, %v11075_v14  ;;  %v16956_v52 = vmax.f32 %v16955_v12, 0.0  ;;  %v14025_v0 = vpop.xlane.xlu1 %6550  ;;  %v6762_v47 = vsel %vm3018_vm1, %v16959_v54, 0.0 }
 0x317   : > { %v5559_v5 = vrot.slane %v13987_v57, %v11196_v40  ;;  %v14017_v17 = vmul.f32 %v5551_v6, %v16954_v29  ;;  %16958 = vst [vmem:[#allocation152_spill] sm:$0xff] %v14025_v0  ;;  %v16963_v39 = vmax.f32 %v16962_v10, 0.0  ;;  %v14041_v29 = vrot.slane %v13887_v27, %v11075_v14  ;;  %6763 = vadd.xlane.f32.xlu0 %v6762_v47  ;;  %v16967_v10 = vld [vmem:[#allocation106_spill] sm:$0xff]  ;;  %v16970_v47 = vld [vmem:[#allocation116_spill] sm:$0xff] }
 0x318   : > { %16951 = vst [vmem:[#allocation15_spill] sm:$0xff] %v14001_v9  ;;  %v14021_v38 = vmul.f32 %v5571_v42, %v16956_v52  ;;  %v16961_v9 = vmax.f32 %v16960_v28, 0.0  ;;  %v5575_v42 = vrot.slane %v14011_v1, %v11196_v40  ;;  %v14048_v12 = vrot.slane %v4553_v44, %v11075_v14  ;;  %v16966_v52 = vld [vmem:[#allocation138_spill] sm:$0xff] }
 0x319   : > { %v14035_v6 = vmul.f32 %v5559_v5, %v16963_v39  ;;  %v5627_v28 = vrot.slane %v4452_v21, %v11196_v40  ;;  %v6560_v5 = vpop.xlane.xlu0 %6559  ;;  %v6765_v54 = vsel %vm3018_vm1, %v16966_v52, 0.0  ;;  %v16968_v39 = vmax.f32 %v16967_v10, 0.0 }
 0x31a   : > { %16957 = vst [vmem:[#allocation17_spill] sm:$0xff] %v14021_v38  ;;  %v14031_v4 = vmul.f32 %v5555_v62, %v16961_v9  ;;  %v16965_v9 = vld [vmem:[#allocation145_spill] sm:$0xff]  ;;  %v4454_v25 = vcombine.high %v13912_v3, %v13912_v3  ;;  %v7629_v44 = vrot.slane %v6560_v5, %v16757_v45  ;;  %6766 = vadd.xlane.f32.xlu1 %v6765_v54  ;;  %v16971_v21 = vmax.f32 %v16970_v47, 0.0  ;;  %v16973_v3 = vld [vmem:[#allocation136_spill] sm:$0xff]  ;;  %v16975_v47 = vld [vmem:[#allocation119_spill] sm:$0xff] }
 0x31b   : > { %16964 = vst [vmem:[#allocation224_spill] sm:$0xff] %v14035_v6  ;;  %v14053_v62 = vadd.f32 %v13425_v36, %v16965_v9  ;;  %v14059_v0 = vmul.f32 %v5575_v42, %v16968_v39  ;;  %v4500_v9 = vcombine.high %v13454_v24, %v13454_v24  ;;  %v4502_v52 = vcombine.high %v13927_v26, %v13927_v26  ;;  %v6563_v6 = vpop.xlane.xlu1 %6562 }
 0x31c   : > { %v14066_v38 = vmul.f32 %v5627_v28, %v16971_v21  ;;  %v6864_v42 = vsel %vm3018_vm1, %v13654_v46, 0.0  ;;  %v5631_v10 = vrot.slane %v4454_v25, %v11196_v40  ;;  %v4485_v5 = vrot.slane %v16973_v3, %v11075_v14 }
 0x31d   : > { %16969 = vst [vmem:[#allocation30_spill] sm:$0xff] %v14059_v0  ;;  %v16974_v28 = vcombine.high %v16973_v3, %v16973_v3  ;;  %v8525_v24 = vsel %vm8484_vm3, %v7629_v44, %v13890_v23  ;;  %v7633_v26 = vrot.slane %v6563_v6, %v16757_v45  ;;  %6865 = vadd.xlane.f32.xlu0 %v6864_v42  ;;  %v6867_v46 = vsel %vm3018_vm1, %v13668_v19, 0.0  ;;  %v6566_v25 = vpop.xlane.xlu0 %6565  ;;  %v16978_v19 = vld [vmem:[#allocation123_spill] sm:$0xff] }
 0x31e   : > { %16972 = vst [vmem:[#allocation225_spill] sm:$0xff] %v14066_v38  ;;  %v5643_v39 = vrot.slane %v4500_v9, %v11196_v40  ;;  %v16976_v21 = vmax.f32 %v16975_v47, 0.0  ;;  %v5647_v3 = vrot.slane %v4502_v52, %v11196_v40  ;;  %v7637_v44 = vrot.slane %v6566_v25, %v16757_v45  ;;  %6868 = vadd.xlane.f32.xlu1 %v6867_v46  ;;  %v16985_v46 = vld [vmem:[#allocation13_spill] sm:$0xff] }
 0x31f   : > { %v14081_v54 = vrot.slane %v16974_v28, %v11075_v14  ;;  %v5651_v28 = vrot.slane %v4485_v5, %v11196_v40  ;;  %v8526_v6 = vsel %vm8486_vm4, %v7633_v26, %v8525_v24  ;;  %v16979_v42 = vmax.f32 %v16978_v19, 0.0  ;;  %v14105_v47 = vpop.xlane.xlu1 %6568  ;;  %v16983_v24 = vld [vmem:[#allocation11_spill] sm:$0xff] }
 0x320   : > { %v14091_v38 = vmul.f32 %v5631_v10, %v16976_v21  ;;  %v4354_v10 = vcombine.high %v13981_v58, %v13981_v58  ;;  %16980 = vst [vmem:[#allocation208_spill] sm:$0xff] %v14105_v47  ;;  %v6816_v52 = vsel %vm3018_vm1, %v13499_v56, 0.0  ;;  %v16981_v21 = vld [vmem:[#allocation127_spill] sm:$0xff]  ;;  %v16984_v26 = vmax.f32 %v16983_v24, 0.0  ;;  %v16996_v58 = vld [vmem:[#allocation101_spill] sm:$0xff] }
 0x321   : > { %v5655_v23 = vrot.slane %v14081_v54, %v11196_v40  ;;  %v14101_v9 = vmul.f32 %v5643_v39, %v16979_v42  ;;  %v16986_v19 = vmax.f32 %v16985_v46, 0.0  ;;  %v14126_v56 = vsel %vm8488_vm5, %v7637_v44, %v8526_v6  ;;  %6817 = vadd.xlane.f32.xlu0 %v6816_v52  ;;  %v16990_v44 = vld [vmem:[#allocation99_spill] sm:$0xff] }
 0x322   : > { %16977 = vst [vmem:[#allocation227_spill] sm:$0xff] %v14091_v38  ;;  %v16982_v38 = vmax.f32 %v16981_v21, 0.0  ;;  %v14115_v25 = vmul.f32 %v5651_v28, %v16984_v26  ;;  %16987 = vst [vmem:[#allocation228_spill] sm:$0xff] %v14126_v56  ;;  %v16988_v28 = vld [vmem:[#allocation115_spill] sm:$0xff]  ;;  %v6819_v24 = vsel %vm3018_vm1, %v13512_v20, 0.0  ;;  %v4356_v26 = vcombine.high %v13987_v57, %v13987_v57 }
 0x323   : > { %v14119_v39 = vmul.f32 %v5655_v23, %v16986_v19  ;;  %v14132_v21 = vadd.f32 %v13425_v36, %v16988_v28  ;;  %v14134_v23 = vpop.xlane.xlu0 %6619  ;;  %6820 = vadd.xlane.f32.xlu1 %v6819_v24  ;;  %v6870_v6 = vsel %vm3018_vm1, %v13679_v11, 0.0  ;;  %v4404_v46 = vcombine.high %v14011_v1, %v14011_v1  ;;  %v14150_v19 = vpop.xlane.xlu1 %6622  ;;  %v16994_v24 = vld [vmem:[#allocation201_spill] sm:$0xff] }
 0x324   : > { %v14111_v0 = vmul.f32 %v5647_v3, %v16982_v38  ;;  %v5563_v38 = vrot.slane %v4354_v10, %v11196_v40  ;;  %v3258_v3 = vmax.f32 %v14053_v62, 0.0  ;;  %16989 = vst [vmem:[#allocation229_spill] sm:$0xff] %v14134_v23  ;;  %v16991_v10 = vmax.f32 %v16990_v44, 0.0  ;;  %16992 = vst [vmem:[#allocation63_spill] sm:$0xff] %v14150_v19 }
 0x325   : > { %v4402_v62 = vcombine.high %v13693_v8, %v13693_v8  ;;  %v5567_v20 = vrot.slane %v4356_v26, %v11196_v40  ;;  %v4387_v57 = vrot.slane %v13461_v30, %v11075_v14  ;;  %v16993_v11 = vcombine.high %v13461_v30, %v13461_v30  ;;  %6871 = vadd.xlane.f32.xlu0 %v6870_v6 }
 0x326   : > { %v14144_v52 = vmul.f32 %v5563_v38, %v16991_v10  ;;  %v4501_v38 = vcombine.high %v4485_v5, %v4485_v5  ;;  %v3225_v44 = vadd.f32 %v13425_v36, %v16994_v24  ;;  %v6873_v8 = vsel %vm3018_vm1, %v13686_v48, 0.0  ;;  %v16998_v48 = vld [vmem:[#allocation103_spill] sm:$0xff] }
 0x327   : > { %v4401_v28 = vrot.slane %v16993_v11, %v11075_v14  ;;  %v5579_v1 = vrot.slane %v4402_v62, %v11196_v40  ;;  %v5583_v26 = vrot.slane %v4404_v46, %v11196_v40  ;;  %v14165_v10 = vpop.xlane.xlu0 %6571  ;;  %v16997_v42 = vmax.f32 %v16996_v58, 0.0  ;;  %6874 = vadd.xlane.f32.xlu1 %v6873_v8  ;;  %v17000_v46 = vld [vmem:[#allocation105_spill] sm:$0xff]  ;;  %v17005_v8 = vld [vmem:[#allocation110_spill] sm:$0xff] }
 0x328   : > { %16995 = vst [vmem:[#allocation202_spill] sm:$0xff] %v14165_v10  ;;  %v5587_v30 = vrot.slane %v4387_v57, %v11196_v40  ;;  %v5659_v11 = vrot.slane %v4501_v38, %v11196_v40  ;;  %v14175_v6 = vmul.f32 %v13595_v59, %v3258_v3  ;;  %v16999_v62 = vmax.f32 %v16998_v48, 0.0  ;;  %v17003_v38 = vld [vmem:[#allocation108_spill] sm:$0xff] }
 0x329   : > { %v14169_v56 = vmul.f32 %v5567_v20, %v16997_v42  ;;  %v5591_v5 = vrot.slane %v4401_v28, %v11196_v40  ;;  %v17001_v10 = vmax.f32 %v17000_v46, 0.0  ;;  %v4503_v58 = vcombine.high %v14081_v54, %v14081_v54  ;;  %v14187_v42 = vpop.xlane.xlu1 %6574 }
 0x32a   : > { %v14179_v24 = vmul.f32 %v5579_v1, %v16999_v62  ;;  %17002 = vst [vmem:[#allocation232_spill] sm:$0xff] %v14187_v42  ;;  %v6876_v20 = vsel %vm3018_vm1, %v13699_v37, 0.0  ;;  %v17004_v3 = vmax.f32 %v17003_v38, 0.0  ;;  %v17006_v48 = vmax.f32 %v17005_v8, 0.0  ;;  %v17007_v62 = vld [vmem:[#allocation10_spill] sm:$0xff] }
 0x32b   : > { %v14183_v19 = vmul.f32 %v5583_v26, %v17001_v10  ;;  %v17008_v46 = vmax.f32 %v17007_v62, 0.0  ;;  %v14207_v10 = vrot.slane %v14045_v61, %v11075_v14  ;;  %v17010_v37 = vld [vmem:[#allocation122_spill] sm:$0xff]  ;;  %6877 = vadd.xlane.f32.xlu0 %v6876_v20  ;;  %v6674_v8 = vpop.xlane.xlu0 %6673  ;;  %v4798_v62 = vcombine.high %v14175_v6, %v14175_v6 }
 0x32c   : > { %v14193_v23 = vmul.f32 %v5587_v30, %v17004_v3  ;;  %v14197_v1 = vmul.f32 %v5591_v5, %v17006_v48  ;;  %v14211_v38 = vadd.f32 %v13425_v36, %v17010_v37  ;;  %v5663_v30 = vrot.slane %v4503_v58, %v11196_v40  ;;  %v17011_v36 = vld [vmem:[#allocation12_spill] sm:$0xff] }
 0x32d   : > { %v14201_v26 = vmul.f32 %v5659_v11, %v17008_v46  ;;  %v3256_v5 = vmax.f32 %v14132_v21, 0.0  ;;  %v3259_v3 = vmax.f32 %v3225_v44, 0.0  ;;  %v6879_v11 = vsel %vm3018_vm1, %v13707_v15, 0.0  ;;  %v6677_v21 = vpop.xlane.xlu1 %6676 }
 0x32e   : > { %v4403_v48 = vcombine.high %v4387_v57, %v4387_v57  ;;  %v14221_v46 = vrot.slane %v14175_v6, %v11075_v14  ;;  %6880 = vadd.xlane.f32.xlu1 %v6879_v11  ;;  %v17012_v20 = vmax.f32 %v17011_v36, 0.0  ;;  %v4405_v58 = vcombine.high %v4401_v28, %v4401_v28 }
 0x32f   : > { %17009 = vst [vmem:[#allocation231_spill] sm:$0xff] %v14201_v26  ;;  %v6888_v44 = vsel %vm3018_vm1, %v13711_v2, 0.0  ;;  %v5731_v57 = vrot.slane %v13822_v33, %v11196_v40  ;;  %v17014_v6 = vcombine.high %v13782_v35, %v13782_v35  ;;  %v7785_v28 = vrot.slane %v6677_v21, %v16757_v45  ;;  %v6626_v2 = vpop.xlane.xlu0 %6625 }
 0x330   : > { %v14225_v37 = vmul.f32 %v5663_v30, %v17012_v20  ;;  %v5595_v15 = vrot.slane %v4403_v48, %v11196_v40  ;;  %v7781_v30 = vrot.slane %v6674_v8, %v16757_v45  ;;  %6889 = vadd.xlane.f32.xlu0 %v6888_v44  ;;  %v5599_v36 = vrot.slane %v4405_v58, %v11196_v40  ;;  %v17015_v20 = vld [vmem:[#allocation107_spill] sm:$0xff]  ;;  %v17020_v58 = vld [vmem:[#allocation109_spill] sm:$0xff] }
 0x331   : > { %v4639_v54 = vrot.slane %v17014_v6, %v11075_v14  ;;  %v6891_v48 = vsel %vm3018_vm1, %v13741_v50, 0.0  ;;  %v17016_v42 = vmax.f32 %v17015_v20, 0.0  ;;  %v14252_v8 = vmul.f32 %v13595_v59, %v3256_v5  ;;  %v17024_v20 = vld [vmem:[#allocation54_spill] sm:$0xff] }
 0x332   : > { %17013 = vst [vmem:[#allocation164_spill] sm:$0xff] %v14225_v37  ;;  %v17017_v37 = vld [vmem:[#allocation52_spill] sm:$0xff]  ;;  %v8559_v21 = vsel %vm8482_vm2, %v7785_v28, %v7781_v30  ;;  %6892 = vadd.xlane.f32.xlu1 %v6891_v48  ;;  %v17021_v44 = vmax.f32 %v17020_v58, 0.0  ;;  %v5667_v50 = vrot.slane %v13873_v13, %v11196_v40  ;;  %v17025_v5 = vmax.f32 %v17024_v20, 0.0 }
 0x333   : > { %v14244_v47 = vmul.f32 %v5595_v15, %v17016_v42  ;;  %v17018_v35 = vmax.f32 %v17017_v37, 0.0  ;;  %v5735_v11 = vrot.slane %v4639_v54, %v11196_v40  ;;  %v14262_v42 = vmul.f32 %v13595_v59, %v3259_v3  ;;  %v6629_v37 = vpop.xlane.xlu1 %6628  ;;  %v17023_v15 = vld [vmem:[#allocation26_spill] sm:$0xff]  ;;  %v17028_v3 = vld [vmem:[#allocation21_spill] sm:$0xff] }
 0x334   : > { %v14257_v26 = vmul.f32 %v5599_v36, %v17021_v44  ;;  %v17027_v30 = vcombine.high %v13795_v55, %v13795_v55  ;;  %v7717_v36 = vrot.slane %v6626_v2, %v16757_v45  ;;  %v7721_v48 = vrot.slane %v6629_v37, %v16757_v45 }
 0x335   : > { %v14248_v6 = vmul.f32 %v5731_v57, %v17018_v35  ;;  %v6822_v57 = vsel %vm3018_vm1, %v17023_v15, 0.0  ;;  %v14268_v35 = vmul.f32 %v5735_v11, %v17025_v5  ;;  %v17029_v58 = vmax.f32 %v17028_v3, 0.0  ;;  %v6680_v11 = vpop.xlane.xlu0 %6679 }
 0x336   : > { %17022 = vst [vmem:[#allocation66_spill] sm:$0xff] %v14257_v26  ;;  %v14274_v28 = vrot.slane %v17027_v30, %v11075_v14  ;;  %6823 = vadd.xlane.f32.xlu0 %v6822_v57  ;;  %v4647_v15 = vcombine.high %v13822_v33, %v13822_v33  ;;  %v6825_v20 = vsel %vm3018_vm1, %v13514_v18, 0.0  ;;  %v4649_v5 = vcombine.high %v4639_v54, %v4639_v54  ;;  %v17031_v57 = vld [vmem:[#allocation207_spill] sm:$0xff]  ;;  %v17032_v18 = vld [vmem:[#allocation25_spill] sm:$0xff] }
 0x337   : > { %17019 = vst [vmem:[#allocation185_spill] sm:$0xff] %v14248_v6  ;;  %17026 = vst [vmem:[#allocation195_spill] sm:$0xff] %v14268_v35  ;;  %v14280_v44 = vmul.f32 %v5667_v50, %v17029_v58  ;;  %v5763_v2 = vrot.slane %v14041_v29, %v11196_v40  ;;  %v14291_v37 = vsel %vm8482_vm2, %v7721_v48, %v7717_v36  ;;  %6826 = vadd.xlane.f32.xlu1 %v6825_v20  ;;  %v6683_v3 = vpop.xlane.xlu1 %6682  ;;  %v17034_v35 = vld [vmem:[#allocation60_spill] sm:$0xff]  ;;  %v17037_v20 = vld [vmem:[#allocation51_spill] sm:$0xff] }
 0x338   : > { %v5671_v55 = vrot.slane %v14274_v28, %v11196_v40  ;;  %v7789_v50 = vrot.slane %v6680_v11, %v16757_v45  ;;  %v6828_v33 = vsel %vm3018_vm1, %v17031_v57, 0.0  ;;  %v5739_v30 = vrot.slane %v4647_v15, %v11196_v40 }
 0x339   : > { %17030 = vst [vmem:[#allocation197_spill] sm:$0xff] %v14280_v44  ;;  %v17033_v58 = vmax.f32 %v17032_v18, 0.0  ;;  %v5743_v54 = vrot.slane %v4649_v5, %v11196_v40  ;;  %v17035_v6 = vmax.f32 %v17034_v35, 0.0  ;;  %v17036_v36 = vcombine.high %v13887_v27, %v13887_v27  ;;  %v6686_v5 = vpop.xlane.xlu0 %6685  ;;  %v17039_v27 = vld [vmem:[#allocation34_spill] sm:$0xff]  ;;  %v17040_v18 = vld [vmem:[#allocation53_spill] sm:$0xff] }
 0x33a   : > { %v8560_v11 = vsel %vm8484_vm3, %v7789_v50, %v8559_v21  ;;  %v7793_v15 = vrot.slane %v6683_v3, %v16757_v45  ;;  %6829 = vadd.xlane.f32.xlu0 %v6828_v33  ;;  %v14320_v35 = vrot.slane %v13812_v49, %v11075_v14  ;;  %v17041_v21 = vmax.f32 %v17040_v18, 0.0 }
 0x33b   : > { %v14299_v44 = vmul.f32 %v5671_v55, %v17033_v58  ;;  %v14304_v26 = vmul.f32 %v5763_v2, %v17035_v6  ;;  %v14310_v48 = vrot.slane %v17036_v36, %v11075_v14  ;;  %v17038_v55 = vmax.f32 %v17037_v20, 0.0  ;;  %v14339_v36 = vpop.xlane.xlu1 %6688  ;;  %v17043_v20 = vld [vmem:[#allocation62_spill] sm:$0xff] }
 0x33c   : > { %v14323_v6 = vrot.slane %v4798_v62, %v11075_v14  ;;  %v6831_v2 = vsel %vm3018_vm1, %v17039_v27, 0.0  ;;  %v14329_v50 = vmul.f32 %v5743_v54, %v17041_v21  ;;  %v8561_v3 = vsel %vm8486_vm4, %v7793_v15, %v8560_v11  ;;  %17042 = vst [vmem:[#allocation162_spill] sm:$0xff] %v14339_v36 }
 0x33d   : > { %v14316_v57 = vmul.f32 %v5739_v30, %v17038_v55  ;;  %v5767_v33 = vrot.slane %v14310_v48, %v11196_v40  ;;  %v7797_v58 = vrot.slane %v6686_v5, %v16757_v45  ;;  %6832 = vadd.xlane.f32.xlu1 %v6831_v2  ;;  %v5747_v62 = vrot.slane %v14320_v35, %v11196_v40  ;;  %v17047_v2 = vld [vmem:[#allocation56_spill] sm:$0xff] }
 0x33e   : > { %v6882_v54 = vsel %vm3018_vm1, %v13764_v22, 0.0  ;;  %v17044_v55 = vmax.f32 %v17043_v20, 0.0  ;;  %v4696_v18 = vcombine.high %v14041_v29, %v14041_v29  ;;  %v4549_v11 = vcombine.high %v13873_v13, %v13873_v13  ;;  %v6698_v29 = vpop.xlane.xlu0 %6697 }
 0x33f   : > { %v14353_v15 = vrot.slane %v14221_v46, %v11075_v14  ;;  %v14356_v5 = vsel %vm8488_vm5, %v7797_v58, %v8561_v3  ;;  %6883 = vadd.xlane.f32.xlu0 %v6882_v54  ;;  %v17048_v22 = vmax.f32 %v17047_v2, 0.0  ;;  %v6885_v13 = vsel %vm3018_vm1, %v13769_v32, 0.0  ;;  %v6701_v32 = vpop.xlane.xlu1 %6700 }
 0x340   : > { %v14345_v27 = vmul.f32 %v5767_v33, %v17044_v55  ;;  %17046 = vst [vmem:[#allocation193_spill] sm:$0xff] %v14356_v5  ;;  %v14364_v33 = vrot.slane %v13970_v41, %v11075_v14  ;;  %v5771_v20 = vrot.slane %v4696_v18, %v11196_v40  ;;  %v5675_v55 = vrot.slane %v4549_v11, %v11196_v40  ;;  %v17052_v11 = vld [vmem:[#allocation19_spill] sm:$0xff] }
 0x341   : > { %v14360_v21 = vmul.f32 %v5747_v62, %v17048_v22  ;;  %v4534_v3 = vrot.slane %v13838_v7, %v11075_v14  ;;  %v7813_v58 = vrot.slane %v6698_v29, %v16757_v45  ;;  %6886 = vadd.xlane.f32.xlu1 %v6885_v13  ;;  %v6894_v62 = vsel %vm3018_vm1, %v13773_v31, 0.0  ;;  %v17050_v22 = vld [vmem:[#allocation59_spill] sm:$0xff] }
 0x342   : > { %17045 = vst [vmem:[#allocation151_spill] sm:$0xff] %v14345_v27  ;;  %v5779_v54 = vrot.slane %v14364_v33, %v11196_v40  ;;  %v4551_v2 = vcombine.high %v14274_v28, %v14274_v28  ;;  %v17051_v18 = vmax.f32 %v17050_v22, 0.0  ;;  %v17053_v5 = vmax.f32 %v17052_v11, 0.0  ;;  %v6632_v11 = vpop.xlane.xlu0 %6631 }
 0x343   : > { %17049 = vst [vmem:[#allocation8_spill] sm:$0xff] %v14360_v21  ;;  %v5683_v29 = vrot.slane %v4534_v3, %v11196_v40  ;;  %v5699_v31 = vrot.slane %v14207_v10, %v11196_v40  ;;  %v7817_v13 = vrot.slane %v6701_v32, %v16757_v45  ;;  %6895 = vadd.xlane.f32.xlu0 %v6894_v62  ;;  %v17054_v21 = vld [vmem:[#allocation146_spill] sm:$0xff]  ;;  %v6897_v62 = vsel %vm3018_vm1, %v13777_v63, 0.0 }
 0x344   : > { %v14381_v30 = vmul.f32 %v5771_v20, %v17051_v18  ;;  %v14385_v36 = vmul.f32 %v5675_v55, %v17053_v5  ;;  %v17055_v27 = vmax.f32 %v17054_v21, 0.0  ;;  %v5679_v22 = vrot.slane %v4551_v2, %v11196_v40  ;;  %v17059_v21 = vld [vmem:[#allocation31_spill] sm:$0xff] }
 0x345   : > { %v17057_v20 = vcombine.high %v13838_v7, %v13838_v7  ;;  %v17058_v55 = vmax.f32 %v14211_v38, 0.0  ;;  %v17061_v2 = vld [vmem:[#allocation43_spill] sm:$0xff]  ;;  %v14420_v38 = vsel %vm8482_vm2, %v7817_v13, %v7813_v58  ;;  %6898 = vadd.xlane.f32.xlu1 %v6897_v62  ;;  %v17066_v58 = vcombine.high %v13812_v49, %v13812_v49 }
 0x346   : > { %v14393_v28 = vmul.f32 %v5779_v54, %v17055_v27  ;;  %v17060_v27 = vmax.f32 %v17059_v21, 0.0  ;;  %v17062_v32 = vmax.f32 %v17061_v2, 0.0  ;;  %v6635_v21 = vpop.xlane.xlu1 %6634  ;;  %v6903_v62 = vsel %vm3018_vm1, %v13801_v53, 0.0 }
 0x347   : > { %v14400_v5 = vrot.slane %v17057_v20, %v11075_v14  ;;  %v14405_v18 = vmul.f32 %v13595_v59, %v17058_v55  ;;  %v7725_v59 = vrot.slane %v6632_v11, %v16757_v45  ;;  %v17064_v20 = vld [vmem:[#allocation23_spill] sm:$0xff]  ;;  %v4646_v13 = vrot.slane %v17066_v58, %v11075_v14 }
 0x348   : > { %17056 = vst [vmem:[#allocation214_spill] sm:$0xff] %v14393_v28  ;;  %v14411_v54 = vmul.f32 %v5683_v29, %v17060_v27  ;;  %v14415_v28 = vmul.f32 %v5699_v31, %v17062_v32  ;;  %v17065_v55 = vmax.f32 %v17064_v20, 0.0  ;;  %v14429_v29 = vrot.slane %v14252_v8, %v11075_v14  ;;  %v6638_v32 = vpop.xlane.xlu0 %6637  ;;  %v17068_v20 = vld [vmem:[#allocation37_spill] sm:$0xff] }
 0x349   : > { %v6900_v31 = vsel %vm3018_vm1, %v13789_v43, 0.0  ;;  %v5687_v27 = vrot.slane %v14400_v5, %v11196_v40  ;;  %v7729_v11 = vrot.slane %v6635_v21, %v16757_v45  ;;  %v17067_v43 = vcombine.high %v14045_v61, %v14045_v61  ;;  %6904 = vadd.xlane.f32.xlu1 %v6903_v62 }
 0x34a   : > { %17063 = vst [vmem:[#allocation22_spill] sm:$0xff] %v14415_v28  ;;  %v14425_v63 = vmul.f32 %v5679_v22, %v17065_v55  ;;  %v8546_v22 = vsel %vm8484_vm3, %v7725_v59, %v14291_v37  ;;  %6901 = vadd.xlane.f32.xlu0 %v6900_v31  ;;  %v17069_v55 = vmax.f32 %v17068_v20, 0.0  ;;  %v5751_v49 = vrot.slane %v4646_v13, %v11196_v40  ;;  %v14460_v58 = vpop.xlane.xlu1 %6640  ;;  %v17073_v20 = vld [vmem:[#allocation58_spill] sm:$0xff] }
 0x34b   : > { %v4590_v2 = vrot.slane %v17067_v43, %v11075_v14  ;;  %v4648_v37 = vcombine.high %v14320_v35, %v14320_v35  ;;  %v4698_v59 = vcombine.high %v14310_v48, %v14310_v48  ;;  %v8547_v53 = vsel %vm8486_vm4, %v7729_v11, %v8546_v22  ;;  %17071 = vst [vmem:[#allocation161_spill] sm:$0xff] %v14460_v58 }
 0x34c   : > { %v14450_v7 = vmul.f32 %v5687_v27, %v17069_v55  ;;  %v7733_v21 = vrot.slane %v6638_v32, %v16757_v45  ;;  %v4550_v31 = vcombine.high %v4534_v3, %v4534_v3  ;;  %v17072_v27 = vld [vmem:[#allocation196_spill] sm:$0xff]  ;;  %v17074_v55 = vmax.f32 %v17073_v20, 0.0  ;;  %v17077_v3 = vld [vmem:[#allocation45_spill] sm:$0xff]  ;;  %v6650_v20 = vpop.xlane.xlu0 %6649 }
 0x34d   : > { %v5703_v61 = vrot.slane %v4590_v2, %v11196_v40  ;;  %v6834_v43 = vsel %vm3018_vm1, %v17072_v27, 0.0  ;;  %v5755_v35 = vrot.slane %v4648_v37, %v11196_v40  ;;  %v5775_v48 = vrot.slane %v4698_v59, %v11196_v40  ;;  %v17080_v37 = vld [vmem:[#allocation55_spill] sm:$0xff] }
 0x34e   : > { %17070 = vst [vmem:[#allocation217_spill] sm:$0xff] %v14450_v7  ;;  %v14466_v7 = vmul.f32 %v5751_v49, %v17074_v55  ;;  %v14473_v11 = vsel %vm8488_vm5, %v7733_v21, %v8547_v53  ;;  %6835 = vadd.xlane.f32.xlu0 %v6834_v43  ;;  %v17078_v62 = vmax.f32 %v17077_v3, 0.0  ;;  %v5691_v27 = vrot.slane %v4550_v31, %v11196_v40  ;;  %v17079_v49 = vld [vmem:[#allocation41_spill] sm:$0xff]  ;;  %v17085_v31 = vld [vmem:[#allocation24_spill] sm:$0xff] }
 0x34f   : > { %17076 = vst [vmem:[#allocation155_spill] sm:$0xff] %v14473_v11  ;;  %v6837_v55 = vsel %vm3018_vm1, %v17079_v49, 0.0  ;;  %v17081_v58 = vmax.f32 %v17080_v37, 0.0  ;;  %v4650_v53 = vcombine.high %v4646_v13, %v4646_v13  ;;  %v17086_v43 = vmax.f32 %v17085_v31, 0.0  ;;  %v17089_v13 = vld [vmem:[#allocation46_spill] sm:$0xff] }
 0x350   : > { %17075 = vst [vmem:[#allocation165_spill] sm:$0xff] %v14466_v7  ;;  %v14477_v32 = vmul.f32 %v5703_v61, %v17078_v62  ;;  %v17082_v7 = vld [vmem:[#allocation61_spill] sm:$0xff]  ;;  %v14494_v61 = vrot.slane %v14262_v42, %v11075_v14  ;;  %6838 = vadd.xlane.f32.xlu1 %v6837_v55  ;;  %v4552_v49 = vcombine.high %v14400_v5, %v14400_v5  ;;  %v14514_v31 = vpop.xlane.xlu0 %6691 }
 0x351   : > { %v14484_v59 = vmul.f32 %v5755_v35, %v17081_v58  ;;  %v17083_v22 = vmax.f32 %v17082_v7, 0.0  ;;  %v14498_v3 = vmul.f32 %v5691_v27, %v17086_v43  ;;  %v4598_v58 = vcombine.high %v14207_v10, %v14207_v10  ;;  %v6653_v35 = vpop.xlane.xlu1 %6652  ;;  %v17088_v7 = vld [vmem:[#allocation9_spill] sm:$0xff]  ;;  %17090 = vst [vmem:[#allocation199_spill] sm:$0xff] %v14514_v31 }
 0x352   : > { %v5759_v62 = vrot.slane %v4650_v53, %v11196_v40  ;;  %v7749_v55 = vrot.slane %v6650_v20, %v16757_v45  ;;  %v7753_v27 = vrot.slane %v6653_v35, %v16757_v45  ;;  %v4583_v10 = vrot.slane %v14048_v12, %v11075_v14  ;;  %v17091_v43 = vld [vmem:[#allocation57_spill] sm:$0xff] }
 0x353   : > { %v14488_v28 = vmul.f32 %v5775_v48, %v17083_v22  ;;  %17087 = vst [vmem:[#allocation167_spill] sm:$0xff] %v14498_v3  ;;  %v6906_v48 = vsel %vm3018_vm1, %v17088_v7, 0.0  ;;  %v6909_v22 = vsel %vm3018_vm1, %v17089_v13, 0.0  ;;  %v5707_v37 = vrot.slane %v4598_v58, %v11196_v40 }
 0x354   : > { %6907 = vadd.xlane.f32.xlu0 %v6906_v48  ;;  %v17092_v7 = vmax.f32 %v17091_v43, 0.0  ;;  %v5695_v53 = vrot.slane %v4552_v49, %v11196_v40  ;;  %v4600_v21 = vcombine.high %v4590_v2, %v4590_v2  ;;  %v17094_v5 = vcombine.high %v13970_v41, %v13970_v41  ;;  %6910 = vadd.xlane.f32.xlu1 %v6909_v22  ;;  %v17095_v48 = vld [vmem:[#allocation42_spill] sm:$0xff]  ;;  %v17099_v2 = vld [vmem:[#allocation216_spill] sm:$0xff]  ;;  %v17100_v41 = vld [vmem:[#allocation35_spill] sm:$0xff] }
 0x355   : > { %17084 = vst [vmem:[#allocation168_spill] sm:$0xff] %v14488_v28  ;;  %v4749_v58 = vcombine.high %v14405_v18, %v14405_v18  ;;  %v14528_v35 = vsel %vm8482_vm2, %v7753_v27, %v7749_v55  ;;  %v17096_v31 = vmax.f32 %v17095_v48, 0.0  ;;  %v14535_v49 = vpop.xlane.xlu1 %6694  ;;  %v4715_v22 = vcombine.high %v14429_v29, %v14429_v29 }
 0x356   : > { %v14518_v13 = vmul.f32 %v5759_v62, %v17092_v7  ;;  %v4695_v20 = vrot.slane %v17094_v5, %v11075_v14  ;;  %v5715_v62 = vrot.slane %v4583_v10, %v11196_v40  ;;  %17098 = vst [vmem:[#allocation180_spill] sm:$0xff] %v14535_v49  ;;  %v6846_v7 = vsel %vm3018_vm1, %v17099_v2, 0.0  ;;  %v17108_v49 = vld [vmem:[#allocation44_spill] sm:$0xff] }
 0x357   : > { %v14532_v43 = vmul.f32 %v5707_v37, %v17096_v31  ;;  %v17101_v5 = vmax.f32 %v17100_v41, 0.0  ;;  %v14549_v27 = vrot.slane %v14405_v18, %v11075_v14  ;;  %v17103_v37 = vld [vmem:[#allocation48_spill] sm:$0xff]  ;;  %v17107_v41 = vld [vmem:[#allocation219_spill] sm:$0xff] }
 0x358   : > { %17093 = vst [vmem:[#allocation140_spill] sm:$0xff] %v14518_v13  ;;  %v5711_v13 = vrot.slane %v4600_v21, %v11196_v40  ;;  %v5783_v55 = vrot.slane %v4695_v20, %v11196_v40  ;;  %6847 = vadd.xlane.f32.xlu0 %v6846_v7  ;;  %v17104_v31 = vmax.f32 %v17103_v37, 0.0  ;;  %v6704_v21 = vpop.xlane.xlu0 %6703  ;;  %v17111_v18 = vld [vmem:[#allocation68_spill] sm:$0xff]  ;;  %v14573_v37 = vrot.slane %v14429_v29, %v11075_v14 }
 0x359   : > { %17097 = vst [vmem:[#allocation150_spill] sm:$0xff] %v14532_v43  ;;  %v14541_v11 = vmul.f32 %v5695_v53, %v17101_v5  ;;  %v17106_v53 = vcombine.high %v14048_v12, %v14048_v12  ;;  %v6849_v5 = vsel %vm3018_vm1, %v17107_v41, 0.0  ;;  %v17112_v3 = vmax.f32 %v17111_v18, 0.0  ;;  %v17115_v41 = vld [vmem:[#allocation18_spill] sm:$0xff] }
 0x35a   : > { %v14553_v48 = vmul.f32 %v5715_v62, %v17104_v31  ;;  %v4697_v62 = vcombine.high %v14364_v33, %v14364_v33  ;;  %v7821_v12 = vrot.slane %v6704_v21, %v16757_v45  ;;  %6850 = vadd.xlane.f32.xlu1 %v6849_v5  ;;  %v4599_v33 = vcombine.high %v4583_v10, %v4583_v10  ;;  %v17116_v21 = vld [vmem:[#allocation50_spill] sm:$0xff] }
 0x35b   : > { %17102 = vst [vmem:[#allocation79_spill] sm:$0xff] %v14541_v11  ;;  %v4597_v2 = vrot.slane %v17106_v53, %v11075_v14  ;;  %v17109_v11 = vmax.f32 %v17108_v49, 0.0  ;;  %v14567_v7 = vmul.f32 %v5783_v55, %v17112_v3  ;;  %v4699_v53 = vcombine.high %v4695_v20, %v4695_v20  ;;  %v6707_v49 = vpop.xlane.xlu1 %6706 }
 0x35c   : > { %17105 = vst [vmem:[#allocation230_spill] sm:$0xff] %v14553_v48  ;;  %v6963_v3 = vsel %vm3018_vm1, %v17115_v41, 0.0  ;;  %v5787_v55 = vrot.slane %v4697_v62, %v11196_v40  ;;  %v8567_v29 = vsel %vm8484_vm3, %v7821_v12, %v14420_v38  ;;  %v7825_v18 = vrot.slane %v6707_v49, %v16757_v45 }
 0x35d   : > { %v14563_v43 = vmul.f32 %v5711_v13, %v17109_v11  ;;  %17113 = vst [vmem:[#allocation36_spill] sm:$0xff] %v14567_v7  ;;  %v5719_v31 = vrot.slane %v4597_v2, %v11196_v40  ;;  %v17114_v11 = vld [vmem:[#allocation221_spill] sm:$0xff]  ;;  %v17117_v5 = vmax.f32 %v17116_v21, 0.0  ;;  %v5791_v20 = vrot.slane %v4699_v53, %v11196_v40  ;;  %v17122_v53 = vld [vmem:[#allocation67_spill] sm:$0xff] }
 0x35e   : > { %v6960_v13 = vsel %vm3018_vm1, %v17114_v11, 0.0  ;;  %v17119_v11 = vld [vmem:[#allocation64_spill] sm:$0xff]  ;;  %v5723_v62 = vrot.slane %v4599_v33, %v11196_v40  ;;  %v4601_v10 = vcombine.high %v4597_v2, %v4597_v2  ;;  %v5859_v38 = vrot.slane %v14353_v15, %v11196_v40  ;;  %6964 = vadd.xlane.f32.xlu1 %v6963_v3  ;;  %v17127_v33 = vld [vmem:[#allocation47_spill] sm:$0xff] }
 0x35f   : > { %17110 = vst [vmem:[#allocation181_spill] sm:$0xff] %v14563_v43  ;;  %6961 = vadd.xlane.f32.xlu0 %v6960_v13  ;;  %v14587_v7 = vmul.f32 %v5719_v31, %v17117_v5  ;;  %v6710_v43 = vpop.xlane.xlu0 %6709  ;;  %v17120_v48 = vmax.f32 %v17119_v11, 0.0  ;;  %v14599_v12 = vrot.slane %v14494_v61, %v11075_v14  ;;  %v8568_v31 = vsel %vm8486_vm4, %v7825_v18, %v8567_v29 }
 0x360   : > { %v7829_v49 = vrot.slane %v6710_v43, %v16757_v45  ;;  %v17123_v13 = vmax.f32 %v17122_v53, 0.0  ;;  %v17128_v21 = vmax.f32 %v17127_v33, 0.0  ;;  %v5727_v11 = vrot.slane %v4601_v10, %v11196_v40 }
 0x361   : > { %17118 = vst [vmem:[#allocation183_spill] sm:$0xff] %v14587_v7  ;;  %v14592_v28 = vmul.f32 %v5787_v55, %v17120_v48  ;;  %v14607_v48 = vpop.xlane.xlu1 %6712  ;;  %v17126_v55 = vld [vmem:[#allocation209_spill] sm:$0xff]  ;;  %v17133_v43 = vcombine.high %v14252_v8, %v14252_v8  ;;  %v4862_v8 = vcombine.high %v14494_v61, %v14494_v61  ;;  %v14657_v61 = vrot.slane %v14323_v6, %v11075_v14 }
 0x362   : > { %v14605_v41 = vmul.f32 %v5791_v20, %v17123_v13  ;;  %17125 = vst [vmem:[#allocation74_spill] sm:$0xff] %v14607_v48  ;;  %v6840_v2 = vsel %vm3018_vm1, %v17126_v55, 0.0  ;;  %v14613_v5 = vmul.f32 %v5723_v62, %v17128_v21  ;;  %v17134_v20 = vcombine.high %v14262_v42, %v14262_v42  ;;  %v17138_v13 = vld [vmem:[#allocation204_spill] sm:$0xff]  ;;  %v17139_v42 = vld [vmem:[#allocation49_spill] sm:$0xff] }
 0x363   : > { %17121 = vst [vmem:[#allocation184_spill] sm:$0xff] %v14592_v28  ;;  %v17130_v28 = vld [vmem:[#allocation178_spill] sm:$0xff]  ;;  %v14624_v3 = vrot.slane %v17133_v43, %v11075_v14  ;;  %v14633_v62 = vsel %vm8488_vm5, %v7829_v49, %v8568_v31  ;;  %6841 = vadd.xlane.f32.xlu0 %v6840_v2  ;;  %v6843_v55 = vsel %vm3018_vm1, %v17138_v13, 0.0  ;;  %v17140_v33 = vmax.f32 %v17139_v42, 0.0 }
 0x364   : > { %17124 = vst [vmem:[#allocation153_spill] sm:$0xff] %v14605_v41  ;;  %17129 = vst [vmem:[#allocation215_spill] sm:$0xff] %v14613_v5  ;;  %v17131_v29 = vmax.f32 %v17130_v28, 0.0  ;;  %v14630_v53 = vrot.slane %v17134_v20, %v11075_v14  ;;  %v17136_v28 = vcombine.high %v14221_v46, %v14221_v46  ;;  %v5795_v31 = vrot.slane %v14573_v37, %v11196_v40  ;;  %v17144_v20 = vld [vmem:[#allocation71_spill] sm:$0xff] }
 0x365   : > { %17135 = vst [vmem:[#allocation77_spill] sm:$0xff] %v14633_v62  ;;  %v14647_v21 = vmul.f32 %v5727_v11, %v17140_v33  ;;  %v14652_v49 = vrot.slane %v4749_v58, %v11075_v14  ;;  %6844 = vadd.xlane.f32.xlu1 %v6843_v55  ;;  %v4843_v2 = vcombine.high %v14353_v15, %v14353_v15  ;;  %v17143_v11 = vld [vmem:[#allocation206_spill] sm:$0xff] }
 0x366   : > { %v14618_v18 = vmul.f32 %v5859_v38, %v17131_v29  ;;  %v4835_v10 = vrot.slane %v17136_v28, %v11075_v14  ;;  %v14641_v38 = vpop.xlane.xlu0 %6643  ;;  %v14661_v29 = vpop.xlane.xlu1 %6646  ;;  %v6912_v43 = vsel %vm3018_vm1, %v17143_v11, 0.0  ;;  %v17145_v28 = vmax.f32 %v17144_v20, 0.0  ;;  %v17147_v15 = vld [vmem:[#allocation182_spill] sm:$0xff] }
 0x367   : > { %17137 = vst [vmem:[#allocation213_spill] sm:$0xff] %v14641_v38  ;;  %17141 = vst [vmem:[#allocation81_spill] sm:$0xff] %v14647_v21  ;;  %v14670_v58 = vrot.slane %v4715_v22, %v11075_v14  ;;  %v5891_v55 = vrot.slane %v14599_v12, %v11196_v40  ;;  %v14676_v42 = vrot.slane %v14549_v27, %v11075_v14  ;;  %6913 = vadd.xlane.f32.xlu0 %v6912_v43  ;;  %v17150_v22 = vld [vmem:[#allocation133_spill] sm:$0xff] }
 0x368   : > { %17132 = vst [vmem:[#allocation211_spill] sm:$0xff] %v14618_v18  ;;  %v5863_v46 = vrot.slane %v4835_v10, %v11196_v40  ;;  %17142 = vst [vmem:[#allocation75_spill] sm:$0xff] %v14661_v29  ;;  %v14667_v13 = vmul.f32 %v5795_v31, %v17145_v28  ;;  %v17148_v33 = vmax.f32 %v17147_v15, 0.0  ;;  %v5875_v11 = vrot.slane %v14657_v61, %v11196_v40  ;;  %v17151_v29 = vld [vmem:[#allocation137_spill] sm:$0xff]  ;;  %v17157_v18 = vld [vmem:[#allocation175_spill] sm:$0xff] }
 0x369   : > { %v5867_v31 = vrot.slane %v4843_v2, %v11196_v40  ;;  %v6915_v28 = vsel %vm3018_vm1, %v17150_v22, 0.0  ;;  %v5799_v48 = vrot.slane %v14670_v58, %v11196_v40  ;;  %v17152_v38 = vmax.f32 %v17151_v29, 0.0  ;;  %v17154_v43 = vld [vmem:[#allocation33_spill] sm:$0xff]  ;;  %v17159_v29 = vld [vmem:[#allocation16_spill] sm:$0xff] }
 0x36a   : > { %17146 = vst [vmem:[#allocation80_spill] sm:$0xff] %v14667_v13  ;;  %v14680_v62 = vmul.f32 %v5863_v46, %v17148_v33  ;;  %v6656_v20 = vpop.xlane.xlu0 %6655  ;;  %v14695_v46 = vrot.slane %v14624_v3, %v11075_v14  ;;  %v7465_v15 = vrot.slane %v17154_v43, %v16757_v45  ;;  %6916 = vadd.xlane.f32.xlu1 %v6915_v28  ;;  %v17155_v33 = vld [vmem:[#allocation130_spill] sm:$0xff]  ;;  %v17158_v21 = vmax.f32 %v17157_v18, 0.0  ;;  %v17162_v18 = vld [vmem:[#allocation160_spill] sm:$0xff] }
 0x36b   : > { %v14691_v13 = vmul.f32 %v5891_v55, %v17152_v38  ;;  %v7757_v2 = vrot.slane %v6656_v20, %v16757_v45  ;;  %v6659_v38 = vpop.xlane.xlu1 %6658  ;;  %v6966_v55 = vsel %vm3018_vm1, %v17159_v29, 0.0  ;;  %v4745_v28 = vcombine.high %v14573_v37, %v14573_v37 }
 0x36c   : > { %17149 = vst [vmem:[#allocation226_spill] sm:$0xff] %v14680_v62  ;;  %v17156_v62 = vmax.f32 %v17155_v33, 0.0  ;;  %v14706_v5 = vmul.f32 %v5867_v31, %v17158_v21  ;;  %v5811_v20 = vrot.slane %v14695_v46, %v11196_v40  ;;  %v7461_v21 = vrot.slane %v17162_v18, %v16757_v45  ;;  %6967 = vadd.xlane.f32.xlu0 %v6966_v55  ;;  %v17165_v55 = vld [vmem:[#allocation70_spill] sm:$0xff] }
 0x36d   : > { %17153 = vst [vmem:[#allocation84_spill] sm:$0xff] %v14691_v13  ;;  %v17160_v13 = vld [vmem:[#allocation73_spill] sm:$0xff]  ;;  %v7761_v31 = vrot.slane %v6659_v38, %v16757_v45  ;;  %v5803_v37 = vrot.slane %v4745_v28, %v11196_v40  ;;  %v17167_v28 = vld [vmem:[#allocation163_spill] sm:$0xff] }
 0x36e   : > { %v14702_v22 = vmul.f32 %v5875_v11, %v17156_v62  ;;  %v17161_v41 = vmax.f32 %v17160_v13, 0.0  ;;  %v4764_v62 = vcombine.high %v14549_v27, %v14549_v27  ;;  %v8553_v11 = vsel %vm8484_vm3, %v7757_v2, %v14528_v35  ;;  %v17163_v13 = vld [vmem:[#allocation78_spill] sm:$0xff] }
 0x36f   : > { %v17164_v43 = vmax.f32 %v17163_v13, 0.0  ;;  %v4845_v27 = vcombine.high %v4835_v10, %v4835_v10  ;;  %v8483_v29 = vsel %vm8482_vm2, %v7465_v15, %v7461_v21  ;;  %v8554_v18 = vsel %vm8486_vm4, %v7761_v31, %v8553_v11  ;;  %v14737_v38 = vpop.xlane.xlu1 %6664  ;;  %v17168_v31 = vld [vmem:[#allocation157_spill] sm:$0xff] }
 0x370   : > { %v14712_v7 = vmul.f32 %v5799_v48, %v17161_v41  ;;  %v6662_v41 = vpop.xlane.xlu0 %6661  ;;  %v6969_v48 = vsel %vm3018_vm1, %v13942_v60, 0.0  ;;  %v5827_v2 = vrot.slane %v14676_v42, %v11196_v40  ;;  %v6972_v60 = vsel %vm3018_vm1, %v13946_v51, 0.0 }
 0x371   : > { %v14729_v33 = vmul.f32 %v5811_v20, %v17164_v43  ;;  %v7765_v35 = vrot.slane %v6662_v41, %v16757_v45  ;;  %6970 = vadd.xlane.f32.xlu1 %v6969_v48  ;;  %v17166_v20 = vmax.f32 %v17165_v55, 0.0  ;;  %v5871_v10 = vrot.slane %v4845_v27, %v11196_v40  ;;  %6973 = vadd.xlane.f32.xlu0 %v6972_v60 }
 0x372   : > { %v14747_v15 = vrot.slane %v4862_v8, %v11075_v14  ;;  %v7469_v21 = vrot.slane %v17167_v28, %v16757_v45  ;;  %v17169_v41 = vmax.f32 %v17168_v31, 0.0  ;;  %v4892_v51 = vcombine.high %v14599_v12, %v14599_v12  ;;  %v17176_v31 = vld [vmem:[#allocation205_spill] sm:$0xff] }
 0x373   : > { %v14743_v13 = vmul.f32 %v5803_v37, %v17166_v20  ;;  %v14752_v11 = vsel %vm8488_vm5, %v7765_v35, %v8554_v18  ;;  %v6975_v8 = vsel %vm3018_vm1, %v13957_v16, 0.0  ;;  %v17171_v37 = vld [vmem:[#allocation179_spill] sm:$0xff]  ;;  %v14772_v35 = vrot.slane %v14630_v53, %v11075_v14  ;;  %v14784_v28 = vpop.xlane.xlu1 %6718 }
 0x374   : > { %v14756_v48 = vmul.f32 %v5827_v2, %v17169_v41  ;;  %v14760_v43 = vpop.xlane.xlu0 %6715  ;;  %v17172_v27 = vmax.f32 %v17171_v37, 0.0  ;;  %v5895_v18 = vrot.slane %v14747_v15, %v11196_v40  ;;  %v17173_v2 = vld [vmem:[#allocation27_spill] sm:$0xff]  ;;  %v8485_v12 = vsel %vm8484_vm3, %v7469_v21, %v8483_v29  ;;  %17175 = vst [vmem:[#allocation88_spill] sm:$0xff] %v14784_v28  ;;  %v17177_v37 = vld [vmem:[#allocation141_spill] sm:$0xff] }
 0x375   : > { %v7473_v60 = vrot.slane %v17173_v2, %v16757_v45  ;;  %6976 = vadd.xlane.f32.xlu1 %v6975_v8  ;;  %v5899_v20 = vrot.slane %v4892_v51, %v11196_v40  ;;  %v17174_v16 = vcombine.high %v14323_v6, %v14323_v6  ;;  %v6984_v41 = vsel %vm3018_vm1, %v17176_v31, 0.0  ;;  %v17180_v51 = vld [vmem:[#allocation135_spill] sm:$0xff] }
 0x376   : > { %17170 = vst [vmem:[#allocation86_spill] sm:$0xff] %v14756_v48  ;;  %v14766_v55 = vmul.f32 %v5871_v10, %v17172_v27  ;;  %v17178_v27 = vmax.f32 %v17177_v37, 0.0  ;;  %v5907_v29 = vrot.slane %v14772_v35, %v11196_v40  ;;  %v4747_v21 = vcombine.high %v14670_v58, %v14670_v58  ;;  %6985 = vadd.xlane.f32.xlu0 %v6984_v41  ;;  %v17183_v58 = vld [vmem:[#allocation143_spill] sm:$0xff] }
 0x377   : > { %v14782_v10 = vrot.slane %v17174_v16, %v11075_v14  ;;  %v4716_v6 = vcombine.high %v14624_v3, %v14624_v3  ;;  %v17181_v8 = vmax.f32 %v17180_v51, 0.0  ;;  %v6987_v37 = vsel %vm3018_vm1, %v13965_v34, 0.0  ;;  %v17186_v51 = vld [vmem:[#allocation171_spill] sm:$0xff] }
 0x378   : > { %v14790_v48 = vmul.f32 %v5895_v18, %v17178_v27  ;;  %v4844_v18 = vcombine.high %v14657_v61, %v14657_v61  ;;  %v14806_v31 = vpop.xlane.xlu0 %6667  ;;  %v17184_v27 = vmax.f32 %v17183_v58, 0.0  ;;  %v5807_v3 = vrot.slane %v4747_v21, %v11196_v40  ;;  %v17187_v61 = vld [vmem:[#allocation132_spill] sm:$0xff]  ;;  %v14826_v58 = vpop.xlane.xlu1 %6670 }
 0x379   : > { %v14800_v2 = vmul.f32 %v5899_v20, %v17181_v8  ;;  %v5879_v16 = vrot.slane %v14782_v10, %v11196_v40  ;;  %v14816_v20 = vrot.slane %v4764_v62, %v11075_v14  ;;  %v8487_v41 = vsel %vm8486_vm4, %v7473_v60, %v8485_v12  ;;  %6988 = vadd.xlane.f32.xlu1 %v6987_v37 }
 0x37a   : > { %17179 = vst [vmem:[#allocation38_spill] sm:$0xff] %v14790_v48  ;;  %v14812_v48 = vmul.f32 %v5907_v29, %v17184_v27  ;;  %v7477_v8 = vrot.slane %v17186_v51, %v16757_v45  ;;  %v5883_v34 = vrot.slane %v4844_v18, %v11196_v40  ;;  %v17190_v29 = vld [vmem:[#allocation15_spill] sm:$0xff]  ;;  %v17191_v27 = vld [vmem:[#allocation72_spill] sm:$0xff]  ;;  %v4794_v12 = vcombine.high %v14676_v42, %v14676_v42 }
 0x37b   : > { %17182 = vst [vmem:[#allocation90_spill] sm:$0xff] %v14800_v2  ;;  %v17188_v2 = vmax.f32 %v17187_v61, 0.0  ;;  %v6918_v21 = vsel %vm3018_vm1, %v17190_v29, 0.0  ;;  %v17192_v62 = vmax.f32 %v17191_v27, 0.0  ;;  %v5831_v60 = vrot.slane %v14816_v20, %v11196_v40  ;;  %v17194_v18 = vld [vmem:[#allocation187_spill] sm:$0xff] }
 0x37c   : > { %17185 = vst [vmem:[#allocation223_spill] sm:$0xff] %v14812_v48  ;;  %6919 = vadd.xlane.f32.xlu0 %v6918_v21  ;;  %v17195_v37 = vmax.f32 %v17194_v18, 0.0  ;;  %v6770_v61 = vpop.xlane.xlu0 %6769  ;;  %v6921_v29 = vsel %vm3018_vm1, %v14017_v17, 0.0  ;;  %v17197_v42 = vld [vmem:[#allocation159_spill] sm:$0xff]  ;;  %v4744_v21 = vrot.slane %v4716_v6, %v11075_v14  ;;  %v14859_v18 = vsel %vm8488_vm5, %v7477_v8, %v8487_v41  ;;  %v17203_v8 = vld [vmem:[#allocation169_spill] sm:$0xff] }
 0x37d   : > { %v14823_v28 = vmul.f32 %v5879_v16, %v17188_v2  ;;  %v14832_v48 = vmul.f32 %v5807_v3, %v17192_v62  ;;  %v4863_v2 = vcombine.high %v14630_v53, %v14630_v53  ;;  %v4765_v16 = vcombine.high %v14652_v49, %v14652_v49  ;;  %6922 = vadd.xlane.f32.xlu1 %v6921_v29 }
 0x37e   : > { %v14844_v51 = vmul.f32 %v5883_v34, %v17195_v37  ;;  %v14848_v3 = vrot.slane %v14652_v49, %v11075_v14  ;;  %v17198_v27 = vmax.f32 %v17197_v42, 0.0  ;;  %v5835_v53 = vrot.slane %v4794_v12, %v11196_v40  ;;  %v6773_v37 = vpop.xlane.xlu1 %6772  ;;  %v17200_v42 = vld [vmem:[#allocation156_spill] sm:$0xff] }
 0x37f   : > { %17189 = vst [vmem:[#allocation83_spill] sm:$0xff] %v14823_v28  ;;  %17193 = vst [vmem:[#allocation85_spill] sm:$0xff] %v14832_v48  ;;  %v6924_v49 = vsel %vm3018_vm1, %v14031_v4, 0.0  ;;  %v4894_v17 = vcombine.high %v14747_v15, %v14747_v15  ;;  %v17201_v12 = vmax.f32 %v17200_v42, 0.0  ;;  %v5815_v6 = vrot.slane %v4744_v21, %v11196_v40  ;;  %v17206_v42 = vld [vmem:[#allocation224_spill] sm:$0xff] }
 0x380   : > { %17196 = vst [vmem:[#allocation87_spill] sm:$0xff] %v14844_v51  ;;  %v14854_v62 = vmul.f32 %v5831_v60, %v17198_v27  ;;  %v5843_v34 = vrot.slane %v14848_v3, %v11196_v40  ;;  %v7909_v60 = vrot.slane %v6770_v61, %v16757_v45  ;;  %v4746_v41 = vcombine.high %v14695_v46, %v14695_v46  ;;  %v6722_v51 = vpop.xlane.xlu0 %6721 }
 0x381   : > { %v14870_v27 = vmul.f32 %v5835_v53, %v17201_v12  ;;  %v7913_v4 = vrot.slane %v6773_v37, %v16757_v45  ;;  %6925 = vadd.xlane.f32.xlu0 %v6924_v49  ;;  %v17204_v29 = vmax.f32 %v17203_v8, 0.0  ;;  %v5903_v15 = vrot.slane %v4894_v17, %v11196_v40  ;;  %v17207_v12 = vld [vmem:[#allocation82_spill] sm:$0xff]  ;;  %v17211_v17 = vld [vmem:[#allocation192_spill] sm:$0xff] }
 0x382   : > { %17199 = vst [vmem:[#allocation89_spill] sm:$0xff] %v14854_v62  ;;  %v4891_v61 = vrot.slane %v4863_v2, %v11075_v14  ;;  %v6927_v53 = vsel %vm3018_vm1, %v17206_v42, 0.0  ;;  %v5819_v46 = vrot.slane %v4746_v41, %v11196_v40  ;;  %v4846_v49 = vcombine.high %v14782_v10, %v14782_v10 }
 0x383   : > { %17202 = vst [vmem:[#allocation92_spill] sm:$0xff] %v14870_v27  ;;  %v14878_v62 = vmul.f32 %v5843_v34, %v17204_v29  ;;  %v17208_v27 = vmax.f32 %v17207_v12, 0.0  ;;  %v17210_v34 = vld [vmem:[#allocation176_spill] sm:$0xff]  ;;  %v8587_v2 = vsel %vm8482_vm2, %v7913_v4, %v7909_v60  ;;  %6928 = vadd.xlane.f32.xlu1 %v6927_v53  ;;  %v17212_v29 = vld [vmem:[#allocation139_spill] sm:$0xff]  ;;  %v7845_v8 = vrot.slane %v6722_v51, %v16757_v45 }
 0x384   : > { %v7481_v37 = vrot.slane %v17210_v34, %v16757_v45  ;;  %v17213_v42 = vmax.f32 %v17212_v29, 0.0  ;;  %v17216_v12 = vld [vmem:[#allocation76_spill] sm:$0xff]  ;;  %v5911_v34 = vrot.slane %v4891_v61, %v11196_v40  ;;  %v5887_v28 = vrot.slane %v4846_v49, %v11196_v40  ;;  %v6776_v53 = vpop.xlane.xlu0 %6775  ;;  %v17219_v29 = vld [vmem:[#allocation30_spill] sm:$0xff]  ;;  %v17223_v49 = vld [vmem:[#allocation131_spill] sm:$0xff] }
 0x385   : > { %17205 = vst [vmem:[#allocation94_spill] sm:$0xff] %v14878_v62  ;;  %v14886_v48 = vmul.f32 %v5815_v6, %v17208_v27  ;;  %v6725_v27 = vpop.xlane.xlu1 %6724  ;;  %v17215_v6 = vld [vmem:[#allocation17_spill] sm:$0xff]  ;;  %v4796_v4 = vcombine.high %v14816_v20, %v14816_v20  ;;  %v7917_v20 = vrot.slane %v6776_v53, %v16757_v45  ;;  %v17228_v53 = vld [vmem:[#allocation158_spill] sm:$0xff] }
 0x386   : > { %v14898_v62 = vmul.f32 %v5903_v15, %v17213_v42  ;;  %v6936_v41 = vsel %vm3018_vm1, %v17215_v6, 0.0  ;;  %v7849_v60 = vrot.slane %v6725_v27, %v16757_v45  ;;  %v4893_v15 = vcombine.high %v14772_v35, %v14772_v35 }
 0x387   : > { %17209 = vst [vmem:[#allocation91_spill] sm:$0xff] %v14886_v48  ;;  %v17217_v48 = vmax.f32 %v17216_v12, 0.0  ;;  %6937 = vadd.xlane.f32.xlu0 %v6936_v41  ;;  %v17224_v12 = vmax.f32 %v17223_v49, 0.0  ;;  %v4748_v27 = vcombine.high %v4744_v21, %v4744_v21  ;;  %v5839_v35 = vrot.slane %v4796_v4, %v11196_v40 }
 0x388   : > { %17214 = vst [vmem:[#allocation93_spill] sm:$0xff] %v14898_v62  ;;  %v8573_v41 = vsel %vm8482_vm2, %v7849_v60, %v7845_v8  ;;  %v4793_v21 = vrot.slane %v4765_v16, %v11075_v14  ;;  %v8588_v8 = vsel %vm8484_vm3, %v7917_v20, %v8587_v2  ;;  %v17229_v4 = vmax.f32 %v17228_v53, 0.0  ;;  %v17234_v2 = vld [vmem:[#allocation125_spill] sm:$0xff]  ;;  %v17235_v20 = vld [vmem:[#allocation194_spill] sm:$0xff] }
 0x389   : > { %v14904_v10 = vmul.f32 %v5819_v46, %v17217_v48  ;;  %v6939_v48 = vsel %vm3018_vm1, %v17219_v29, 0.0  ;;  %v17220_v46 = vld [vmem:[#allocation118_spill] sm:$0xff]  ;;  %v14922_v51 = vmul.f32 %v5887_v28, %v17224_v12  ;;  %v6779_v62 = vpop.xlane.xlu1 %6778  ;;  %v17226_v29 = vld [vmem:[#allocation225_spill] sm:$0xff]  ;;  %v5823_v28 = vrot.slane %v4748_v27, %v11196_v40 }
 0x38a   : > { %v17221_v42 = vmax.f32 %v17220_v46, 0.0  ;;  %6940 = vadd.xlane.f32.xlu1 %v6939_v48  ;;  %v6978_v46 = vsel %vm3018_vm1, %v17226_v29, 0.0  ;;  %v7921_v60 = vrot.slane %v6779_v62, %v16757_v45  ;;  %v14938_v48 = vmul.f32 %v5839_v35, %v17229_v4  ;;  %v6782_v29 = vpop.xlane.xlu0 %6781 }
 0x38b   : > { %17218 = vst [vmem:[#allocation112_spill] sm:$0xff] %v14904_v10  ;;  %17225 = vst [vmem:[#allocation186_spill] sm:$0xff] %v14922_v51  ;;  %v5915_v10 = vrot.slane %v4893_v15, %v11196_v40  ;;  %6979 = vadd.xlane.f32.xlu0 %v6978_v46  ;;  %v17230_v15 = vld [vmem:[#allocation142_spill] sm:$0xff]  ;;  %v5847_v14 = vrot.slane %v4793_v21, %v11196_v40  ;;  %v4895_v16 = vcombine.high %v4891_v61, %v4891_v61 }
 0x38c   : > { %v14918_v6 = vmul.f32 %v5911_v34, %v17221_v42  ;;  %v17227_v34 = vld [vmem:[#allocation227_spill] sm:$0xff]  ;;  %v17231_v49 = vmax.f32 %v17230_v15, 0.0  ;;  %v17232_v51 = vld [vmem:[#allocation154_spill] sm:$0xff]  ;;  %v4795_v62 = vcombine.high %v14848_v3, %v14848_v3  ;;  %v7485_v27 = vrot.slane %v17234_v2, %v16757_v45 }
 0x38d   : > { %v6981_v42 = vsel %vm3018_vm1, %v17227_v34, 0.0  ;;  %v17233_v34 = vmax.f32 %v17232_v51, 0.0  ;;  %v7489_v35 = vrot.slane %v17235_v20, %v16757_v45  ;;  %v7925_v46 = vrot.slane %v6782_v29, %v16757_v45  ;;  %v14957_v51 = vpop.xlane.xlu1 %6784  ;;  %v17236_v61 = vld [vmem:[#allocation170_spill] sm:$0xff]  ;;  %v17238_v29 = vld [vmem:[#allocation144_spill] sm:$0xff] }
 0x38e   : > { %17222 = vst [vmem:[#allocation96_spill] sm:$0xff] %v14918_v6  ;;  %v14942_v12 = vmul.f32 %v5915_v10, %v17231_v49  ;;  %v8589_v10 = vsel %vm8486_vm4, %v7921_v60, %v8588_v8  ;;  %6982 = vadd.xlane.f32.xlu1 %v6981_v42  ;;  %v17237_v53 = vmax.f32 %v17236_v61, 0.0  ;;  %v5919_v3 = vrot.slane %v4895_v16, %v11196_v40  ;;  %v6794_v60 = vpop.xlane.xlu0 %6793  ;;  %v17243_v61 = vld [vmem:[#allocation191_spill] sm:$0xff] }
 0x38f   : > { %v14946_v6 = vmul.f32 %v5823_v28, %v17233_v34  ;;  %v6990_v28 = vsel %vm3018_vm1, %v14101_v9, 0.0  ;;  %v5851_v15 = vrot.slane %v4795_v62, %v11196_v40  ;;  %v14968_v49 = vsel %vm8488_vm5, %v7925_v46, %v8589_v10  ;;  %v17242_v62 = vld [vmem:[#allocation172_spill] sm:$0xff] }
 0x390   : > { %v14963_v4 = vmul.f32 %v5847_v14, %v17237_v53  ;;  %6991 = vadd.xlane.f32.xlu0 %v6990_v28  ;;  %v6993_v42 = vsel %vm3018_vm1, %v14111_v0, 0.0  ;;  %v4797_v8 = vcombine.high %v4793_v21, %v4793_v21  ;;  %v17239_v9 = vmax.f32 %v17238_v29, 0.0  ;;  %v17240_v14 = vld [vmem:[#allocation166_spill] sm:$0xff]  ;;  %v17245_v29 = vld [vmem:[#allocation203_spill] sm:$0xff] }
 0x391   : > { %v17241_v2 = vmax.f32 %v17240_v14, 0.0  ;;  %v8491_v16 = vsel %vm8490_vm6, %v7481_v37, %v14859_v18  ;;  %v2869_v10 = vmax.f32 %v17242_v62, 0.0  ;;  %v6797_v46 = vpop.xlane.xlu1 %6796  ;;  %v6996_v28 = vsel %vm3018_vm1, %v14115_v25, 0.0 }
 0x392   : > { %v14974_v34 = vmul.f32 %v5919_v3, %v17239_v9  ;;  %6994 = vadd.xlane.f32.xlu1 %v6993_v42  ;;  %v5855_v0 = vrot.slane %v4797_v8, %v11196_v40  ;;  %v8493_v21 = vsel %vm8492_vm7, %v7485_v27, %v8491_v16  ;;  %v17244_v53 = vrot.slane %v17211_v17, %v16757_v45  ;;  %v6728_v27 = vpop.xlane.xlu0 %6727  ;;  %v17246_v16 = vld [vmem:[#allocation148_spill] sm:$0xff] }
 0x393   : > { %v14978_v20 = vmul.f32 %v5851_v15, %v17241_v2  ;;  %v7941_v18 = vrot.slane %v6794_v60, %v16757_v45  ;;  %v7945_v37 = vrot.slane %v6797_v46, %v16757_v45  ;;  %v14997_v40 = vsel %vm8494_vm8, %v7489_v35, %v8493_v21  ;;  %v17247_v21 = vld [vmem:[#allocation7_spill] sm:$0xff] }
 0x394   : > { %v8514_v3 = vsel %vm8490_vm6, %v17244_v53, %v17243_v61  ;;  %6997 = vadd.xlane.f32.xlu0 %v6996_v28  ;;  %v14994_v15 = vmul.f32 %v5855_v0, %v2869_v10  ;;  %v6999_v25 = vsel %vm3018_vm1, %v14119_v39, 0.0  ;;  %v7853_v17 = vrot.slane %v6728_v27, %v16757_v45 }
 0x395   : > { %v8594_v42 = vsel %vm8482_vm2, %v7945_v37, %v7941_v18  ;;  %v6731_v8 = vpop.xlane.xlu1 %6730  ;;  %v6930_v60 = vsel %vm3018_vm1, %v14144_v52, 0.0  ;;  %v7513_v9 = vrot.slane %v17245_v29, %v16757_v45  ;;  %v6933_v39 = vsel %vm3018_vm1, %v14169_v56, 0.0  ;;  %v17248_v56 = vld [vmem:[#allocation28_spill] sm:$0xff] }
 0x396   : > { %7000 = vadd.xlane.f32.xlu1 %v6999_v25  ;;  %v8574_v14 = vsel %vm8484_vm3, %v7853_v17, %v8573_v41  ;;  %v7857_v35 = vrot.slane %v6731_v8, %v16757_v45  ;;  %v6734_v2 = vpop.xlane.xlu0 %6733  ;;  %v7581_v62 = vrot.slane %v17246_v16, %v16757_v45  ;;  %v6942_v41 = vsel %vm3018_vm1, %v14179_v24, 0.0  ;;  %v17249_v37 = vld [vmem:[#allocation200_spill] sm:$0xff]  ;;  %v17250_v8 = vld [vmem:[#allocation218_spill] sm:$0xff] }
 0x397   : > { %v7861_v0 = vrot.slane %v6734_v2, %v16757_v45  ;;  %v7585_v46 = vrot.slane %v17247_v21, %v16757_v45  ;;  %v8500_v61 = vsel %vm8490_vm6, %v7513_v9, %v17248_v56  ;;  %v6945_v18 = vsel %vm3018_vm1, %v14183_v19, 0.0 }
 0x398   : > { %6931 = vadd.xlane.f32.xlu0 %v6930_v60  ;;  %v8575_v10 = vsel %vm8486_vm4, %v7857_v35, %v8574_v14  ;;  %v7517_v27 = vrot.slane %v17249_v37, %v16757_v45  ;;  %v8515_v24 = vsel %vm8492_vm7, %v7581_v62, %v8514_v3  ;;  %v6948_v17 = vsel %vm3018_vm1, %v14193_v23, 0.0 }
 0x399   : > { %v15015_v52 = vpop.xlane.xlu1 %6736  ;;  %v15022_v28 = vsel %vm8488_vm5, %v7861_v0, %v8575_v10  ;;  %v7521_v60 = vrot.slane %v17250_v8, %v16757_v45  ;;  %v15038_v19 = vsel %vm8494_vm8, %v7585_v46, %v8515_v24  ;;  %v6951_v3 = vsel %vm3018_vm1, %v14197_v1, 0.0  ;;  %v17252_v0 = vld [vmem:[#allocation164_spill] sm:$0xff] }
 0x39a   : > { %6934 = vadd.xlane.f32.xlu1 %v6933_v39  ;;  %v6746_v53 = vpop.xlane.xlu0 %6745  ;;  %v8501_v23 = vsel %vm8492_vm7, %v7517_v27, %v8500_v61  ;;  %v17251_v39 = vld [vmem:[#allocation231_spill] sm:$0xff]  ;;  %v6954_v46 = vsel %vm3018_vm1, %v14244_v47, 0.0 }
 0x39b   : > { %v7877_v29 = vrot.slane %v6746_v53, %v16757_v45  ;;  %v7002_v16 = vsel %vm3018_vm1, %v17251_v39, 0.0  ;;  %v15051_v62 = vsel %vm8494_vm8, %v7521_v60, %v8501_v23  ;;  %v17255_v60 = vld [vmem:[#allocation124_spill] sm:$0xff]  ;;  %v17257_v39 = vld [vmem:[#allocation198_spill] sm:$0xff] }
 0x39c   : > { %6943 = vadd.xlane.f32.xlu0 %v6942_v41  ;;  %v7005_v41 = vsel %vm3018_vm1, %v17252_v0, 0.0  ;;  %v17258_v0 = vld [vmem:[#allocation195_spill] sm:$0xff] }
 0x39d   : > { %v6749_v25 = vpop.xlane.xlu1 %6748 }
 0x39e   : > { %6946 = vadd.xlane.f32.xlu1 %v6945_v18  ;;  %v7881_v9 = vrot.slane %v6749_v25, %v16757_v45  ;;  %v15040_v14 = vpop.xlane.xlu0 %6787  ;;  %v17253_v18 = vld [vmem:[#allocation66_spill] sm:$0xff] }
 0x39f   : > { %v6957_v37 = vsel %vm3018_vm1, %v17253_v18, 0.0  ;;  %v17260_v18 = vld [vmem:[#allocation6_spill] sm:$0xff] }
 0x3a0   : > { %6949 = vadd.xlane.f32.xlu0 %v6948_v17  ;;  %v8580_v35 = vsel %vm8482_vm2, %v7881_v9, %v7877_v29  ;;  %v17254_v17 = vld [vmem:[#allocation121_spill] sm:$0xff]  ;;  %v6861_v29 = vsel %vm3018_vm1, %v17255_v60, 0.0 }
 0x3a1   : > { %v15046_v2 = vpop.xlane.xlu1 %6790  ;;  %v6858_v8 = vsel %vm3018_vm1, %v17254_v17, 0.0 }
 0x3a2   : > { %6952 = vadd.xlane.f32.xlu1 %v6951_v3  ;;  %v6800_v10 = vpop.xlane.xlu0 %6799  ;;  %v17256_v3 = vld [vmem:[#allocation185_spill] sm:$0xff] }
 0x3a3   : > { %v7949_v1 = vrot.slane %v6800_v10, %v16757_v45  ;;  %v7056_v23 = vsel %vm3018_vm1, %v17256_v3, 0.0  ;;  %v17262_v3 = vld [vmem:[#allocation197_spill] sm:$0xff] }
 0x3a4   : > { %7003 = vadd.xlane.f32.xlu0 %v7002_v16  ;;  %v7673_v16 = vrot.slane %v17257_v39, %v16757_v45 }
 0x3a5   : > { %v6803_v21 = vpop.xlane.xlu1 %6802  ;;  %v8595_v56 = vsel %vm8484_vm3, %v7949_v1, %v8594_v42 }
 0x3a6   : > { %7006 = vadd.xlane.f32.xlu1 %v7005_v41  ;;  %v7953_v61 = vrot.slane %v6803_v21, %v16757_v45  ;;  %v6806_v53 = vpop.xlane.xlu0 %6805  ;;  %v7059_v41 = vsel %vm3018_vm1, %v17258_v0, 0.0  ;;  %v7062_v0 = vsel %vm3018_vm1, %v14316_v57, 0.0 }
 0x3a7   : > { %v7957_v24 = vrot.slane %v6806_v53, %v16757_v45 }
 0x3a8   : > { %6955 = vadd.xlane.f32.xlu0 %v6954_v46  ;;  %v8596_v27 = vsel %vm8486_vm4, %v7953_v61, %v8595_v56  ;;  %v17259_v46 = vld [vmem:[#allocation210_spill] sm:$0xff] }
 0x3a9   : > { %v15064_v25 = vpop.xlane.xlu1 %6808  ;;  %v15069_v47 = vsel %vm8488_vm5, %v7957_v24, %v8596_v27  ;;  %v6852_v56 = vsel %vm3018_vm1, %v17259_v46, 0.0  ;;  %v17261_v24 = vld [vmem:[#allocation220_spill] sm:$0xff]  ;;  %v7065_v46 = vsel %vm3018_vm1, %v14329_v50, 0.0 }
 0x3aa   : > { %6958 = vadd.xlane.f32.xlu1 %v6957_v37  ;;  %v15071_v42 = vpop.xlane.xlu0 %6739  ;;  %v8535_v37 = vsel %vm8490_vm6, %v7673_v16, %v17260_v18  ;;  %v6855_v17 = vsel %vm3018_vm1, %v17261_v24, 0.0  ;;  %v7011_v16 = vsel %vm3018_vm1, %v14299_v44, 0.0  ;;  %v7080_v44 = vsel %vm3018_vm1, %v14304_v26, 0.0  ;;  %v17265_v18 = vld [vmem:[#allocation151_spill] sm:$0xff]  ;;  %v17266_v24 = vld [vmem:[#allocation14_spill] sm:$0xff]  ;;  %v17267_v50 = vld [vmem:[#allocation8_spill] sm:$0xff] }
 0x3ac   : > { %6859 = vadd.xlane.f32.xlu0 %v6858_v8 }
 0x3ad   : > { %v15075_v9 = vpop.xlane.xlu1 %6742 }
 0x3ae   : > { %6862 = vadd.xlane.f32.xlu1 %v6861_v29  ;;  %v6752_v10 = vpop.xlane.xlu0 %6751 }
 0x3af   : > { %v7885_v1 = vrot.slane %v6752_v10, %v16757_v45 }
 0x3b0   : > { %7057 = vadd.xlane.f32.xlu0 %v7056_v23 }
 0x3b1   : > { %v6755_v21 = vpop.xlane.xlu1 %6754  ;;  %v8581_v61 = vsel %vm8484_vm3, %v7885_v1, %v8580_v35  ;;  %v7008_v35 = vsel %vm3018_vm1, %v17262_v3, 0.0  ;;  %v17268_v3 = vld [vmem:[#allocation222_spill] sm:$0xff] }
 0x3b2   : > { %7060 = vadd.xlane.f32.xlu1 %v7059_v41  ;;  %v7889_v53 = vrot.slane %v6755_v21, %v16757_v45  ;;  %v6758_v27 = vpop.xlane.xlu0 %6757  ;;  %v17263_v41 = vld [vmem:[#allocation39_spill] sm:$0xff] }
 0x3b3   : > { %v7893_v60 = vrot.slane %v6758_v27, %v16757_v45  ;;  %v7609_v1 = vrot.slane %v17263_v41, %v16757_v45  ;;  %v7083_v27 = vsel %vm3018_vm1, %v17265_v18, 0.0  ;;  %v7086_v41 = vsel %vm3018_vm1, %v14381_v30, 0.0 }
 0x3b4   : > { %6853 = vadd.xlane.f32.xlu0 %v6852_v56  ;;  %v8582_v8 = vsel %vm8486_vm4, %v7889_v53, %v8581_v61  ;;  %v17264_v61 = vld [vmem:[#allocation40_spill] sm:$0xff] }
 0x3b5   : > { %v15094_v29 = vpop.xlane.xlu1 %6760  ;;  %v15099_v23 = vsel %vm8488_vm5, %v7893_v60, %v8582_v8  ;;  %v8521_v53 = vsel %vm8490_vm6, %v7609_v1, %v17264_v61  ;;  %v7068_v60 = vsel %vm3018_vm1, %v17267_v50, 0.0  ;;  %v7014_v61 = vsel %vm3018_vm1, %v14385_v36, 0.0 }
 0x3b6   : > { %6856 = vadd.xlane.f32.xlu1 %v6855_v17  ;;  %v15101_v39 = vpop.xlane.xlu0 %6811  ;;  %v7677_v17 = vrot.slane %v17266_v24, %v16757_v45  ;;  %v7020_v36 = vsel %vm3018_vm1, %v14411_v54, 0.0 }
 0x3b8   : > { %7009 = vadd.xlane.f32.xlu0 %v7008_v35  ;;  %v7681_v35 = vrot.slane %v17268_v3, %v16757_v45 }
 0x3b9   : > { %v15105_v10 = vpop.xlane.xlu1 %6814 }
 0x3ba   : > { %7012 = vadd.xlane.f32.xlu1 %v7011_v16  ;;  %v15111_v21 = vpop.xlane.xlu0 %6763 }
 0x3bc   : > { %7063 = vadd.xlane.f32.xlu0 %v7062_v0 }
 0x3bd   : > { %v15115_v56 = vpop.xlane.xlu1 %6766 }
 0x3be   : > { %7066 = vadd.xlane.f32.xlu1 %v7065_v46  ;;  %v6866_v57 = vpop.xlane.xlu0 %6865  ;;  %v8536_v46 = vsel %vm8492_vm7, %v7677_v17, %v8535_v37 }
 0x3bf   : > { %v8037_v26 = vrot.slane %v6866_v57, %v16757_v45 }
 0x3c0   : > { %7081 = vadd.xlane.f32.xlu0 %v7080_v44 }
 0x3c1   : > { %v6869_v8 = vpop.xlane.xlu1 %6868 }
 0x3c2   : > { %7084 = vadd.xlane.f32.xlu1 %v7083_v27  ;;  %v8041_v16 = vrot.slane %v6869_v8, %v16757_v45  ;;  %v6818_v0 = vpop.xlane.xlu0 %6817  ;;  %v15140_v27 = vsel %vm8494_vm8, %v7681_v35, %v8536_v46  ;;  %v17269_v8 = vld [vmem:[#allocation214_spill] sm:$0xff] }
 0x3c3   : > { %v7973_v18 = vrot.slane %v6818_v0, %v16757_v45  ;;  %v7092_v30 = vsel %vm3018_vm1, %v17269_v8, 0.0  ;;  %v7017_v0 = vsel %vm3018_vm1, %v14425_v63, 0.0  ;;  %v17274_v63 = vld [vmem:[#allocation212_spill] sm:$0xff] }
 0x3c4   : > { %7069 = vadd.xlane.f32.xlu0 %v7068_v60  ;;  %v8615_v1 = vsel %vm8482_vm2, %v8041_v16, %v8037_v26  ;;  %v17270_v60 = vld [vmem:[#allocation65_spill] sm:$0xff] }
 0x3c5   : > { %v6821_v44 = vpop.xlane.xlu1 %6820  ;;  %v7705_v3 = vrot.slane %v17270_v60, %v16757_v45 }
 0x3c6   : > { %7087 = vadd.xlane.f32.xlu1 %v7086_v41  ;;  %v7977_v57 = vrot.slane %v6821_v44, %v16757_v45  ;;  %v6872_v24 = vpop.xlane.xlu0 %6871  ;;  %v17271_v41 = vld [vmem:[#allocation69_spill] sm:$0xff] }
 0x3c7   : > { %v8045_v37 = vrot.slane %v6872_v24, %v16757_v45  ;;  %v7613_v46 = vrot.slane %v17271_v41, %v16757_v45 }
 0x3c8   : > { %7015 = vadd.xlane.f32.xlu0 %v7014_v61  ;;  %v8601_v50 = vsel %vm8482_vm2, %v7977_v57, %v7973_v18  ;;  %v17272_v18 = vld [vmem:[#allocation22_spill] sm:$0xff]  ;;  %v17273_v57 = vld [vmem:[#allocation152_spill] sm:$0xff] }
 0x3c9   : > { %v6875_v17 = vpop.xlane.xlu1 %6874  ;;  %v8616_v26 = vsel %vm8484_vm3, %v8045_v37, %v8615_v1  ;;  %v7032_v1 = vsel %vm3018_vm1, %v17272_v18, 0.0  ;;  %v7617_v24 = vrot.slane %v17273_v57, %v16757_v45  ;;  %v8522_v60 = vsel %vm8492_vm7, %v7613_v46, %v8521_v53  ;;  %v17277_v57 = vld [vmem:[#allocation208_spill] sm:$0xff] }
 0x3ca   : > { %7093 = vadd.xlane.f32.xlu1 %v7092_v30  ;;  %v8049_v35 = vrot.slane %v6875_v17, %v16757_v45  ;;  %v6878_v16 = vpop.xlane.xlu0 %6877  ;;  %v8542_v30 = vsel %vm8490_vm6, %v7705_v3, %v17274_v63  ;;  %v17275_v17 = vld [vmem:[#allocation217_spill] sm:$0xff]  ;;  %v7641_v63 = vrot.slane %v17277_v57, %v16757_v45  ;;  %v17283_v57 = vld [vmem:[#allocation140_spill] sm:$0xff] }
 0x3cb   : > { %v8053_v61 = vrot.slane %v6878_v16, %v16757_v45 }
 0x3cc   : > { %7021 = vadd.xlane.f32.xlu0 %v7020_v36  ;;  %v8617_v44 = vsel %vm8486_vm4, %v8049_v35, %v8616_v26  ;;  %v7023_v36 = vsel %vm3018_vm1, %v17275_v17, 0.0  ;;  %v17276_v35 = vld [vmem:[#allocation165_spill] sm:$0xff] }
 0x3cd   : > { %v15158_v54 = vpop.xlane.xlu1 %6880  ;;  %v15165_v8 = vsel %vm8488_vm5, %v8053_v61, %v8617_v44  ;;  %v7071_v16 = vsel %vm3018_vm1, %v17276_v35, 0.0  ;;  %v15177_v44 = vsel %vm8494_vm8, %v7617_v24, %v8522_v60  ;;  %v7035_v61 = vsel %vm3018_vm1, %v14477_v32, 0.0  ;;  %v17279_v60 = vld [vmem:[#allocation229_spill] sm:$0xff] }
 0x3ce   : > { %7018 = vadd.xlane.f32.xlu1 %v7017_v0  ;;  %v6890_v37 = vpop.xlane.xlu0 %6889 }
 0x3cf   : > { %v8069_v0 = vrot.slane %v6890_v37, %v16757_v45 }
 0x3d0   : > { %7033 = vadd.xlane.f32.xlu0 %v7032_v1  ;;  %v7074_v1 = vsel %vm3018_vm1, %v14484_v59, 0.0 }
 0x3d1   : > { %v6893_v26 = vpop.xlane.xlu1 %6892 }
 0x3d2   : > { %7024 = vadd.xlane.f32.xlu1 %v7023_v36  ;;  %v8073_v41 = vrot.slane %v6893_v26, %v16757_v45  ;;  %v6824_v3 = vpop.xlane.xlu0 %6823  ;;  %v17278_v36 = vld [vmem:[#allocation168_spill] sm:$0xff]  ;;  %v7709_v26 = vrot.slane %v17279_v60, %v16757_v45  ;;  %v17285_v60 = vld [vmem:[#allocation150_spill] sm:$0xff] }
 0x3d3   : > { %v7981_v53 = vrot.slane %v6824_v3, %v16757_v45  ;;  %v7089_v32 = vsel %vm3018_vm1, %v17278_v36, 0.0 }
 0x3d4   : > { %7072 = vadd.xlane.f32.xlu0 %v7071_v16  ;;  %v8622_v18 = vsel %vm8482_vm2, %v8073_v41, %v8069_v0  ;;  %v17280_v0 = vld [vmem:[#allocation167_spill] sm:$0xff]  ;;  %v8543_v36 = vsel %vm8492_vm7, %v7709_v26, %v8542_v30 }
 0x3d5   : > { %v6827_v46 = vpop.xlane.xlu1 %6826  ;;  %v8602_v37 = vsel %vm8484_vm3, %v7981_v53, %v8601_v50  ;;  %v7026_v41 = vsel %vm3018_vm1, %v17280_v0, 0.0  ;;  %v17281_v50 = vld [vmem:[#allocation63_spill] sm:$0xff]  ;;  %v17282_v53 = vld [vmem:[#allocation228_spill] sm:$0xff]  ;;  %v7038_v0 = vsel %vm3018_vm1, %v17285_v60, 0.0 }
 0x3d6   : > { %7036 = vadd.xlane.f32.xlu1 %v7035_v61  ;;  %v7985_v24 = vrot.slane %v6827_v46, %v16757_v45  ;;  %v6830_v17 = vpop.xlane.xlu0 %6829  ;;  %v7713_v3 = vrot.slane %v17281_v50, %v16757_v45  ;;  %v8528_v46 = vsel %vm8490_vm6, %v7641_v63, %v17282_v53  ;;  %v17287_v50 = vld [vmem:[#allocation79_spill] sm:$0xff] }
 0x3d7   : > { %v7989_v16 = vrot.slane %v6830_v17, %v16757_v45  ;;  %v7029_v53 = vsel %vm3018_vm1, %v17287_v50, 0.0  ;;  %v17289_v50 = vld [vmem:[#allocation181_spill] sm:$0xff] }
 0x3d8   : > { %7075 = vadd.xlane.f32.xlu0 %v7074_v1  ;;  %v8603_v35 = vsel %vm8486_vm4, %v7985_v24, %v8602_v37  ;;  %v7077_v37 = vsel %vm3018_vm1, %v17283_v57, 0.0  ;;  %v17284_v24 = vld [vmem:[#allocation202_spill] sm:$0xff]  ;;  %v15212_v63 = vsel %vm8494_vm8, %v7713_v3, %v8543_v36 }
 0x3d9   : > { %v6833_v59 = vpop.xlane.xlu1 %6832  ;;  %v8604_v61 = vsel %vm8488_vm5, %v7989_v16, %v8603_v35  ;;  %v7645_v17 = vrot.slane %v17284_v24, %v16757_v45  ;;  %v17286_v35 = vld [vmem:[#allocation232_spill] sm:$0xff]  ;;  %v17288_v24 = vld [vmem:[#allocation230_spill] sm:$0xff] }
 0x3da   : > { %7090 = vadd.xlane.f32.xlu1 %v7089_v32  ;;  %v6884_v1 = vpop.xlane.xlu0 %6883  ;;  %v7649_v16 = vrot.slane %v17286_v35, %v16757_v45  ;;  %v7993_v57 = vrot.slane %v6833_v59, %v16757_v45  ;;  %v7044_v60 = vsel %vm3018_vm1, %v17288_v24, 0.0  ;;  %v7041_v59 = vsel %vm3018_vm1, %v17289_v50, 0.0  ;;  %v17290_v24 = vld [vmem:[#allocation36_spill] sm:$0xff] }
 0x3db   : > { %v8529_v30 = vsel %vm8492_vm7, %v7645_v17, %v8528_v46 }
 0x3dc   : > { %7027 = vadd.xlane.f32.xlu0 %v7026_v41  ;;  %v15224_v36 = vsel %vm8494_vm8, %v7649_v16, %v8529_v30  ;;  %v8605_v17 = vsel %vm8490_vm6, %v7993_v57, %v8604_v61  ;;  %v8057_v16 = vrot.slane %v15158_v54, %v16757_v45 }
 0x3dd   : > { %v6887_v32 = vpop.xlane.xlu1 %6886 }
 0x3de   : > { %7078 = vadd.xlane.f32.xlu1 %v7077_v37  ;;  %v6896_v41 = vpop.xlane.xlu0 %6895  ;;  %v8065_v61 = vrot.slane %v6887_v32, %v16757_v45 }
 0x3df   : > { %v8077_v37 = vrot.slane %v6896_v41, %v16757_v45 }
 0x3e0   : > { %7039 = vadd.xlane.f32.xlu0 %v7038_v0 }
 0x3e1   : > { %v6899_v26 = vpop.xlane.xlu1 %6898  ;;  %v8623_v0 = vsel %vm8484_vm3, %v8077_v37, %v8622_v18  ;;  %v7095_v18 = vsel %vm3018_vm1, %v17290_v24, 0.0  ;;  %v17293_v24 = vld [vmem:[#allocation153_spill] sm:$0xff] }
 0x3e2   : > { %7030 = vadd.xlane.f32.xlu1 %v7029_v53  ;;  %v8081_v3 = vrot.slane %v6899_v26, %v16757_v45  ;;  %v6902_v35 = vpop.xlane.xlu0 %6901  ;;  %v17291_v26 = vld [vmem:[#allocation183_spill] sm:$0xff] }
 0x3e3   : > { %v8085_v46 = vrot.slane %v6902_v35, %v16757_v45  ;;  %v17292_v35 = vld [vmem:[#allocation184_spill] sm:$0xff] }
 0x3e4   : > { %7045 = vadd.xlane.f32.xlu0 %v7044_v60  ;;  %v8624_v41 = vsel %vm8486_vm4, %v8081_v3, %v8623_v0  ;;  %v7047_v60 = vsel %vm3018_vm1, %v17291_v26, 0.0  ;;  %v8061_v0 = vrot.slane %v6884_v1, %v16757_v45  ;;  %v7098_v50 = vsel %vm3018_vm1, %v17292_v35, 0.0 }
 0x3e5   : > { %v6905_v53 = vpop.xlane.xlu1 %6904  ;;  %v8625_v37 = vsel %vm8488_vm5, %v8085_v46, %v8624_v41  ;;  %v7101_v1 = vsel %vm3018_vm1, %v17293_v24, 0.0  ;;  %v17297_v24 = vld [vmem:[#allocation211_spill] sm:$0xff] }
 0x3e6   : > { %7042 = vadd.xlane.f32.xlu1 %v7041_v59  ;;  %v6836_v30 = vpop.xlane.xlu0 %6835  ;;  %v8089_v41 = vrot.slane %v6905_v53, %v16757_v45 }
 0x3e7   : > { %v7997_v3 = vrot.slane %v6836_v30, %v16757_v45 }
 0x3e8   : > { %7096 = vadd.xlane.f32.xlu0 %v7095_v18  ;;  %v8619_v18 = vsel %vm8490_vm6, %v8057_v16, %v15165_v8 }
 0x3e9   : > { %v6839_v57 = vpop.xlane.xlu1 %6838  ;;  %v8606_v54 = vsel %vm8492_vm7, %v7997_v3, %v8605_v17  ;;  %v8620_v26 = vsel %vm8492_vm7, %v8061_v0, %v8619_v18  ;;  %v17295_v3 = vld [vmem:[#allocation162_spill] sm:$0xff]  ;;  %v17298_v18 = vld [vmem:[#allocation193_spill] sm:$0xff] }
 0x3ea   : > { %7048 = vadd.xlane.f32.xlu1 %v7047_v60  ;;  %v8001_v59 = vrot.slane %v6839_v57, %v16757_v45  ;;  %v6908_v46 = vpop.xlane.xlu0 %6907  ;;  %v17294_v57 = vld [vmem:[#allocation215_spill] sm:$0xff]  ;;  %v15258_v53 = vsel %vm8494_vm8, %v8065_v61, %v8620_v26  ;;  %v7801_v35 = vrot.slane %v17295_v3, %v16757_v45  ;;  %v7152_v61 = vsel %vm3018_vm1, %v17297_v24, 0.0  ;;  %v17301_v3 = vld [vmem:[#allocation161_spill] sm:$0xff] }
 0x3eb   : > { %v8093_v32 = vrot.slane %v6908_v46, %v16757_v45  ;;  %v7050_v17 = vsel %vm3018_vm1, %v17294_v57, 0.0  ;;  %v17299_v57 = vld [vmem:[#allocation226_spill] sm:$0xff]  ;;  %v7164_v24 = vsel %vm3018_vm1, %v14702_v22, 0.0 }
 0x3ec   : > { %7099 = vadd.xlane.f32.xlu0 %v7098_v50  ;;  %v15252_v30 = vsel %vm8494_vm8, %v8001_v59, %v8606_v54  ;;  %v17296_v50 = vld [vmem:[#allocation81_spill] sm:$0xff]  ;;  %v8626_v54 = vsel %vm8490_vm6, %v8089_v41, %v8625_v37  ;;  %v8563_v26 = vsel %vm8490_vm6, %v7801_v35, %v17298_v18  ;;  %v17300_v41 = vld [vmem:[#allocation80_spill] sm:$0xff] }
 0x3ed   : > { %v6911_v60 = vpop.xlane.xlu1 %6910  ;;  %v7053_v59 = vsel %vm3018_vm1, %v17296_v50, 0.0  ;;  %v8627_v0 = vsel %vm8492_vm7, %v8093_v32, %v8626_v54  ;;  %v7104_v32 = vsel %vm3018_vm1, %v17300_v41, 0.0  ;;  %v7737_v50 = vrot.slane %v17301_v3, %v16757_v45  ;;  %v17302_v54 = vld [vmem:[#allocation213_spill] sm:$0xff]  ;;  %v17304_v3 = vld [vmem:[#allocation155_spill] sm:$0xff] }
 0x3ee   : > { %7102 = vadd.xlane.f32.xlu1 %v7101_v1  ;;  %v8097_v8 = vrot.slane %v6911_v60, %v16757_v45  ;;  %v6848_v16 = vpop.xlane.xlu0 %6847  ;;  %v7741_v35 = vrot.slane %v17302_v54, %v16757_v45  ;;  %v7773_v54 = vrot.slane %v14806_v31, %v16757_v45 }
 0x3ef   : > { %v8549_v22 = vsel %vm8490_vm6, %v7737_v50, %v17304_v3 }
 0x3f0   : > { %7051 = vadd.xlane.f32.xlu0 %v7050_v17  ;;  %v15270_v1 = vsel %vm8494_vm8, %v8097_v8, %v8627_v0  ;;  %v7155_v17 = vsel %vm3018_vm1, %v17299_v57, 0.0 }
 0x3f1   : > { %v6851_v46 = vpop.xlane.xlu1 %6850 }
 0x3f2   : > { %7054 = vadd.xlane.f32.xlu1 %v7053_v59  ;;  %v6962_v60 = vpop.xlane.xlu0 %6961 }
 0x3f3   : > { %v8165_v59 = vrot.slane %v6962_v60, %v16757_v45  ;;  %v7158_v60 = vsel %vm3018_vm1, %v14706_v5, 0.0  ;;  %v7107_v5 = vsel %vm3018_vm1, %v14712_v7, 0.0 }
 0x3f4   : > { %7153 = vadd.xlane.f32.xlu0 %v7152_v61  ;;  %v17303_v61 = vld [vmem:[#allocation75_spill] sm:$0xff] }
 0x3f5   : > { %v6965_v37 = vpop.xlane.xlu1 %6964  ;;  %v7745_v18 = vrot.slane %v17303_v61, %v16757_v45 }
 0x3f6   : > { %7156 = vadd.xlane.f32.xlu1 %v7155_v17  ;;  %v8169_v8 = vrot.slane %v6965_v37, %v16757_v45  ;;  %v6842_v0 = vpop.xlane.xlu0 %6841  ;;  %v7769_v37 = vrot.slane %v14737_v38, %v16757_v45  ;;  %v8550_v38 = vsel %vm8492_vm7, %v7741_v35, %v8549_v22  ;;  %v7116_v35 = vsel %vm3018_vm1, %v14729_v33, 0.0  ;;  %v17308_v33 = vld [vmem:[#allocation74_spill] sm:$0xff] }
 0x3f7   : > { %v8005_v41 = vrot.slane %v6842_v0, %v16757_v45  ;;  %v7777_v0 = vrot.slane %v14826_v58, %v16757_v45  ;;  %v15310_v50 = vsel %vm8494_vm8, %v7745_v18, %v8550_v38 }
 0x3f8   : > { %7105 = vadd.xlane.f32.xlu0 %v7104_v32  ;;  %v8643_v57 = vsel %vm8482_vm2, %v8169_v8, %v8165_v59  ;;  %v8013_v59 = vrot.slane %v6848_v16, %v16757_v45  ;;  %v8556_v58 = vsel %vm8490_vm6, %v7769_v37, %v14752_v11  ;;  %v7110_v11 = vsel %vm3018_vm1, %v14743_v13, 0.0 }
 0x3f9   : > { %v6845_v17 = vpop.xlane.xlu1 %6844  ;;  %v8557_v18 = vsel %vm8492_vm7, %v7773_v54, %v8556_v58  ;;  %v7833_v37 = vrot.slane %v17308_v33, %v16757_v45 }
 0x3fa   : > { %7165 = vadd.xlane.f32.xlu1 %v7164_v24  ;;  %v8009_v32 = vrot.slane %v6845_v17, %v16757_v45  ;;  %v15300_v8 = vpop.xlane.xlu0 %6913  ;;  %v8017_v24 = vrot.slane %v6851_v46, %v16757_v45  ;;  %v17305_v17 = vld [vmem:[#allocation84_spill] sm:$0xff]  ;;  %v15327_v22 = vsel %vm8494_vm8, %v7777_v0, %v8557_v18 }
 0x3fc   : > { %7159 = vadd.xlane.f32.xlu0 %v7158_v60  ;;  %v8608_v61 = vsel %vm8482_vm2, %v8009_v32, %v8005_v41  ;;  %v7176_v60 = vsel %vm3018_vm1, %v17305_v17, 0.0  ;;  %v17306_v41 = vld [vmem:[#allocation199_spill] sm:$0xff]  ;;  %v17309_v17 = vld [vmem:[#allocation88_spill] sm:$0xff] }
 0x3fd   : > { %v8609_v31 = vsel %vm8484_vm3, %v8013_v59, %v8608_v61  ;;  %v6917_v16 = vpop.xlane.xlu1 %6916  ;;  %v7805_v32 = vrot.slane %v17306_v41, %v16757_v45  ;;  %v17307_v59 = vld [vmem:[#allocation180_spill] sm:$0xff]  ;;  %v7837_v61 = vrot.slane %v14760_v43, %v16757_v45 }
 0x3fe   : > { %7108 = vadd.xlane.f32.xlu1 %v7107_v5  ;;  %v15316_v7 = vsel %vm8486_vm4, %v8017_v24, %v8609_v31  ;;  %v6968_v46 = vpop.xlane.xlu0 %6967  ;;  %v7809_v5 = vrot.slane %v17307_v59, %v16757_v45  ;;  %v7161_v31 = vsel %vm3018_vm1, %v14766_v55, 0.0 }
 0x3ff   : > { %v8173_v3 = vrot.slane %v6968_v46, %v16757_v45 }
 0x400   : > { %7177 = vadd.xlane.f32.xlu0 %v7176_v60  ;;  %v7841_v60 = vrot.slane %v17309_v17, %v16757_v45 }
 0x401   : > { %v6971_v38 = vpop.xlane.xlu1 %6970  ;;  %v8644_v54 = vsel %vm8484_vm3, %v8173_v3, %v8643_v57  ;;  %v8564_v57 = vsel %vm8492_vm7, %v7805_v32, %v8563_v26  ;;  %v17311_v3 = vld [vmem:[#allocation77_spill] sm:$0xff]  ;;  %v7865_v32 = vrot.slane %v15015_v52, %v16757_v45  ;;  %v7897_v52 = vrot.slane %v15094_v29, %v16757_v45 }
 0x402   : > { %7117 = vadd.xlane.f32.xlu1 %v7116_v35  ;;  %v8177_v24 = vrot.slane %v6971_v38, %v16757_v45  ;;  %v6974_v0 = vpop.xlane.xlu0 %6973  ;;  %v17310_v35 = vld [vmem:[#allocation86_spill] sm:$0xff]  ;;  %v15349_v43 = vsel %vm8494_vm8, %v7809_v5, %v8564_v57  ;;  %v8570_v59 = vsel %vm8490_vm6, %v7833_v37, %v17311_v3  ;;  %v8105_v37 = vrot.slane %v6917_v16, %v16757_v45  ;;  %v17314_v57 = vld [vmem:[#allocation223_spill] sm:$0xff] }
 0x403   : > { %v8181_v58 = vrot.slane %v6974_v0, %v16757_v45  ;;  %v7128_v18 = vsel %vm3018_vm1, %v17310_v35, 0.0  ;;  %v8571_v26 = vsel %vm8492_vm7, %v7837_v61, %v8570_v59  ;;  %v7873_v61 = vrot.slane %v15075_v9, %v16757_v45 }
 0x404   : > { %7111 = vadd.xlane.f32.xlu0 %v7110_v11  ;;  %v8645_v13 = vsel %vm8486_vm4, %v8177_v24, %v8644_v54  ;;  %v17312_v11 = vld [vmem:[#allocation38_spill] sm:$0xff]  ;;  %v15364_v54 = vsel %vm8494_vm8, %v7841_v60, %v8571_v26  ;;  %v7869_v24 = vrot.slane %v15071_v42, %v16757_v45  ;;  %v7901_v42 = vrot.slane %v15111_v21, %v16757_v45 }
 0x405   : > { %v6977_v46 = vpop.xlane.xlu1 %6976  ;;  %v8646_v41 = vsel %vm8488_vm5, %v8181_v58, %v8645_v13  ;;  %v7179_v33 = vsel %vm3018_vm1, %v17312_v11, 0.0  ;;  %v8101_v16 = vrot.slane %v15300_v8, %v16757_v45  ;;  %v7905_v9 = vrot.slane %v15115_v56, %v16757_v45  ;;  %v17315_v8 = vld [vmem:[#allocation83_spill] sm:$0xff] }
 0x406   : > { %7162 = vadd.xlane.f32.xlu1 %v7161_v31  ;;  %v8185_v55 = vrot.slane %v6977_v46, %v16757_v45  ;;  %v6986_v38 = vpop.xlane.xlu0 %6985  ;;  %v17313_v31 = vld [vmem:[#allocation90_spill] sm:$0xff]  ;;  %v7188_v46 = vsel %vm3018_vm1, %v17314_v57, 0.0  ;;  %v8584_v11 = vsel %vm8490_vm6, %v7897_v52, %v15099_v23  ;;  %v7933_v23 = vrot.slane %v15040_v14, %v16757_v45 }
 0x407   : > { %v7182_v17 = vsel %vm3018_vm1, %v17313_v31, 0.0  ;;  %v8197_v13 = vrot.slane %v6986_v38, %v16757_v45  ;;  %v8629_v21 = vsel %vm8482_vm2, %v8105_v37, %v8101_v16  ;;  %v17318_v16 = vld [vmem:[#allocation89_spill] sm:$0xff]  ;;  %v7961_v57 = vrot.slane %v15064_v25, %v16757_v45 }
 0x408   : > { %7129 = vadd.xlane.f32.xlu0 %v7128_v18  ;;  %v15361_v5 = vsel %vm8490_vm6, %v8185_v55, %v8646_v41  ;;  %v8577_v18 = vsel %vm8490_vm6, %v7865_v32, %v15022_v28  ;;  %v7167_v55 = vsel %vm3018_vm1, %v17315_v8, 0.0  ;;  %v8585_v32 = vsel %vm8492_vm7, %v7901_v42, %v8584_v11 }
 0x409   : > { %v6989_v0 = vpop.xlane.xlu1 %6988  ;;  %v8578_v3 = vsel %vm8492_vm7, %v7869_v24, %v8577_v18  ;;  %v7929_v24 = vrot.slane %v14957_v51, %v16757_v45  ;;  %v15410_v31 = vsel %vm8494_vm8, %v7905_v9, %v8585_v32 }
 0x40a   : > { %7180 = vadd.xlane.f32.xlu1 %v7179_v33  ;;  %v8201_v60 = vrot.slane %v6989_v0, %v16757_v45  ;;  %v6920_v58 = vpop.xlane.xlu0 %6919  ;;  %v15398_v38 = vsel %vm8494_vm8, %v7873_v61, %v8578_v3  ;;  %v17316_v33 = vld [vmem:[#allocation85_spill] sm:$0xff]  ;;  %v17317_v61 = vld [vmem:[#allocation87_spill] sm:$0xff]  ;;  %v17320_v3 = vld [vmem:[#allocation94_spill] sm:$0xff] }
 0x40b   : > { %v8109_v35 = vrot.slane %v6920_v58, %v16757_v45  ;;  %v7113_v26 = vsel %vm3018_vm1, %v17316_v33, 0.0  ;;  %v7170_v52 = vsel %vm3018_vm1, %v17317_v61, 0.0  ;;  %v7131_v58 = vsel %vm3018_vm1, %v17318_v16, 0.0  ;;  %v17324_v16 = vld [vmem:[#allocation96_spill] sm:$0xff] }
 0x40c   : > { %7183 = vadd.xlane.f32.xlu0 %v7182_v17  ;;  %v15386_v29 = vsel %vm8482_vm2, %v8201_v60, %v8197_v13  ;;  %v7937_v13 = vrot.slane %v15046_v2, %v16757_v45  ;;  %v7965_v2 = vrot.slane %v15101_v39, %v16757_v45  ;;  %v7140_v39 = vsel %vm3018_vm1, %v17320_v3, 0.0 }
 0x40d   : > { %v6923_v41 = vpop.xlane.xlu1 %6922  ;;  %v8630_v59 = vsel %vm8484_vm3, %v8109_v35, %v8629_v21  ;;  %v17319_v35 = vld [vmem:[#allocation92_spill] sm:$0xff]  ;;  %v7194_v3 = vsel %vm3018_vm1, %v14942_v12, 0.0 }
 0x40e   : > { %7189 = vadd.xlane.f32.xlu1 %v7188_v46  ;;  %v8113_v56 = vrot.slane %v6923_v41, %v16757_v45  ;;  %v6926_v28 = vpop.xlane.xlu0 %6925  ;;  %v8591_v46 = vsel %vm8490_vm6, %v7929_v24, %v14968_v49  ;;  %v7134_v18 = vsel %vm3018_vm1, %v17319_v35, 0.0  ;;  %v7969_v41 = vrot.slane %v15105_v10, %v16757_v45 }
 0x40f   : > { %v8117_v0 = vrot.slane %v6926_v28, %v16757_v45  ;;  %v8592_v21 = vsel %vm8492_vm7, %v7933_v23, %v8591_v46  ;;  %v8598_v10 = vsel %vm8490_vm6, %v7961_v57, %v15069_v47  ;;  %v17321_v28 = vld [vmem:[#allocation91_spill] sm:$0xff]  ;;  %v17322_v23 = vld [vmem:[#allocation93_spill] sm:$0xff] }
 0x410   : > { %7168 = vadd.xlane.f32.xlu0 %v7167_v55  ;;  %v8631_v37 = vsel %vm8486_vm4, %v8113_v56, %v8630_v59  ;;  %v15437_v55 = vsel %vm8494_vm8, %v7937_v13, %v8592_v21  ;;  %v7119_v33 = vsel %vm3018_vm1, %v17321_v28, 0.0  ;;  %v17323_v13 = vld [vmem:[#allocation112_spill] sm:$0xff] }
 0x411   : > { %v6929_v17 = vpop.xlane.xlu1 %6928  ;;  %v8632_v51 = vsel %vm8488_vm5, %v8117_v0, %v8631_v37 }
 0x412   : > { %7114 = vadd.xlane.f32.xlu1 %v7113_v26  ;;  %v8121_v60 = vrot.slane %v6929_v17, %v16757_v45  ;;  %v8599_v26 = vsel %vm8492_vm7, %v7965_v2, %v8598_v10  ;;  %v7185_v17 = vsel %vm3018_vm1, %v17322_v23, 0.0 }
 0x413   : > { %v15452_v37 = vsel %vm8494_vm8, %v7969_v41, %v8599_v26  ;;  %v7137_v41 = vsel %vm3018_vm1, %v14938_v48, 0.0  ;;  %v7143_v26 = vsel %vm3018_vm1, %v14963_v4, 0.0 }
 0x414   : > { %7171 = vadd.xlane.f32.xlu0 %v7170_v52  ;;  %v6938_v42 = vpop.xlane.xlu0 %6937  ;;  %v8633_v14 = vsel %vm8490_vm6, %v8121_v60, %v8632_v51  ;;  %v7122_v51 = vsel %vm3018_vm1, %v17323_v13, 0.0 }
 0x415   : > { %v8133_v25 = vrot.slane %v6938_v42, %v16757_v45 }
 0x416   : > { %7132 = vadd.xlane.f32.xlu1 %v7131_v58  ;;  %v7191_v58 = vsel %vm3018_vm1, %v17324_v16, 0.0 }
 0x417   : > { %v6941_v9 = vpop.xlane.xlu1 %6940 }
 0x418   : > { %v8137_v8 = vrot.slane %v6941_v9, %v16757_v45  ;;  %7135 = vadd.xlane.f32.xlu0 %v7134_v18  ;;  %v6980_v49 = vpop.xlane.xlu0 %6979  ;;  %v17325_v9 = vld [vmem:[#allocation186_spill] sm:$0xff] }
 0x419   : > { %v8189_v56 = vrot.slane %v6980_v49, %v16757_v45  ;;  %v7173_v35 = vsel %vm3018_vm1, %v17325_v9, 0.0 }
 0x41a   : > { %v8636_v59 = vsel %vm8482_vm2, %v8137_v8, %v8133_v25  ;;  %7141 = vadd.xlane.f32.xlu1 %v7140_v39 }
 0x41b   : > { %v6983_v11 = vpop.xlane.xlu1 %6982  ;;  %v8648_v24 = vsel %vm8492_vm7, %v8189_v56, %v15361_v5 }
 0x41c   : > { %v8193_v32 = vrot.slane %v6983_v11, %v16757_v45  ;;  %7120 = vadd.xlane.f32.xlu0 %v7119_v33  ;;  %v7125_v11 = vsel %vm3018_vm1, %v14946_v6, 0.0 }
 0x41d   : > { %v6992_v0 = vpop.xlane.xlu0 %6991 }
 0x41e   : > { %v8205_v47 = vrot.slane %v6992_v0, %v16757_v45  ;;  %7186 = vadd.xlane.f32.xlu1 %v7185_v17  ;;  %v15458_v61 = vsel %vm8494_vm8, %v8193_v32, %v8648_v24  ;;  %v7197_v24 = vsel %vm3018_vm1, %v14974_v34, 0.0  ;;  %v7146_v17 = vsel %vm3018_vm1, %v14978_v20, 0.0 }
 0x41f   : > { %v6995_v52 = vpop.xlane.xlu1 %6994 }
 0x420   : > { %v8651_v5 = vsel %vm8484_vm3, %v8205_v47, %v15386_v29  ;;  %v8209_v60 = vrot.slane %v6995_v52, %v16757_v45  ;;  %7123 = vadd.xlane.f32.xlu0 %v7122_v51  ;;  %v7149_v52 = vsel %vm3018_vm1, %v14994_v15, 0.0 }
 0x421   : > { %v6998_v42 = vpop.xlane.xlu0 %6997 }
 0x422   : > { %v8652_v57 = vsel %vm8486_vm4, %v8209_v60, %v8651_v5  ;;  %v8213_v46 = vrot.slane %v6998_v42, %v16757_v45  ;;  %7192 = vadd.xlane.f32.xlu1 %v7191_v58 }
 0x423   : > { %v7001_v2 = vpop.xlane.xlu1 %7000 }
 0x424   : > { %v8653_v18 = vsel %vm8488_vm5, %v8213_v46, %v8652_v57  ;;  %v8217_v29 = vrot.slane %v7001_v2, %v16757_v45  ;;  %7174 = vadd.xlane.f32.xlu0 %v7173_v35 }
 0x425   : > { %v6932_v21 = vpop.xlane.xlu0 %6931 }
 0x426   : > { %v8654_v25 = vsel %vm8490_vm6, %v8217_v29, %v8653_v18  ;;  %v8125_v8 = vrot.slane %v6932_v21, %v16757_v45  ;;  %7138 = vadd.xlane.f32.xlu1 %v7137_v41 }
 0x427   : > { %v6935_v49 = vpop.xlane.xlu1 %6934 }
 0x428   : > { %v8129_v39 = vrot.slane %v6935_v49, %v16757_v45  ;;  %7195 = vadd.xlane.f32.xlu0 %v7194_v3  ;;  %v8634_v56 = vsel %vm8492_vm7, %v8125_v8, %v8633_v14 }
 0x429   : > { %v6944_v10 = vpop.xlane.xlu0 %6943 }
 0x42a   : > { %v8141_v48 = vrot.slane %v6944_v10, %v16757_v45  ;;  %7126 = vadd.xlane.f32.xlu1 %v7125_v11  ;;  %v15485_v28 = vsel %vm8494_vm8, %v8129_v39, %v8634_v56  ;;  %v17326_v56 = vld [vmem:[#allocation174_spill] sm:$0xff]  ;;  %v17327_v11 = vld [vmem:[#allocation189_spill] sm:$0xff] }
 0x42b   : > { %v6947_v33 = vpop.xlane.xlu1 %6946  ;;  %v7529_v10 = vrot.slane %v17326_v56, %v16757_v45 }
 0x42c   : > { %v8637_v12 = vsel %vm8484_vm3, %v8141_v48, %v8636_v59  ;;  %v8145_v32 = vrot.slane %v6947_v33, %v16757_v45  ;;  %7144 = vadd.xlane.f32.xlu0 %v7143_v26  ;;  %v7533_v48 = vrot.slane %v17327_v11, %v16757_v45  ;;  %v17328_v26 = vld [vmem:[#allocation147_spill] sm:$0xff] }
 0x42d   : > { %v6950_v14 = vpop.xlane.xlu0 %6949 }
 0x42e   : > { %v8638_v6 = vsel %vm8486_vm4, %v8145_v32, %v8637_v12  ;;  %v8149_v0 = vrot.slane %v6950_v14, %v16757_v45  ;;  %7198 = vadd.xlane.f32.xlu1 %v7197_v24  ;;  %v7525_v12 = vrot.slane %v17328_v26, %v16757_v45  ;;  %v17329_v24 = vld [vmem:[#allocation173_spill] sm:$0xff] }
 0x42f   : > { %v6953_v23 = vpop.xlane.xlu1 %6952 }
 0x430   : > { %v8639_v4 = vsel %vm8488_vm5, %v8149_v0, %v8638_v6  ;;  %v8153_v59 = vrot.slane %v6953_v23, %v16757_v45  ;;  %7147 = vadd.xlane.f32.xlu0 %v7146_v17  ;;  %v8503_v14 = vsel %vm8482_vm2, %v7529_v10, %v7525_v12  ;;  %v7537_v6 = vrot.slane %v17329_v24, %v16757_v45  ;;  %v17330_v17 = vld [vmem:[#allocation20_spill] sm:$0xff] }
 0x431   : > { %v7004_v47 = vpop.xlane.xlu0 %7003  ;;  %v8504_v0 = vsel %vm8484_vm3, %v7533_v48, %v8503_v14 }
 0x432   : > { %v15502_v34 = vsel %vm8490_vm6, %v8153_v59, %v8639_v4  ;;  %v8221_v13 = vrot.slane %v7004_v47, %v16757_v45  ;;  %7150 = vadd.xlane.f32.xlu1 %v7149_v52  ;;  %v7541_v4 = vrot.slane %v17330_v17, %v16757_v45  ;;  %v8505_v47 = vsel %vm8486_vm4, %v7537_v6, %v8504_v0 }
 0x433   : > { %v7007_v51 = vpop.xlane.xlu1 %7006 }
 0x434   : > { %v8225_v5 = vrot.slane %v7007_v51, %v16757_v45  ;;  %v8655_v20 = vsel %vm8492_vm7, %v8221_v13, %v8654_v25  ;;  %v17331_v51 = vld [vmem:[#allocation134_spill] sm:$0xff] }
 0x435   : > { %v15507_v60 = vpop.xlane.xlu0 %6955 }
 0x436   : > { %v15510_v42 = vsel %vm8494_vm8, %v8225_v5, %v8655_v20  ;;  %v7545_v5 = vrot.slane %v17331_v51, %v16757_v45  ;;  %v8506_v20 = vsel %vm8488_vm5, %v7541_v4, %v8505_v47 }
 0x437   : > { %v15512_v16 = vpop.xlane.xlu1 %6958 }
 0x438   : > { %v8507_v48 = vsel %vm8490_vm6, %v7545_v5, %v8506_v20 }
 0x439   : > { %v6860_v58 = vpop.xlane.xlu0 %6859 }
 0x43b   : > { %v6863_v15 = vpop.xlane.xlu1 %6862 }
 0x43d   : > { %v7058_v57 = vpop.xlane.xlu0 %7057 }
 0x43e   : > { %v8293_v2 = vrot.slane %v7058_v57, %v16757_v45  ;;  %v17332_v57 = vld [vmem:[#allocation32_spill] sm:$0xff] }
 0x43f   : > { %v7061_v46 = vpop.xlane.xlu1 %7060 }
 0x440   : > { %v8297_v9 = vrot.slane %v7061_v46, %v16757_v45  ;;  %v7549_v46 = vrot.slane %v17332_v57, %v16757_v45 }
 0x441   : > { %v6854_v35 = vpop.xlane.xlu0 %6853 }
 0x442   : > { %v15517_v18 = vsel %vm8482_vm2, %v8297_v9, %v8293_v2  ;;  %v8021_v52 = vrot.slane %v6854_v35, %v16757_v45  ;;  %v17333_v35 = vld [vmem:[#allocation149_spill] sm:$0xff]  ;;  %v8508_v12 = vsel %vm8492_vm7, %v7549_v46, %v8507_v48 }
 0x443   : > { %v6857_v29 = vpop.xlane.xlu1 %6856  ;;  %v7553_v11 = vrot.slane %v17333_v35, %v16757_v45 }
 0x444   : > { %v8025_v9 = vrot.slane %v6857_v29, %v16757_v45  ;;  %v8611_v56 = vsel %vm8488_vm5, %v8021_v52, %v15316_v7  ;;  %v8029_v29 = vrot.slane %v6860_v58, %v16757_v45  ;;  %v8157_v52 = vrot.slane %v15507_v60, %v16757_v45 }
 0x445   : > { %v15519_v21 = vpop.xlane.xlu0 %7009  ;;  %v8509_v7 = vsel %vm8494_vm8, %v7553_v11, %v8508_v12 }
 0x447   : > { %v15521_v41 = vpop.xlane.xlu1 %7012 }
 0x449   : > { %v15523_v25 = vpop.xlane.xlu0 %7063 }
 0x44b   : > { %v15525_v8 = vpop.xlane.xlu1 %7066 }
 0x44d   : > { %v15527_v49 = vpop.xlane.xlu0 %7081 }
 0x44f   : > { %v15529_v3 = vpop.xlane.xlu1 %7084 }
 0x451   : > { %v15531_v39 = vpop.xlane.xlu0 %7069 }
 0x453   : > { %v15537_v33 = vpop.xlane.xlu1 %7087 }
 0x455   : > { %v15541_v32 = vpop.xlane.xlu0 %7015 }
 0x456   : > { %v8237_v60 = vrot.slane %v15541_v32, %v16757_v45 }
 0x457   : > { %v15547_v23 = vpop.xlane.xlu1 %7093 }
 0x459   : > { %v15551_v59 = vpop.xlane.xlu0 %7021 }
 0x45b   : > { %v15555_v13 = vpop.xlane.xlu1 %7018 }
 0x45d   : > { %8745 = vxpose.xlu0.b32.start [1/16] (narrow) %v14997_v40, 8  ;;  %v7034_v2 = vpop.xlane.xlu0 %7033  ;;  %v8612_v40 = vsel %vm8490_vm6, %v8025_v9, %v8611_v56 }
 0x45e   : > { %v8613_v6 = vsel %vm8492_vm7, %v8029_v29, %v8612_v40  ;;  %v8261_v32 = vrot.slane %v7034_v2, %v16757_v45  ;;  %v8245_v2 = vrot.slane %v15551_v59, %v16757_v45 }
 0x45f   : > { %v15566_v10 = vpop.xlane.xlu1 %7024 }
 0x460   : > { %v8249_v56 = vrot.slane %v15566_v10, %v16757_v45 }
 0x461   : > { %8746 = vxpose.xlu0.b32.cont [2/16] (narrow) %v15051_v62, 8  ;;  %v15572_v26 = vpop.xlane.xlu0 %7072  ;;  %v8033_v62 = vrot.slane %v6863_v15, %v16757_v45 }
 0x463   : > { %v7037_v14 = vpop.xlane.xlu1 %7036  ;;  %v8614_v17 = vsel %vm8494_vm8, %v8033_v62, %v8613_v6  ;;  %v8329_v6 = vrot.slane %v15529_v3, %v16757_v45 }
 0x465   : > { %8777 = vxpose.xlu1.b32.start [1/16] (narrow) %v15252_v30, 8  ;;  %8747 = vxpose.xlu0.b32.cont [3/16] (narrow) %v8509_v7, 8  ;;  %v15579_v24 = vpop.xlane.xlu0 %7075  ;;  %v8305_v7 = vrot.slane %v15525_v8, %v16757_v45 }
 0x467   : > { %v15583_v0 = vpop.xlane.xlu1 %7090 }
 0x468   : > { %v8337_v8 = vrot.slane %v15583_v0, %v16757_v45  ;;  %v8313_v0 = vrot.slane %v15572_v26, %v16757_v45 }
 0x469   : > { %8748 = vxpose.xlu0.b32.cont [4/16] (narrow) %v15038_v19, 8  ;;  %8778 = vxpose.xlu1.b32.cont [2/16] (narrow) %v8614_v17, 8  ;;  %v7028_v58 = vpop.xlane.xlu0 %7027  ;;  %v8161_v19 = vrot.slane %v15512_v16, %v16757_v45  ;;  %v8265_v16 = vrot.slane %v7037_v14, %v16757_v45  ;;  %v8325_v17 = vrot.slane %v15527_v49, %v16757_v45 }
 0x46a   : > { %v8253_v11 = vrot.slane %v7028_v58, %v16757_v45  ;;  %v8309_v49 = vrot.slane %v15531_v39, %v16757_v45 }
 0x46b   : > { %v15587_v4 = vpop.xlane.xlu1 %7078  ;;  %v8664_v35 = vsel %vm8482_vm2, %v8265_v16, %v8261_v32 }
 0x46c   : > { %v8321_v39 = vrot.slane %v15587_v4, %v16757_v45 }
 0x46d   : > { %8749 = vxpose.xlu0.b32.cont [5/16] (narrow) %v15177_v44, 8  ;;  %8779 = vxpose.xlu1.b32.cont [3/16] (narrow) %v15258_v53, 8  ;;  %v7040_v30 = vpop.xlane.xlu0 %7039  ;;  %v8641_v53 = vsel %vm8492_vm7, %v8157_v52, %v15502_v34  ;;  %v8241_v34 = vrot.slane %v15555_v13, %v16757_v45  ;;  %v8301_v13 = vrot.slane %v15523_v25, %v16757_v45 }
 0x46f   : > { %v7031_v47 = vpop.xlane.xlu1 %7030  ;;  %v8672_v14 = vsel %vm8484_vm3, %v8301_v13, %v15517_v18 }
 0x471   : > { %8750 = vxpose.xlu0.b32.cont [6/16] (narrow) %v15224_v36, 8  ;;  %8780 = vxpose.xlu1.b32.cont [4/16] (narrow) %v15270_v1, 8  ;;  %v7046_v15 = vpop.xlane.xlu0 %7045  ;;  %v8233_v36 = vrot.slane %v15521_v41, %v16757_v45  ;;  %v8642_v1 = vsel %vm8494_vm8, %v8161_v19, %v8641_v53  ;;  %v8269_v41 = vrot.slane %v7040_v30, %v16757_v45 }
 0x472   : > { %v8277_v10 = vrot.slane %v7046_v15, %v16757_v45  ;;  %v8678_v15 = vsel %vm8482_vm2, %v8329_v6, %v8325_v17  ;;  %v8317_v53 = vrot.slane %v15579_v24, %v16757_v45 }
 0x473   : > { %v7043_v51 = vpop.xlane.xlu1 %7042 }
 0x475   : > { %8751 = vxpose.xlu0.b32.cont [7/16] (narrow) %v15140_v27, 8  ;;  %8781 = vxpose.xlu1.b32.cont [5/16] (narrow) %v15485_v28, 8  ;;  %v15599_v44 = vpop.xlane.xlu0 %7096  ;;  %v8229_v28 = vrot.slane %v15519_v21, %v16757_v45 }
 0x477   : > { %v7049_v5 = vpop.xlane.xlu1 %7048  ;;  %v8657_v57 = vsel %vm8482_vm2, %v8233_v36, %v8229_v28  ;;  %v8345_v36 = vrot.slane %v15599_v44, %v16757_v45 }
 0x478   : > { %v8658_v46 = vsel %vm8484_vm3, %v8237_v60, %v8657_v57  ;;  %v8281_v25 = vrot.slane %v7049_v5, %v16757_v45  ;;  %v8341_v60 = vrot.slane %v15547_v23, %v16757_v45 }
 0x479   : > { %8752 = vxpose.xlu0.b32.cont [8/16] (narrow) %v15212_v63, 8  ;;  %8782 = vxpose.xlu1.b32.cont [6/16] (narrow) %v8642_v1, 8  ;;  %v15609_v27 = vpop.xlane.xlu0 %7099  ;;  %v8273_v63 = vrot.slane %v7043_v51, %v16757_v45  ;;  %v8659_v9 = vsel %vm8486_vm4, %v8241_v34, %v8658_v46  ;;  %v8673_v51 = vsel %vm8486_vm4, %v8305_v7, %v8672_v14 }
 0x47a   : > { %v8660_v40 = vsel %vm8488_vm5, %v8245_v2, %v8659_v9  ;;  %v8674_v26 = vsel %vm8488_vm5, %v8309_v49, %v8673_v51  ;;  %v8349_v24 = vrot.slane %v15609_v27, %v16757_v45 }
 0x47b   : > { %v15617_v20 = vpop.xlane.xlu1 %7102  ;;  %v8661_v62 = vsel %vm8490_vm6, %v8249_v56, %v8660_v40  ;;  %v8675_v4 = vsel %vm8490_vm6, %v8313_v0, %v8674_v26 }
 0x47c   : > { %v8662_v18 = vsel %vm8492_vm7, %v8253_v11, %v8661_v62  ;;  %v8676_v16 = vsel %vm8492_vm7, %v8317_v53, %v8675_v4  ;;  %v8353_v23 = vrot.slane %v15617_v20, %v16757_v45 }
 0x47d   : > { %8753 = vxpose.xlu0.b32.cont [9/16] (narrow) %v15310_v50, 8  ;;  %8783 = vxpose.xlu1.b32.cont [7/16] (narrow) %v15458_v61, 8  ;;  %v7052_v21 = vpop.xlane.xlu0 %7051  ;;  %v8665_v50 = vsel %vm8484_vm3, %v8269_v41, %v8664_v35  ;;  %v8257_v61 = vrot.slane %v7031_v47, %v16757_v45  ;;  %v8677_v57 = vsel %vm8494_vm8, %v8321_v39, %v8676_v16 }
 0x47e   : > { %v8666_v12 = vsel %vm8486_vm4, %v8273_v63, %v8665_v50  ;;  %v8285_v29 = vrot.slane %v7052_v21, %v16757_v45 }
 0x47f   : > { %v7055_v48 = vpop.xlane.xlu1 %7054  ;;  %v8663_v47 = vsel %vm8494_vm8, %v8257_v61, %v8662_v18 }
 0x480   : > { %v8289_v3 = vrot.slane %v7055_v48, %v16757_v45 }
 0x481   : > { %8754 = vxpose.xlu0.b32.cont [10/16] (narrow) %v15327_v22, 8  ;;  %8784 = vxpose.xlu1.b32.cont [8/16] (narrow) %v15510_v42, 8  ;;  %v15643_v59 = vpop.xlane.xlu0 %7153  ;;  %v8333_v22 = vrot.slane %v15537_v33, %v16757_v45  ;;  %v8667_v42 = vsel %vm8488_vm5, %v8277_v10, %v8666_v12 }
 0x482   : > { %v8668_v30 = vsel %vm8490_vm6, %v8281_v25, %v8667_v42 }
 0x483   : > { %v15657_v58 = vpop.xlane.xlu1 %7156  ;;  %v8669_v52 = vsel %vm8492_vm7, %v8285_v29, %v8668_v30  ;;  %v8679_v19 = vsel %vm8484_vm3, %v8333_v22, %v8678_v15 }
 0x484   : > { %v8670_v1 = vsel %vm8494_vm8, %v8289_v3, %v8669_v52  ;;  %v8425_v51 = vrot.slane %v15657_v58, %v16757_v45 }
 0x485   : > { %8755 = vxpose.xlu0.b32.cont [11/16] (narrow) %v15349_v43, 8  ;;  %8785 = vxpose.xlu1.b32.cont [9/16] (narrow) %v8663_v47, 8  ;;  %v7106_v33 = vpop.xlane.xlu0 %7105  ;;  %v8680_v43 = vsel %vm8486_vm4, %v8337_v8, %v8679_v19 }
 0x486   : > { %v8681_v34 = vsel %vm8488_vm5, %v8341_v60, %v8680_v43  ;;  %v8357_v40 = vrot.slane %v7106_v33, %v16757_v45  ;;  %v8421_v43 = vrot.slane %v15643_v59, %v16757_v45 }
 0x487   : > { %v15676_v5 = vpop.xlane.xlu1 %7165  ;;  %v8682_v41 = vsel %vm8490_vm6, %v8345_v36, %v8681_v34 }
 0x488   : > { %v8683_v27 = vsel %vm8492_vm7, %v8349_v24, %v8682_v41  ;;  %v8699_v59 = vsel %vm8482_vm2, %v8425_v51, %v8421_v43 }
 0x489   : > { %8756 = vxpose.xlu0.b32.cont [12/16] (narrow) %v15364_v54, 8  ;;  %8786 = vxpose.xlu1.b32.cont [10/16] (narrow) %v8670_v1, 8  ;;  %v15690_v28 = vpop.xlane.xlu0 %7159  ;;  %v8684_v63 = vsel %vm8494_vm8, %v8353_v23, %v8683_v27 }
 0x48a   : > { %v8429_v39 = vrot.slane %v15690_v28, %v16757_v45 }
 0x48b   : > { %v7109_v44 = vpop.xlane.xlu1 %7108 }
 0x48c   : > { %v8361_v12 = vrot.slane %v7109_v44, %v16757_v45  ;;  %v8700_v16 = vsel %vm8484_vm3, %v8429_v39, %v8699_v59 }
 0x48d   : > { %8757 = vxpose.xlu0.b32.cont [13/16] (narrow) %v15398_v38, 8  ;;  %8787 = vxpose.xlu1.b32.cont [11/16] (narrow) %v8677_v57, 8  ;;  %v15700_v54 = vpop.xlane.xlu0 %7177 }
 0x48e   : > { %v8685_v14 = vsel %vm8482_vm2, %v8361_v12, %v8357_v40  ;;  %v8453_v28 = vrot.slane %v15700_v54, %v16757_v45 }
 0x48f   : > { %v7118_v32 = vpop.xlane.xlu1 %7117 }
 0x490   : > { %v8373_v42 = vrot.slane %v7118_v32, %v16757_v45 }
 0x491   : > { %8758 = vxpose.xlu0.b32.cont [14/16] (narrow) %v15410_v31, 8  ;;  %8788 = vxpose.xlu1.b32.cont [12/16] (narrow) %v8684_v63, 8  ;;  %v7112_v46 = vpop.xlane.xlu0 %7111 }
 0x493   : > { %v7163_v21 = vpop.xlane.xlu1 %7162 }
 0x494   : > { %v8433_v26 = vrot.slane %v7163_v21, %v16757_v45 }
 0x495   : > { %8759 = vxpose.xlu0.b32.cont [15/16] (narrow) %v15437_v55, 8  ;;  %v7130_v20 = vpop.xlane.xlu0 %7129 }
 0x496   : > { %v8389_v18 = vrot.slane %v7130_v20, %v16757_v45  ;;  %v8701_v57 = vsel %vm8486_vm4, %v8433_v26, %v8700_v16 }
 0x497   : > { %v7181_v13 = vpop.xlane.xlu1 %7180 }
 0x498   : > { %v8457_v60 = vrot.slane %v7181_v13, %v16757_v45 }
 0x499   : > { %8760 = vxpose.xlu0.b32.end [16/16] (narrow) %v15452_v37, 8  ;;  %v15707_v38 = vpop.xlane.xlu0 %7183  ;;  %v8365_v37 = vrot.slane %v7112_v46, %v16757_v45 }
 0x49a   : > { %v8706_v27 = vsel %vm8482_vm2, %v8457_v60, %v8453_v28  ;;  %v8461_v32 = vrot.slane %v15707_v38, %v16757_v45 }
 0x49b   : > { %v15709_v9 = vpop.xlane.xlu1 %7189  ;;  %v8686_v7 = vsel %vm8484_vm3, %v8365_v37, %v8685_v14 }
 0x49d   : > { %v15711_v56 = vpop.xlane.xlu0 %7168 }
 0x49e   : > { %v8441_v54 = vrot.slane %v15711_v56, %v16757_v45  ;;  %v8707_v56 = vsel %vm8484_vm3, %v8461_v32, %v8706_v27 }
 0x49f   : > { %v7115_v35 = vpop.xlane.xlu1 %7114 }
 0x4a0   : > { %v8369_v10 = vrot.slane %v7115_v35, %v16757_v45  ;;  %v8437_v35 = vrot.slane %v15676_v5, %v16757_v45 }
 0x4a1   : > { %v15713_v2 = vpop.xlane.xlu0 %7171 }
 0x4a2   : > { %v8687_v17 = vsel %vm8486_vm4, %v8369_v10, %v8686_v7 }
 0x4a3   : > { %v7133_v11 = vpop.xlane.xlu1 %7132  ;;  %v8688_v49 = vsel %vm8488_vm5, %v8373_v42, %v8687_v17 }
 0x4a4   : > { %v8393_v6 = vrot.slane %v7133_v11, %v16757_v45  ;;  %v8445_v11 = vrot.slane %v15713_v2, %v16757_v45  ;;  %v8469_v2 = vrot.slane %v15709_v9, %v16757_v45  ;;  %v8810_v9 = vstv %s8809_s15 }
 0x4a5   : > { %v7136_v31 = vpop.xlane.xlu0 %7135 }
 0x4a6   : > { %v8397_v3 = vrot.slane %v7136_v31, %v16757_v45  ;;  %v8692_v47 = vsel %vm8482_vm2, %v8393_v6, %v8389_v18 }
 0x4a7   : > { %v7142_v50 = vpop.xlane.xlu1 %7141 }
 0x4a8   : > { %v8693_v36 = vsel %vm8484_vm3, %v8397_v3, %v8692_v47  ;;  %v8405_v34 = vrot.slane %v7142_v50, %v16757_v45  ;;  %v8702_v50 = vsel %vm8488_vm5, %v8437_v35, %v8701_v57 }
 0x4a9   : > { %v7121_v48 = vpop.xlane.xlu0 %7120 }
 0x4aa   : > { %v8377_v22 = vrot.slane %v7121_v48, %v16757_v45  ;;  %v8703_v48 = vsel %vm8490_vm6, %v8441_v54, %v8702_v50 }
 0x4ab   : > { %v15715_v61 = vpop.xlane.xlu1 %7186  ;;  %v8704_v12 = vsel %vm8492_vm7, %v8445_v11, %v8703_v48 }
 0x4ac   : > { %v8689_v15 = vsel %vm8490_vm6, %v8377_v22, %v8688_v49  ;;  %v8465_v21 = vrot.slane %v15715_v61, %v16757_v45 }
 0x4ad   : > { %v7124_v55 = vpop.xlane.xlu0 %7123 }
 0x4ae   : > { %v8381_v8 = vrot.slane %v7124_v55, %v16757_v45  ;;  %v8708_v61 = vsel %vm8486_vm4, %v8465_v21, %v8707_v56 }
 0x4af   : > { %v15719_v25 = vpop.xlane.xlu1 %7192  ;;  %v8709_v10 = vsel %vm8488_vm5, %v8469_v2, %v8708_v61 }
 0x4b0   : > { %v8690_v53 = vsel %vm8492_vm7, %v8381_v8, %v8689_v15  ;;  %v8473_v5 = vrot.slane %v15719_v25, %v16757_v45 }
 0x4b1   : > { %v15723_v29 = vpop.xlane.xlu0 %7174 }
 0x4b2   : > { %v8449_v38 = vrot.slane %v15723_v29, %v16757_v45  ;;  %v8710_v29 = vsel %vm8490_vm6, %v8473_v5, %v8709_v10 }
 0x4b3   : > { %v7139_v62 = vpop.xlane.xlu1 %7138 }
 0x4b4   : > { %v8401_v33 = vrot.slane %v7139_v62, %v16757_v45  ;;  %v8705_v40 = vsel %vm8494_vm8, %v8449_v38, %v8704_v12 }
 0x4b5   : > { %v7196_v30 = vpop.xlane.xlu0 %7195 }
 0x4b6   : > { %v8694_v24 = vsel %vm8486_vm4, %v8401_v33, %v8693_v36  ;;  %v8477_v55 = vrot.slane %v7196_v30, %v16757_v45 }
 0x4b7   : > { %v7127_v52 = vpop.xlane.xlu1 %7126  ;;  %v8695_v41 = vsel %vm8488_vm5, %v8405_v34, %v8694_v24 }
 0x4b8   : > { %v8385_v0 = vrot.slane %v7127_v52, %v16757_v45  ;;  %v8711_v14 = vsel %vm8492_vm7, %v8477_v55, %v8710_v29 }
 0x4b9   : > { %v7145_v19 = vpop.xlane.xlu0 %7144 }
 0x4ba   : > { %v8691_v1 = vsel %vm8494_vm8, %v8385_v0, %v8690_v53  ;;  %v8409_v58 = vrot.slane %v7145_v19, %v16757_v45 }
 0x4bb   : > { %v7199_v4 = vpop.xlane.xlu1 %7198  ;;  %8789 = vxpose.xlu1.b32.cont [13/16] (narrow) %v8691_v1, 8 }
 0x4bc   : > { %v8696_v63 = vsel %vm8490_vm6, %v8409_v58, %v8695_v41  ;;  %v8481_v37 = vrot.slane %v7199_v4, %v16757_v45 }
 0x4bd   : > { %v7148_v44 = vpop.xlane.xlu0 %7147 }
 0x4be   : > { %v8413_v23 = vrot.slane %v7148_v44, %v16757_v45  ;;  %v8712_v25 = vsel %vm8494_vm8, %v8481_v37, %v8711_v14 }
 0x4bf   : > { %v7151_v46 = vpop.xlane.xlu1 %7150 }
 0x4c0   : > { %v8417_v20 = vrot.slane %v7151_v46, %v16757_v45  ;;  %v8697_v13 = vsel %vm8492_vm7, %v8413_v23, %v8696_v63 }
 0x4c2   : > { %v8698_v31 = vsel %vm8494_vm8, %v8417_v20, %v8697_v13 }
 0x4c3   : > { %8790 = vxpose.xlu1.b32.cont [14/16] (narrow) %v8698_v31, 8 }
 0x4c7   : > { %8791 = vxpose.xlu1.b32.cont [15/16] (narrow) %v8705_v40, 8 }
 0x4cb   : > { %8792 = vxpose.xlu1.b32.end [16/16] (narrow) %v8712_v25, 8 }
 0x4dd   : > { %v8761_v7 = vpop.trf.xlu0 }
 0x4de   : > { %v8811_v6 = vadd.f32 %v8810_v9, %v8761_v7 }
 0x4e0   : > { %v8813_v62 = vrot.slane %v8811_v6, 4 }
 0x4e2   : > { %v8814_v17 = vmax.f32 %v8811_v6, %v8813_v62 }
 0x4e4   : > { %v8815_v45 = vrot.slane %v8814_v17, 2 }
 0x4e6   : > { %v8816_v22 = vmax.f32 %v8814_v17, %v8815_v45 }
 0x4e8   : > { %v8817_v42 = vrot.slane %v8816_v22, 1 }
 0x4ea   : > { %v8818_v18 = vmax.f32 %v8816_v22, %v8817_v42 }
 0x4ec   : > { %v8825_v8 = vsub.f32 %v8811_v6, %v8818_v18 }
 0x4ee   : > { %v8827_v30 = vmul.f32 1.442695, %v8825_v8 }
 0x4f0   : > { %9874 = vpow2.f32 %v8827_v30 }
 0x4fa   : > { %v9875_v3 = vpop.eup %9874 }
 0x4fb   : > { %v8831_v47 = vrot.slane %v9875_v3, 4 }
 0x4fd   : > { %v8832_v49 = vadd.f32 %v9875_v3, %v8831_v47 }
 0x4ff   : > { %v8833_v33 = vrot.slane %v8832_v49, 2 }
 0x501   : > { %v8834_v52 = vadd.f32 %v8833_v33, %v8832_v49 }
 0x503   : > { %v8835_v15 = vrot.slane %v8834_v52, 1 }
 0x505   : > { %v8836_v0 = vadd.f32 %v8835_v15, %v8834_v52 }
 0x507   : > { %9876 = vrcp.f32 %v8836_v0 }
 0x50f   : > { %v8793_v51 = vpop.trf.xlu1 }
 0x510   : > { %v8812_v19 = vadd.f32 %v8810_v9, %v8793_v51 }
 0x511   : > { %v9877_v53 = vpop.eup %9876 }
 0x512   : > { %v8819_v43 = vrot.slane %v8812_v19, 4  ;;  %v8844_v39 = vmul.f32 %v9877_v53, %v9875_v3 }
 0x514   : > { %v8820_v36 = vmax.f32 %v8812_v19, %v8819_v43  ;;  %8847 = vst [vmem:[%s262_s18] sm:$0xff] %v8844_v39 }
 0x516   : > { %v8821_v1 = vrot.slane %v8820_v36, 2 }
 0x518   : > { %v8822_v26 = vmax.f32 %v8820_v36, %v8821_v1 }
 0x51a   : > { %v8823_v60 = vrot.slane %v8822_v26, 1 }
 0x51c   : > { %v8824_v24 = vmax.f32 %v8822_v26, %v8823_v60 }
 0x51e   : > { %v8826_v58 = vsub.f32 %v8812_v19, %v8824_v24 }
 0x520   : > { %v8829_v4 = vmul.f32 1.442695, %v8826_v58 }
 0x522   : > { %9878 = vpow2.f32 %v8829_v4 }
 0x52c   : > { %v9879_v34 = vpop.eup %9878 }
 0x52d   : > { %v8837_v59 = vrot.slane %v9879_v34, 4 }
 0x52f   : > { %v8838_v28 = vadd.f32 %v9879_v34, %v8837_v59 }
 0x531   : > { %v8839_v44 = vrot.slane %v8838_v28, 2 }
 0x533   : > { %v8840_v16 = vadd.f32 %v8839_v44, %v8838_v28 }
 0x535   : > { %v8841_v41 = vrot.slane %v8840_v16, 1 }
 0x537   : > { %v8842_v23 = vadd.f32 %v8841_v41, %v8840_v16 }
 0x539   : > { %9880 = vrcp.f32 %v8842_v23 }
 0x543   : > { %v9881_v57 = vpop.eup %9880 }
 0x544   : > { %v8846_v27 = vmul.f32 %v9881_v57, %v9879_v34 }
 0x546   : > { %8848 = vst [vmem:[%s262_s18 + $0x8] sm:$0xff] %v8846_v27 }
 0x547   : > { %9902 = shalt.err (!%p9899_p4)
}
 0x548   : > { %s9903_s12 = scalar_lea.hbm %s15800_s22, 256  ;;  %s9907_s14 = scalar_lea.hbm %s15850_s6, 512 }
 0x549   : > { %p9904_p7 = scmp.ne.s32.totalorder %s15800_s22, %s9903_s12  ;;  %p9908_p10 = scmp.lt.u32.totalorder %s15800_s22, %s15850_s6 }
 0x54a   : > { %p9909_p11 = scmp.lt.u32.totalorder %s9907_s14, %s9903_s12  ;;  %p9911_p13 = scmp.lt.u32.totalorder %s9903_s12, %s15800_s22 }
 0x54b   : > { %p9905_p8 = pnand %p9904_p7, %p10031_p5 }
 0x54c   : > { %p9910_p12 = por %p9909_p11, %p9908_p10 }
 0x54d   : > { %p9906_p9 = pneg %p9905_p8 }
 0x54e   : > { %p9912_p0 = por %p9911_p13, %p9910_p12 }
 0x550   : > { %p9913_p1 = pnand %p9912_p0, %p9906_p9 }
 0x552   : > { %9916 = shalt.err (!%p9913_p1)
}
 0x553   : > { %9687 = dma.vmem_to_hbm [thread:$0]  (%p10031_p5), %s15802_s19, 256, %s15800_s22, %s8850_s27  }
 0x554 PF: > { %p9693_p2 = scmp.ge.s32.totalorder %s9951_s26, 2  ;;  %s8876_s17 = sand.u32 1, %s9939_s23  }
 0x555   : > { %s8877_s18 = scalar_lea.sflag [#allocation4], %s8876_s17 }
 0x556   : > { %p9690_p3 = pnand %p9693_p2, %p10035_p6 }
 0x558   : > { %9934 = dma.done.wait (!%p9690_p3), %s8877_s18, 256  }
 0x559   : > { %9936 = vsyncadd (!%p9690_p3), %s8877_s18, 4294967040  ;;  %p17_p4 = scmp.ge.s32.totalorder %s10018_s28, 4   ;;  %s17334_s23 = smov %s9943_s24 }
 0x55a   : > { %s17335_s24 = smov %s9947_s25  ;;  %s17336_s25 = smov %s10029_s7 }
 0x55b   : > { %s17337_s26 = smov %s10018_s28  ;;  %19 = sbr.rel (!%p17_p4) target bundleno = 5 (0x5), region = 82 }
 0x562   :  { %8882 = vsyncpa [#allocation4], 1 }
 0x563   :  { %8884 = vsyncpa [#allocation4 + $0x1], 1 }

</bundles_post_ra>
